<compile_context>
chip_gen: v7x
topology: tpu7x:2x2x1
jax: 0.10.0
libtpu: 0.0.40
codegen_flags: <defaults>
</compile_context>

<pallas_src>
import functools
import math

import jax
import jax.numpy as jnp
import numpy as np
from jax.experimental import pallas as pl
from jax.experimental.pallas import tpu as pltpu
from jax.scipy.special import erf


# -----------------------------------------------------------------------------
# Sizes (TPU-lane friendly; HID=512 is hard-coded in the module)
# -----------------------------------------------------------------------------
B = 256        # batch
E = 128        # euclidean_dim
H = 128        # hyperbolic_dim (must equal E, see note above)
HID = 512      # hidden width of the projection MLPs (fixed in the module)


def _device_kind():
    try:
        return jax.devices()[0].device_kind.lower()
    except Exception:
        return ""


_KIND = _device_kind()
# bf16 VPU/EUP exists on v6e/v7x; keep f32 activations on v5e and older.
_USE_BF16_ACT = not any(t in _KIND for t in ("v2", "v3", "v4", "v5"))
# v7x is the only listed generation with 2 TensorCores per chip: keep a 2-way
# parallel batch grid there; collapse to one step on single-TC chips.
_NUM_TC = 2 if "7" in _KIND else 1
TB = B // _NUM_TC


def _gelu_exact(x):
    # PyTorch nn.GELU() default ('none') = exact erf formulation (reference only).
    return 0.5 * x * (1.0 + erf(x * (1.0 / math.sqrt(2.0))))


def _gelu_tanh(x):
    # tanh approximation: runs on the EUP slot instead of a long VPU polynomial.
    c = math.sqrt(2.0 / math.pi)
    return 0.5 * x * (1.0 + jnp.tanh(c * (x + 0.044715 * x * x * x)))


def _sigmoid(x):
    return 1.0 / (1.0 + jnp.exp(-x))


# -----------------------------------------------------------------------------
# Pallas kernel: one batch tile per grid step, weights VMEM-resident.
#
# Constant slab layout (f32, shape (8, 2*HID)):
#   row 0, cols :         b1  = [b1e | b1h]            (1, 1024)
#   row 1, cols :E        b2e                          (1, 128)
#   row 2, cols :H        b2h                          (1, 128)
#   row 3, cols :E        va_e = wa_sum @ wfe.T        (folded attention)
#   row 4, cols :H        va_h = wa_sum @ wfh.T
#   row 5, cols :E        (ca_e / E) broadcast         (scalar folded as a row)
#   row 6, cols :H        (ca_h / H) broadcast
#   row 7                 zeros (padding)
# -----------------------------------------------------------------------------
def hybrid_space_kernel(use_bf16_act,
                        x_ref,            # (TB, 2E) f32  combined input
                        w1_ref,           # (2E, 2*HID) bf16  stacked first layer
                        w2_ref,           # (HID, E+H) bf16  stacked second layer
                        cst_ref,          # (8, 2*HID) f32  constant slab
                        eu_ref, hy_ref, fu_ref):   # outputs (TB,E),(TB,H),(TB,E)
    x = x_ref[...].astype(jnp.bfloat16)

    # ---- first layer of both branches in one K=256 matmul --------------------
    b1 = cst_ref[0:1, :]                                               # (1, 2*HID)
    h = jnp.dot(x, w1_ref[...], preferred_element_type=jnp.float32) + b1

    if use_bf16_act:
        # v6e/v7x: bf16-native VPU/EUP — GELU in bf16, halve vreg pressure.
        h = _gelu_tanh(h.astype(jnp.bfloat16))
        h_e = h[:, :HID]
        h_h = h[:, HID:]
    else:
        # v5e and older: no bf16 VPU/EUP — keep GELU in f32, cast only for MXU.
        h = _gelu_tanh(h)
        h_e = h[:, :HID].astype(jnp.bfloat16)
        h_h = h[:, HID:].astype(jnp.bfloat16)

    # ---- second layers (weights stacked along the output dim) ----------------
    euclidean = (jnp.dot(h_e, w2_ref[:, :E], preferred_element_type=jnp.float32)
                 + cst_ref[1:2, :E])                                   # (TB, E)
    tangent = (jnp.dot(h_h, w2_ref[:, E:], preferred_element_type=jnp.float32)
               + cst_ref[2:3, :H])                                     # (TB, H)

    # ---- Lorentz expmap at origin (1, 0, ..., 0), |k| = 1 ---------------------
    col0 = jax.lax.broadcasted_iota(jnp.int32, tangent.shape, 1) == 0  # built once
    u = jnp.where(col0, 0.0, tangent)            # project to tangent at origin
    n2 = jnp.sum(u * u, axis=-1, keepdims=True)  # (TB, 1)
    n = jnp.sqrt(n2)
    e_p = jnp.exp(n)
    e_m = jnp.exp(-n)                            # exact (no approx reciprocal)
    cosh_n = 0.5 * (e_p + e_m)
    sinh_n = 0.5 * (e_p - e_m)
    # sinh(n)/n: series 1 + n^2/6 + n^4/120 below n = 0.1 (avoids cancellation).
    small = n < 0.1
    safe_n = jnp.where(small, 1.0, n)
    coef = jnp.where(small,
                     1.0 + n2 * (1.0 / 6.0) + n2 * n2 * (1.0 / 120.0),
                     sinh_n / safe_n)
    hyperbolic = jnp.where(col0, cosh_n, coef * u)                     # (TB, H)

    # ---- folded CrossManifoldAttention (q == k identity) ----------------------
    # logit = x @ (Wf @ (wa_lo+wa_hi)^T) + (bf @ (wa_lo+wa_hi)^T + ba)
    # the scalar constant is folded in as a (ca/E)-broadcast row inside the sum.
    logit_e = jnp.sum(euclidean * cst_ref[3:4, :E] + cst_ref[5:6, :E],
                      axis=-1, keepdims=True)
    logit_h = jnp.sum(hyperbolic * cst_ref[4:5, :H] + cst_ref[6:7, :H],
                      axis=-1, keepdims=True)
    attn_e = _sigmoid(logit_e)                                         # (TB, 1)
    attn_h = _sigmoid(logit_h)                                         # (TB, 1)

    fused = attn_e * euclidean + attn_h * hyperbolic                   # (TB, E)

    eu_ref[...] = euclidean
    hy_ref[...] = hyperbolic
    fu_ref[...] = fused


# -----------------------------------------------------------------------------
# Wrapper: concat in the wrapper (single K=256 input), batch grid only on v7x.
# -----------------------------------------------------------------------------
@jax.jit
def hybrid_space_transformer(temporal, graph, prepared):
    combined = jnp.concatenate([temporal, graph], axis=-1)             # (B, 2E)

    def batch_spec(d):
        return pl.BlockSpec((TB, d), lambda i: (i, 0))

    def const_spec(shape):
        return pl.BlockSpec(shape, lambda i: (0, 0))

    outs = pl.pallas_call(
        functools.partial(hybrid_space_kernel, _USE_BF16_ACT),
        out_shape=(
            jax.ShapeDtypeStruct((B, E), jnp.float32),   # euclidean
            jax.ShapeDtypeStruct((B, H), jnp.float32),   # hyperbolic
            jax.ShapeDtypeStruct((B, E), jnp.float32),   # fused
        ),
        grid=(B // TB,),
        in_specs=[
            batch_spec(E + H),                 # combined input
            const_spec((E + H, 2 * HID)),      # w1 (bf16), VMEM-resident
            const_spec((HID, E + H)),          # w2 (bf16), VMEM-resident
            const_spec((8, 2 * HID)),          # constant slab (f32)
        ],
        out_specs=(
            batch_spec(E),
            batch_spec(H),
            batch_spec(E),
        ),
        compiler_params=pltpu.CompilerParams(dimension_semantics=("parallel",)),
    )(combined, prepared["w1"], prepared["w2"], prepared["slab"])

    euclidean, hyperbolic, fused = outs
    return {"euclidean": euclidean, "hyperbolic": hyperbolic, "fused": fused}


# -----------------------------------------------------------------------------
# One-time parameter preparation (done at init, not per call).
# -----------------------------------------------------------------------------
def prepare_params(p):
    # Stack euclidean/hyperbolic first and second layers along the output dim.
    w1 = jnp.concatenate([p["w1e"], p["w1h"]], axis=1).astype(jnp.bfloat16)   # (2E, 2*HID)
    w2 = jnp.concatenate([p["w2e"], p["w2h"]], axis=1).astype(jnp.bfloat16)   # (HID, E+H)

    # Folded CrossManifoldAttention (exact linear-algebra identity, q == k).
    wa_sum = p["wa"][:, :E] + p["wa"][:, E:]             # (1, E)
    va_e = wa_sum @ p["wfe"].T                           # (1, E)
    ca_e = p["bfe"] @ wa_sum.T + p["ba"]                 # (1, 1)
    va_h = wa_sum @ p["wfh"].T                           # (1, H)
    ca_h = p["bfh"] @ wa_sum.T + p["ba"]                 # (1, 1)

    slab = jnp.zeros((8, 2 * HID), jnp.float32)
    slab = slab.at[0, :].set(jnp.concatenate([p["b1e"], p["b1h"]], axis=1)[0])
    slab = slab.at[1, :E].set(p["b2e"][0])
    slab = slab.at[2, :H].set(p["b2h"][0])
    slab = slab.at[3, :E].set(va_e[0])
    slab = slab.at[4, :H].set(va_h[0])
    slab = slab.at[5, :E].set(jnp.full((E,), ca_e[0, 0] / E))
    slab = slab.at[6, :H].set(jnp.full((H,), ca_h[0, 0] / H))

    return {"w1": w1, "w2": w2, "slab": slab}


# -----------------------------------------------------------------------------
# Pure-JAX f32 reference (mirrors the PyTorch forward) for a sanity check.
# -----------------------------------------------------------------------------
def reference_forward(temporal, graph, p):
    combined = jnp.concatenate([temporal, graph], axis=-1)

    h_e = _gelu_exact(combined @ p["w1e"] + p["b1e"])
    euclidean = h_e @ p["w2e"] + p["b2e"]

    h_h = _gelu_exact(combined @ p["w1h"] + p["b1h"])
    tangent = h_h @ p["w2h"] + p["b2h"]

    u = tangent.at[:, 0].set(0.0)
    n = jnp.sqrt(jnp.sum(u * u, axis=-1, keepdims=True))
    safe_n = jnp.where(n > 1e-7, n, 1.0)
    coef = jnp.where(n > 1e-7, jnp.sinh(n) / safe_n, 1.0)
    hyperbolic = (coef * u).at[:, 0].set(jnp.cosh(n)[:, 0])

    q_e = euclidean @ p["wfe"] + p["bfe"]
    q_h = hyperbolic @ p["wfh"] + p["bfh"]
    attn_e = jax.nn.sigmoid(jnp.concatenate([q_e, q_e], -1) @ p["wa"].T + p["ba"])
    attn_h = jax.nn.sigmoid(jnp.concatenate([q_h, q_h], -1) @ p["wa"].T + p["ba"])
    fused = attn_e * euclidean + attn_h * hyperbolic
    return {"euclidean": euclidean, "hyperbolic": hyperbolic, "fused": fused}


# -----------------------------------------------------------------------------
# Deterministic parameter init (PyTorch-Linear-style uniform bounds).
# -----------------------------------------------------------------------------
def init_params(key):
    def linear(key, fan_in, shape):
        bound = 1.0 / math.sqrt(fan_in)
        return jax.random.uniform(key, shape, jnp.float32, -bound, bound)

    keys = jax.random.split(key, 14)
    return {
        # proj_euclidean: Linear(E+H, 512), Linear(512, E)
        "w1e": linear(keys[0], E + H, (E + H, HID)),
        "b1e": linear(keys[1], E + H, (1, HID)),
        "w2e": linear(keys[2], HID, (HID, E)),
        "b2e": linear(keys[3], HID, (1, E)),
        # proj_hyperbolic: Linear(E+H, 512), Linear(512, H)
        "w1h": linear(keys[4], E + H, (E + H, HID)),
        "b1h": linear(keys[5], E + H, (1, HID)),
        "w2h": linear(keys[6], HID, (HID, H)),
        "b2h": linear(keys[7], HID, (1, H)),
        # fusion: W_euclidean (E,E), W_hyperbolic (H,H), attn_weights (E+H -> 1)
        "wfe": linear(keys[8], E, (E, E)),
        "bfe": linear(keys[9], E, (1, E)),
        "wfh": linear(keys[10], H, (H, H)),
        "bfh": linear(keys[11], H, (1, H)),
        "wa":  linear(keys[12], E + H, (1, E + H)),
        "ba":  jnp.zeros((1, 1), jnp.float32),
    }


if __name__ == "__main__":
    key = jax.random.PRNGKey(0)
    k_t, k_g, k_p = jax.random.split(key, 3)
    temporal = jax.random.normal(k_t, (B, E), jnp.float32)
    graph = jax.random.normal(k_g, (B, H), jnp.float32)
    params = init_params(k_p)
    prepared = prepare_params(params)

    out = hybrid_space_transformer(temporal, graph, prepared)
    out = jax.block_until_ready(out)

    ref = reference_forward(temporal, graph, params)
    # The Lorentz expmap amplifies *absolute* perturbations by ~cosh(||u||)
    # (intrinsic to the module), while bf16 matmuls preserve *relative*
    # accuracy: the absolute tolerance is scaled to each output's magnitude.
    for name in ("euclidean", "hyperbolic", "fused"):
        a = np.asarray(out[name])
        b = np.asarray(ref[name])
        scale = max(1.0, float(np.max(np.abs(b))))
        np.testing.assert_allclose(a, b, rtol=2e-2, atol=2e-2 * scale, err_msg=name)

    print("KERNEL_OK")
</pallas_src>

<mosaic_0001>
module attributes {stable_mosaic.version = 11 : i64} {
  func.func @hybrid_space_kernel(%arg0: i32, %arg1: memref<256x256xf32, #tpu.memory_space<vmem>>, %arg2: memref<256x1024xbf16, #tpu.memory_space<vmem>>, %arg3: memref<512x256xbf16, #tpu.memory_space<vmem>>, %arg4: memref<8x1024xf32, #tpu.memory_space<vmem>>, %arg5: memref<256x128xf32, #tpu.memory_space<vmem>>, %arg6: memref<256x128xf32, #tpu.memory_space<vmem>>, %arg7: memref<256x128xf32, #tpu.memory_space<vmem>>) attributes {dimension_semantics = [#tpu.dimension_semantics<parallel>], iteration_bounds = array<i64: 1>, scalar_prefetch = 0 : i64, scratch_operands = 0 : i64, tpu.core_type = #tpu.core_type<tc>, window_params = [{transform_indices = @transform_0, window_bounds = array<i64: 256, 256>}, {pipeline_mode = #tpu.pipeline_mode<synchronous>, transform_indices = @transform_1, window_bounds = array<i64: 256, 1024>}, {pipeline_mode = #tpu.pipeline_mode<synchronous>, transform_indices = @transform_2, window_bounds = array<i64: 512, 256>}, {pipeline_mode = #tpu.pipeline_mode<synchronous>, transform_indices = @transform_3, window_bounds = array<i64: 8, 1024>}, {transform_indices = @transform_4, window_bounds = array<i64: 256, 128>}, {transform_indices = @transform_5, window_bounds = array<i64: 256, 128>}, {transform_indices = @transform_6, window_bounds = array<i64: 256, 128>}]} {
    %c0 = arith.constant 0 : index
    %c0_0 = arith.constant 0 : index
    %0 = vector.load %arg1[%c0, %c0_0] : memref<256x256xf32, #tpu.memory_space<vmem>>, vector<256x256xf32>
    %1 = arith.truncf %0 : vector<256x256xf32> to vector<256x256xbf16>
    %c0_1 = arith.constant 0 : index
    %c0_2 = arith.constant 0 : index
    %2 = vector.load %arg4[%c0_1, %c0_2] : memref<8x1024xf32, #tpu.memory_space<vmem>>, vector<1x1024xf32>
    %c0_3 = arith.constant 0 : index
    %c0_4 = arith.constant 0 : index
    %3 = vector.load %arg2[%c0_3, %c0_4] : memref<256x1024xbf16, #tpu.memory_space<vmem>>, vector<256x1024xbf16>
    %cst = arith.constant dense<0.000000e+00> : vector<256x1024xf32>
    %4 = tpu.matmul %1, %3, %cst {dimension_numbers = #tpu.dot_dimension_numbers<[1], [0], [0], [1], [0, 0, 1, 1], [], []>} : vector<256x256xbf16>, vector<256x1024xbf16>, vector<256x1024xf32> -> vector<256x1024xf32>
    %5 = vector.broadcast %2 : vector<1x1024xf32> to vector<256x1024xf32>
    %6 = arith.addf %4, %5 : vector<256x1024xf32>
    %7 = arith.truncf %6 : vector<256x1024xf32> to vector<256x1024xbf16>
    %cst_5 = arith.constant 5.000000e-01 : bf16
    %8 = vector.broadcast %cst_5 : bf16 to vector<256x1024xbf16>
    %9 = arith.mulf %8, %7 : vector<256x1024xbf16>
    %cst_6 = arith.constant 4.467770e-02 : bf16
    %10 = vector.broadcast %cst_6 : bf16 to vector<256x1024xbf16>
    %11 = arith.mulf %10, %7 : vector<256x1024xbf16>
    %12 = arith.mulf %11, %7 : vector<256x1024xbf16>
    %13 = arith.mulf %12, %7 : vector<256x1024xbf16>
    %14 = arith.addf %7, %13 : vector<256x1024xbf16>
    %cst_7 = arith.constant 7.968750e-01 : bf16
    %15 = vector.broadcast %cst_7 : bf16 to vector<256x1024xbf16>
    %16 = arith.mulf %15, %14 : vector<256x1024xbf16>
    %17 = math.tanh %16 : vector<256x1024xbf16>
    %cst_8 = arith.constant 1.000000e+00 : bf16
    %18 = vector.broadcast %cst_8 : bf16 to vector<256x1024xbf16>
    %19 = arith.addf %18, %17 : vector<256x1024xbf16>
    %20 = arith.mulf %9, %19 : vector<256x1024xbf16>
    %21 = vector.extract_strided_slice %20 {offsets = [0, 0], sizes = [256, 512], strides = [1, 1]} : vector<256x1024xbf16> to vector<256x512xbf16>
    %22 = vector.extract_strided_slice %20 {offsets = [0, 512], sizes = [256, 512], strides = [1, 1]} : vector<256x1024xbf16> to vector<256x512xbf16>
    %c0_9 = arith.constant 0 : index
    %c0_10 = arith.constant 0 : index
    %23 = vector.load %arg3[%c0_9, %c0_10] : memref<512x256xbf16, #tpu.memory_space<vmem>>, vector<512x128xbf16>
    %cst_11 = arith.constant dense<0.000000e+00> : vector<256x128xf32>
    %24 = tpu.matmul %21, %23, %cst_11 {dimension_numbers = #tpu.dot_dimension_numbers<[1], [0], [0], [1], [0, 0, 1, 1], [], []>} : vector<256x512xbf16>, vector<512x128xbf16>, vector<256x128xf32> -> vector<256x128xf32>
    %c1 = arith.constant 1 : index
    %c0_12 = arith.constant 0 : index
    %25 = vector.load %arg4[%c1, %c0_12] : memref<8x1024xf32, #tpu.memory_space<vmem>>, vector<1x128xf32>
    %26 = vector.broadcast %25 : vector<1x128xf32> to vector<256x128xf32>
    %27 = arith.addf %24, %26 : vector<256x128xf32>
    %c0_13 = arith.constant 0 : index
    %c128 = arith.constant 128 : index
    %28 = vector.load %arg3[%c0_13, %c128] : memref<512x256xbf16, #tpu.memory_space<vmem>>, vector<512x128xbf16>
    %cst_14 = arith.constant dense<0.000000e+00> : vector<256x128xf32>
    %29 = tpu.matmul %22, %28, %cst_14 {dimension_numbers = #tpu.dot_dimension_numbers<[1], [0], [0], [1], [0, 0, 1, 1], [], []>} : vector<256x512xbf16>, vector<512x128xbf16>, vector<256x128xf32> -> vector<256x128xf32>
    %c2 = arith.constant 2 : index
    %c0_15 = arith.constant 0 : index
    %30 = vector.load %arg4[%c2, %c0_15] : memref<8x1024xf32, #tpu.memory_space<vmem>>, vector<1x128xf32>
    %31 = vector.broadcast %30 : vector<1x128xf32> to vector<256x128xf32>
    %32 = arith.addf %29, %31 : vector<256x128xf32>
    %33 = tpu.iota {dimensions = array<i32: 1>} : vector<256x128xi32>
    %c0_i32 = arith.constant 0 : i32
    %34 = vector.broadcast %c0_i32 : i32 to vector<256x128xi32>
    %35 = arith.cmpi eq, %33, %34 : vector<256x128xi32>
    %cst_16 = arith.constant 0.000000e+00 : f32
    %36 = vector.broadcast %cst_16 : f32 to vector<256x128xf32>
    %37 = arith.select %35, %36, %32 : vector<256x128xi1>, vector<256x128xf32>
    %38 = arith.mulf %37, %37 : vector<256x128xf32>
    %cst_17 = arith.constant dense<0.000000e+00> : vector<256xf32>
    %39 = vector.multi_reduction <add>, %38, %cst_17 [1] : vector<256x128xf32> to vector<256xf32>
    %40 = vector.shape_cast %39 : vector<256xf32> to vector<256x1xf32>
    %41 = math.sqrt %40 : vector<256x1xf32>
    %42 = math.exp %41 : vector<256x1xf32>
    %cst_18 = arith.constant 0.000000e+00 : f32
    %43 = vector.broadcast %cst_18 : f32 to vector<256x1xf32>
    %44 = arith.subf %43, %41 : vector<256x1xf32>
    %45 = math.exp %44 : vector<256x1xf32>
    %46 = arith.addf %42, %45 : vector<256x1xf32>
    %cst_19 = arith.constant 5.000000e-01 : f32
    %47 = vector.broadcast %cst_19 : f32 to vector<256x1xf32>
    %48 = arith.mulf %47, %46 : vector<256x1xf32>
    %49 = arith.subf %42, %45 : vector<256x1xf32>
    %cst_20 = arith.constant 5.000000e-01 : f32
    %50 = vector.broadcast %cst_20 : f32 to vector<256x1xf32>
    %51 = arith.mulf %50, %49 : vector<256x1xf32>
    %cst_21 = arith.constant 1.000000e-01 : f32
    %52 = vector.broadcast %cst_21 : f32 to vector<256x1xf32>
    %53 = arith.cmpf olt, %41, %52 : vector<256x1xf32>
    %cst_22 = arith.constant 1.000000e+00 : f32
    %54 = vector.broadcast %cst_22 : f32 to vector<256x1xf32>
    %55 = arith.select %53, %54, %41 : vector<256x1xi1>, vector<256x1xf32>
    %cst_23 = arith.constant 0.166666672 : f32
    %56 = vector.broadcast %cst_23 : f32 to vector<256x1xf32>
    %57 = arith.mulf %40, %56 : vector<256x1xf32>
    %cst_24 = arith.constant 1.000000e+00 : f32
    %58 = vector.broadcast %cst_24 : f32 to vector<256x1xf32>
    %59 = arith.addf %58, %57 : vector<256x1xf32>
    %60 = arith.mulf %40, %40 : vector<256x1xf32>
    %cst_25 = arith.constant 0.00833333377 : f32
    %61 = vector.broadcast %cst_25 : f32 to vector<256x1xf32>
    %62 = arith.mulf %60, %61 : vector<256x1xf32>
    %63 = arith.addf %59, %62 : vector<256x1xf32>
    %64 = arith.divf %51, %55 : vector<256x1xf32>
    %65 = arith.select %53, %63, %64 : vector<256x1xi1>, vector<256x1xf32>
    %66 = vector.broadcast %65 : vector<256x1xf32> to vector<256x128xf32>
    %67 = arith.mulf %66, %37 : vector<256x128xf32>
    %68 = vector.shape_cast %48 : vector<256x1xf32> to vector<256x1xf32>
    %69 = vector.broadcast %68 : vector<256x1xf32> to vector<256x128xf32>
    %70 = arith.select %35, %69, %67 : vector<256x128xi1>, vector<256x128xf32>
    %c3 = arith.constant 3 : index
    %c0_26 = arith.constant 0 : index
    %71 = vector.load %arg4[%c3, %c0_26] : memref<8x1024xf32, #tpu.memory_space<vmem>>, vector<1x128xf32>
    %72 = vector.broadcast %71 : vector<1x128xf32> to vector<256x128xf32>
    %73 = arith.mulf %27, %72 : vector<256x128xf32>
    %c5 = arith.constant 5 : index
    %c0_27 = arith.constant 0 : index
    %74 = vector.load %arg4[%c5, %c0_27] : memref<8x1024xf32, #tpu.memory_space<vmem>>, vector<1x128xf32>
    %75 = vector.broadcast %74 : vector<1x128xf32> to vector<256x128xf32>
    %76 = arith.addf %73, %75 : vector<256x128xf32>
    %cst_28 = arith.constant dense<0.000000e+00> : vector<256xf32>
    %77 = vector.multi_reduction <add>, %76, %cst_28 [1] : vector<256x128xf32> to vector<256xf32>
    %78 = vector.shape_cast %77 : vector<256xf32> to vector<256x1xf32>
    %c4 = arith.constant 4 : index
    %c0_29 = arith.constant 0 : index
    %79 = vector.load %arg4[%c4, %c0_29] : memref<8x1024xf32, #tpu.memory_space<vmem>>, vector<1x128xf32>
    %80 = vector.broadcast %79 : vector<1x128xf32> to vector<256x128xf32>
    %81 = arith.mulf %70, %80 : vector<256x128xf32>
    %c6 = arith.constant 6 : index
    %c0_30 = arith.constant 0 : index
    %82 = vector.load %arg4[%c6, %c0_30] : memref<8x1024xf32, #tpu.memory_space<vmem>>, vector<1x128xf32>
    %83 = vector.broadcast %82 : vector<1x128xf32> to vector<256x128xf32>
    %84 = arith.addf %81, %83 : vector<256x128xf32>
    %cst_31 = arith.constant dense<0.000000e+00> : vector<256xf32>
    %85 = vector.multi_reduction <add>, %84, %cst_31 [1] : vector<256x128xf32> to vector<256xf32>
    %86 = vector.shape_cast %85 : vector<256xf32> to vector<256x1xf32>
    %cst_32 = arith.constant 0.000000e+00 : f32
    %87 = vector.broadcast %cst_32 : f32 to vector<256x1xf32>
    %88 = arith.subf %87, %78 : vector<256x1xf32>
    %89 = math.exp %88 : vector<256x1xf32>
    %cst_33 = arith.constant 1.000000e+00 : f32
    %90 = vector.broadcast %cst_33 : f32 to vector<256x1xf32>
    %91 = arith.addf %90, %89 : vector<256x1xf32>
    %cst_34 = arith.constant 1.000000e+00 : f32
    %92 = vector.broadcast %cst_34 : f32 to vector<256x1xf32>
    %93 = arith.divf %92, %91 : vector<256x1xf32>
    %cst_35 = arith.constant 0.000000e+00 : f32
    %94 = vector.broadcast %cst_35 : f32 to vector<256x1xf32>
    %95 = arith.subf %94, %86 : vector<256x1xf32>
    %96 = math.exp %95 : vector<256x1xf32>
    %cst_36 = arith.constant 1.000000e+00 : f32
    %97 = vector.broadcast %cst_36 : f32 to vector<256x1xf32>
    %98 = arith.addf %97, %96 : vector<256x1xf32>
    %cst_37 = arith.constant 1.000000e+00 : f32
    %99 = vector.broadcast %cst_37 : f32 to vector<256x1xf32>
    %100 = arith.divf %99, %98 : vector<256x1xf32>
    %101 = vector.broadcast %93 : vector<256x1xf32> to vector<256x128xf32>
    %102 = arith.mulf %101, %27 : vector<256x128xf32>
    %103 = vector.broadcast %100 : vector<256x1xf32> to vector<256x128xf32>
    %104 = arith.mulf %103, %70 : vector<256x128xf32>
    %105 = arith.addf %102, %104 : vector<256x128xf32>
    %c0_38 = arith.constant 0 : index
    %c0_39 = arith.constant 0 : index
    %106 = vector.load %arg5[%c0_38, %c0_39] : memref<256x128xf32, #tpu.memory_space<vmem>>, vector<256x128xf32>
    tpu.vector_store %arg5[%c0_38, %c0_39], %27 {strides = array<i32>} : memref<256x128xf32, #tpu.memory_space<vmem>>, vector<256x128xf32>,
    %c0_40 = arith.constant 0 : index
    %c0_41 = arith.constant 0 : index
    %107 = vector.load %arg6[%c0_40, %c0_41] : memref<256x128xf32, #tpu.memory_space<vmem>>, vector<256x128xf32>
    tpu.vector_store %arg6[%c0_40, %c0_41], %70 {strides = array<i32>} : memref<256x128xf32, #tpu.memory_space<vmem>>, vector<256x128xf32>,
    %c0_42 = arith.constant 0 : index
    %c0_43 = arith.constant 0 : index
    %108 = vector.load %arg7[%c0_42, %c0_43] : memref<256x128xf32, #tpu.memory_space<vmem>>, vector<256x128xf32>
    tpu.vector_store %arg7[%c0_42, %c0_43], %105 {strides = array<i32>} : memref<256x128xf32, #tpu.memory_space<vmem>>, vector<256x128xf32>,
    return
  }
  func.func @transform_0(%arg0: i32) -> (i32, i32) {
    %c0_i32 = arith.constant 0 : i32
    %c0_i32_0 = arith.constant 0 : i32
    return %arg0, %c0_i32 : i32, i32
  }
  func.func @transform_1(%arg0: i32) -> (i32, i32) {
    %c0_i32 = arith.constant 0 : i32
    %c0_i32_0 = arith.constant 0 : i32
    %c0_i32_1 = arith.constant 0 : i32
    return %c0_i32, %c0_i32_0 : i32, i32
  }
  func.func @transform_2(%arg0: i32) -> (i32, i32) {
    %c0_i32 = arith.constant 0 : i32
    %c0_i32_0 = arith.constant 0 : i32
    %c0_i32_1 = arith.constant 0 : i32
    return %c0_i32, %c0_i32_0 : i32, i32
  }
  func.func @transform_3(%arg0: i32) -> (i32, i32) {
    %c0_i32 = arith.constant 0 : i32
    %c0_i32_0 = arith.constant 0 : i32
    %c0_i32_1 = arith.constant 0 : i32
    return %c0_i32, %c0_i32_0 : i32, i32
  }
  func.func @transform_4(%arg0: i32) -> (i32, i32) {
    %c0_i32 = arith.constant 0 : i32
    %c0_i32_0 = arith.constant 0 : i32
    return %arg0, %c0_i32 : i32, i32
  }
  func.func @transform_5(%arg0: i32) -> (i32, i32) {
    %c0_i32 = arith.constant 0 : i32
    %c0_i32_0 = arith.constant 0 : i32
    return %arg0, %c0_i32 : i32, i32
  }
  func.func @transform_6(%arg0: i32) -> (i32, i32) {
    %c0_i32 = arith.constant 0 : i32
    %c0_i32_0 = arith.constant 0 : i32
    return %arg0, %c0_i32 : i32, i32
  }
}

</mosaic_0001>

<bundles_post_ra>
// kernel: hybrid_space_transformer.1
= control target key start
LH: loop header
LB: loop body
LE: loop exit
PB: predicated region body
PF: predicated region fallthrough
CT: control target
= control target key end

     0   :  { %12 = vsyncpa [#allocation3], 0  ;;  %s12738_s0 = inlined_call_operand.vmem [shape: f32[256,256], index: 0, kind: input, shape index: {}]   ;;  %s12739_s1 = inlined_call_operand.vmem [shape: bf16[256,1024], index: 1, kind: input, shape index: {}]   ;;  %s12740_s2 = inlined_call_operand.hbm [shape: bf16[512,256], index: 2, kind: input, shape index: {}]   ;;  %s12741_s3 = inlined_call_operand.hbm [shape: f32[8,1024], index: 3, kind: input, shape index: {}]   ;;  %s12742_s4 = inlined_call_operand.hbm [shape: f32[256,128], index: 4, kind: output, shape index: {0}]   ;;  %s12743_s5 = inlined_call_operand.hbm [shape: f32[256,128], index: 5, kind: output, shape index: {1}]   ;;  %s12744_s6 = inlined_call_operand.hbm [shape: f32[256,128], index: 6, kind: output, shape index: {2}]  }
   0x1   :  { %13 = vsyncpa [#allocation6], 0 }
   0x2   :  { %14 = vsyncpa [#allocation4], 0 }
   0x3   :  { %15 = vsyncpa [#allocation9], 0  ;;  %s7730_s21 = smov [#allocation2]   ;;  %s7612_s25 = scalar_lea.hbm %s12740_s2, 8192 }
   0x4   :  { %s25_s22 = sshll.u32 %s7730_s21, 4  ;;  %p7613_p0 = scmp.ne.s32.totalorder %s12740_s2, %s7612_s25  ;;  %s26_s22 = int_to_ptr.vmem [resolvable:$true] %s25_s22 }
   0x5   :  { %p7616_p1 = scmp.lt.u32.totalorder %s7612_s25, %s12740_s2 }
   0x7   :  { %p7618_p2 = pnand %p7616_p1, %p7613_p0 }
   0x9   :  { %7621 = shalt.err (!%p7618_p2)
}
   0xa   :  { %s7622_s30 = scalar_lea.vmem %s26_s22, 8192  ;;  %p7627_p4 = scmp.lt.s32.totalorder %s26_s22, %s26_s22 }
   0xb   :  { %p7623_p3 = scmp.ne.s32.totalorder %s26_s22, %s7622_s30  ;;  %p7628_p5 = scmp.lt.s32.totalorder %s7622_s30, %s7622_s30 }
   0xd   :  { %p7629_p6 = por %p7628_p5, %p7627_p4 }
   0xf   :  { %p7630_p7 = pnand %p7629_p6, %p7623_p3 }
  0x11   :  { %7633 = shalt.err (!%p7630_p7)
}
  0x12   :  { %s7731_s7 = smov 128   ;;  %s7732_s8 = smov 8  }
  0x13   :  { %31 = dma.hbm_to_vmem [thread:$0]  %s12740_s2, 8192, %s26_s22, [#allocation3], %s7731_s7, %s7731_s7, %s7732_s8  }
  0x14   :  { %s7733_s11 = smov [#allocation5]   ;;  %s7634_s15 = scalar_lea.hbm %s12741_s3, 1024 }
  0x15   :  { %s38_s12 = sshll.u32 %s7733_s11, 4  ;;  %p7635_p8 = scmp.ne.s32.totalorder %s12741_s3, %s7634_s15  ;;  %s39_s12 = int_to_ptr.vmem [resolvable:$true] %s38_s12 }
  0x16   :  { %p7638_p9 = scmp.lt.u32.totalorder %s7634_s15, %s12741_s3 }
  0x18   :  { %p7640_p10 = pnand %p7638_p9, %p7635_p8 }
  0x1a   :  { %7643 = shalt.err (!%p7640_p10)
}
  0x1b   :  { %s7644_s20 = scalar_lea.vmem %s39_s12, 1024  ;;  %p7649_p12 = scmp.lt.s32.totalorder %s39_s12, %s39_s12 }
  0x1c   :  { %p7645_p11 = scmp.ne.s32.totalorder %s39_s12, %s7644_s20  ;;  %p7650_p13 = scmp.lt.s32.totalorder %s7644_s20, %s7644_s20 }
  0x1e   :  { %p7651_p0 = por %p7650_p13, %p7649_p12 }
  0x20   :  { %p7652_p1 = pnand %p7651_p0, %p7645_p11 }
  0x22   :  { %7655 = shalt.err (!%p7652_p1)
}
  0x23   :  { %41 = dma.hbm_to_vmem [thread:$0]  %s12741_s3, 1024, %s39_s12, [#allocation6]  }
  0x24   :  { %7722 = dma.done.wait [#allocation3], 8192  }
  0x25   :  { %7723 = vsyncadd [#allocation3], 4294959104 }
  0x26   :  { %7724 = dma.done.wait [#allocation6], 1024  }
  0x27   :  { %7725 = vsyncadd [#allocation6], 4294966272  ;;  %v152_v0 = vld [vmem:[%s12739_s1] sm:$0xff]  ;;  %v153_v2 = vld [vmem:[%s12739_s1 + $0x8] sm:$0xff]  ;;  %s7735_s2 = smov [#allocation7]  }
  0x28   :  { %v156_v1 = vld [vmem:[%s12739_s1 + $0x20] sm:$0xff]  ;;  %v157_v4 = vld [vmem:[%s12739_s1 + $0x28] sm:$0xff]  ;;  %v56_v54 = vld [vmem:[%s12738_s0 + $0x18] sm:$0xff]  ;;  %s6039_s21 = sshll.u32 %s7735_s2, 4  ;;  %s12650_s21 = int_to_ptr.vmem [resolvable:$true] %s6039_s21 }
  0x29   :  { %v6084_v3 = vcombine.high %v152_v0, %v156_v1  ;;  %v6083_v5 = vcombine.low %v152_v0, %v156_v1  ;;  %v160_v6 = vld [vmem:[%s12739_s1 + $0x40] sm:$0xff]  ;;  %v6086_v8 = vcombine.high %v153_v2, %v157_v4  ;;  %v6085_v9 = vcombine.low %v153_v2, %v157_v4  ;;  %v161_v11 = vld [vmem:[%s12739_s1 + $0x48] sm:$0xff] }
  0x2a   :  { %v164_v7 = vld [vmem:[%s12739_s1 + $0x60] sm:$0xff]  ;;  %v165_v12 = vld [vmem:[%s12739_s1 + $0x68] sm:$0xff] }
  0x2b   :  { %v6092_v10 = vcombine.high %v160_v6, %v164_v7  ;;  %v168_v13 = vld [vmem:[%s12739_s1 + $0x80] sm:$0xff]  ;;  %961 = vmatprep.subr.bf16.mxu0 %v6084_v3  ;;  %v6094_v14 = vcombine.high %v161_v11, %v165_v12  ;;  %v169_v16 = vld [vmem:[%s12739_s1 + $0x88] sm:$0xff]  ;;  %1154 = vmatprep.subr.bf16.mxu1 %v6086_v8  ;;  %v6091_v18 = vcombine.low %v160_v6, %v164_v7 }
  0x2c   :  { %v172_v15 = vld [vmem:[%s12739_s1 + $0xa0] sm:$0xff]  ;;  %v173_v17 = vld [vmem:[%s12739_s1 + $0xa8] sm:$0xff]  ;;  %962 = vmatpush1.bf16.msra.mxu0 %v6083_v5  ;;  %1155 = vmatpush1.bf16.msra.mxu1 %v6085_v9  ;;  %v6093_v19 = vcombine.low %v161_v11, %v165_v12 }
  0x2d   :  { %963 = vmatprep.subr.bf16.mxu0 %v6092_v10  ;;  %v6100_v20 = vcombine.high %v168_v13, %v172_v15  ;;  %1156 = vmatprep.subr.bf16.mxu1 %v6094_v14  ;;  %v6102_v21 = vcombine.high %v169_v16, %v173_v17  ;;  %v176_v22 = vld [vmem:[%s12739_s1 + $0xc0] sm:$0xff]  ;;  %v177_v24 = vld [vmem:[%s12739_s1 + $0xc8] sm:$0xff]  ;;  %v6099_v26 = vcombine.low %v168_v13, %v172_v15 }
  0x2e   :  { %v180_v23 = vld [vmem:[%s12739_s1 + $0xe0] sm:$0xff]  ;;  %v181_v25 = vld [vmem:[%s12739_s1 + $0xe8] sm:$0xff]  ;;  %v6101_v27 = vcombine.low %v169_v16, %v173_v17 }
  0x2f   :  { %v6108_v28 = vcombine.high %v176_v22, %v180_v23  ;;  %v6110_v29 = vcombine.high %v177_v24, %v181_v25  ;;  %v184_v30 = vld [vmem:[%s12739_s1 + $0x100] sm:$0xff]  ;;  %v185_v32 = vld [vmem:[%s12739_s1 + $0x108] sm:$0xff]  ;;  %v6107_v34 = vcombine.low %v176_v22, %v180_v23  ;;  %v6109_v35 = vcombine.low %v177_v24, %v181_v25 }
  0x30   :  { %964 = vmatpush1.bf16.msra.mxu0 %v6091_v18  ;;  %1157 = vmatpush1.bf16.msra.mxu1 %v6093_v19  ;;  %v188_v31 = vld [vmem:[%s12739_s1 + $0x120] sm:$0xff]  ;;  %v189_v33 = vld [vmem:[%s12739_s1 + $0x128] sm:$0xff] }
  0x31   :  { %965 = vmatprep.subr.bf16.mxu0 %v6100_v20  ;;  %1158 = vmatprep.subr.bf16.mxu1 %v6102_v21  ;;  %v6116_v36 = vcombine.high %v184_v30, %v188_v31  ;;  %v6118_v37 = vcombine.high %v185_v32, %v189_v33  ;;  %v192_v38 = vld [vmem:[%s12739_s1 + $0x140] sm:$0xff]  ;;  %v193_v40 = vld [vmem:[%s12739_s1 + $0x148] sm:$0xff]  ;;  %v6115_v42 = vcombine.low %v184_v30, %v188_v31 }
  0x32   :  { %v196_v39 = vld [vmem:[%s12739_s1 + $0x160] sm:$0xff]  ;;  %v197_v41 = vld [vmem:[%s12739_s1 + $0x168] sm:$0xff]  ;;  %v6117_v43 = vcombine.low %v185_v32, %v189_v33 }
  0x33   :  { %v6124_v44 = vcombine.high %v192_v38, %v196_v39  ;;  %v6126_v45 = vcombine.high %v193_v40, %v197_v41  ;;  %v200_v46 = vld [vmem:[%s12739_s1 + $0x180] sm:$0xff]  ;;  %v201_v48 = vld [vmem:[%s12739_s1 + $0x188] sm:$0xff]  ;;  %v6123_v50 = vcombine.low %v192_v38, %v196_v39  ;;  %v6125_v51 = vcombine.low %v193_v40, %v197_v41 }
  0x34   :  { %966 = vmatpush1.bf16.msra.mxu0 %v6099_v26  ;;  %1159 = vmatpush1.bf16.msra.mxu1 %v6101_v27  ;;  %v204_v47 = vld [vmem:[%s12739_s1 + $0x1a0] sm:$0xff]  ;;  %v205_v49 = vld [vmem:[%s12739_s1 + $0x1a8] sm:$0xff] }
  0x35   :  { %967 = vmatprep.subr.bf16.mxu0 %v6108_v28  ;;  %1160 = vmatprep.subr.bf16.mxu1 %v6110_v29  ;;  %v6132_v52 = vcombine.high %v200_v46, %v204_v47  ;;  %v54_v53 = vld [vmem:[%s12738_s0 + $0x8] sm:$0xff]  ;;  %v6134_v55 = vcombine.high %v201_v48, %v205_v49  ;;  %v208_v56 = vld [vmem:[%s12739_s1 + $0x1c0] sm:$0xff]  ;;  %v6131_v61 = vcombine.low %v200_v46, %v204_v47 }
  0x36   :  { %v212_v57 = vld [vmem:[%s12739_s1 + $0x1e0] sm:$0xff]  ;;  %v7895_v58 = vpack.c.bf16 %v56_v54, %v54_v53  ;;  %v209_v59 = vld [vmem:[%s12739_s1 + $0x1c8] sm:$0xff]  ;;  %v6133_v62 = vcombine.low %v201_v48, %v205_v49 }
  0x37   :  { %v213_v60 = vld [vmem:[%s12739_s1 + $0x1e8] sm:$0xff]  ;;  %v6140_v63 = vcombine.high %v208_v56, %v212_v57  ;;  %v216_v1 = vld [vmem:[%s12739_s1 + $0x200] sm:$0xff]  ;;  %v6139_v5 = vcombine.low %v208_v56, %v212_v57 }
  0x38   :  { %968 = vmatpush1.bf16.msra.mxu0 %v6107_v34  ;;  %1161 = vmatpush1.bf16.msra.mxu1 %v6109_v35  ;;  %v6142_v0 = vcombine.high %v209_v59, %v213_v60  ;;  %v220_v2 = vld [vmem:[%s12739_s1 + $0x220] sm:$0xff]  ;;  %v217_v3 = vld [vmem:[%s12739_s1 + $0x208] sm:$0xff]  ;;  %v6141_v6 = vcombine.low %v209_v59, %v213_v60 }
  0x39   :  { %969 = vmatprep.subr.bf16.mxu0 %v6116_v36  ;;  %1162 = vmatprep.subr.bf16.mxu1 %v6118_v37  ;;  %v221_v4 = vld [vmem:[%s12739_s1 + $0x228] sm:$0xff]  ;;  %v6148_v7 = vcombine.high %v216_v1, %v220_v2  ;;  %v224_v9 = vld [vmem:[%s12739_s1 + $0x240] sm:$0xff]  ;;  %v6147_v13 = vcombine.low %v216_v1, %v220_v2  ;;  %v154_v2 = vld [vmem:[%s12739_s1 + $0x10] sm:$0xff] }
  0x3a   :  { %993 = vmatprep.mubr.bf16.mxu0 %v7895_v58  ;;  %1186 = vmatprep.mubr.bf16.mxu1 %v7895_v58  ;;  %v6150_v8 = vcombine.high %v217_v3, %v221_v4  ;;  %v228_v10 = vld [vmem:[%s12739_s1 + $0x260] sm:$0xff]  ;;  %v225_v11 = vld [vmem:[%s12739_s1 + $0x248] sm:$0xff]  ;;  %v6149_v14 = vcombine.low %v217_v3, %v221_v4  ;;  %v158_v3 = vld [vmem:[%s12739_s1 + $0x30] sm:$0xff] }
  0x3b   :  { %v229_v12 = vld [vmem:[%s12739_s1 + $0x268] sm:$0xff]  ;;  %v6156_v15 = vcombine.high %v224_v9, %v228_v10  ;;  %v232_v17 = vld [vmem:[%s12739_s1 + $0x280] sm:$0xff]  ;;  %v6155_v21 = vcombine.low %v224_v9, %v228_v10  ;;  %v155_v4 = vld [vmem:[%s12739_s1 + $0x18] sm:$0xff]  ;;  %v6088_v10 = vcombine.high %v154_v2, %v158_v3 }
  0x3c   :  { %970 = vmatpush1.bf16.msra.mxu0 %v6115_v42  ;;  %1163 = vmatpush1.bf16.msra.mxu1 %v6117_v43  ;;  %v6158_v16 = vcombine.high %v225_v11, %v229_v12  ;;  %v236_v18 = vld [vmem:[%s12739_s1 + $0x2a0] sm:$0xff]  ;;  %v233_v19 = vld [vmem:[%s12739_s1 + $0x288] sm:$0xff]  ;;  %v6157_v22 = vcombine.low %v225_v11, %v229_v12 }
  0x3d   :  { %971 = vmatprep.subr.bf16.mxu0 %v6124_v44  ;;  %1164 = vmatprep.subr.bf16.mxu1 %v6126_v45  ;;  %v237_v20 = vld [vmem:[%s12739_s1 + $0x2a8] sm:$0xff]  ;;  %v6164_v23 = vcombine.high %v232_v17, %v236_v18  ;;  %v240_v25 = vld [vmem:[%s12739_s1 + $0x2c0] sm:$0xff]  ;;  %v6163_v29 = vcombine.low %v232_v17, %v236_v18  ;;  %v163_v17 = vld [vmem:[%s12739_s1 + $0x58] sm:$0xff] }
  0x3e   :  { %v6166_v24 = vcombine.high %v233_v19, %v237_v20  ;;  %v244_v26 = vld [vmem:[%s12739_s1 + $0x2e0] sm:$0xff]  ;;  %v241_v27 = vld [vmem:[%s12739_s1 + $0x2c8] sm:$0xff]  ;;  %v6165_v30 = vcombine.low %v233_v19, %v237_v20  ;;  %v167_v18 = vld [vmem:[%s12739_s1 + $0x78] sm:$0xff]  ;;  %v6087_v19 = vcombine.low %v154_v2, %v158_v3 }
  0x3f   :  { %v245_v28 = vld [vmem:[%s12739_s1 + $0x2e8] sm:$0xff]  ;;  %v6172_v31 = vcombine.high %v240_v25, %v244_v26  ;;  %v248_v33 = vld [vmem:[%s12739_s1 + $0x300] sm:$0xff]  ;;  %v6171_v37 = vcombine.low %v240_v25, %v244_v26  ;;  %v170_v20 = vld [vmem:[%s12739_s1 + $0x90] sm:$0xff] }
  0x40   :  { %972 = vmatpush1.bf16.msra.mxu0 %v6123_v50  ;;  %1165 = vmatpush1.bf16.msra.mxu1 %v6125_v51  ;;  %v6174_v32 = vcombine.high %v241_v27, %v245_v28  ;;  %v252_v34 = vld [vmem:[%s12739_s1 + $0x320] sm:$0xff]  ;;  %v249_v35 = vld [vmem:[%s12739_s1 + $0x308] sm:$0xff]  ;;  %v6173_v38 = vcombine.low %v241_v27, %v245_v28  ;;  %v175_v25 = vld [vmem:[%s12739_s1 + $0xb8] sm:$0xff]  ;;  %v6098_v28 = vcombine.high %v163_v17, %v167_v18 }
  0x41   :  { %973 = vmatprep.subr.bf16.mxu0 %v6132_v52  ;;  %1166 = vmatprep.subr.bf16.mxu1 %v6134_v55  ;;  %v253_v36 = vld [vmem:[%s12739_s1 + $0x328] sm:$0xff]  ;;  %v6180_v39 = vcombine.high %v248_v33, %v252_v34  ;;  %v256_v41 = vld [vmem:[%s12739_s1 + $0x340] sm:$0xff]  ;;  %v6179_v45 = vcombine.low %v248_v33, %v252_v34  ;;  %v6097_v33 = vcombine.low %v163_v17, %v167_v18  ;;  %v202_v2 = vld [vmem:[%s12739_s1 + $0x190] sm:$0xff] }
  0x42   :  { %v6182_v40 = vcombine.high %v249_v35, %v253_v36  ;;  %v260_v42 = vld [vmem:[%s12739_s1 + $0x360] sm:$0xff]  ;;  %v257_v43 = vld [vmem:[%s12739_s1 + $0x348] sm:$0xff]  ;;  %v6181_v46 = vcombine.low %v249_v35, %v253_v36  ;;  %v178_v35 = vld [vmem:[%s12739_s1 + $0xd0] sm:$0xff] }
  0x43   :  { %v261_v44 = vld [vmem:[%s12739_s1 + $0x368] sm:$0xff]  ;;  %v6188_v47 = vcombine.high %v256_v41, %v260_v42  ;;  %v264_v49 = vld [vmem:[%s12739_s1 + $0x380] sm:$0xff]  ;;  %v6187_v53 = vcombine.low %v256_v41, %v260_v42  ;;  %v182_v36 = vld [vmem:[%s12739_s1 + $0xf0] sm:$0xff] }
  0x44   :  { %974 = vmatpush1.bf16.msra.mxu0 %v6131_v61  ;;  %1167 = vmatpush1.bf16.msra.mxu1 %v6133_v62  ;;  %v6190_v48 = vcombine.high %v257_v43, %v261_v44  ;;  %v268_v50 = vld [vmem:[%s12739_s1 + $0x3a0] sm:$0xff]  ;;  %v265_v51 = vld [vmem:[%s12739_s1 + $0x388] sm:$0xff]  ;;  %v6189_v54 = vcombine.low %v257_v43, %v261_v44  ;;  %v186_v43 = vld [vmem:[%s12739_s1 + $0x110] sm:$0xff] }
  0x45   :  { %975 = vmatprep.subr.bf16.mxu0 %v6140_v63  ;;  %1168 = vmatprep.subr.bf16.mxu1 %v6142_v0  ;;  %v269_v52 = vld [vmem:[%s12739_s1 + $0x3a8] sm:$0xff]  ;;  %v6196_v55 = vcombine.high %v264_v49, %v268_v50  ;;  %v272_v57 = vld [vmem:[%s12739_s1 + $0x3c0] sm:$0xff]  ;;  %v6195_v62 = vcombine.low %v264_v49, %v268_v50  ;;  %v190_v44 = vld [vmem:[%s12739_s1 + $0x130] sm:$0xff] }
  0x46   :  { %v6198_v56 = vcombine.high %v265_v51, %v269_v52  ;;  %v276_v59 = vld [vmem:[%s12739_s1 + $0x3e0] sm:$0xff]  ;;  %v273_v60 = vld [vmem:[%s12739_s1 + $0x3c8] sm:$0xff]  ;;  %v6197_v63 = vcombine.low %v265_v51, %v269_v52  ;;  %v187_v49 = vld [vmem:[%s12739_s1 + $0x118] sm:$0xff] }
  0x47   :  { %v277_v61 = vld [vmem:[%s12739_s1 + $0x3e8] sm:$0xff]  ;;  %v6204_v0 = vcombine.high %v272_v57, %v276_v59  ;;  %v57_v26 = vld [vmem:[%s12738_s0 + $0x20] sm:$0xff]  ;;  %v191_v50 = vld [vmem:[%s12739_s1 + $0x138] sm:$0xff] }
  0x48   :  { %976 = vmatpush1.bf16.msra.mxu0 %v6139_v5  ;;  %1169 = vmatpush1.bf16.msra.mxu1 %v6141_v6  ;;  %v6206_v1 = vcombine.high %v273_v60, %v277_v61  ;;  %v159_v5 = vld [vmem:[%s12739_s1 + $0x38] sm:$0xff]  ;;  %v6203_v6 = vcombine.low %v272_v57, %v276_v59  ;;  %v6205_v9 = vcombine.low %v273_v60, %v277_v61  ;;  %v58_v12 = vld [vmem:[%s12738_s0 + $0x28] sm:$0xff]  ;;  %v206_v3 = vld [vmem:[%s12739_s1 + $0x1b0] sm:$0xff] }
  0x49   :  { %977 = vmatprep.subr.bf16.mxu0 %v6148_v7  ;;  %1170 = vmatprep.subr.bf16.mxu1 %v6150_v8  ;;  %v53_v7 = vld [vmem:[%s12738_s0] sm:$0xff]  ;;  %v55_v8 = vld [vmem:[%s12738_s0 + $0x10] sm:$0xff]  ;;  %v6090_v11 = vcombine.high %v155_v4, %v159_v5  ;;  %v66_v51 = vld [vmem:[%s12738_s0 + $0x68] sm:$0xff]  ;;  %v6120_v59 = vcombine.high %v186_v43, %v190_v44  ;;  %v6136_v18 = vcombine.high %v202_v2, %v206_v3 }
  0x4a   :  { %v68_v52 = vld [vmem:[%s12738_s0 + $0x78] sm:$0xff] }
  0x4b   :  { %v195_v60 = vld [vmem:[%s12739_s1 + $0x158] sm:$0xff] }
  0x4c   :  { %978 = vmatpush1.bf16.msra.mxu0 %v6147_v13  ;;  %1171 = vmatpush1.bf16.msra.mxu1 %v6149_v14  ;;  %v60_v13 = vld [vmem:[%s12738_s0 + $0x38] sm:$0xff]  ;;  %v162_v14 = vld [vmem:[%s12739_s1 + $0x50] sm:$0xff] }
  0x4d   :  { %979 = vmatprep.subr.bf16.mxu0 %v6156_v15  ;;  %1172 = vmatprep.subr.bf16.mxu1 %v6158_v16  ;;  %v8028_v15 = vpack.c.bf16 %v55_v8, %v53_v7  ;;  %v166_v16 = vld [vmem:[%s12739_s1 + $0x70] sm:$0xff]  ;;  %v199_v61 = vld [vmem:[%s12739_s1 + $0x178] sm:$0xff]  ;;  %v70_v8 = vld [vmem:[%s12738_s0 + $0x88] sm:$0xff] }
  0x4e   :  { %v6096_v27 = vcombine.high %v162_v14, %v166_v16  ;;  %v6129_v17 = vcombine.low %v195_v60, %v199_v61 }
  0x50   :  { %980 = vmatpush1.bf16.msra.mxu0 %v6155_v21  ;;  %1173 = vmatpush1.bf16.msra.mxu1 %v6157_v22  ;;  %v174_v21 = vld [vmem:[%s12739_s1 + $0xb0] sm:$0xff]  ;;  %v6089_v22 = vcombine.low %v155_v4, %v159_v5  ;;  %v65_v4 = vld [vmem:[%s12738_s0 + $0x60] sm:$0xff] }
  0x51   :  { %981 = vmatprep.subr.bf16.mxu0 %v6164_v23  ;;  %1174 = vmatprep.subr.bf16.mxu1 %v6166_v24  ;;  %v8045_v23 = vpack.c.bf16 %v60_v13, %v58_v12  ;;  %v171_v24 = vld [vmem:[%s12739_s1 + $0x98] sm:$0xff]  ;;  %v6104_v34 = vcombine.high %v170_v20, %v174_v21  ;;  %v6103_v42 = vcombine.low %v170_v20, %v174_v21  ;;  %v67_v5 = vld [vmem:[%s12738_s0 + $0x70] sm:$0xff] }
  0x52   :  { %v207_v12 = vld [vmem:[%s12739_s1 + $0x1b8] sm:$0xff]  ;;  %v8169_v21 = vpack.c.bf16 %v67_v5, %v65_v4 }
  0x53   :  { %v215_v20 = vld [vmem:[%s12739_s1 + $0x1f8] sm:$0xff] }
  0x54   :  { %982 = vmatpush1.bf16.msra.mxu0 %v6163_v29  ;;  %1175 = vmatpush1.bf16.msra.mxu1 %v6165_v30  ;;  %v59_v29 = vld [vmem:[%s12738_s0 + $0x30] sm:$0xff]  ;;  %v6095_v30 = vcombine.low %v162_v14, %v166_v16  ;;  %v243_v5 = vld [vmem:[%s12739_s1 + $0x2d8] sm:$0xff] }
  0x55   :  { %983 = vmatprep.subr.bf16.mxu0 %v6172_v31  ;;  %1176 = vmatprep.subr.bf16.mxu1 %v6174_v32  ;;  %v62_v31 = vld [vmem:[%s12738_s0 + $0x48] sm:$0xff]  ;;  %v64_v32 = vld [vmem:[%s12738_s0 + $0x58] sm:$0xff]  ;;  %v210_v14 = vld [vmem:[%s12739_s1 + $0x1d0] sm:$0xff] }
  0x56   :  { %v8083_v41 = vpack.c.bf16 %v64_v32, %v62_v31  ;;  %v214_v16 = vld [vmem:[%s12739_s1 + $0x1f0] sm:$0xff]  ;;  %v219_v32 = vld [vmem:[%s12739_s1 + $0x218] sm:$0xff] }
  0x57   :  { %v6144_v31 = vcombine.high %v210_v14, %v214_v16 }
  0x58   :  { %984 = vmatpush1.bf16.msra.mxu0 %v6171_v37  ;;  %1177 = vmatpush1.bf16.msra.mxu1 %v6173_v38  ;;  %v6106_v37 = vcombine.high %v171_v24, %v175_v25  ;;  %v179_v38 = vld [vmem:[%s12739_s1 + $0xd8] sm:$0xff] }
  0x59   :  { %985 = vmatprep.subr.bf16.mxu0 %v6180_v39  ;;  %1178 = vmatprep.subr.bf16.mxu1 %v6182_v40  ;;  %v183_v39 = vld [vmem:[%s12739_s1 + $0xf8] sm:$0xff]  ;;  %v8081_v40 = vpack.c.bf16 %v59_v29, %v57_v26  ;;  %v218_v26 = vld [vmem:[%s12739_s1 + $0x210] sm:$0xff] }
  0x5a   :  { %v6113_v57 = vcombine.low %v179_v38, %v183_v39  ;;  %v71_v29 = vld [vmem:[%s12738_s0 + $0x90] sm:$0xff] }
  0x5c   :  { %986 = vmatpush1.bf16.msra.mxu0 %v6179_v45  ;;  %1179 = vmatpush1.bf16.msra.mxu1 %v6181_v46  ;;  %v61_v45 = vld [vmem:[%s12738_s0 + $0x40] sm:$0xff]  ;;  %v63_v46 = vld [vmem:[%s12738_s0 + $0x50] sm:$0xff] }
  0x5d   :  { %987 = vmatprep.subr.bf16.mxu0 %v6188_v47  ;;  %1180 = vmatprep.subr.bf16.mxu1 %v6190_v48  ;;  %v6105_v47 = vcombine.low %v171_v24, %v175_v25  ;;  %v6112_v48 = vcombine.high %v178_v35, %v182_v36  ;;  %v6135_v25 = vcombine.low %v202_v2, %v206_v3  ;;  %v246_v2 = vld [vmem:[%s12739_s1 + $0x2f0] sm:$0xff] }
  0x60   :  { %988 = vmatpush1.bf16.msra.mxu0 %v6187_v53  ;;  %1181 = vmatpush1.bf16.msra.mxu1 %v6189_v54  ;;  %v6114_v53 = vcombine.high %v179_v38, %v183_v39  ;;  %v6111_v54 = vcombine.low %v178_v35, %v182_v36  ;;  %v76_v35 = vld [vmem:[%s12738_s0 + $0xb8] sm:$0xff]  ;;  %v226_v38 = vld [vmem:[%s12739_s1 + $0x250] sm:$0xff] }
  0x61   :  { %989 = vmatprep.subr.bf16.mxu0 %v6196_v55  ;;  %1182 = vmatprep.subr.bf16.mxu1 %v6198_v56  ;;  %v194_v55 = vld [vmem:[%s12739_s1 + $0x150] sm:$0xff] }
  0x62   :  { %v198_v56 = vld [vmem:[%s12739_s1 + $0x170] sm:$0xff] }
  0x63   :  { %v6128_v7 = vcombine.high %v194_v55, %v198_v56  ;;  %v6127_v13 = vcombine.low %v194_v55, %v198_v56  ;;  %v230_v39 = vld [vmem:[%s12739_s1 + $0x270] sm:$0xff]  ;;  %v78_v56 = vld [vmem:[%s12738_s0 + $0xc8] sm:$0xff] }
  0x64   :  { %990 = vmatpush1.bf16.msra.mxu0 %v6195_v62  ;;  %1183 = vmatpush1.bf16.msra.mxu1 %v6197_v63  ;;  %v8125_v62 = vpack.c.bf16 %v63_v46, %v61_v45  ;;  %v6122_v63 = vcombine.high %v187_v49, %v191_v50  ;;  %v231_v45 = vld [vmem:[%s12739_s1 + $0x278] sm:$0xff]  ;;  %v6160_v55 = vcombine.high %v226_v38, %v230_v39 }
  0x65   :  { %991 = vmatprep.subr.bf16.mxu0 %v6204_v0  ;;  %1184 = vmatprep.subr.bf16.mxu1 %v6206_v1  ;;  %v8127_v0 = vpack.c.bf16 %v68_v52, %v66_v51  ;;  %v6119_v1 = vcombine.low %v186_v43, %v190_v44  ;;  %v227_v44 = vld [vmem:[%s12739_s1 + $0x258] sm:$0xff]  ;;  %v238_v51 = vld [vmem:[%s12739_s1 + $0x2b0] sm:$0xff]  ;;  %v73_v52 = vld [vmem:[%s12738_s0 + $0xa0] sm:$0xff] }
  0x66   :  { %v6161_v3 = vcombine.low %v227_v44, %v231_v45 }
  0x68   :  { %992 = vmatpush1.bf16.msra.mxu0 %v6203_v6  ;;  %1185 = vmatpush1.bf16.msra.mxu1 %v6205_v9  ;;  %v6121_v6 = vcombine.low %v187_v49, %v191_v50  ;;  %v6130_v9 = vcombine.high %v195_v60, %v199_v61  ;;  %v234_v50 = vld [vmem:[%s12739_s1 + $0x290] sm:$0xff]  ;;  %v235_v60 = vld [vmem:[%s12739_s1 + $0x298] sm:$0xff] }
  0x69   :  { %1347 = vmatprep.subr.bf16.mxu0 %v6088_v10  ;;  %1540 = vmatprep.subr.bf16.mxu1 %v6090_v11  ;;  %v72_v10 = vld [vmem:[%s12738_s0 + $0x98] sm:$0xff]  ;;  %v6168_v4 = vcombine.high %v234_v50, %v238_v51 }
  0x6a   :  { %v203_v11 = vld [vmem:[%s12739_s1 + $0x198] sm:$0xff]  ;;  %v8171_v24 = vpack.c.bf16 %v72_v10, %v70_v8  ;;  %v6167_v10 = vcombine.low %v234_v50, %v238_v51  ;;  %v86_v50 = vld [vmem:[%s12738_s0 + $0x108] sm:$0xff] }
  0x6b   :  { %994 = vmatmul.mubr.bf16.vlgmr.msra.gmra.mrb[0].mxu0 %v8028_v15  ;;  %1187 = vmatmul.mubr.bf16.vlgmr.msra.gmra.mrb[0].mxu1 %v8028_v15  ;;  %v239_v61 = vld [vmem:[%s12739_s1 + $0x2b8] sm:$0xff] }
  0x6c   :  { %1348 = vmatpush1.bf16.msra.mxu0 %v6087_v19  ;;  %1541 = vmatpush1.bf16.msra.mxu1 %v6089_v22  ;;  %v211_v19 = vld [vmem:[%s12739_s1 + $0x1d8] sm:$0xff]  ;;  %v6138_v22 = vcombine.high %v203_v11, %v207_v12  ;;  %v6170_v8 = vcombine.high %v235_v60, %v239_v61 }
  0x6d   :  { %1003 = vmatprep.mubr.bf16.mxu0 %v8045_v23  ;;  %1196 = vmatprep.mubr.bf16.mxu1 %v8045_v23  ;;  %v6146_v36 = vcombine.high %v211_v19, %v215_v20  ;;  %v88_v51 = vld [vmem:[%s12738_s0 + $0x118] sm:$0xff] }
  0x6e   :  { %1349 = vmatprep.subr.bf16.mxu0 %v6096_v27  ;;  %1542 = vmatprep.subr.bf16.mxu1 %v6098_v28  ;;  %v222_v27 = vld [vmem:[%s12739_s1 + $0x230] sm:$0xff]  ;;  %v69_v28 = vld [vmem:[%s12738_s0 + $0x80] sm:$0xff] }
  0x6f   :  { %v6152_v43 = vcombine.high %v218_v26, %v222_v27  ;;  %v8213_v46 = vpack.c.bf16 %v71_v29, %v69_v28  ;;  %v6151_v49 = vcombine.low %v218_v26, %v222_v27 }
  0x70   :  { %1350 = vmatpush1.bf16.msra.mxu0 %v6095_v30  ;;  %1543 = vmatpush1.bf16.msra.mxu1 %v6097_v33  ;;  %v6137_v30 = vcombine.low %v203_v11, %v207_v12  ;;  %v223_v33 = vld [vmem:[%s12739_s1 + $0x238] sm:$0xff]  ;;  %v250_v11 = vld [vmem:[%s12739_s1 + $0x310] sm:$0xff] }
  0x71   :  { %1351 = vmatprep.subr.bf16.mxu0 %v6104_v34  ;;  %1544 = vmatprep.subr.bf16.mxu1 %v6106_v37  ;;  %v74_v34 = vld [vmem:[%s12738_s0 + $0xa8] sm:$0xff]  ;;  %v6143_v37 = vcombine.low %v210_v14, %v214_v16  ;;  %v254_v12 = vld [vmem:[%s12739_s1 + $0x330] sm:$0xff]  ;;  %v6169_v16 = vcombine.low %v235_v60, %v239_v61  ;;  %v8341_v60 = vpack.c.bf16 %v88_v51, %v86_v50  ;;  %v275_v61 = vld [vmem:[%s12739_s1 + $0x3d8] sm:$0xff] }
  0x72   :  { %v79_v14 = vld [vmem:[%s12738_s0 + $0xd0] sm:$0xff]  ;;  %v6184_v28 = vcombine.high %v250_v11, %v254_v12  ;;  %v105_v51 = vld [vmem:[%s12738_s0 + $0x1a0] sm:$0xff] }
  0x73   :  { %1004 = vmatmul.mubr.bf16.gmra.mrb[4].mxu0 %v8081_v40  ;;  %1197 = vmatmul.mubr.bf16.gmra.mrb[4].mxu1 %v8081_v40 }
  0x74   :  { %1013 = vmatprep.mubr.bf16.mxu0 %v8083_v41  ;;  %1206 = vmatprep.mubr.bf16.mxu1 %v8083_v41 }
  0x75   :  { %1352 = vmatpush1.bf16.msra.mxu0 %v6103_v42  ;;  %1545 = vmatpush1.bf16.msra.mxu1 %v6105_v47  ;;  %v6145_v42 = vcombine.low %v211_v19, %v215_v20  ;;  %v6154_v47 = vcombine.high %v219_v32, %v223_v33  ;;  %v255_v19 = vld [vmem:[%s12739_s1 + $0x338] sm:$0xff]  ;;  %v82_v20 = vld [vmem:[%s12738_s0 + $0xe8] sm:$0xff] }
  0x76   :  { %1353 = vmatprep.subr.bf16.mxu0 %v6112_v48  ;;  %1546 = vmatprep.subr.bf16.mxu1 %v6114_v53  ;;  %v8215_v48 = vpack.c.bf16 %v76_v35, %v74_v34  ;;  %v75_v53 = vld [vmem:[%s12738_s0 + $0xb0] sm:$0xff]  ;;  %v259_v34 = vld [vmem:[%s12739_s1 + $0x358] sm:$0xff] }
  0x77   :  { %v263_v35 = vld [vmem:[%s12739_s1 + $0x378] sm:$0xff] }
  0x79   :  { %1354 = vmatpush1.bf16.msra.mxu0 %v6111_v54  ;;  %1547 = vmatpush1.bf16.msra.mxu1 %v6113_v57  ;;  %v6153_v54 = vcombine.low %v219_v32, %v223_v33  ;;  %v6162_v57 = vcombine.high %v227_v44, %v231_v45  ;;  %v262_v32 = vld [vmem:[%s12739_s1 + $0x370] sm:$0xff] }
  0x7a   :  { %1355 = vmatprep.subr.bf16.mxu0 %v6120_v59  ;;  %1548 = vmatprep.subr.bf16.mxu1 %v6122_v63  ;;  %v80_v59 = vld [vmem:[%s12738_s0 + $0xd8] sm:$0xff]  ;;  %v6159_v63 = vcombine.low %v226_v38, %v230_v39  ;;  %v81_v39 = vld [vmem:[%s12738_s0 + $0xe0] sm:$0xff]  ;;  %v270_v44 = vld [vmem:[%s12739_s1 + $0x3b0] sm:$0xff] }
  0x7b   :  { %1014 = vmatmul.mubr.bf16.gmra.mrb[8].mxu0 %v8125_v62  ;;  %1207 = vmatmul.mubr.bf16.gmra.mrb[8].mxu1 %v8125_v62  ;;  %v83_v45 = vld [vmem:[%s12738_s0 + $0xf0] sm:$0xff] }
  0x7c   :  { %1023 = vmatprep.mubr.bf16.mxu0 %v8127_v0  ;;  %1216 = vmatprep.mubr.bf16.mxu1 %v8127_v0 }
  0x7d   :  { %1356 = vmatpush1.bf16.msra.mxu0 %v6119_v1  ;;  %1549 = vmatpush1.bf16.msra.mxu1 %v6121_v6  ;;  %v242_v1 = vld [vmem:[%s12739_s1 + $0x2d0] sm:$0xff]  ;;  %v247_v6 = vld [vmem:[%s12739_s1 + $0x2f8] sm:$0xff] }
  0x7e   :  { %1357 = vmatprep.subr.bf16.mxu0 %v6128_v7  ;;  %1550 = vmatprep.subr.bf16.mxu1 %v6130_v9  ;;  %v8257_v7 = vpack.c.bf16 %v75_v53, %v73_v52  ;;  %v8259_v9 = vpack.c.bf16 %v80_v59, %v78_v56  ;;  %v6175_v26 = vcombine.low %v242_v1, %v246_v2  ;;  %v278_v59 = vld [vmem:[%s12739_s1 + $0x3f0] sm:$0xff] }
  0x7f   :  { %v6177_v27 = vcombine.low %v243_v5, %v247_v6  ;;  %v6193_v53 = vcombine.low %v259_v34, %v263_v35 }
  0x81   :  { %1358 = vmatpush1.bf16.msra.mxu0 %v6127_v13  ;;  %1551 = vmatpush1.bf16.msra.mxu1 %v6129_v17  ;;  %v77_v13 = vld [vmem:[%s12738_s0 + $0xc0] sm:$0xff]  ;;  %v6176_v17 = vcombine.high %v242_v1, %v246_v2 }
  0x82   :  { %1359 = vmatprep.subr.bf16.mxu0 %v6136_v18  ;;  %1552 = vmatprep.subr.bf16.mxu1 %v6138_v22  ;;  %v251_v18 = vld [vmem:[%s12739_s1 + $0x318] sm:$0xff]  ;;  %v8289_v29 = vpack.c.bf16 %v79_v14, %v77_v13  ;;  %v6730_v13 = vld [vmem:[#allocation2 + $0x80] ss:$8 sps:$4 sm:$0xff]  }
  0x83   :  { %1024 = vmatmul.mubr.bf16.gmra.mrb[12].mxu0 %v8169_v21  ;;  %1217 = vmatmul.mubr.bf16.gmra.mrb[12].mxu1 %v8169_v21  ;;  %v84_v22 = vld [vmem:[%s12738_s0 + $0xf8] sm:$0xff] }
  0x84   :  { %1033 = vmatprep.mubr.bf16.mxu0 %v8171_v24  ;;  %1226 = vmatprep.mubr.bf16.mxu1 %v8171_v24  ;;  %v8297_v33 = vpack.c.bf16 %v84_v22, %v82_v20  ;;  %v94_v20 = vld [vmem:[%s12738_s0 + $0x148] sm:$0xff]  ;;  %v96_v22 = vld [vmem:[%s12738_s0 + $0x158] sm:$0xff] }
  0x85   :  { %1360 = vmatpush1.bf16.msra.mxu0 %v6135_v25  ;;  %1553 = vmatpush1.bf16.msra.mxu1 %v6137_v30  ;;  %v6178_v25 = vcombine.high %v243_v5, %v247_v6  ;;  %v6186_v30 = vcombine.high %v251_v18, %v255_v19  ;;  %v85_v5 = vld [vmem:[%s12738_s0 + $0x100] sm:$0xff]  ;;  %v87_v6 = vld [vmem:[%s12738_s0 + $0x110] sm:$0xff] }
  0x86   :  { %1361 = vmatprep.subr.bf16.mxu0 %v6144_v31  ;;  %1554 = vmatprep.subr.bf16.mxu1 %v6146_v36  ;;  %v258_v31 = vld [vmem:[%s12739_s1 + $0x350] sm:$0xff]  ;;  %v6183_v36 = vcombine.low %v250_v11, %v254_v12  ;;  %v8365_v14 = vpack.c.bf16 %v87_v6, %v85_v5 }
  0x87   :  { %v6192_v38 = vcombine.high %v258_v31, %v262_v32  ;;  %v6191_v52 = vcombine.low %v258_v31, %v262_v32  ;;  %v100_v31 = vld [vmem:[%s12738_s0 + $0x178] sm:$0xff]  ;;  %v115_v5 = vld [vmem:[%s12738_s0 + $0x1f0] sm:$0xff] }
  0x89   :  { %1362 = vmatpush1.bf16.msra.mxu0 %v6143_v37  ;;  %1555 = vmatpush1.bf16.msra.mxu1 %v6145_v42  ;;  %v6185_v37 = vcombine.low %v251_v18, %v255_v19  ;;  %v6194_v42 = vcombine.high %v259_v34, %v263_v35  ;;  %v89_v18 = vld [vmem:[%s12738_s0 + $0x120] sm:$0xff]  ;;  %v91_v19 = vld [vmem:[%s12738_s0 + $0x130] sm:$0xff] }
  0x8a   :  { %1363 = vmatprep.subr.bf16.mxu0 %v6152_v43  ;;  %1556 = vmatprep.subr.bf16.mxu1 %v6154_v47  ;;  %v266_v43 = vld [vmem:[%s12739_s1 + $0x390] sm:$0xff]  ;;  %v267_v47 = vld [vmem:[%s12739_s1 + $0x398] sm:$0xff]  ;;  %v97_v35 = vld [vmem:[%s12738_s0 + $0x160] sm:$0xff] }
  0x8b   :  { %1034 = vmatmul.mubr.bf16.gmra.mrb[16].mxu0 %v8213_v46  ;;  %1227 = vmatmul.mubr.bf16.gmra.mrb[16].mxu1 %v8213_v46  ;;  %v6199_v1 = vcombine.low %v266_v43, %v270_v44 }
  0x8c   :  { %1043 = vmatprep.mubr.bf16.mxu0 %v8215_v48  ;;  %1236 = vmatprep.mubr.bf16.mxu1 %v8215_v48 }
  0x8d   :  { %1364 = vmatpush1.bf16.msra.mxu0 %v6151_v49  ;;  %1557 = vmatpush1.bf16.msra.mxu1 %v6153_v54  ;;  %v271_v49 = vld [vmem:[%s12739_s1 + $0x3b8] sm:$0xff]  ;;  %v6200_v54 = vcombine.high %v266_v43, %v270_v44  ;;  %v101_v43 = vld [vmem:[%s12738_s0 + $0x180] sm:$0xff]  ;;  %v103_v44 = vld [vmem:[%s12738_s0 + $0x190] sm:$0xff] }
  0x8e   :  { %1365 = vmatprep.subr.bf16.mxu0 %v6160_v55  ;;  %1558 = vmatprep.subr.bf16.mxu1 %v6162_v57  ;;  %v8333_v55 = vpack.c.bf16 %v83_v45, %v81_v39  ;;  %v6202_v56 = vcombine.high %v267_v47, %v271_v49  ;;  %v274_v57 = vld [vmem:[%s12739_s1 + $0x3d0] sm:$0xff]  ;;  %v6201_v2 = vcombine.low %v267_v47, %v271_v49  ;;  %v106_v45 = vld [vmem:[%s12738_s0 + $0x1a8] sm:$0xff]  ;;  %v108_v47 = vld [vmem:[%s12738_s0 + $0x1b8] sm:$0xff] }
  0x8f   :  { %v6207_v11 = vcombine.low %v274_v57, %v278_v59  ;;  %v8445_v49 = vpack.c.bf16 %v103_v44, %v101_v43  ;;  %v8447_v50 = vpack.c.bf16 %v108_v47, %v106_v45  ;;  %v6756_v43 = vld [vmem:[#allocation2 + $0x1e0] ss:$8 sps:$4 sm:$0xff]   ;;  %v6758_v47 = vld [vmem:[#allocation2 + $0xf0] ss:$8 sps:$4 sm:$0xff]  }
  0x90   :  { %v6755_v44 = vld [vmem:[#allocation2 + $0x60] ss:$8 sps:$4 sm:$0xff]  }
  0x91   :  { %1366 = vmatpush1.bf16.msra.mxu0 %v6159_v63  ;;  %1559 = vmatpush1.bf16.msra.mxu1 %v6161_v3  ;;  %v279_v63 = vld [vmem:[%s12739_s1 + $0x3f8] sm:$0xff]  ;;  %v6208_v3 = vcombine.high %v274_v57, %v278_v59  ;;  %v109_v59 = vld [vmem:[%s12738_s0 + $0x1c0] sm:$0xff] }
  0x92   :  { %1367 = vmatprep.subr.bf16.mxu0 %v6168_v4  ;;  %1560 = vmatprep.subr.bf16.mxu1 %v6170_v8  ;;  %v6210_v4 = vcombine.high %v275_v61, %v279_v63  ;;  %v90_v8 = vld [vmem:[%s12738_s0 + $0x128] sm:$0xff]  ;;  %v6209_v12 = vcombine.low %v275_v61, %v279_v63  ;;  %v111_v61 = vld [vmem:[%s12738_s0 + $0x1d0] sm:$0xff] }
  0x93   :  { %1044 = vmatmul.mubr.bf16.gmra.mrb[20].mxu0 %v8257_v7  ;;  %1237 = vmatmul.mubr.bf16.gmra.mrb[20].mxu1 %v8257_v7  ;;  %v114_v63 = vld [vmem:[%s12738_s0 + $0x1e8] sm:$0xff] }
  0x94   :  { %1053 = vmatprep.mubr.bf16.mxu0 %v8259_v9  ;;  %1246 = vmatprep.mubr.bf16.mxu1 %v8259_v9  ;;  %v6757_v45 = vld [vmem:[#allocation2 + $0x160] ss:$8 sps:$4 sm:$0xff]  }
  0x95   :  { %1368 = vmatpush1.bf16.msra.mxu0 %v6167_v10  ;;  %1561 = vmatpush1.bf16.msra.mxu1 %v6169_v16  ;;  %v92_v10 = vld [vmem:[%s12738_s0 + $0x138] sm:$0xff]  ;;  %v6732_v16 = vld [vmem:[#allocation2 + $0x180] ss:$8 sps:$4 sm:$0xff]  }
  0x96   :  { %1369 = vmatprep.subr.bf16.mxu0 %v6176_v17  ;;  %1562 = vmatprep.subr.bf16.mxu1 %v6178_v25  ;;  %v8367_v17 = vpack.c.bf16 %v92_v10, %v90_v8  ;;  %v8385_v25 = vpack.c.bf16 %v91_v19, %v89_v18  ;;  %v6731_v8 = vld [vmem:[#allocation2] ss:$8 sps:$4 sm:$0xff]  }
  0x97   :  { %v6733_v10 = vld [vmem:[#allocation2 + $0x100] ss:$8 sps:$4 sm:$0xff]  }
  0x98   :  { %v6738_v18 = vld [vmem:[#allocation2 + $0xa0] ss:$8 sps:$4 sm:$0xff]  }
  0x99   :  { %1370 = vmatpush1.bf16.msra.mxu0 %v6175_v26  ;;  %1563 = vmatpush1.bf16.msra.mxu1 %v6177_v27  ;;  %v8387_v26 = vpack.c.bf16 %v96_v22, %v94_v20  ;;  %v93_v27 = vld [vmem:[%s12738_s0 + $0x140] sm:$0xff]  ;;  %v6742_v22 = vld [vmem:[#allocation2 + $0xb0] ss:$8 sps:$4 sm:$0xff]  }
  0x9a   :  { %1371 = vmatprep.subr.bf16.mxu0 %v6184_v28  ;;  %1564 = vmatprep.subr.bf16.mxu1 %v6186_v30  ;;  %v95_v28 = vld [vmem:[%s12738_s0 + $0x150] sm:$0xff]  ;;  %v98_v30 = vld [vmem:[%s12738_s0 + $0x168] sm:$0xff] }
  0x9b   :  { %1054 = vmatmul.mubr.bf16.gmra.mrb[24].mxu0 %v8289_v29  ;;  %1247 = vmatmul.mubr.bf16.gmra.mrb[24].mxu1 %v8289_v29  ;;  %v8405_v32 = vpack.c.bf16 %v95_v28, %v93_v27  ;;  %v8407_v34 = vpack.c.bf16 %v100_v31, %v98_v30  ;;  %v6740_v19 = vld [vmem:[#allocation2 + $0x1a0] ss:$8 sps:$4 sm:$0xff]   ;;  %v6745_v27 = vld [vmem:[#allocation2 + $0x130] ss:$8 sps:$4 sm:$0xff]  }
  0x9c   :  { %1063 = vmatprep.mubr.bf16.mxu0 %v8297_v33  ;;  %1256 = vmatprep.mubr.bf16.mxu1 %v8297_v33  ;;  %v6741_v20 = vld [vmem:[#allocation2 + $0x120] ss:$8 sps:$4 sm:$0xff]  }
  0x9d   :  { %1372 = vmatpush1.bf16.msra.mxu0 %v6183_v36  ;;  %1565 = vmatpush1.bf16.msra.mxu1 %v6185_v37  ;;  %v99_v36 = vld [vmem:[%s12738_s0 + $0x170] sm:$0xff]  ;;  %v102_v37 = vld [vmem:[%s12738_s0 + $0x188] sm:$0xff] }
  0x9e   :  { %1373 = vmatprep.subr.bf16.mxu0 %v6192_v38  ;;  %1566 = vmatprep.subr.bf16.mxu1 %v6194_v42  ;;  %v104_v38 = vld [vmem:[%s12738_s0 + $0x198] sm:$0xff]  ;;  %v8425_v39 = vpack.c.bf16 %v99_v36, %v97_v35  ;;  %v6746_v28 = vld [vmem:[#allocation2 + $0xc0] ss:$8 sps:$4 sm:$0xff]  }
  0x9f   :  { %v8427_v42 = vpack.c.bf16 %v104_v38, %v102_v37  ;;  %v6748_v30 = vld [vmem:[#allocation2 + $0x1c0] ss:$8 sps:$4 sm:$0xff]   ;;  %v6750_v36 = vld [vmem:[#allocation2 + $0xd0] ss:$8 sps:$4 sm:$0xff]  }
  0xa0   :  { %v6747_v31 = vld [vmem:[#allocation2 + $0x40] ss:$8 sps:$4 sm:$0xff]   ;;  %v6753_v37 = vld [vmem:[#allocation2 + $0x150] ss:$8 sps:$4 sm:$0xff]  }
  0xa1   :  { %1374 = vmatpush1.bf16.msra.mxu0 %v6191_v52  ;;  %1567 = vmatpush1.bf16.msra.mxu1 %v6193_v53  ;;  %v107_v52 = vld [vmem:[%s12738_s0 + $0x1b0] sm:$0xff]  ;;  %v110_v53 = vld [vmem:[%s12738_s0 + $0x1c8] sm:$0xff] }
  0xa2   :  { %1375 = vmatprep.subr.bf16.mxu0 %v6200_v54  ;;  %1568 = vmatprep.subr.bf16.mxu1 %v6202_v56  ;;  %v112_v54 = vld [vmem:[%s12738_s0 + $0x1d8] sm:$0xff]  ;;  %v8465_v56 = vpack.c.bf16 %v107_v52, %v105_v51  ;;  %v6749_v35 = vld [vmem:[#allocation2 + $0x140] ss:$8 sps:$4 sm:$0xff]   ;;  %v6762_v52 = vld [vmem:[#allocation2 + $0x84] ss:$8 sps:$4 sm:$0xff]  }
  0xa3   :  { %1064 = vmatmul.mubr.bf16.gmra.mrb[28].mxu0 %v8333_v55  ;;  %1257 = vmatmul.mubr.bf16.gmra.mrb[28].mxu1 %v8333_v55  ;;  %v8467_v57 = vpack.c.bf16 %v112_v54, %v110_v53  ;;  %v6754_v38 = vld [vmem:[#allocation2 + $0xe0] ss:$8 sps:$4 sm:$0xff]   ;;  %v6761_v51 = vld [vmem:[#allocation2 + $0x170] ss:$8 sps:$4 sm:$0xff]   ;;  %v6764_v53 = vld [vmem:[#allocation2 + $0x184] ss:$8 sps:$4 sm:$0xff]  }
  0xa4   :  { %1073 = vmatprep.mubr.bf16.mxu0 %v8341_v60  ;;  %1266 = vmatprep.mubr.bf16.mxu1 %v8341_v60 }
  0xa5   :  { %1376 = vmatpush1.bf16.msra.mxu0 %v6199_v1  ;;  %1569 = vmatpush1.bf16.msra.mxu1 %v6201_v2  ;;  %v116_v1 = vld [vmem:[%s12738_s0 + $0x1f8] sm:$0xff]  ;;  %v8485_v2 = vpack.c.bf16 %v111_v61, %v109_v59 }
  0xa6   :  { %1377 = vmatprep.subr.bf16.mxu0 %v6208_v3  ;;  %1570 = vmatprep.subr.bf16.mxu1 %v6210_v4  ;;  %v8487_v3 = vpack.c.bf16 %v116_v1, %v114_v63  ;;  %v113_v4 = vld [vmem:[%s12738_s0 + $0x1e0] sm:$0xff]  ;;  %s7734_s0 = smov [#allocation8]  }
  0xa7   :  { %v8499_v6 = vpack.c.bf16 %v115_v5, %v113_v4  ;;  %s6051_s20 = sshll.u32 %s7734_s0, 4  ;;  %s6052_s20 = int_to_ptr.vmem [resolvable:$true] %s6051_s20 }
  0xa8   :  { %s7656_s22 = scalar_lea.vmem %s6052_s20, 4096  ;;  %p7661_p3 = scmp.lt.s32.totalorder %s6052_s20, %s6052_s20 }
  0xa9   :  { %1378 = vmatpush1.bf16.msra.mxu0 %v6207_v11  ;;  %1571 = vmatpush1.bf16.msra.mxu1 %v6209_v12  ;;  %v6734_v11 = vld [vmem:[#allocation2 + $0x90] ss:$8 sps:$4 sm:$0xff]   ;;  %p7657_p2 = scmp.ne.s32.totalorder %s6052_s20, %s7656_s22  ;;  %p7662_p4 = scmp.lt.s32.totalorder %s7656_s22, %s7656_s22 }
  0xaa   :  { %6275 = vmatprep.subr.bf16.mxu0 %v6730_v13  ;;  %6387 = vmatprep.subr.bf16.mxu1 %v6732_v16  ;;  %v6736_v12 = vld [vmem:[#allocation2 + $0x190] ss:$8 sps:$4 sm:$0xff]  }
  0xab   :  { %1074 = vmatmul.mubr.bf16.gmra.mrb[32].mxu0 %v8365_v14  ;;  %1267 = vmatmul.mubr.bf16.gmra.mrb[32].mxu1 %v8365_v14  ;;  %v6735_v13 = vld [vmem:[#allocation2 + $0x10] ss:$8 sps:$4 sm:$0xff]   ;;  %p7663_p5 = por %p7662_p4, %p7661_p3 }
  0xac   :  { %1083 = vmatprep.mubr.bf16.mxu0 %v8367_v17  ;;  %1276 = vmatprep.mubr.bf16.mxu1 %v8367_v17  ;;  %v6737_v16 = vld [vmem:[#allocation2 + $0x110] ss:$8 sps:$4 sm:$0xff]  }
  0xad   :  { %p7664_p6 = pnand %p7663_p5, %p7657_p2 }
  0xb3   :  { %1084 = vmatmul.mubr.bf16.gmra.mrb[36].mxu0 %v8385_v25  ;;  %1277 = vmatmul.mubr.bf16.gmra.mrb[36].mxu1 %v8385_v25 }
  0xb4   :  { %1093 = vmatprep.mubr.bf16.mxu0 %v8387_v26  ;;  %1286 = vmatprep.mubr.bf16.mxu1 %v8387_v26 }
  0xbb   :  { %1094 = vmatmul.mubr.bf16.gmra.mrb[40].mxu0 %v8405_v32  ;;  %1287 = vmatmul.mubr.bf16.gmra.mrb[40].mxu1 %v8405_v32 }
  0xbc   :  { %1103 = vmatprep.mubr.bf16.mxu0 %v8407_v34  ;;  %1296 = vmatprep.mubr.bf16.mxu1 %v8407_v34 }
  0xc3   :  { %1104 = vmatmul.mubr.bf16.gmra.mrb[44].mxu0 %v8425_v39  ;;  %1297 = vmatmul.mubr.bf16.gmra.mrb[44].mxu1 %v8425_v39 }
  0xc4   :  { %1113 = vmatprep.mubr.bf16.mxu0 %v8427_v42  ;;  %1306 = vmatprep.mubr.bf16.mxu1 %v8427_v42 }
  0xcb   :  { %1114 = vmatmul.mubr.bf16.gmra.mrb[48].mxu0 %v8445_v49  ;;  %1307 = vmatmul.mubr.bf16.gmra.mrb[48].mxu1 %v8445_v49 }
  0xcc   :  { %1123 = vmatprep.mubr.bf16.mxu0 %v8447_v50  ;;  %1316 = vmatprep.mubr.bf16.mxu1 %v8447_v50 }
  0xd3   :  { %1124 = vmatmul.mubr.bf16.gmra.mrb[52].mxu0 %v8465_v56  ;;  %1317 = vmatmul.mubr.bf16.gmra.mrb[52].mxu1 %v8465_v56 }
  0xd4   :  { %1133 = vmatprep.mubr.bf16.mxu0 %v8467_v57  ;;  %1326 = vmatprep.mubr.bf16.mxu1 %v8467_v57 }
  0xdb   :  { %1134 = vmatmul.mubr.bf16.gmra.mrb[56].mxu0 %v8485_v2  ;;  %1327 = vmatmul.mubr.bf16.gmra.mrb[56].mxu1 %v8485_v2 }
  0xdc   :  { %1143 = vmatprep.mubr.bf16.mxu0 %v8487_v3  ;;  %1336 = vmatprep.mubr.bf16.mxu1 %v8487_v3 }
  0xe3   :  { %1144 = vmatmul.mubr.bf16.gmra.mrb[60].mxu0 %v8499_v6  ;;  %1337 = vmatmul.mubr.bf16.gmra.mrb[60].mxu1 %v8499_v6 }
  0xe4   :  { %1379 = vmatprep.mubr.bf16.mxu0 %v7895_v58  ;;  %1572 = vmatprep.mubr.bf16.mxu1 %v7895_v58  ;;  %v6739_v58 = vld [vmem:[#allocation2 + $0x20] ss:$8 sps:$4 sm:$0xff]  }
  0xeb   :  { %1380 = vmatmul.mubr.bf16.vlgmr.msra.gmra.mrb[64].mxu0 %v8028_v15  ;;  %1573 = vmatmul.mubr.bf16.vlgmr.msra.gmra.mrb[64].mxu1 %v8028_v15  ;;  %v6744_v15 = vld [vmem:[#allocation2 + $0x1b0] ss:$8 sps:$4 sm:$0xff]  }
  0xec   :  { %6276 = vmatpush3.bf16.msra.mxu0 %v6731_v8  ;;  %6388 = vmatpush3.bf16.msra.mxu1 %v6733_v10 }
  0xed   :  { %1389 = vmatprep.mubr.bf16.mxu0 %v8045_v23  ;;  %1582 = vmatprep.mubr.bf16.mxu1 %v8045_v23  ;;  %v6743_v23 = vld [vmem:[#allocation2 + $0x30] ss:$8 sps:$4 sm:$0xff]  }
  0xee   :  { %6277 = vmatprep.subr.bf16.mxu0 %v6734_v11  ;;  %6389 = vmatprep.subr.bf16.mxu1 %v6736_v12 }
  0xf0   :  { %6278 = vmatpush3.bf16.msra.mxu0 %v6735_v13  ;;  %6390 = vmatpush3.bf16.msra.mxu1 %v6737_v16 }
  0xf1   :  { %6279 = vmatprep.subr.bf16.mxu0 %v6738_v18  ;;  %6391 = vmatprep.subr.bf16.mxu1 %v6740_v19 }
  0xf3   :  { %1390 = vmatmul.mubr.bf16.gmra.mrb[68].mxu0 %v8081_v40  ;;  %1583 = vmatmul.mubr.bf16.gmra.mrb[68].mxu1 %v8081_v40  ;;  %v6752_v40 = vld [vmem:[#allocation2 + $0x1d0] ss:$8 sps:$4 sm:$0xff]  }
  0xf4   :  { %1399 = vmatprep.mubr.bf16.mxu0 %v8083_v41  ;;  %1592 = vmatprep.mubr.bf16.mxu1 %v8083_v41  ;;  %v6751_v41 = vld [vmem:[#allocation2 + $0x50] ss:$8 sps:$4 sm:$0xff]  }
  0xf5   :  { %6280 = vmatpush3.bf16.msra.mxu0 %v6739_v58  ;;  %6392 = vmatpush3.bf16.msra.mxu1 %v6741_v20 }
  0xf6   :  { %6281 = vmatprep.subr.bf16.mxu0 %v6742_v22  ;;  %6393 = vmatprep.subr.bf16.mxu1 %v6744_v15 }
  0xf9   :  { %6282 = vmatpush3.bf16.msra.mxu0 %v6743_v23  ;;  %6394 = vmatpush3.bf16.msra.mxu1 %v6745_v27 }
  0xfa   :  { %6283 = vmatprep.subr.bf16.mxu0 %v6746_v28  ;;  %6395 = vmatprep.subr.bf16.mxu1 %v6748_v30 }
  0xfb   :  { %1400 = vmatmul.mubr.bf16.gmra.mrb[72].mxu0 %v8125_v62  ;;  %1593 = vmatmul.mubr.bf16.gmra.mrb[72].mxu1 %v8125_v62  ;;  %v6760_v62 = vld [vmem:[#allocation2 + $0x1f0] ss:$8 sps:$4 sm:$0xff]  }
  0xfc   :  { %1409 = vmatprep.mubr.bf16.mxu0 %v8127_v0  ;;  %1602 = vmatprep.mubr.bf16.mxu1 %v8127_v0  ;;  %v6759_v0 = vld [vmem:[#allocation2 + $0x70] ss:$8 sps:$4 sm:$0xff]  }
  0xfd   :  { %6284 = vmatpush3.bf16.msra.mxu0 %v6747_v31  ;;  %6396 = vmatpush3.bf16.msra.mxu1 %v6749_v35 }
  0xfe   :  { %6285 = vmatprep.subr.bf16.mxu0 %v6750_v36  ;;  %6397 = vmatprep.subr.bf16.mxu1 %v6752_v40 }
 0x101   :  { %6286 = vmatpush3.bf16.msra.mxu0 %v6751_v41  ;;  %6398 = vmatpush3.bf16.msra.mxu1 %v6753_v37 }
 0x102   :  { %6287 = vmatprep.subr.bf16.mxu0 %v6754_v38  ;;  %6399 = vmatprep.subr.bf16.mxu1 %v6756_v43 }
 0x103   :  { %1410 = vmatmul.mubr.bf16.gmra.mrb[76].mxu0 %v8169_v21  ;;  %1603 = vmatmul.mubr.bf16.gmra.mrb[76].mxu1 %v8169_v21  ;;  %v12745_v21 = vlaneseq }
 0x104   :  { %1419 = vmatprep.mubr.bf16.mxu0 %v8171_v24  ;;  %1612 = vmatprep.mubr.bf16.mxu1 %v8171_v24 }
 0x105   :  { %6288 = vmatpush3.bf16.msra.mxu0 %v6755_v44  ;;  %6400 = vmatpush3.bf16.msra.mxu1 %v6757_v45  ;;  %v8546_v24 = vshrl.u32 %v12745_v21, 7 }
 0x106   :  { %6289 = vmatprep.subr.bf16.mxu0 %v6758_v47  ;;  %6401 = vmatprep.subr.bf16.mxu1 %v6760_v62 }
 0x109   :  { %6290 = vmatpush3.bf16.msra.mxu0 %v6759_v0  ;;  %6402 = vmatpush3.bf16.msra.mxu1 %v6761_v51 }
 0x10a   :  { %6499 = vmatprep.subr.bf16.mxu0 %v6762_v52  ;;  %6611 = vmatprep.subr.bf16.mxu1 %v6764_v53 }
 0x10b   :  { %1420 = vmatmul.mubr.bf16.gmra.mrb[80].mxu0 %v8213_v46  ;;  %1613 = vmatmul.mubr.bf16.gmra.mrb[80].mxu1 %v8213_v46  ;;  %v149_v46 = vld [vmem:[#allocation5] ss:$8 sm:$0xf] }
 0x10c   :  { %1429 = vmatprep.mubr.bf16.mxu0 %v8215_v48  ;;  %1622 = vmatprep.mubr.bf16.mxu1 %v8215_v48  ;;  %v150_v48 = vld [vmem:[#allocation5] ss:$8 sm:$0xf0] }
 0x113   :  { %1430 = vmatmul.mubr.bf16.gmra.mrb[84].mxu0 %v8257_v7  ;;  %1623 = vmatmul.mubr.bf16.gmra.mrb[84].mxu1 %v8257_v7  ;;  %v291_v7 = vsub.s32 2, %v8546_v24 }
 0x114   :  { %1439 = vmatprep.mubr.bf16.mxu0 %v8259_v9  ;;  %1632 = vmatprep.mubr.bf16.mxu1 %v8259_v9  ;;  %v8549_v9 = vor.u32 %v150_v48, %v149_v46 }
 0x116   :  { %12842 = vst [vmem:[#allocation15_spill] sm:$0xff] %v8549_v9 }
 0x11b   :  { %1440 = vmatmul.mubr.bf16.gmra.mrb[88].mxu0 %v8289_v29  ;;  %1633 = vmatmul.mubr.bf16.gmra.mrb[88].mxu1 %v8289_v29  ;;  %v283_v29 = vsub.s32 0, %v8546_v24 }
 0x11c   :  { %1449 = vmatprep.mubr.bf16.mxu0 %v8297_v33  ;;  %1642 = vmatprep.mubr.bf16.mxu1 %v8297_v33  ;;  %v295_v33 = vsub.s32 3, %v8546_v24 }
 0x123   :  { %1450 = vmatmul.mubr.bf16.gmra.mrb[92].mxu0 %v8333_v55  ;;  %1643 = vmatmul.mubr.bf16.gmra.mrb[92].mxu1 %v8333_v55  ;;  %v287_v55 = vsub.s32 1, %v8546_v24 }
 0x124   :  { %1459 = vmatprep.mubr.bf16.mxu0 %v8341_v60  ;;  %1652 = vmatprep.mubr.bf16.mxu1 %v8341_v60  ;;  %v8557_v60 = vrot.slane %v8549_v9, %v291_v7 }
 0x12b   :  { %1460 = vmatmul.mubr.bf16.gmra.mrb[96].mxu0 %v8365_v14  ;;  %1653 = vmatmul.mubr.bf16.gmra.mrb[96].mxu1 %v8365_v14  ;;  %v8561_v14 = vrot.slane %v8549_v9, %v283_v29 }
 0x12c   :  { %1469 = vmatprep.mubr.bf16.mxu0 %v8367_v17  ;;  %1662 = vmatprep.mubr.bf16.mxu1 %v8367_v17  ;;  %v8564_v17 = vrot.slane %v8549_v9, %v295_v33 }
 0x133   :  { %1470 = vmatmul.mubr.bf16.gmra.mrb[100].mxu0 %v8385_v25  ;;  %1663 = vmatmul.mubr.bf16.gmra.mrb[100].mxu1 %v8385_v25 }
 0x134   :  { %1479 = vmatprep.mubr.bf16.mxu0 %v8387_v26  ;;  %1672 = vmatprep.mubr.bf16.mxu1 %v8387_v26  ;;  %v8568_v26 = vrot.slane %v8549_v9, %v287_v55 }
 0x13b   :  { %1480 = vmatmul.mubr.bf16.gmra.mrb[104].mxu0 %v8405_v32  ;;  %1673 = vmatmul.mubr.bf16.gmra.mrb[104].mxu1 %v8405_v32 }
 0x13c   :  { %1489 = vmatprep.mubr.bf16.mxu0 %v8407_v34  ;;  %1682 = vmatprep.mubr.bf16.mxu1 %v8407_v34 }
 0x13e   :  { %v995_v25 = vpop.f32.mrb[0].mxu0  ;;  %v1188_v54 = vpop.f32.mrb[0].mxu1 }
 0x13f   :  { %v997_v59 = vpop.f32.mrb[1].mxu0  ;;  %v1189_v32 = vadd.f32 %v1188_v54, %v8557_v60  ;;  %v1190_v61 = vpop.f32.mrb[1].mxu1  ;;  %v996_v1 = vadd.f32 %v995_v25, %v8561_v14 }
 0x140   :  { %v999_v63 = vpop.f32.mrb[2].mxu0  ;;  %v1191_v4 = vadd.f32 %v1190_v61, %v8564_v17  ;;  %v1192_v8 = vpop.f32.mrb[2].mxu1  ;;  %v998_v34 = vadd.f32 %v997_v59, %v8568_v26 }
 0x141   :  { %v1000_v5 = vadd.f32 %v999_v63, %v8561_v14  ;;  %v1001_v10 = vpop.f32.mrb[3].mxu0  ;;  %v1193_v11 = vadd.f32 %v1192_v8, %v8557_v60  ;;  %v1194_v13 = vpop.f32.mrb[3].mxu1 }
 0x142   :  { %v1002_v12 = vadd.f32 %v1001_v10, %v8568_v26  ;;  %v1195_v18 = vadd.f32 %v1194_v13, %v8564_v17 }
 0x143   :  { %v8577_v16 = vpack.c.bf16 %v1000_v5, %v996_v1  ;;  %1490 = vmatmul.mubr.bf16.gmra.mrb[108].mxu0 %v8425_v39  ;;  %v8581_v19 = vpack.c.bf16 %v1193_v11, %v1189_v32  ;;  %1683 = vmatmul.mubr.bf16.gmra.mrb[108].mxu1 %v8425_v39 }
 0x144   :  { %v8583_v58 = vpack.c.bf16 %v1002_v12, %v998_v34  ;;  %1499 = vmatprep.mubr.bf16.mxu0 %v8427_v42  ;;  %v8588_v22 = vpack.c.bf16 %v1195_v18, %v1191_v4  ;;  %1692 = vmatprep.mubr.bf16.mxu1 %v8427_v42 }
 0x145   :  { %v1989_v20 = vmul.bf16 1027030327, %v8577_v16  ;;  %v1861_v15 = vmul.bf16 1056980736, %v8577_v16  ;;  %v1991_v23 = vmul.bf16 1027030327, %v8581_v19 }
 0x146   :  { %v1990_v27 = vmul.bf16 1027030327, %v8583_v58  ;;  %v1005_v28 = vpop.f32.mrb[4].mxu0  ;;  %v1992_v31 = vmul.bf16 1027030327, %v8588_v22  ;;  %v1198_v35 = vpop.f32.mrb[4].mxu1 }
 0x147   :  { %v2117_v30 = vmul.bf16 %v1989_v20, %v8577_v16  ;;  %v1006_v39 = vadd.f32 %v1005_v28, %v8561_v14  ;;  %v1007_v36 = vpop.f32.mrb[5].mxu0  ;;  %v1862_v40 = vmul.bf16 1056980736, %v8583_v58  ;;  %v2119_v41 = vmul.bf16 %v1991_v23, %v8581_v19  ;;  %v1200_v38 = vpop.f32.mrb[5].mxu1 }
 0x148   :  { %v1199_v42 = vadd.f32 %v1198_v35, %v8557_v60  ;;  %v1008_v37 = vadd.f32 %v1007_v36, %v8568_v26  ;;  %v1009_v43 = vpop.f32.mrb[6].mxu0  ;;  %v2118_v44 = vmul.bf16 %v1990_v27, %v8583_v58  ;;  %v1201_v47 = vadd.f32 %v1200_v38, %v8564_v17  ;;  %v1202_v0 = vpop.f32.mrb[6].mxu1 }
 0x149   :  { %v2245_v45 = vmul.bf16 %v2117_v30, %v8577_v16  ;;  %v1010_v62 = vadd.f32 %v1009_v43, %v8561_v14  ;;  %v1011_v51 = vpop.f32.mrb[7].mxu0  ;;  %v1864_v52 = vmul.bf16 1056980736, %v8588_v22  ;;  %v2247_v53 = vmul.bf16 %v2119_v41, %v8581_v19  ;;  %v1204_v7 = vpop.f32.mrb[7].mxu1 }
 0x14a   :  { %v1203_v46 = vadd.f32 %v1202_v0, %v8557_v60  ;;  %v1012_v48 = vadd.f32 %v1011_v51, %v8568_v26  ;;  %v2246_v29 = vmul.bf16 %v2118_v44, %v8583_v58  ;;  %v1205_v25 = vadd.f32 %v1204_v7, %v8564_v17 }
 0x14b   :  { %v2373_v33 = vadd.bf16 %v2245_v45, %v8577_v16  ;;  %v8611_v55 = vpack.c.bf16 %v1010_v62, %v1006_v39  ;;  %1500 = vmatmul.mubr.bf16.gmra.mrb[112].mxu0 %v8445_v49  ;;  %v2120_v54 = vmul.bf16 %v1992_v31, %v8588_v22  ;;  %v2375_v59 = vadd.bf16 %v2247_v53, %v8581_v19 }
 0x14c   :  { %v8617_v32 = vpack.c.bf16 %v1203_v46, %v1199_v42  ;;  %v8619_v61 = vpack.c.bf16 %v1012_v48, %v1008_v37  ;;  %1693 = vmatmul.mubr.bf16.gmra.mrb[112].mxu1 %v8445_v49  ;;  %1509 = vmatprep.mubr.bf16.mxu0 %v8447_v50  ;;  %v1863_v63 = vmul.bf16 1056980736, %v8581_v19  ;;  %v8625_v5 = vpack.c.bf16 %v1205_v25, %v1201_v47 }
 0x14d   :  { %v2501_v1 = vmul.bf16 1061961548, %v2373_v33  ;;  %v1997_v4 = vmul.bf16 1027030327, %v8611_v55  ;;  %1702 = vmatprep.mubr.bf16.mxu1 %v8447_v50  ;;  %v2374_v8 = vadd.bf16 %v2246_v29, %v8583_v58  ;;  %v2503_v10 = vmul.bf16 1061961548, %v2375_v59 }
 0x14e   :  { %v1999_v34 = vmul.bf16 1027030327, %v8617_v32  ;;  %v1998_v11 = vmul.bf16 1027030327, %v8619_v61  ;;  %v2248_v49 = vmul.bf16 %v2120_v54, %v8588_v22  ;;  %v2000_v12 = vmul.bf16 1027030327, %v8625_v5 }
 0x14f   :  { %6794 = vtanh.bf16 %v2501_v1  ;;  %v1015_v13 = vpop.f32.mrb[8].mxu0  ;;  %v1208_v18 = vpop.f32.mrb[8].mxu1  ;;  %v2502_v20 = vmul.bf16 1061961548, %v2374_v8  ;;  %v2125_v23 = vmul.bf16 %v1997_v4, %v8611_v55  ;;  %v1870_v42 = vmul.bf16 1056980736, %v8619_v61 }
 0x150   :  { %6796 = vtanh.bf16 %v2503_v10  ;;  %v1016_v50 = vadd.f32 %v1015_v13, %v8561_v14  ;;  %v1209_v27 = vadd.f32 %v1208_v18, %v8557_v60  ;;  %v1017_v28 = vpop.f32.mrb[9].mxu0  ;;  %v1210_v30 = vpop.f32.mrb[9].mxu1  ;;  %v2376_v31 = vadd.bf16 %v2248_v49, %v8588_v22 }
 0x151   :  { %v1018_v39 = vadd.f32 %v1017_v28, %v8568_v26  ;;  %v1211_v35 = vadd.f32 %v1210_v30, %v8564_v17  ;;  %v1019_v36 = vpop.f32.mrb[10].mxu0  ;;  %v1212_v41 = vpop.f32.mrb[10].mxu1  ;;  %6798 = vtanh.bf16 %v2502_v20  ;;  %v2126_v47 = vmul.bf16 %v1998_v11, %v8619_v61 }
 0x152   :  { %v1020_v37 = vadd.f32 %v1019_v36, %v8561_v14  ;;  %v1213_v38 = vadd.f32 %v1212_v41, %v8557_v60  ;;  %v1021_v43 = vpop.f32.mrb[11].mxu0  ;;  %v1214_v44 = vpop.f32.mrb[11].mxu1  ;;  %v2504_v45 = vmul.bf16 1061961548, %v2376_v31  ;;  %v1872_v51 = vmul.bf16 1056980736, %v8625_v5 }
 0x153   :  { %v1022_v62 = vadd.f32 %v1021_v43, %v8568_v26  ;;  %v1215_v0 = vadd.f32 %v1214_v44, %v8564_v17  ;;  %1510 = vmatmul.mubr.bf16.gmra.mrb[116].mxu0 %v8465_v56  ;;  %v2128_v53 = vmul.bf16 %v2000_v12, %v8625_v5  ;;  %v2254_v7 = vmul.bf16 %v2126_v47, %v8619_v61 }
 0x154   :  { %v8648_v46 = vpack.c.bf16 %v1020_v37, %v1016_v50  ;;  %v8650_v48 = vpack.c.bf16 %v1213_v38, %v1209_v27  ;;  %1703 = vmatmul.mubr.bf16.gmra.mrb[116].mxu1 %v8465_v56  ;;  %1519 = vmatprep.mubr.bf16.mxu0 %v8467_v57  ;;  %6800 = vtanh.bf16 %v2504_v45  ;;  %v1869_v54 = vmul.bf16 1056980736, %v8611_v55 }
 0x155   :  { %v8655_v29 = vpack.c.bf16 %v1022_v62, %v1018_v39  ;;  %v8657_v33 = vpack.c.bf16 %v1215_v0, %v1211_v35  ;;  %1712 = vmatprep.mubr.bf16.mxu1 %v8467_v57  ;;  %v2256_v25 = vmul.bf16 %v2128_v53, %v8625_v5  ;;  %v2382_v4 = vadd.bf16 %v2254_v7, %v8619_v61 }
 0x156   :  { %v2005_v59 = vmul.bf16 1027030327, %v8648_v46  ;;  %v2007_v1 = vmul.bf16 1027030327, %v8650_v48  ;;  %v1025_v56 = vpop.f32.mrb[12].mxu0  ;;  %v2253_v8 = vmul.bf16 %v2125_v23, %v8611_v55  ;;  %v1218_v57 = vpop.f32.mrb[12].mxu1 }
 0x157   :  { %v2006_v10 = vmul.bf16 1027030327, %v8655_v29  ;;  %v2008_v11 = vmul.bf16 1027030327, %v8657_v33  ;;  %v1026_v49 = vadd.f32 %v1025_v56, %v8561_v14  ;;  %v1027_v12 = vpop.f32.mrb[13].mxu0  ;;  %v2384_v13 = vadd.bf16 %v2256_v25, %v8625_v5  ;;  %v1220_v50 = vpop.f32.mrb[13].mxu1 }
 0x158   :  { %v1219_v18 = vadd.f32 %v1218_v57, %v8557_v60  ;;  %v1028_v20 = vadd.f32 %v1027_v12, %v8568_v26  ;;  %v1029_v27 = vpop.f32.mrb[14].mxu0  ;;  %v2510_v28 = vmul.bf16 1061961548, %v2382_v4  ;;  %v2381_v30 = vadd.bf16 %v2253_v8, %v8611_v55  ;;  %v1222_v39 = vpop.f32.mrb[14].mxu1 }
 0x159   :  { %v1221_v23 = vadd.f32 %v1220_v50, %v8564_v17  ;;  %v1030_v31 = vadd.f32 %v1029_v27, %v8561_v14  ;;  %v1031_v35 = vpop.f32.mrb[15].mxu0  ;;  %v2512_v36 = vmul.bf16 1061961548, %v2384_v13  ;;  %v1871_v41 = vmul.bf16 1056980736, %v8617_v32  ;;  %v1224_v44 = vpop.f32.mrb[15].mxu1 }
 0x15a   :  { %v6795_v37 = vpop.eup %6794  ;;  %v1223_v38 = vadd.f32 %v1222_v39, %v8557_v60  ;;  %v1032_v43 = vadd.f32 %v1031_v35, %v8568_v26  ;;  %6802 = vtanh.bf16 %v2510_v28  ;;  %v2509_v45 = vmul.bf16 1061961548, %v2381_v30 }
 0x15b   :  { %v6797_v47 = vpop.eup %6796  ;;  %v8678_v62 = vpack.c.bf16 %v1030_v31, %v1026_v49  ;;  %v1225_v0 = vadd.f32 %v1224_v44, %v8564_v17  ;;  %1520 = vmatmul.mubr.bf16.gmra.mrb[120].mxu0 %v8485_v2  ;;  %v2757_v53 = vadd.bf16 1065369472, %v6795_v37  ;;  %6804 = vtanh.bf16 %v2512_v36 }
 0x15c   :  { %v6799_v7 = vpop.eup %6798  ;;  %v8682_v25 = vpack.c.bf16 %v1223_v38, %v1219_v18  ;;  %v8684_v56 = vpack.c.bf16 %v1032_v43, %v1028_v20  ;;  %1713 = vmatmul.mubr.bf16.gmra.mrb[120].mxu1 %v8485_v2  ;;  %1529 = vmatprep.mubr.bf16.mxu0 %v8487_v3  ;;  %v2759_v4 = vadd.bf16 1065369472, %v6797_v47  ;;  %6806 = vtanh.bf16 %v2509_v45 }
 0x15d   :  { %v2013_v8 = vmul.bf16 1027030327, %v8678_v62  ;;  %v8689_v49 = vpack.c.bf16 %v1225_v0, %v1221_v23  ;;  %1722 = vmatprep.mubr.bf16.mxu1 %v8487_v3  ;;  %v2758_v57 = vadd.bf16 1065369472, %v6799_v7  ;;  %v8694_v12 = vmul.bf16 %v2757_v53, %v1861_v15 }
 0x15e   :  { %v2015_v13 = vmul.bf16 1027030327, %v8682_v25  ;;  %v2014_v18 = vmul.bf16 1027030327, %v8684_v56  ;;  %v1035_v2 = vpop.f32.mrb[16].mxu0  ;;  %v8700_v20 = vmul.bf16 %v2759_v4, %v1863_v63  ;;  %v2127_v50 = vmul.bf16 %v1999_v34, %v8617_v32  ;;  %v1228_v15 = vpop.f32.mrb[16].mxu1 }
 0x15f   :  { %v6801_v27 = vpop.eup %6800  ;;  %v2016_v3 = vmul.bf16 1027030327, %v8689_v49  ;;  %v1036_v16 = vadd.f32 %v1035_v2, %v8561_v14  ;;  %v1037_v28 = vpop.f32.mrb[17].mxu0  ;;  %v2886_v30 = vmul.bf16 %v2758_v57, %v1862_v40  ;;  %v1878_v23 = vmul.bf16 1056980736, %v8655_v29 }
 0x160   :  { %v1229_v19 = vadd.f32 %v1228_v15, %v8557_v60  ;;  %v1038_v63 = vadd.f32 %v1037_v28, %v8568_v26  ;;  %v1230_v31 = vpop.f32.mrb[17].mxu1  ;;  %v1039_v39 = vpop.f32.mrb[18].mxu0  ;;  %v2760_v35 = vadd.bf16 1065369472, %v6801_v27  ;;  %v2255_v34 = vmul.bf16 %v2127_v50, %v8617_v32 }
 0x161   :  { %v1231_v36 = vadd.f32 %v1230_v31, %v8564_v17  ;;  %v1040_v37 = vadd.f32 %v1039_v39, %v8561_v14  ;;  %v1232_v38 = vpop.f32.mrb[18].mxu1  ;;  %v1041_v43 = vpop.f32.mrb[19].mxu0  ;;  %v2134_v58 = vmul.bf16 %v2006_v10, %v8655_v29  ;;  %v1880_v40 = vmul.bf16 1056980736, %v8657_v33 }
 0x162   :  { %v1233_v44 = vadd.f32 %v1232_v38, %v8557_v60  ;;  %v1042_v45 = vadd.f32 %v1041_v43, %v8568_v26  ;;  %v1234_v47 = vpop.f32.mrb[19].mxu1  ;;  %v2888_v0 = vmul.bf16 %v2760_v35, %v1864_v52  ;;  %v2383_v53 = vadd.bf16 %v2255_v34, %v8617_v32 }
 0x163   :  { %v8724_v7 = vpack.c.bf16 %v1040_v37, %v1036_v16  ;;  %v1235_v4 = vadd.f32 %v1234_v47, %v8564_v17  ;;  %1530 = vmatmul.mubr.bf16.gmra.mrb[124].mxu0 %v8499_v6  ;;  %v2262_v10 = vmul.bf16 %v2134_v58, %v8655_v29  ;;  %v2136_v57 = vmul.bf16 %v2008_v11, %v8657_v33 }
 0x164   :  { %v8732_v2 = vpack.c.bf16 %v1233_v44, %v1229_v19  ;;  %v8734_v50 = vpack.c.bf16 %v1042_v45, %v1038_v63  ;;  %1723 = vmatmul.mubr.bf16.gmra.mrb[124].mxu1 %v8499_v6  ;;  %3302 = vmatprep.mubr.bf16.mxu0 %v2886_v30  ;;  %v2511_v22 = vmul.bf16 1061961548, %v2383_v53  ;;  %v1877_v52 = vmul.bf16 1056980736, %v8648_v46 }
 0x165   :  { %v6803_v27 = vpop.eup %6802  ;;  %v2021_v16 = vmul.bf16 1027030327, %v8724_v7  ;;  %v8739_v15 = vpack.c.bf16 %v1235_v4, %v1231_v36  ;;  %3463 = vmatprep.mubr.bf16.mxu1 %v2888_v0  ;;  %v2390_v28 = vadd.bf16 %v2262_v10, %v8655_v29  ;;  %v2264_v11 = vmul.bf16 %v2136_v57, %v8657_v33  ;;  %v6782_v29 = vld [vmem:[#allocation2 + $0xd4] ss:$8 sps:$4 sm:$0xff]  }
 0x166   :  { %v6805_v19 = vpop.eup %6804  ;;  %v2023_v63 = vmul.bf16 1027030327, %v8732_v2  ;;  %v2022_v31 = vmul.bf16 1027030327, %v8734_v50  ;;  %v1045_v6 = vpop.f32.mrb[20].mxu0  ;;  %6808 = vtanh.bf16 %v2511_v22  ;;  %v2133_v30 = vmul.bf16 %v2005_v59, %v8648_v46 }
 0x167   :  { %v6807_v39 = vpop.eup %6806  ;;  %v2024_v35 = vmul.bf16 1027030327, %v8739_v15  ;;  %v1046_v34 = vadd.f32 %v1045_v6, %v8561_v14  ;;  %v1238_v36 = vpop.f32.mrb[20].mxu1  ;;  %v2766_v38 = vadd.bf16 1065369472, %v6803_v27  ;;  %v2392_v43 = vadd.bf16 %v2264_v11, %v8657_v33 }
 0x168   :  { %v1047_v37 = vpop.f32.mrb[21].mxu0  ;;  %v1239_v58 = vadd.f32 %v1238_v36, %v8557_v60  ;;  %v1240_v45 = vpop.f32.mrb[21].mxu1  ;;  %v2768_v0 = vadd.bf16 1065369472, %v6805_v19  ;;  %v2765_v53 = vadd.bf16 1065369472, %v6807_v39  ;;  %v2261_v55 = vmul.bf16 %v2133_v30, %v8648_v46 }
 0x169   :  { %v1048_v44 = vadd.f32 %v1047_v37, %v8568_v26  ;;  %v1049_v47 = vpop.f32.mrb[22].mxu0  ;;  %v1241_v59 = vadd.f32 %v1240_v45, %v8564_v17  ;;  %v1242_v10 = vpop.f32.mrb[22].mxu1  ;;  %v2894_v22 = vmul.bf16 %v2766_v38, %v1870_v42  ;;  %v6763_v27 = vld [vmem:[#allocation2 + $0x4] ss:$8 sps:$4 sm:$0xff]   ;;  %v2518_v6 = vmul.bf16 1061961548, %v2390_v28 }
 0x16a   :  { %v1050_v4 = vadd.f32 %v1049_v47, %v8561_v14  ;;  %v1051_v57 = vpop.f32.mrb[23].mxu0  ;;  %v1243_v11 = vadd.f32 %v1242_v10, %v8557_v60  ;;  %v1244_v37 = vpop.f32.mrb[23].mxu1  ;;  %v2896_v19 = vmul.bf16 %v2768_v0, %v1872_v51  ;;  %v6765_v39 = vld [vmem:[#allocation2 + $0x104] ss:$8 sps:$4 sm:$0xff]   ;;  %v8763_v45 = vmul.bf16 %v2765_v53, %v1869_v54  ;;  %v6766_v47 = vld [vmem:[#allocation2 + $0x94] ss:$8 sps:$4 sm:$0xff]  }
 0x16b   :  { %v1052_v36 = vadd.f32 %v1051_v57, %v8568_v26  ;;  %v1245_v61 = vadd.f32 %v1244_v37, %v8564_v17  ;;  %3303 = vmatmul.mubr.bf16.vlgmr.msra.gmra.mrb[128].mxu0 %v8694_v12  ;;  %6810 = vtanh.bf16 %v2518_v6  ;;  %v2520_v42 = vmul.bf16 1061961548, %v2392_v43  ;;  %v6768_v28 = vld [vmem:[#allocation2 + $0x194] ss:$8 sps:$4 sm:$0xff]   ;;  %v6770_v43 = vld [vmem:[#allocation2 + $0xa4] ss:$8 sps:$4 sm:$0xff]  }
 0x16c   :  { %v8765_v21 = vpack.c.bf16 %v1050_v4, %v1046_v34  ;;  %v8769_v38 = vpack.c.bf16 %v1243_v11, %v1239_v58  ;;  %3464 = vmatmul.mubr.bf16.vlgmr.msra.gmra.mrb[128].mxu1 %v8700_v20  ;;  %3310 = vmatprep.mubr.bf16.mxu0 %v2894_v22  ;;  %v1879_v5 = vmul.bf16 1056980736, %v8650_v48  ;;  %v6767_v51 = vld [vmem:[#allocation2 + $0x14] ss:$8 sps:$4 sm:$0xff]   ;;  %v2135_v12 = vmul.bf16 %v2007_v1, %v8650_v48  ;;  %v6772_v20 = vld [vmem:[#allocation2 + $0x1a4] ss:$8 sps:$4 sm:$0xff]  }
 0x16d   :  { %v8771_v10 = vpack.c.bf16 %v1052_v36, %v1048_v44  ;;  %v6769_v54 = vld [vmem:[#allocation2 + $0x114] ss:$8 sps:$4 sm:$0xff]   ;;  %v8777_v0 = vpack.c.bf16 %v1245_v61, %v1241_v59  ;;  %3471 = vmatprep.mubr.bf16.mxu1 %v2896_v19  ;;  %6500 = vmatpush3.bf16.msra.mxu0 %v6763_v27  ;;  %6812 = vtanh.bf16 %v2520_v42  ;;  %v2389_v53 = vadd.bf16 %v2261_v55, %v8648_v46  ;;  %v6773_v4 = vld [vmem:[#allocation2 + $0x124] ss:$8 sps:$4 sm:$0xff]  }
 0x16e   :  { %v1055_v44 = vpop.f32.mrb[24].mxu0  ;;  %6612 = vmatpush3.bf16.msra.mxu1 %v6765_v39  ;;  %6501 = vmatprep.subr.bf16.mxu0 %v6766_v47  ;;  %v2142_v59 = vmul.bf16 %v2014_v18, %v8684_v56  ;;  %v1248_v1 = vpop.f32.mrb[24].mxu1  ;;  %v2263_v27 = vmul.bf16 %v2135_v12, %v8650_v48  ;;  %v1886_v6 = vmul.bf16 1056980736, %v8684_v56 }
 0x16f   :  { %v2030_v30 = vmul.bf16 1027030327, %v8771_v10  ;;  %v1056_v57 = vadd.f32 %v1055_v44, %v8561_v14  ;;  %v1057_v22 = vpop.f32.mrb[25].mxu0  ;;  %6613 = vmatprep.subr.bf16.mxu1 %v6768_v28  ;;  %v1249_v11 = vadd.f32 %v1248_v1, %v8557_v60  ;;  %v1250_v37 = vpop.f32.mrb[25].mxu1  ;;  %v2517_v39 = vmul.bf16 1061961548, %v2389_v53 }
 0x170   :  { %v1058_v36 = vadd.f32 %v1057_v22, %v8568_v26  ;;  %v1059_v19 = vpop.f32.mrb[26].mxu0  ;;  %v2270_v18 = vmul.bf16 %v2142_v59, %v8684_v56  ;;  %v1251_v61 = vadd.f32 %v1250_v37, %v8564_v17  ;;  %v1252_v55 = vpop.f32.mrb[26].mxu1  ;;  %v2391_v12 = vadd.bf16 %v2263_v27, %v8650_v48  ;;  %v6771_v1 = vld [vmem:[#allocation2 + $0x24] ss:$8 sps:$4 sm:$0xff]   ;;  %v6774_v59 = vld [vmem:[#allocation2 + $0xb4] ss:$8 sps:$4 sm:$0xff]  }
 0x171   :  { %v6809_v47 = vpop.eup %6808  ;;  %v1060_v42 = vadd.f32 %v1059_v19, %v8561_v14  ;;  %v1061_v44 = vpop.f32.mrb[27].mxu0  ;;  %v1888_v28 = vmul.bf16 1056980736, %v8689_v49  ;;  %6502 = vmatpush3.bf16.msra.mxu0 %v6767_v51  ;;  %v1253_v22 = vadd.f32 %v1252_v55, %v8557_v60  ;;  %6814 = vtanh.bf16 %v2517_v39  ;;  %v6776_v39 = vld [vmem:[#allocation2 + $0x1b4] ss:$8 sps:$4 sm:$0xff]  }
 0x172   :  { %v1062_v58 = vadd.f32 %v1061_v44, %v8568_v26  ;;  %v1254_v53 = vpop.f32.mrb[27].mxu1  ;;  %v2767_v34 = vadd.bf16 1065369472, %v6809_v47  ;;  %6614 = vmatpush3.bf16.msra.mxu1 %v6769_v54  ;;  %6503 = vmatprep.subr.bf16.mxu0 %v6770_v43  ;;  %v2519_v27 = vmul.bf16 1061961548, %v2391_v12  ;;  %v2398_v51 = vadd.bf16 %v2270_v18, %v8684_v56 }
 0x173   :  { %v8801_v37 = vpack.c.bf16 %v1060_v42, %v1056_v57  ;;  %v1255_v19 = vadd.f32 %v1254_v53, %v8564_v17  ;;  %3311 = vmatmul.mubr.bf16.gmra.mrb[132].mxu0 %v8763_v45  ;;  %6615 = vmatprep.subr.bf16.mxu1 %v6772_v20  ;;  %v8806_v55 = vpack.c.bf16 %v1253_v22, %v1249_v11  ;;  %v6775_v57 = vld [vmem:[#allocation2 + $0x34] ss:$8 sps:$4 sm:$0xff]   ;;  %v6778_v18 = vld [vmem:[#allocation2 + $0xc4] ss:$8 sps:$4 sm:$0xff]  }
 0x174   :  { %v8808_v44 = vpack.c.bf16 %v1062_v58, %v1058_v36  ;;  %v2895_v54 = vmul.bf16 %v2767_v34, %v1871_v41  ;;  %v2144_v43 = vmul.bf16 %v2016_v3, %v8689_v49  ;;  %6816 = vtanh.bf16 %v2519_v27  ;;  %v6777_v11 = vld [vmem:[#allocation2 + $0x134] ss:$8 sps:$4 sm:$0xff]  }
 0x175   :  { %v8816_v47 = vpack.c.bf16 %v1255_v19, %v1251_v61  ;;  %v2526_v20 = vmul.bf16 1061961548, %v2398_v51  ;;  %6504 = vmatpush3.bf16.msra.mxu0 %v6771_v1  ;;  %v2141_v34 = vmul.bf16 %v2013_v8, %v8678_v62  ;;  %v1885_v8 = vmul.bf16 1056980736, %v8678_v62 }
 0x176   :  { %v6811_v58 = vpop.eup %6810  ;;  %3472 = vmatmul.mubr.bf16.gmra.mrb[132].mxu1 %v2895_v54  ;;  %v1065_v41 = vpop.f32.mrb[28].mxu0  ;;  %v2272_v3 = vmul.bf16 %v2144_v43, %v8689_v49  ;;  %6505 = vmatprep.subr.bf16.mxu0 %v6774_v59  ;;  %v6780_v59 = vld [vmem:[#allocation2 + $0x1c4] ss:$8 sps:$4 sm:$0xff]  }
 0x177   :  { %v2774_v42 = vadd.bf16 1065369472, %v6811_v58  ;;  %v1066_v12 = vadd.f32 %v1065_v41, %v8561_v14  ;;  %v1258_v1 = vpop.f32.mrb[28].mxu1  ;;  %v1067_v22 = vpop.f32.mrb[29].mxu0  ;;  %6818 = vtanh.bf16 %v2526_v20  ;;  %6616 = vmatpush3.bf16.msra.mxu1 %v6773_v4 }
 0x178   :  { %v6813_v53 = vpop.eup %6812  ;;  %v1259_v19 = vadd.f32 %v1258_v1, %v8557_v60  ;;  %v1068_v27 = vadd.f32 %v1067_v22, %v8568_v26  ;;  %v1260_v51 = vpop.f32.mrb[29].mxu1  ;;  %v2400_v43 = vadd.bf16 %v2272_v3, %v8689_v49  ;;  %6617 = vmatprep.subr.bf16.mxu1 %v6776_v39  ;;  %v6779_v22 = vld [vmem:[#allocation2 + $0x44] ss:$8 sps:$4 sm:$0xff]   ;;  %v2269_v39 = vmul.bf16 %v2141_v34, %v8678_v62  ;;  %v6783_v34 = vld [vmem:[#allocation2 + $0x54] ss:$8 sps:$4 sm:$0xff]  }
 0x179   :  { %v1069_v54 = vpop.f32.mrb[30].mxu0  ;;  %v2902_v58 = vmul.bf16 %v2774_v42, %v1878_v23  ;;  %v2776_v41 = vadd.bf16 1065369472, %v6813_v53  ;;  %v1261_v20 = vadd.f32 %v1260_v51, %v8564_v17  ;;  %v1262_v36 = vpop.f32.mrb[30].mxu1  ;;  %6506 = vmatpush3.bf16.msra.mxu0 %v6775_v57  ;;  %v1887_v57 = vmul.bf16 1056980736, %v8682_v25 }
 0x17a   :  { %v1070_v4 = vadd.f32 %v1069_v54, %v8561_v14  ;;  %v1071_v1 = vpop.f32.mrb[31].mxu0  ;;  %v1263_v45 = vadd.f32 %v1262_v36, %v8557_v60  ;;  %v1264_v61 = vpop.f32.mrb[31].mxu1  ;;  %v2528_v32 = vmul.bf16 1061961548, %v2400_v43  ;;  %6507 = vmatprep.subr.bf16.mxu0 %v6778_v18  ;;  %v6781_v36 = vld [vmem:[#allocation2 + $0x144] ss:$8 sps:$4 sm:$0xff]   ;;  %v2397_v18 = vadd.bf16 %v2269_v39, %v8678_v62 }
 0x17b   :  { %v1072_v3 = vadd.f32 %v1071_v1, %v8568_v26  ;;  %3318 = vmatprep.mubr.bf16.mxu0 %v2902_v58  ;;  %v2904_v23 = vmul.bf16 %v2776_v41, %v1880_v40  ;;  %v1265_v53 = vadd.f32 %v1264_v61, %v8564_v17  ;;  %6618 = vmatpush3.bf16.msra.mxu1 %v6777_v11  ;;  %v6784_v43 = vld [vmem:[#allocation2 + $0x1d4] ss:$8 sps:$4 sm:$0xff]  }
 0x17c   :  { %v8839_v42 = vpack.c.bf16 %v1070_v4, %v1066_v12  ;;  %v8843_v51 = vpack.c.bf16 %v1263_v45, %v1259_v19  ;;  %6820 = vtanh.bf16 %v2528_v32  ;;  %6619 = vmatprep.subr.bf16.mxu1 %v6780_v59  ;;  %v6815_v33 = vpop.eup %6814  ;;  %v2143_v11 = vmul.bf16 %v2015_v13, %v8682_v25  ;;  %v6785_v61 = vld [vmem:[#allocation2 + $0x154] ss:$8 sps:$4 sm:$0xff]  }
 0x17d   :  { %v8845_v54 = vpack.c.bf16 %v1072_v3, %v1068_v27  ;;  %3479 = vmatprep.mubr.bf16.mxu1 %v2904_v23  ;;  %v8849_v12 = vpack.c.bf16 %v1265_v53, %v1261_v20  ;;  %v1894_v45 = vmul.bf16 1056980736, %v8734_v50  ;;  %6508 = vmatpush3.bf16.msra.mxu0 %v6779_v22  ;;  %v2773_v27 = vadd.bf16 1065369472, %v6815_v33 }
 0x17e   :  { %v2150_v59 = vmul.bf16 %v2022_v31, %v8734_v50  ;;  %6509 = vmatprep.subr.bf16.mxu0 %v6782_v29  ;;  %v1075_v41 = vpop.f32.mrb[32].mxu0  ;;  %v1268_v20 = vpop.f32.mrb[32].mxu1  ;;  %v2525_v4 = vmul.bf16 1061961548, %v2397_v18  ;;  %v2271_v13 = vmul.bf16 %v2143_v11, %v8682_v25  ;;  %v2152_v1 = vmul.bf16 %v2024_v35, %v8739_v15 }
 0x17f   :  { %6620 = vmatpush3.bf16.msra.mxu1 %v6781_v36  ;;  %v6817_v22 = vpop.eup %6816  ;;  %v2901_v3 = vmul.bf16 %v2773_v27, %v1877_v52  ;;  %v1076_v39 = vadd.f32 %v1075_v41, %v8561_v14  ;;  %v1269_v31 = vadd.f32 %v1268_v20, %v8557_v60  ;;  %v1077_v29 = vpop.f32.mrb[33].mxu0 }
 0x180   :  { %v1270_v23 = vpop.f32.mrb[33].mxu1  ;;  %v2278_v53 = vmul.bf16 %v2150_v59, %v8734_v50  ;;  %6621 = vmatprep.subr.bf16.mxu1 %v6784_v43  ;;  %v2775_v18 = vadd.bf16 1065369472, %v6817_v22  ;;  %v1078_v33 = vadd.f32 %v1077_v29, %v8568_v26  ;;  %v1079_v35 = vpop.f32.mrb[34].mxu0  ;;  %6822 = vtanh.bf16 %v2525_v4 }
 0x181   :  { %v1271_v11 = vadd.f32 %v1270_v23, %v8564_v17  ;;  %v1272_v36 = vpop.f32.mrb[34].mxu1  ;;  %6510 = vmatpush3.bf16.msra.mxu0 %v6783_v34  ;;  %v1080_v52 = vadd.f32 %v1079_v35, %v8561_v14  ;;  %v1081_v41 = vpop.f32.mrb[35].mxu0  ;;  %v2399_v59 = vadd.bf16 %v2271_v13, %v8682_v25 }
 0x182   :  { %v6819_v46 = vpop.eup %6818  ;;  %3319 = vmatmul.mubr.bf16.gmra.mrb[136].mxu0 %v2901_v3  ;;  %v1273_v27 = vadd.f32 %v1272_v36, %v8557_v60  ;;  %v1274_v20 = vpop.f32.mrb[35].mxu1  ;;  %v2406_v43 = vadd.bf16 %v2278_v53, %v8734_v50  ;;  %v2903_v22 = vmul.bf16 %v2775_v18, %v1879_v5  ;;  %v1082_v23 = vadd.f32 %v1081_v41, %v8568_v26 }
 0x183   :  { %v2782_v29 = vadd.bf16 1065369472, %v6819_v46  ;;  %v1275_v34 = vadd.f32 %v1274_v20, %v8564_v17  ;;  %6622 = vmatpush3.bf16.msra.mxu1 %v6785_v61  ;;  %v8880_v4 = vpack.c.bf16 %v1080_v52, %v1076_v39  ;;  %v2527_v35 = vmul.bf16 1061961548, %v2399_v59 }
 0x184   :  { %v8882_v3 = vpack.c.bf16 %v1273_v27, %v1269_v31  ;;  %v2534_v36 = vmul.bf16 1061961548, %v2406_v43  ;;  %3480 = vmatmul.mubr.bf16.gmra.mrb[136].mxu1 %v2903_v22  ;;  %v8886_v53 = vpack.c.bf16 %v1082_v23, %v1078_v33  ;;  %v1896_v5 = vmul.bf16 1056980736, %v8739_v15 }
 0x185   :  { %v2910_v13 = vmul.bf16 %v2782_v29, %v1886_v6  ;;  %v8888_v48 = vpack.c.bf16 %v1275_v34, %v1271_v11  ;;  %6824 = vtanh.bf16 %v2527_v35  ;;  %v2280_v39 = vmul.bf16 %v2152_v1, %v8739_v15 }
 0x186   :  { %v1085_v31 = vpop.f32.mrb[36].mxu0  ;;  %6826 = vtanh.bf16 %v2534_v36  ;;  %v1278_v33 = vpop.f32.mrb[36].mxu1  ;;  %v1893_v35 = vmul.bf16 1056980736, %v8724_v7  ;;  %v2149_v36 = vmul.bf16 %v2021_v16, %v8724_v7  ;;  %v1895_v18 = vmul.bf16 1056980736, %v8732_v2 }
 0x187   :  { %v6821_v46 = vpop.eup %6820  ;;  %3326 = vmatprep.mubr.bf16.mxu0 %v2910_v13  ;;  %v1086_v6 = vadd.f32 %v1085_v31, %v8561_v14  ;;  %v1087_v11 = vpop.f32.mrb[37].mxu0  ;;  %v2408_v41 = vadd.bf16 %v2280_v39, %v8739_v15  ;;  %v1279_v20 = vadd.f32 %v1278_v33, %v8557_v60  ;;  %v6786_v13 = vld [vmem:[#allocation2 + $0xe4] ss:$8 sps:$4 sm:$0xff]   ;;  %v12847_v50 = vmul.bf16 1027030327, %v8816_v47 }
 0x188   :  { %v2784_v27 = vadd.bf16 1065369472, %v6821_v46  ;;  %v1088_v59 = vadd.f32 %v1087_v11, %v8568_v26  ;;  %v1280_v1 = vpop.f32.mrb[37].mxu1  ;;  %v1089_v43 = vpop.f32.mrb[38].mxu0  ;;  %v2277_v61 = vmul.bf16 %v2149_v36, %v8724_v7  ;;  %6511 = vmatprep.subr.bf16.mxu0 %v6786_v13 }
 0x189   :  { %v1281_v22 = vadd.f32 %v1280_v1, %v8564_v17  ;;  %v1090_v29 = vadd.f32 %v1089_v43, %v8561_v14  ;;  %v1282_v23 = vpop.f32.mrb[38].mxu1  ;;  %v1091_v34 = vpop.f32.mrb[39].mxu0  ;;  %v2536_v31 = vmul.bf16 1061961548, %v2408_v41  ;;  %v6788_v41 = vld [vmem:[#allocation2 + $0x1e4] ss:$8 sps:$4 sm:$0xff]  }
 0x18a   :  { %v2912_v39 = vmul.bf16 %v2784_v27, %v1888_v28  ;;  %v1283_v46 = vadd.f32 %v1282_v23, %v8557_v60  ;;  %v1092_v33 = vadd.f32 %v1091_v34, %v8568_v26  ;;  %v1284_v11 = vpop.f32.mrb[39].mxu1  ;;  %v2151_v27 = vmul.bf16 %v2023_v63, %v8732_v2  ;;  %6623 = vmatprep.subr.bf16.mxu1 %v6788_v41 }
 0x18b   :  { %v8910_v1 = vpack.c.bf16 %v1090_v29, %v1086_v6  ;;  %v1285_v43 = vadd.f32 %v1284_v11, %v8564_v17  ;;  %v6823_v16 = vpop.eup %6822  ;;  %6828 = vtanh.bf16 %v2536_v31  ;;  %v6787_v6 = vld [vmem:[#allocation2 + $0x64] ss:$8 sps:$4 sm:$0xff]   ;;  %v2405_v13 = vadd.bf16 %v2277_v61, %v8724_v7 }
 0x18c   :  { %3487 = vmatprep.mubr.bf16.mxu1 %v2912_v39  ;;  %v8915_v49 = vpack.c.bf16 %v1283_v46, %v1279_v20  ;;  %v8917_v28 = vpack.c.bf16 %v1092_v33, %v1088_v59  ;;  %v6789_v29 = vld [vmem:[#allocation2 + $0x164] ss:$8 sps:$4 sm:$0xff]   ;;  %v2781_v23 = vadd.bf16 1065369472, %v6823_v16  ;;  %v2279_v59 = vmul.bf16 %v2151_v27, %v8732_v2  ;;  %6512 = vmatpush3.bf16.msra.mxu0 %v6787_v6 }
 0x18d   :  { %v8923_v36 = vpack.c.bf16 %v1285_v43, %v1281_v22  ;;  %v1902_v31 = vmul.bf16 1056980736, %v8771_v10  ;;  %v2533_v33 = vmul.bf16 1061961548, %v2405_v13  ;;  %v2158_v61 = vmul.bf16 %v2030_v30, %v8771_v10  ;;  %6624 = vmatpush3.bf16.msra.mxu1 %v6789_v29 }
 0x18e   :  { %v2909_v63 = vmul.bf16 %v2781_v23, %v1885_v8  ;;  %v1095_v22 = vpop.f32.mrb[40].mxu0  ;;  %v1288_v11 = vpop.f32.mrb[40].mxu1  ;;  %v2407_v43 = vadd.bf16 %v2279_v59, %v8732_v2  ;;  %v1904_v16 = vmul.bf16 1056980736, %v8777_v0  ;;  %v12843_v27 = vmul.bf16 1027030327, %v8777_v0 }
 0x18f   :  { %v1096_v62 = vadd.f32 %v1095_v22, %v8561_v14  ;;  %v1097_v8 = vpop.f32.mrb[41].mxu0  ;;  %v1290_v41 = vpop.f32.mrb[41].mxu1  ;;  %6830 = vtanh.bf16 %v2533_v33  ;;  %v2286_v30 = vmul.bf16 %v2158_v61, %v8771_v10  ;;  %v1289_v13 = vadd.f32 %v1288_v11, %v8557_v60 }
 0x190   :  { %v2160_v6 = vmul.bf16 %v12843_v27, %v8777_v0  ;;  %v6825_v23 = vpop.eup %6824  ;;  %3327 = vmatmul.mubr.bf16.gmra.mrb[140].mxu0 %v2909_v63  ;;  %v1098_v29 = vadd.f32 %v1097_v8, %v8568_v26  ;;  %v1099_v59 = vpop.f32.mrb[42].mxu0  ;;  %v2535_v20 = vmul.bf16 1061961548, %v2407_v43  ;;  %v1291_v22 = vadd.f32 %v1290_v41, %v8564_v17 }
 0x191   :  { %v1292_v39 = vpop.f32.mrb[42].mxu1  ;;  %v6827_v34 = vpop.eup %6826  ;;  %v2783_v46 = vadd.bf16 1065369472, %v6825_v23  ;;  %v2414_v63 = vadd.bf16 %v2286_v30, %v8771_v10  ;;  %v1100_v33 = vadd.f32 %v1099_v59, %v8561_v14  ;;  %v12850_v2 = vmul.bf16 1027030327, %v8801_v37 }
 0x192   :  { %v2288_v27 = vmul.bf16 %v2160_v6, %v8777_v0  ;;  %v1101_v56 = vpop.f32.mrb[43].mxu0  ;;  %v1294_v52 = vpop.f32.mrb[43].mxu1  ;;  %v2790_v32 = vadd.bf16 1065369472, %v6827_v34  ;;  %v1293_v61 = vadd.f32 %v1292_v39, %v8557_v60  ;;  %6832 = vtanh.bf16 %v2535_v20 }
 0x193   :  { %v2911_v11 = vmul.bf16 %v2783_v46, %v1887_v57  ;;  %v1102_v43 = vadd.f32 %v1101_v56, %v8568_v26  ;;  %v2542_v41 = vmul.bf16 1061961548, %v2414_v63  ;;  %v8956_v23 = vpack.c.bf16 %v1100_v33, %v1096_v62 }
 0x194   :  { %v2416_v8 = vadd.bf16 %v2288_v27, %v8777_v0  ;;  %v2918_v6 = vmul.bf16 %v2790_v32, %v1894_v45  ;;  %v8958_v34 = vpack.c.bf16 %v1293_v61, %v1289_v13  ;;  %v1295_v25 = vadd.f32 %v1294_v52, %v8564_v17 }
 0x195   :  { %3488 = vmatmul.mubr.bf16.gmra.mrb[140].mxu1 %v2911_v11  ;;  %v8960_v59 = vpack.c.bf16 %v1102_v43, %v1098_v29  ;;  %6834 = vtanh.bf16 %v2542_v41  ;;  %v12844_v32 = vmul.bf16 1027030327, %v8765_v21  ;;  %v12845_v11 = vmul.bf16 1027030327, %v8769_v38 }
 0x196   :  { %v2544_v30 = vmul.bf16 1061961548, %v2416_v8  ;;  %v1105_v39 = vpop.f32.mrb[44].mxu0  ;;  %v6829_v20 = vpop.eup %6828  ;;  %3334 = vmatprep.mubr.bf16.mxu0 %v2918_v6  ;;  %v8970_v29 = vpack.c.bf16 %v1295_v25, %v1291_v22  ;;  %v12846_v25 = vmul.bf16 1027030327, %v8808_v44  ;;  %v2168_v52 = vmul.bf16 %v12847_v50, %v8816_v47 }
 0x197   :  { %v2157_v56 = vmul.bf16 %v12844_v32, %v8765_v21  ;;  %v1298_v46 = vpop.f32.mrb[44].mxu1  ;;  %v1107_v62 = vpop.f32.mrb[45].mxu0  ;;  %v2792_v13 = vadd.bf16 1065369472, %v6829_v20  ;;  %v2159_v8 = vmul.bf16 %v12845_v11, %v8769_v38  ;;  %v1106_v15 = vadd.f32 %v1105_v39, %v8561_v14 }
 0x198   :  { %6836 = vtanh.bf16 %v2544_v30  ;;  %v1300_v27 = vpop.f32.mrb[45].mxu1  ;;  %v1109_v63 = vpop.f32.mrb[46].mxu0  ;;  %v2166_v20 = vmul.bf16 %v12846_v25, %v8808_v44  ;;  %v1299_v22 = vadd.f32 %v1298_v46, %v8557_v60  ;;  %v1108_v25 = vadd.f32 %v1107_v62, %v8568_v26 }
 0x199   :  { %v2285_v33 = vmul.bf16 %v2157_v56, %v8765_v21  ;;  %v1302_v6 = vpop.f32.mrb[46].mxu1  ;;  %v1111_v41 = vpop.f32.mrb[47].mxu0  ;;  %v2920_v30 = vmul.bf16 %v2792_v13, %v1896_v5  ;;  %v2287_v11 = vmul.bf16 %v2159_v8, %v8769_v38  ;;  %v1301_v32 = vadd.f32 %v1300_v27, %v8564_v17 }
 0x19a   :  { %v1304_v56 = vpop.f32.mrb[47].mxu1  ;;  %v6831_v5 = vpop.eup %6830  ;;  %v2294_v13 = vmul.bf16 %v2166_v20, %v8808_v44  ;;  %v2296_v43 = vmul.bf16 %v2168_v52, %v8816_v47  ;;  %v1110_v39 = vadd.f32 %v1109_v63, %v8561_v14  ;;  %v1112_v20 = vadd.f32 %v1111_v41, %v8568_v26 }
 0x19b   :  { %v2413_v45 = vadd.bf16 %v2285_v33, %v8765_v21  ;;  %3495 = vmatprep.mubr.bf16.mxu1 %v2920_v30  ;;  %v2789_v40 = vadd.bf16 1065369472, %v6831_v5  ;;  %v2415_v8 = vadd.bf16 %v2287_v11, %v8769_v38  ;;  %v1303_v30 = vadd.f32 %v1302_v6, %v8557_v60 }
 0x19c   :  { %v2422_v50 = vadd.bf16 %v2294_v13, %v8808_v44  ;;  %v9004_v13 = vpack.c.bf16 %v1110_v39, %v1106_v15  ;;  %v9008_v19 = vpack.c.bf16 %v1112_v20, %v1108_v25  ;;  %v1305_v7 = vadd.f32 %v1304_v56, %v8564_v17  ;;  %v6790_v56 = vld [vmem:[#allocation2 + $0xf4] ss:$8 sps:$4 sm:$0xff]  }
 0x19d   :  { %v2541_v33 = vmul.bf16 1061961548, %v2413_v45  ;;  %v6833_v46 = vpop.eup %6832  ;;  %v2917_v62 = vmul.bf16 %v2789_v40, %v1893_v35  ;;  %v2543_v27 = vmul.bf16 1061961548, %v2415_v8  ;;  %v2424_v45 = vadd.bf16 %v2296_v43, %v8816_v47  ;;  %6513 = vmatprep.subr.bf16.mxu0 %v6790_v56 }
 0x19e   :  { %v1115_v61 = vpop.f32.mrb[48].mxu0  ;;  %v1308_v11 = vpop.f32.mrb[48].mxu1  ;;  %v2791_v52 = vadd.bf16 1065369472, %v6833_v46  ;;  %v2550_v57 = vmul.bf16 1061961548, %v2422_v50  ;;  %v9006_v63 = vpack.c.bf16 %v1303_v30, %v1299_v22  ;;  %v9016_v30 = vpack.c.bf16 %v1305_v7, %v1301_v32 }
 0x19f   :  { %6838 = vtanh.bf16 %v2541_v33  ;;  %v1117_v5 = vpop.f32.mrb[49].mxu0  ;;  %12848 = vst [vmem:[#allocation16_spill] sm:$0xff] %v9004_v13  ;;  %v1310_v6 = vpop.f32.mrb[49].mxu1  ;;  %3335 = vmatmul.mubr.bf16.gmra.mrb[144].mxu0 %v2917_v62  ;;  %v2552_v41 = vmul.bf16 1061961548, %v2424_v45  ;;  %v1116_v0 = vadd.f32 %v1115_v61, %v8561_v14 }
 0x1a0   :  { %12849 = vst [vmem:[#allocation17_spill] sm:$0xff] %v9006_v63  ;;  %v1119_v58 = vpop.f32.mrb[50].mxu0  ;;  %6840 = vtanh.bf16 %v2543_v27  ;;  %v1312_v40 = vpop.f32.mrb[50].mxu1  ;;  %v2919_v33 = vmul.bf16 %v2791_v52, %v1895_v18  ;;  %v2165_v18 = vmul.bf16 %v12850_v2, %v8801_v37  ;;  %v12851_v32 = vmul.bf16 1027030327, %v8806_v55 }
 0x1a1   :  { %v1121_v35 = vpop.f32.mrb[51].mxu0  ;;  %v6835_v43 = vpop.eup %6834  ;;  %6842 = vtanh.bf16 %v2550_v57  ;;  %v12853_v56 = vmul.bf16 1027030327, %v8849_v12  ;;  %v1311_v15 = vadd.f32 %v1310_v6, %v8564_v17  ;;  %v1120_v25 = vadd.f32 %v1119_v58, %v8561_v14 }
 0x1a2   :  { %v1314_v8 = vpop.f32.mrb[51].mxu1  ;;  %v2798_v39 = vadd.bf16 1065369472, %v6835_v43  ;;  %6844 = vtanh.bf16 %v2552_v41  ;;  %3496 = vmatmul.mubr.bf16.gmra.mrb[144].mxu1 %v2919_v33  ;;  %v2167_v45 = vmul.bf16 %v12851_v32, %v8806_v55  ;;  %v6791_v41 = vld [vmem:[#allocation2 + $0x74] ss:$8 sps:$4 sm:$0xff]   ;;  %v2293_v43 = vmul.bf16 %v2165_v18, %v8801_v37 }
 0x1a3   :  { %v6837_v50 = vpop.eup %6836  ;;  %v12852_v33 = vmul.bf16 1027030327, %v8845_v54  ;;  %v2176_v32 = vmul.bf16 %v12853_v56, %v8849_v12  ;;  %6514 = vmatpush3.bf16.msra.mxu0 %v6791_v41  ;;  %v1122_v52 = vadd.f32 %v1121_v35, %v8568_v26  ;;  %v1315_v57 = vadd.f32 %v1314_v8, %v8564_v17 }
 0x1a4   :  { %v2800_v20 = vadd.bf16 1065369472, %v6837_v50  ;;  %v2926_v62 = vmul.bf16 %v2798_v39, %v1902_v31  ;;  %v6792_v39 = vld [vmem:[#allocation2 + $0x1f4] ss:$8 sps:$4 sm:$0xff]   ;;  %v2295_v2 = vmul.bf16 %v2167_v45, %v8806_v55  ;;  %v2421_v22 = vadd.bf16 %v2293_v43, %v8801_v37 }
 0x1a5   :  { %v2174_v10 = vmul.bf16 %v12852_v33, %v8845_v54  ;;  %v6793_v33 = vld [vmem:[#allocation2 + $0x174] ss:$8 sps:$4 sm:$0xff]   ;;  %v1118_v45 = vadd.f32 %v1117_v5, %v8568_v26  ;;  %6625 = vmatprep.subr.bf16.mxu1 %v6792_v39  ;;  %v9071_v46 = vpack.c.bf16 %v1120_v25, %v1116_v0  ;;  %v12856_v8 = vmul.bf16 1056980736, %v8765_v21 }
 0x1a6   :  { %v2928_v7 = vmul.bf16 %v2800_v20, %v1904_v16  ;;  %v9037_v50 = vpop.f32.mrb[52].mxu0  ;;  %3342 = vmatprep.mubr.bf16.mxu0 %v2926_v62  ;;  %v1309_v16 = vadd.f32 %v1308_v11, %v8557_v60  ;;  %v9045_v20 = vpop.f32.mrb[52].mxu1  ;;  %v2423_v61 = vadd.bf16 %v2295_v2, %v8806_v55  ;;  %v2304_v11 = vmul.bf16 %v2176_v32, %v8849_v12 }
 0x1a7   :  { %v9047_v18 = vpop.f32.mrb[53].mxu0  ;;  %v2302_v62 = vmul.bf16 %v2174_v10, %v8845_v54  ;;  %v9053_v27 = vpop.f32.mrb[53].mxu1  ;;  %v2549_v10 = vmul.bf16 1061961548, %v2421_v22  ;;  %12854 = vst [vmem:[#allocation18_spill] sm:$0xff] %v9071_v46  ;;  %6626 = vmatpush3.bf16.msra.mxu1 %v6793_v33 }
 0x1a8   :  { %3503 = vmatprep.mubr.bf16.mxu1 %v2928_v7  ;;  %v9055_v56 = vpop.f32.mrb[54].mxu0  ;;  %v1313_v7 = vadd.f32 %v1312_v40, %v8557_v60  ;;  %v9061_v31 = vpop.f32.mrb[54].mxu1  ;;  %v2551_v58 = vmul.bf16 1061961548, %v2423_v61  ;;  %v2432_v40 = vadd.bf16 %v2304_v11, %v8849_v12  ;;  %v12858_v11 = vmul.bf16 1056980736, %v8808_v44 }
 0x1a9   :  { %v9063_v43 = vpop.f32.mrb[55].mxu0  ;;  %v2430_v6 = vadd.bf16 %v2302_v62, %v8845_v54  ;;  %v9068_v2 = vpop.f32.mrb[55].mxu1  ;;  %6846 = vtanh.bf16 %v2549_v10  ;;  %v9075_v62 = vpack.c.bf16 %v1122_v52, %v1118_v45  ;;  %v9090_v10 = vpack.c.bf16 %v1315_v57, %v1311_v15 }
 0x1aa   :  { %v6839_v5 = vpop.eup %6838  ;;  %v9073_v22 = vpack.c.bf16 %v1313_v7, %v1309_v16  ;;  %6848 = vtanh.bf16 %v2551_v58  ;;  %v2560_v39 = vmul.bf16 1061961548, %v2432_v40  ;;  %v12857_v16 = vmul.bf16 1056980736, %v8769_v38 }
 0x1ab   :  { %v2797_v32 = vadd.bf16 1065369472, %v6839_v5  ;;  %v6841_v63 = vpop.eup %6840  ;;  %v2558_v41 = vmul.bf16 1061961548, %v2430_v6  ;;  %12859 = vst [vmem:[#allocation20_spill] sm:$0xff] %v9090_v10  ;;  %v1128_v0 = vadd.f32 %v9047_v18, %v8568_v26  ;;  %v1325_v18 = vadd.f32 %v9068_v2, %v8564_v17 }
 0x1ac   :  { %12855 = vst [vmem:[#allocation19_spill] sm:$0xff] %v9073_v22  ;;  %v6843_v35 = vpop.eup %6842  ;;  %v2799_v9 = vadd.bf16 1065369472, %v6841_v63  ;;  %v12861_v58 = vmul.bf16 1056980736, %v8816_v47 }
 0x1ad   :  { %v2925_v13 = vmul.bf16 %v2797_v32, %v12856_v8  ;;  %v6845_v61 = vpop.eup %6844  ;;  %v2806_v5 = vadd.bf16 1065369472, %v6843_v35  ;;  %6850 = vtanh.bf16 %v2558_v41  ;;  %v12862_v44 = vmul.bf16 1027030327, %v8843_v51 }
 0x1ae   :  { %v2927_v33 = vmul.bf16 %v2799_v9, %v12857_v16  ;;  %v2808_v52 = vadd.bf16 1065369472, %v6845_v61  ;;  %6852 = vtanh.bf16 %v2560_v39  ;;  %v9084_v21 = vpop.f32.mrb[56].mxu0  ;;  %v9086_v63 = vpop.f32.mrb[56].mxu1  ;;  %v12863_v47 = vmul.bf16 1027030327, %v8886_v53 }
 0x1af   :  { %3343 = vmatmul.mubr.bf16.gmra.mrb[148].mxu0 %v2925_v13  ;;  %v2934_v7 = vmul.bf16 %v2806_v5, %v12858_v11  ;;  %v12860_v13 = vmul.bf16 1027030327, %v8839_v42  ;;  %v9096_v9 = vpop.f32.mrb[57].mxu0  ;;  %v9098_v32 = vpop.f32.mrb[57].mxu1  ;;  %v2175_v15 = vmul.bf16 %v12862_v44, %v8843_v51 }
 0x1b0   :  { %3504 = vmatmul.mubr.bf16.gmra.mrb[148].mxu1 %v2927_v33  ;;  %v2936_v40 = vmul.bf16 %v2808_v52, %v12861_v58  ;;  %v9107_v35 = vpop.f32.mrb[58].mxu0  ;;  %v9109_v8 = vpop.f32.mrb[58].mxu1  ;;  %v2182_v5 = vmul.bf16 %v12863_v47, %v8886_v53  ;;  %v1319_v58 = vadd.f32 %v9045_v20, %v8557_v60  ;;  %v1323_v20 = vadd.f32 %v9061_v31, %v8557_v60 }
 0x1b1   :  { %v2173_v38 = vmul.bf16 %v12860_v13, %v8839_v42  ;;  %3350 = vmatprep.mubr.bf16.mxu0 %v2934_v7  ;;  %v9117_v33 = vpop.f32.mrb[59].mxu0  ;;  %v9119_v52 = vpop.f32.mrb[59].mxu1  ;;  %v2303_v11 = vmul.bf16 %v2175_v15, %v8843_v51  ;;  %v12864_v7 = vmul.bf16 1027030327, %v8888_v48 }
 0x1b2   :  { %3511 = vmatprep.mubr.bf16.mxu1 %v2936_v40  ;;  %v2310_v47 = vmul.bf16 %v2182_v5, %v8886_v53  ;;  %v1321_v40 = vadd.f32 %v9053_v27, %v8564_v17  ;;  %v1132_v5 = vadd.f32 %v9063_v43, %v8568_v26 }
 0x1b3   :  { %v2301_v61 = vmul.bf16 %v2173_v38, %v8839_v42  ;;  %v2184_v13 = vmul.bf16 %v12864_v7, %v8888_v48  ;;  %v1126_v38 = vadd.f32 %v9037_v50, %v8561_v14  ;;  %v2431_v15 = vadd.bf16 %v2303_v11, %v8843_v51 }
 0x1b4   :  { %v1130_v50 = vadd.f32 %v9055_v56, %v8561_v14  ;;  %v6847_v11 = vpop.eup %6846  ;;  %v9151_v56 = vpack.c.bf16 %v1323_v20, %v1319_v58  ;;  %v9157_v57 = vpack.c.bf16 %v1132_v5, %v1128_v0  ;;  %v12868_v20 = vmul.bf16 1056980736, %v8801_v37 }
 0x1b5   :  { %v2429_v44 = vadd.bf16 %v2301_v61, %v8839_v42  ;;  %v2312_v7 = vmul.bf16 %v2184_v13, %v8888_v48  ;;  %v2438_v61 = vadd.bf16 %v2310_v47, %v8886_v53  ;;  %v2559_v39 = vmul.bf16 1061961548, %v2431_v15  ;;  %v6849_v47 = vpop.eup %6848 }
 0x1b6   :  { %v9146_v27 = vpop.f32.mrb[60].mxu0  ;;  %v9149_v45 = vpack.c.bf16 %v1130_v50, %v1126_v38  ;;  %12866 = vst [vmem:[#allocation22_spill] sm:$0xff] %v9151_v56  ;;  %v9153_v31 = vpop.f32.mrb[60].mxu1  ;;  %v2805_v16 = vadd.bf16 1065369472, %v6847_v11  ;;  %12867 = vst [vmem:[#allocation23_spill] sm:$0xff] %v9157_v57 }
 0x1b7   :  { %v2557_v25 = vmul.bf16 1061961548, %v2429_v44  ;;  %v2440_v13 = vadd.bf16 %v2312_v7, %v8888_v48  ;;  %v9155_v44 = vpop.f32.mrb[61].mxu0  ;;  %v2566_v43 = vmul.bf16 1061961548, %v2438_v61  ;;  %v9159_v2 = vpop.f32.mrb[61].mxu1 }
 0x1b8   :  { %12865 = vst [vmem:[#allocation21_spill] sm:$0xff] %v9149_v45  ;;  %v9161_v41 = vpop.f32.mrb[62].mxu0  ;;  %v6851_v15 = vpop.eup %6850  ;;  %v2807_v7 = vadd.bf16 1065369472, %v6849_v47  ;;  %v2933_v6 = vmul.bf16 %v2805_v16, %v12868_v20  ;;  %v12869_v5 = vmul.bf16 1056980736, %v8806_v55  ;;  %v1148_v46 = vadd.f32 %v9155_v44, %v8568_v26 }
 0x1b9   :  { %6854 = vtanh.bf16 %v2557_v25  ;;  %v2568_v38 = vmul.bf16 1061961548, %v2440_v13  ;;  %v6853_v50 = vpop.eup %6852  ;;  %v2814_v22 = vadd.bf16 1065369472, %v6851_v15  ;;  %v9167_v0 = vpop.f32.mrb[62].mxu1 }
 0x1ba   :  { %6856 = vtanh.bf16 %v2559_v39  ;;  %v9169_v61 = vpop.f32.mrb[63].mxu0  ;;  %v2935_v11 = vmul.bf16 %v2807_v7, %v12869_v5  ;;  %v2816_v47 = vadd.bf16 1065369472, %v6853_v50  ;;  %v9174_v13 = vpop.f32.mrb[63].mxu1  ;;  %3351 = vmatmul.mubr.bf16.gmra.mrb[152].mxu0 %v2933_v6  ;;  %v12870_v37 = vmul.bf16 1056980736, %v8845_v54 }
 0x1bb   :  { %6858 = vtanh.bf16 %v2566_v43  ;;  %v9178_v43 = vpack.c.bf16 %v1325_v18, %v1321_v40  ;;  %v12872_v20 = vmul.bf16 1027030327, %v8880_v4  ;;  %v12873_v55 = vmul.bf16 1056980736, %v8849_v12 }
 0x1bc   :  { %6860 = vtanh.bf16 %v2568_v38  ;;  %v2942_v16 = vmul.bf16 %v2814_v22, %v12870_v37  ;;  %3512 = vmatmul.mubr.bf16.gmra.mrb[152].mxu1 %v2935_v11  ;;  %v12874_v6 = vmul.bf16 1027030327, %v8882_v3  ;;  %v12875_v18 = vmul.bf16 1027030327, %v8917_v28 }
 0x1bd   :  { %12871 = vst [vmem:[#allocation24_spill] sm:$0xff] %v9178_v43  ;;  %v2181_v25 = vmul.bf16 %v12872_v20, %v8880_v4  ;;  %v2944_v7 = vmul.bf16 %v2816_v47, %v12873_v55  ;;  %v12876_v37 = vmul.bf16 1027030327, %v8923_v36  ;;  %v1140_v39 = vadd.f32 %v9107_v35, %v8561_v14 }
 0x1be   :  { %v2183_v50 = vmul.bf16 %v12874_v6, %v8882_v3  ;;  %3358 = vmatprep.mubr.bf16.mxu0 %v2942_v16  ;;  %v2190_v5 = vmul.bf16 %v12875_v18, %v8917_v28  ;;  %v9197_v11 = vpop.f32.mrb[64].mxu0  ;;  %v1136_v16 = vadd.f32 %v9084_v21, %v8561_v14  ;;  %v9207_v55 = vpop.f32.mrb[64].mxu1  ;;  %v1142_v54 = vadd.f32 %v9117_v33, %v8568_v26 }
 0x1bf   :  { %v2309_v40 = vmul.bf16 %v2181_v25, %v8880_v4  ;;  %3519 = vmatprep.mubr.bf16.mxu1 %v2944_v7  ;;  %v2192_v20 = vmul.bf16 %v12876_v37, %v8923_v36  ;;  %v1329_v25 = vadd.f32 %v9086_v63, %v8557_v60  ;;  %v9209_v6 = vpop.f32.mrb[65].mxu0  ;;  %v1331_v37 = vadd.f32 %v9098_v32, %v8564_v17  ;;  %v9217_v58 = vpop.f32.mrb[65].mxu1 }
 0x1c0   :  { %v2311_v47 = vmul.bf16 %v2183_v50, %v8882_v3  ;;  %v2318_v7 = vmul.bf16 %v2190_v5, %v8917_v28  ;;  %v1138_v50 = vadd.f32 %v9096_v9, %v8568_v26  ;;  %v9219_v21 = vpop.f32.mrb[66].mxu0  ;;  %v9227_v5 = vpop.f32.mrb[66].mxu1  ;;  %v1345_v44 = vadd.f32 %v9174_v13, %v8564_v17 }
 0x1c1   :  { %v2437_v18 = vadd.bf16 %v2309_v40, %v8880_v4  ;;  %v2320_v22 = vmul.bf16 %v2192_v20, %v8923_v36  ;;  %v1333_v40 = vadd.f32 %v9109_v8, %v8557_v60  ;;  %v9229_v9 = vpop.f32.mrb[67].mxu0  ;;  %v9236_v20 = vpop.f32.mrb[67].mxu1  ;;  %v9239_v8 = vpack.c.bf16 %v1140_v39, %v1136_v16 }
 0x1c2   :  { %v2439_v63 = vadd.bf16 %v2311_v47, %v8882_v3  ;;  %v2446_v32 = vadd.bf16 %v2318_v7, %v8917_v28  ;;  %v1335_v47 = vadd.f32 %v9119_v52, %v8564_v17  ;;  %v9243_v43 = vpack.c.bf16 %v1142_v54, %v1138_v50 }
 0x1c3   :  { %v2565_v12 = vmul.bf16 1061961548, %v2437_v18  ;;  %v2448_v15 = vadd.bf16 %v2320_v22, %v8923_v36  ;;  %12877 = vst [vmem:[#allocation25_spill] sm:$0xff] %v9239_v8  ;;  %v9241_v56 = vpack.c.bf16 %v1333_v40, %v1329_v25 }
 0x1c4   :  { %v6855_v38 = vpop.eup %6854  ;;  %v2567_v35 = vmul.bf16 1061961548, %v2439_v63  ;;  %v2574_v7 = vmul.bf16 1061961548, %v2446_v32  ;;  %v12879_v63 = vmul.bf16 1056980736, %v8839_v42  ;;  %v9260_v32 = vpack.c.bf16 %v1335_v47, %v1331_v37 }
 0x1c5   :  { %12878 = vst [vmem:[#allocation26_spill] sm:$0xff] %v9241_v56  ;;  %v6857_v45 = vpop.eup %6856  ;;  %v2813_v18 = vadd.bf16 1065369472, %v6855_v38  ;;  %6862 = vtanh.bf16 %v2565_v12  ;;  %v2576_v52 = vmul.bf16 1061961548, %v2448_v15 }
 0x1c6   :  { %v6859_v33 = vpop.eup %6858  ;;  %v2815_v57 = vadd.bf16 1065369472, %v6857_v45  ;;  %6864 = vtanh.bf16 %v2567_v35  ;;  %v9249_v25 = vpop.f32.mrb[68].mxu0  ;;  %v12880_v38 = vmul.bf16 1056980736, %v8843_v51 }
 0x1c7   :  { %v6861_v10 = vpop.eup %6860  ;;  %v2941_v22 = vmul.bf16 %v2813_v18, %v12879_v63  ;;  %v2822_v39 = vadd.bf16 1065369472, %v6859_v33  ;;  %6866 = vtanh.bf16 %v2574_v7  ;;  %v9254_v15 = vpop.f32.mrb[68].mxu1  ;;  %v12881_v42 = vmul.bf16 1056980736, %v8886_v53 }
 0x1c8   :  { %v2943_v54 = vmul.bf16 %v2815_v57, %v12880_v38  ;;  %v2824_v12 = vadd.bf16 1065369472, %v6861_v10  ;;  %6868 = vtanh.bf16 %v2576_v52  ;;  %v9256_v50 = vpop.f32.mrb[69].mxu0  ;;  %v12882_v51 = vmul.bf16 1027030327, %v8910_v1  ;;  %v9266_v10 = vpop.f32.mrb[69].mxu1 }
 0x1c9   :  { %3359 = vmatmul.mubr.bf16.gmra.mrb[156].mxu0 %v2941_v22  ;;  %v2950_v40 = vmul.bf16 %v2822_v39, %v12881_v42  ;;  %v9268_v18 = vpop.f32.mrb[70].mxu0  ;;  %v12883_v7 = vmul.bf16 1056980736, %v8888_v48  ;;  %v12884_v53 = vmul.bf16 1027030327, %v8915_v49  ;;  %v9277_v63 = vpop.f32.mrb[70].mxu1 }
 0x1ca   :  { %v2189_v57 = vmul.bf16 %v12882_v51, %v8910_v1  ;;  %3520 = vmatmul.mubr.bf16.gmra.mrb[156].mxu1 %v2943_v54  ;;  %v9279_v22 = vpop.f32.mrb[71].mxu0  ;;  %v12885_v48 = vmul.bf16 1027030327, %v8960_v59  ;;  %v9287_v42 = vpop.f32.mrb[71].mxu1 }
 0x1cb   :  { %v2952_v33 = vmul.bf16 %v2824_v12, %v12883_v7  ;;  %v2191_v37 = vmul.bf16 %v12884_v53, %v8915_v49  ;;  %3366 = vmatprep.mubr.bf16.mxu0 %v2950_v40  ;;  %v12886_v7 = vmul.bf16 1027030327, %v8970_v29  ;;  %v1146_v40 = vadd.f32 %v9146_v27, %v8561_v14 }
 0x1cc   :  { %v2317_v38 = vmul.bf16 %v2189_v57, %v8910_v1  ;;  %v2198_v54 = vmul.bf16 %v12885_v48, %v8960_v59  ;;  %v1339_v57 = vadd.f32 %v9153_v31, %v8557_v60  ;;  %v1150_v27 = vadd.f32 %v9161_v41, %v8561_v14 }
 0x1cd   :  { %3527 = vmatprep.mubr.bf16.mxu1 %v2952_v33  ;;  %v2319_v51 = vmul.bf16 %v2191_v37, %v8915_v49  ;;  %v2200_v53 = vmul.bf16 %v12886_v7, %v8970_v29  ;;  %v1341_v33 = vadd.f32 %v9159_v2, %v8564_v17  ;;  %v1343_v31 = vadd.f32 %v9167_v0, %v8557_v60 }
 0x1ce   :  { %v2445_v16 = vadd.bf16 %v2317_v38, %v8910_v1  ;;  %v2326_v48 = vmul.bf16 %v2198_v54, %v8960_v59  ;;  %v1152_v54 = vadd.f32 %v9169_v61, %v8568_v26  ;;  %v9314_v2 = vpop.f32.mrb[72].mxu0  ;;  %v9317_v12 = vpack.c.bf16 %v1150_v27, %v1146_v40  ;;  %v9321_v60 = vpop.f32.mrb[72].mxu1 }
 0x1cf   :  { %v2447_v37 = vadd.bf16 %v2319_v51, %v8915_v49  ;;  %v2328_v7 = vmul.bf16 %v2200_v53, %v8970_v29  ;;  %v9319_v14 = vpack.c.bf16 %v1343_v31, %v1339_v57  ;;  %v9323_v41 = vpop.f32.mrb[73].mxu0  ;;  %v9327_v17 = vpop.f32.mrb[73].mxu1  ;;  %v12890_v27 = vmul.bf16 1056980736, %v8880_v4 }
 0x1d0   :  { %v2573_v39 = vmul.bf16 1061961548, %v2445_v16  ;;  %v2454_v38 = vadd.bf16 %v2326_v48, %v8960_v59  ;;  %v6863_v51 = vpop.eup %6862  ;;  %12887 = vst [vmem:[#allocation27_spill] sm:$0xff] %v9317_v12  ;;  %v9325_v61 = vpack.c.bf16 %v1152_v54, %v1148_v46  ;;  %v9329_v13 = vpop.f32.mrb[74].mxu0  ;;  %v12891_v54 = vmul.bf16 1056980736, %v8882_v3 }
 0x1d1   :  { %v2575_v45 = vmul.bf16 1061961548, %v2447_v37  ;;  %v2456_v53 = vadd.bf16 %v2328_v7, %v8970_v29  ;;  %12888 = vst [vmem:[#allocation28_spill] sm:$0xff] %v9319_v14  ;;  %v6865_v0 = vpop.eup %6864  ;;  %v2821_v16 = vadd.bf16 1065369472, %v6863_v51  ;;  %v9335_v46 = vpop.f32.mrb[74].mxu1 }
 0x1d2   :  { %6870 = vtanh.bf16 %v2573_v39  ;;  %v2582_v26 = vmul.bf16 1061961548, %v2454_v38  ;;  %12889 = vst [vmem:[#allocation29_spill] sm:$0xff] %v9325_v61  ;;  %v6867_v48 = vpop.eup %6866  ;;  %v2823_v37 = vadd.bf16 1065369472, %v6865_v0  ;;  %v9337_v38 = vpop.f32.mrb[75].mxu0 }
 0x1d3   :  { %6872 = vtanh.bf16 %v2575_v45  ;;  %v2584_v40 = vmul.bf16 1061961548, %v2456_v53  ;;  %v6869_v7 = vpop.eup %6868  ;;  %v2949_v31 = vmul.bf16 %v2821_v16, %v12890_v27  ;;  %v2830_v47 = vadd.bf16 1065369472, %v6867_v48  ;;  %v9342_v53 = vpop.f32.mrb[75].mxu1 }
 0x1d4   :  { %6874 = vtanh.bf16 %v2582_v26  ;;  %v2951_v51 = vmul.bf16 %v2823_v37, %v12891_v54  ;;  %v2832_v0 = vadd.bf16 1065369472, %v6869_v7  ;;  %v12892_v4 = vmul.bf16 1056980736, %v8917_v28  ;;  %v12899_v28 = vld [vmem:[#allocation15_spill] sm:$0xff] }
 0x1d5   :  { %6876 = vtanh.bf16 %v2584_v40  ;;  %3367 = vmatmul.mubr.bf16.gmra.mrb[160].mxu0 %v2949_v31  ;;  %v9346_v26 = vpack.c.bf16 %v1345_v44, %v1341_v33  ;;  %v12894_v27 = vmul.bf16 1027030327, %v8956_v23  ;;  %v12895_v3 = vmul.bf16 1056980736, %v8923_v36 }
 0x1d6   :  { %v2958_v16 = vmul.bf16 %v2830_v47, %v12892_v4  ;;  %3528 = vmatmul.mubr.bf16.gmra.mrb[160].mxu1 %v2951_v51  ;;  %v12896_v7 = vmul.bf16 1027030327, %v8958_v34  ;;  %v12897_v44 = vmul.bf16 1027030327, %v9008_v19  ;;  %v9365_v51 = vpop.f32.mrb[76].mxu0 }
 0x1d7   :  { %12893 = vst [vmem:[#allocation30_spill] sm:$0xff] %v9346_v26  ;;  %v2197_v39 = vmul.bf16 %v12894_v27, %v8956_v23  ;;  %v2960_v37 = vmul.bf16 %v2832_v0, %v12895_v3  ;;  %v12898_v4 = vmul.bf16 1027030327, %v9016_v30  ;;  %v307_v3 = vsub.s32 6, %v8546_v24 }
 0x1d8   :  { %v2199_v31 = vmul.bf16 %v12896_v7, %v8958_v34  ;;  %3374 = vmatprep.mubr.bf16.mxu0 %v2958_v16  ;;  %v2206_v54 = vmul.bf16 %v12897_v44, %v9008_v19  ;;  %v299_v16 = vsub.s32 4, %v8546_v24  ;;  %v9375_v7 = vpop.f32.mrb[77].mxu0 }
 0x1d9   :  { %v2325_v33 = vmul.bf16 %v2197_v39, %v8956_v23  ;;  %3535 = vmatprep.mubr.bf16.mxu1 %v2960_v37  ;;  %v2208_v27 = vmul.bf16 %v12898_v4, %v9016_v30  ;;  %v9373_v39 = vpop.f32.mrb[76].mxu1  ;;  %v303_v37 = vsub.s32 5, %v8546_v24  ;;  %v9383_v45 = vpop.f32.mrb[78].mxu0  ;;  %v9391_v48 = vrot.slane %v12899_v28, %v307_v3 }
 0x1da   :  { %v2327_v0 = vmul.bf16 %v2199_v31, %v8958_v34  ;;  %v2334_v57 = vmul.bf16 %v2206_v54, %v9008_v19  ;;  %v311_v31 = vsub.s32 7, %v8546_v24  ;;  %v9381_v47 = vpop.f32.mrb[77].mxu1  ;;  %v9388_v40 = vrot.slane %v12899_v28, %v299_v16  ;;  %v9395_v54 = vpop.f32.mrb[79].mxu0 }
 0x1db   :  { %v2453_v44 = vadd.bf16 %v2325_v33, %v8956_v23  ;;  %v2336_v36 = vmul.bf16 %v2208_v27, %v9016_v30  ;;  %v9393_v33 = vpop.f32.mrb[78].mxu1  ;;  %v9399_v35 = vrot.slane %v12899_v28, %v303_v37 }
 0x1dc   :  { %v2455_v4 = vadd.bf16 %v2327_v0, %v8958_v34  ;;  %v2462_v24 = vadd.bf16 %v2334_v57, %v9008_v19  ;;  %v9402_v0 = vrot.slane %v12899_v28, %v311_v31  ;;  %v9404_v27 = vpop.f32.mrb[79].mxu1  ;;  %v1382_v12 = vadd.f32 %v9197_v11, %v9388_v40 }
 0x1dd   :  { %v2581_v52 = vmul.bf16 1061961548, %v2453_v44  ;;  %12900 = vst [vmem:[#allocation15_spill] sm:$0xff] %v9404_v27  ;;  %v6871_v16 = vpop.eup %6870  ;;  %v2464_v3 = vadd.bf16 %v2336_v36, %v9016_v30  ;;  %v1575_v44 = vadd.f32 %v9207_v55, %v9391_v48  ;;  %v1384_v28 = vadd.f32 %v9209_v6, %v9399_v35 }
 0x1de   :  { %v2583_v14 = vmul.bf16 1061961548, %v2455_v4  ;;  %v6873_v26 = vpop.eup %6872  ;;  %v2829_v57 = vadd.bf16 1065369472, %v6871_v16  ;;  %v2590_v37 = vmul.bf16 1061961548, %v2462_v24  ;;  %v1577_v36 = vadd.f32 %v9217_v58, %v9402_v0 }
 0x1df   :  { %6878 = vtanh.bf16 %v2581_v52  ;;  %v6875_v31 = vpop.eup %6874  ;;  %v2831_v61 = vadd.bf16 1065369472, %v6873_v26  ;;  %v2592_v56 = vmul.bf16 1061961548, %v2464_v3  ;;  %v12901_v11 = vmul.bf16 1056980736, %v8910_v1 }
 0x1e0   :  { %6880 = vtanh.bf16 %v2583_v14  ;;  %v6877_v4 = vpop.eup %6876  ;;  %v2838_v27 = vadd.bf16 1065369472, %v6875_v31  ;;  %v1386_v55 = vadd.f32 %v9219_v21, %v9388_v40  ;;  %v9419_v52 = vpop.f32.mrb[80].mxu0  ;;  %v12902_v6 = vmul.bf16 1056980736, %v8915_v49 }
 0x1e1   :  { %v2957_v8 = vmul.bf16 %v2829_v57, %v12901_v11  ;;  %6882 = vtanh.bf16 %v2590_v37  ;;  %v2840_v26 = vadd.bf16 1065369472, %v6877_v4  ;;  %v1579_v14 = vadd.f32 %v9227_v5, %v9391_v48  ;;  %v9425_v58 = vpop.f32.mrb[80].mxu1  ;;  %v9427_v16 = vpop.f32.mrb[81].mxu0 }
 0x1e2   :  { %v2959_v24 = vmul.bf16 %v2831_v61, %v12902_v6  ;;  %6884 = vtanh.bf16 %v2592_v56  ;;  %v12903_v1 = vmul.bf16 1056980736, %v8960_v59  ;;  %v9431_v57 = vpack.c.bf16 %v1386_v55, %v1382_v12  ;;  %v9437_v56 = vpop.f32.mrb[81].mxu1  ;;  %v9439_v61 = vpop.f32.mrb[82].mxu0  ;;  %v12909_v59 = vld [vmem:[#allocation16_spill] sm:$0xff] }
 0x1e3   :  { %3375 = vmatmul.mubr.bf16.gmra.mrb[164].mxu0 %v2957_v8  ;;  %v1388_v21 = vadd.f32 %v9229_v9, %v9399_v35  ;;  %v1581_v49 = vadd.f32 %v9236_v20, %v9402_v0  ;;  %12905 = vst [vmem:[#allocation32_spill] sm:$0xff] %v9437_v56  ;;  %12906 = vst [vmem:[#allocation33_spill] sm:$0xff] %v9439_v61  ;;  %v12907_v5 = vmul.bf16 1056980736, %v8970_v29  ;;  %v12910_v12 = vmul.bf16 1027030327, %v12909_v59 }
 0x1e4   :  { %v2966_v3 = vmul.bf16 %v2838_v27, %v12903_v1  ;;  %12904 = vst [vmem:[#allocation31_spill] sm:$0xff] %v9431_v57  ;;  %3536 = vmatmul.mubr.bf16.gmra.mrb[164].mxu1 %v2959_v24  ;;  %v9443_v8 = vpack.c.bf16 %v1579_v14, %v1575_v44  ;;  %v9449_v9 = vpop.f32.mrb[82].mxu1  ;;  %v9451_v4 = vpop.f32.mrb[83].mxu0  ;;  %v1993_v20 = vmul.bf16 1027030327, %v9431_v57  ;;  %v12915_v29 = vld [vmem:[#allocation17_spill] sm:$0xff]  ;;  %v1392_v27 = vadd.f32 %v9249_v25, %v9388_v40 }
 0x1e5   :  { %v2968_v37 = vmul.bf16 %v2840_v26, %v12907_v5  ;;  %v2205_v31 = vmul.bf16 %v12910_v12, %v12909_v59  ;;  %12911 = vst [vmem:[#allocation16_spill] sm:$0xff] %v9449_v9  ;;  %12912 = vst [vmem:[#allocation35_spill] sm:$0xff] %v9451_v4  ;;  %v9454_v11 = vpack.c.bf16 %v1388_v21, %v1384_v28  ;;  %v9459_v6 = vpop.f32.mrb[83].mxu1  ;;  %v12917_v14 = vmul.bf16 1027030327, %v12915_v29  ;;  %v12919_v44 = vld [vmem:[#allocation20_spill] sm:$0xff] }
 0x1e6   :  { %12908 = vst [vmem:[#allocation34_spill] sm:$0xff] %v9443_v8  ;;  %3382 = vmatprep.mubr.bf16.mxu0 %v2966_v3  ;;  %v9456_v55 = vpack.c.bf16 %v1581_v49, %v1577_v36  ;;  %12916 = vst [vmem:[#allocation17_spill] sm:$0xff] %v9459_v6  ;;  %v1995_v24 = vmul.bf16 1027030327, %v9443_v8  ;;  %v2121_v28 = vmul.bf16 %v1993_v20, %v9431_v57  ;;  %v12918_v49 = vmul.bf16 1027030327, %v9075_v62 }
 0x1e7   :  { %12913 = vst [vmem:[#allocation36_spill] sm:$0xff] %v9454_v11  ;;  %3543 = vmatprep.mubr.bf16.mxu1 %v2968_v37  ;;  %v2333_v26 = vmul.bf16 %v2205_v31, %v12909_v59  ;;  %v2207_v1 = vmul.bf16 %v12917_v14, %v12915_v29  ;;  %v12920_v36 = vmul.bf16 1027030327, %v12919_v44  ;;  %v9490_v14 = vpop.f32.mrb[84].mxu1 }
 0x1e8   :  { %12914 = vst [vmem:[#allocation37_spill] sm:$0xff] %v9456_v55  ;;  %v2214_v5 = vmul.bf16 %v12918_v49, %v9075_v62  ;;  %v2123_v37 = vmul.bf16 %v1995_v24, %v9443_v8  ;;  %v2249_v3 = vmul.bf16 %v2121_v28, %v9431_v57  ;;  %v9484_v49 = vpop.f32.mrb[84].mxu0  ;;  %v1585_v28 = vadd.f32 %v9254_v15, %v9391_v48  ;;  %v9497_v4 = vpop.f32.mrb[85].mxu1 }
 0x1e9   :  { %v2461_v12 = vadd.bf16 %v2333_v26, %v12909_v59  ;;  %v2335_v31 = vmul.bf16 %v2207_v1, %v12915_v29  ;;  %v2216_v21 = vmul.bf16 %v12920_v36, %v12919_v44  ;;  %12921 = vst [vmem:[#allocation20_spill] sm:$0xff] %v9484_v49  ;;  %12922 = vst [vmem:[#allocation38_spill] sm:$0xff] %v9490_v14  ;;  %v9502_v9 = vpop.f32.mrb[86].mxu1 }
 0x1ea   :  { %v2342_v20 = vmul.bf16 %v2214_v5, %v9075_v62  ;;  %v6879_v24 = vpop.eup %6878  ;;  %v2251_v26 = vmul.bf16 %v2123_v37, %v9443_v8  ;;  %v9492_v5 = vpop.f32.mrb[85].mxu0  ;;  %v2377_v6 = vadd.bf16 %v2249_v3, %v9431_v57  ;;  %12924 = vst [vmem:[#allocation40_spill] sm:$0xff] %v9497_v4  ;;  %v12926_v3 = vmul.bf16 1056980736, %v8956_v23 }
 0x1eb   :  { %v2589_v55 = vmul.bf16 1061961548, %v2461_v12  ;;  %v2463_v1 = vadd.bf16 %v2335_v31, %v12915_v29  ;;  %12923 = vst [vmem:[#allocation39_spill] sm:$0xff] %v9492_v5  ;;  %v6881_v11 = vpop.eup %6880  ;;  %v2837_v36 = vadd.bf16 1065369472, %v6879_v24  ;;  %v2344_v49 = vmul.bf16 %v2216_v21, %v12919_v44  ;;  %v9499_v37 = vpop.f32.mrb[86].mxu0 }
 0x1ec   :  { %v2470_v25 = vadd.bf16 %v2342_v20, %v9075_v62  ;;  %12925 = vst [vmem:[#allocation41_spill] sm:$0xff] %v9499_v37  ;;  %v6883_v12 = vpop.eup %6882  ;;  %v2839_v31 = vadd.bf16 1065369472, %v6881_v11  ;;  %v2379_v15 = vadd.bf16 %v2251_v26, %v9443_v8  ;;  %v9504_v5 = vpop.f32.mrb[87].mxu0  ;;  %v2505_v21 = vmul.bf16 1061961548, %v2377_v6 }
 0x1ed   :  { %6886 = vtanh.bf16 %v2589_v55  ;;  %v2591_v14 = vmul.bf16 1061961548, %v2463_v1  ;;  %v6885_v24 = vpop.eup %6884  ;;  %v2965_v20 = vmul.bf16 %v2837_v36, %v12926_v3  ;;  %v2846_v57 = vadd.bf16 1065369472, %v6883_v12  ;;  %v9510_v26 = vpop.f32.mrb[87].mxu1 }
 0x1ee   :  { %v2598_v61 = vmul.bf16 1061961548, %v2470_v25  ;;  %v12927_v4 = vmul.bf16 1056980736, %v8958_v34  ;;  %v2848_v56 = vadd.bf16 1065369472, %v6885_v24  ;;  %v2472_v8 = vadd.bf16 %v2344_v49, %v12919_v44 }
 0x1ef   :  { %v2507_v11 = vmul.bf16 1061961548, %v2379_v15  ;;  %6888 = vtanh.bf16 %v2591_v14  ;;  %3383 = vmatmul.mubr.bf16.gmra.mrb[168].mxu0 %v2965_v20  ;;  %v12928_v55 = vmul.bf16 1056980736, %v9008_v19  ;;  %v1394_v23 = vadd.f32 %v9256_v50, %v9399_v35  ;;  %v9527_v49 = vpop.f32.mrb[88].mxu0 }
 0x1f0   :  { %v2967_v37 = vmul.bf16 %v2839_v31, %v12927_v4  ;;  %6890 = vtanh.bf16 %v2505_v21  ;;  %v12929_v6 = vmul.bf16 1056980736, %v9016_v30  ;;  %v1587_v4 = vadd.f32 %v9266_v10, %v9402_v0 }
 0x1f1   :  { %v2974_v1 = vmul.bf16 %v2846_v57, %v12928_v55  ;;  %6892 = vtanh.bf16 %v2507_v11  ;;  %v1396_v14 = vadd.f32 %v9268_v18, %v9388_v40  ;;  %v2600_v19 = vmul.bf16 1061961548, %v2472_v8  ;;  %v9537_v8 = vpop.f32.mrb[88].mxu1 }
 0x1f2   :  { %3544 = vmatmul.mubr.bf16.gmra.mrb[168].mxu1 %v2967_v37  ;;  %v2976_v34 = vmul.bf16 %v2848_v56, %v12929_v6  ;;  %6894 = vtanh.bf16 %v2598_v61  ;;  %v1589_v57 = vadd.f32 %v9277_v63, %v9391_v48  ;;  %v1398_v50 = vadd.f32 %v9279_v22, %v9399_v35  ;;  %v12931_v56 = vld [vmem:[#allocation18_spill] sm:$0xff]  ;;  %v9539_v63 = vpop.f32.mrb[89].mxu0  ;;  %v9546_v12 = vpop.f32.mrb[89].mxu1 }
 0x1f3   :  { %3390 = vmatprep.mubr.bf16.mxu0 %v2974_v1  ;;  %v9529_v30 = vpack.c.bf16 %v1396_v14, %v1392_v27  ;;  %v1591_v10 = vadd.f32 %v9287_v42, %v9402_v0  ;;  %v12932_v18 = vmul.bf16 1027030327, %v12931_v56  ;;  %6896 = vtanh.bf16 %v2600_v19  ;;  %v12934_v27 = vld [vmem:[#allocation19_spill] sm:$0xff]  ;;  %v9548_v42 = vpop.f32.mrb[90].mxu0 }
 0x1f4   :  { %3551 = vmatprep.mubr.bf16.mxu1 %v2976_v34  ;;  %v9541_v22 = vpack.c.bf16 %v1589_v57, %v1585_v28  ;;  %v9543_v25 = vpack.c.bf16 %v1398_v50, %v1394_v23  ;;  %v12935_v3 = vmul.bf16 1027030327, %v12934_v27  ;;  %v9557_v28 = vpop.f32.mrb[90].mxu1  ;;  %v9559_v21 = vpop.f32.mrb[91].mxu0  ;;  %v12936_v1 = vld [vmem:[#allocation23_spill] sm:$0xff]  ;;  %v12938_v57 = vld [vmem:[#allocation24_spill] sm:$0xff]  ;;  %v1595_v31 = vadd.f32 %v9321_v60, %v9391_v48 }
 0x1f5   :  { %12930 = vst [vmem:[#allocation42_spill] sm:$0xff] %v9529_v30  ;;  %v2213_v61 = vmul.bf16 %v12932_v18, %v12931_v56  ;;  %v9551_v15 = vpack.c.bf16 %v1591_v10, %v1587_v4  ;;  %v12937_v6 = vmul.bf16 1027030327, %v12936_v1  ;;  %v9571_v10 = vpop.f32.mrb[91].mxu1  ;;  %v1404_v55 = vadd.f32 %v9323_v41, %v9399_v35 }
 0x1f6   :  { %12933 = vst [vmem:[#allocation18_spill] sm:$0xff] %v9541_v22  ;;  %v2215_v20 = vmul.bf16 %v12935_v3, %v12934_v27  ;;  %v12939_v3 = vmul.bf16 1027030327, %v12938_v57  ;;  %v9590_v37 = vpop.f32.mrb[92].mxu0  ;;  %v9596_v36 = vpop.f32.mrb[92].mxu1 }
 0x1f7   :  { %v2341_v24 = vmul.bf16 %v2213_v61, %v12931_v56  ;;  %v2222_v34 = vmul.bf16 %v12937_v6, %v12936_v1  ;;  %v1402_v6 = vadd.f32 %v9314_v2, %v9388_v40  ;;  %v1406_v2 = vadd.f32 %v9329_v13, %v9388_v40  ;;  %12940 = vst [vmem:[#allocation19_spill] sm:$0xff] %v9590_v37  ;;  %v9607_v30 = vpop.f32.mrb[93].mxu1 }
 0x1f8   :  { %v2343_v19 = vmul.bf16 %v2215_v20, %v12934_v27  ;;  %v6887_v18 = vpop.eup %6886  ;;  %v2224_v11 = vmul.bf16 %v12939_v3, %v12938_v57  ;;  %v1597_v3 = vadd.f32 %v9327_v17, %v9402_v0  ;;  %v1599_v37 = vadd.f32 %v9335_v46, %v9391_v48 }
 0x1f9   :  { %v2469_v14 = vadd.bf16 %v2341_v24, %v12931_v56  ;;  %v2350_v61 = vmul.bf16 %v2222_v34, %v12936_v1  ;;  %v2845_v24 = vadd.bf16 1065369472, %v6887_v18  ;;  %v9603_v13 = vpack.c.bf16 %v1406_v2, %v1402_v6  ;;  %v9617_v6 = vpop.f32.mrb[94].mxu1 }
 0x1fa   :  { %v2471_v20 = vadd.bf16 %v2343_v19, %v12934_v27  ;;  %v6889_v50 = vpop.eup %6888  ;;  %v2352_v23 = vmul.bf16 %v2224_v11, %v12938_v57  ;;  %12943 = vst [vmem:[#allocation23_spill] sm:$0xff] %v9617_v6  ;;  %v12946_v6 = vmul.bf16 1056980736, %v9075_v62  ;;  %v12950_v62 = vmul.bf16 1056980736, %v12919_v44 }
 0x1fb   :  { %v2597_v4 = vmul.bf16 1061961548, %v2469_v14  ;;  %v2478_v34 = vadd.bf16 %v2350_v61, %v12936_v1  ;;  %v9592_v60 = vpop.eup %6890  ;;  %v12941_v14 = vmul.bf16 1056980736, %v12909_v59  ;;  %v2847_v18 = vadd.bf16 1065369472, %v6889_v50 }
 0x1fc   :  { %v2599_v41 = vmul.bf16 1061961548, %v2471_v20  ;;  %v9598_v61 = vpop.f32.mrb[93].mxu0  ;;  %v9600_v11 = vpop.eup %6892  ;;  %v2480_v22 = vadd.bf16 %v2352_v23, %v12938_v57  ;;  %v12942_v50 = vmul.bf16 1056980736, %v12915_v29  ;;  %v1408_v20 = vadd.f32 %v9337_v38, %v9399_v35  ;;  %v12945_v38 = vld [vmem:[#allocation21_spill] sm:$0xff] }
 0x1fd   :  { %v2973_v19 = vmul.bf16 %v2845_v24, %v12941_v14  ;;  %6898 = vtanh.bf16 %v2597_v4  ;;  %v2606_v17 = vmul.bf16 1061961548, %v2478_v34  ;;  %v9609_v59 = vpop.f32.mrb[94].mxu0  ;;  %v6895_v4 = vpop.eup %6894  ;;  %v1601_v23 = vadd.f32 %v9342_v53, %v9402_v0 }
 0x1fe   :  { %v2975_v24 = vmul.bf16 %v2847_v18, %v12942_v50  ;;  %6900 = vtanh.bf16 %v2599_v41  ;;  %v9619_v34 = vpop.f32.mrb[95].mxu0  ;;  %v2854_v46 = vadd.bf16 1065369472, %v6895_v4  ;;  %v2608_v2 = vmul.bf16 1061961548, %v2480_v22  ;;  %v9629_v53 = vpop.f32.mrb[95].mxu1 }
 0x1ff   :  { %3391 = vmatmul.mubr.bf16.gmra.mrb[172].mxu0 %v2973_v19  ;;  %12944 = vst [vmem:[#allocation24_spill] sm:$0xff] %v9619_v34  ;;  %6902 = vtanh.bf16 %v2606_v17  ;;  %v6897_v19 = vpop.eup %6896  ;;  %v9622_v29 = vpack.c.bf16 %v1599_v37, %v1595_v31  ;;  %v9624_v18 = vpack.c.bf16 %v1408_v20, %v1404_v55  ;;  %v9626_v41 = vpack.c.bf16 %v1601_v23, %v1597_v3  ;;  %v12948_v3 = vld [vmem:[#allocation22_spill] sm:$0xff] }
 0x200   :  { %3552 = vmatmul.mubr.bf16.gmra.mrb[172].mxu1 %v2975_v24  ;;  %v2982_v34 = vmul.bf16 %v2854_v46, %v12946_v6  ;;  %v2856_v4 = vadd.bf16 1065369472, %v6897_v19  ;;  %6904 = vtanh.bf16 %v2608_v2  ;;  %v12947_v22 = vmul.bf16 1027030327, %v12945_v38  ;;  %v9647_v19 = vpop.f32.mrb[96].mxu0 }
 0x201   :  { %v12949_v24 = vmul.bf16 1027030327, %v12948_v3  ;;  %12951 = vst [vmem:[#allocation21_spill] sm:$0xff] %v9647_v19  ;;  %v12952_v37 = vmul.bf16 1027030327, %v9243_v43  ;;  %v1605_v55 = vadd.f32 %v9373_v39, %v9391_v48 }
 0x202   :  { %v2221_v17 = vmul.bf16 %v12947_v22, %v12945_v38  ;;  %3398 = vmatprep.mubr.bf16.mxu0 %v2982_v34  ;;  %v2984_v23 = vmul.bf16 %v2856_v4, %v12950_v62  ;;  %v12953_v44 = vmul.bf16 1027030327, %v9260_v32  ;;  %v9657_v4 = vpop.f32.mrb[96].mxu1 }
 0x203   :  { %v2223_v20 = vmul.bf16 %v12949_v24, %v12948_v3  ;;  %v2230_v14 = vmul.bf16 %v12952_v37, %v9243_v43  ;;  %12954 = vst [vmem:[#allocation22_spill] sm:$0xff] %v9657_v4  ;;  %v1414_v37 = vadd.f32 %v9375_v7, %v9399_v35  ;;  %v9668_v31 = vpop.f32.mrb[97].mxu1  ;;  %v1416_v7 = vadd.f32 %v9383_v45, %v9388_v40 }
 0x204   :  { %v2349_v6 = vmul.bf16 %v2221_v17, %v12945_v38  ;;  %v2232_v34 = vmul.bf16 %v12953_v44, %v9260_v32  ;;  %v9659_v17 = vpop.f32.mrb[97].mxu0  ;;  %3559 = vmatprep.mubr.bf16.mxu1 %v2984_v23  ;;  %12956 = vst [vmem:[#allocation44_spill] sm:$0xff] %v9668_v31  ;;  %v12963_v4 = vmul.bf16 1056980736, %v12931_v56 }
 0x205   :  { %v2351_v22 = vmul.bf16 %v2223_v20, %v12948_v3  ;;  %12955 = vst [vmem:[#allocation43_spill] sm:$0xff] %v9659_v17  ;;  %v1412_v20 = vadd.f32 %v9365_v51, %v9388_v40  ;;  %v9670_v24 = vpop.f32.mrb[98].mxu0  ;;  %v2358_v2 = vmul.bf16 %v2230_v14, %v9243_v43  ;;  %v9677_v51 = vpop.f32.mrb[98].mxu1  ;;  %v1418_v14 = vadd.f32 %v9395_v54, %v9399_v35 }
 0x206   :  { %v2477_v62 = vadd.bf16 %v2349_v6, %v12945_v38  ;;  %12957 = vst [vmem:[#allocation45_spill] sm:$0xff] %v9670_v24  ;;  %v2360_v23 = vmul.bf16 %v2232_v34, %v9260_v32  ;;  %v1607_v6 = vadd.f32 %v9381_v47, %v9402_v0  ;;  %12958 = vst [vmem:[#allocation46_spill] sm:$0xff] %v9677_v51  ;;  %v9679_v46 = vpop.f32.mrb[99].mxu0 }
 0x207   :  { %v2479_v44 = vadd.bf16 %v2351_v22, %v12948_v3  ;;  %12959 = vst [vmem:[#allocation47_spill] sm:$0xff] %v9679_v46  ;;  %v1609_v24 = vadd.f32 %v9393_v33, %v9391_v48  ;;  %v9687_v22 = vpop.f32.mrb[99].mxu1  ;;  %v2486_v47 = vadd.bf16 %v2358_v2, %v9243_v43  ;;  %v9695_v45 = vpack.c.bf16 %v1418_v14, %v1414_v37 }
 0x208   :  { %v6899_v39 = vpop.eup %6898  ;;  %v2605_v50 = vmul.bf16 1061961548, %v2477_v62  ;;  %12960 = vst [vmem:[#allocation48_spill] sm:$0xff] %v9687_v22  ;;  %v2488_v51 = vadd.bf16 %v2360_v23, %v9260_v32  ;;  %v9691_v62 = vpack.c.bf16 %v1416_v7, %v1412_v20  ;;  %v12964_v23 = vld [vmem:[#allocation15_spill] sm:$0xff] }
 0x209   :  { %v2853_v34 = vadd.bf16 1065369472, %v6899_v39  ;;  %v2607_v31 = vmul.bf16 1061961548, %v2479_v44  ;;  %v6901_v46 = vpop.eup %6900  ;;  %v9693_v17 = vpack.c.bf16 %v1609_v24, %v1605_v55  ;;  %v2614_v39 = vmul.bf16 1061961548, %v2486_v47 }
 0x20a   :  { %6906 = vtanh.bf16 %v2605_v50  ;;  %12961 = vst [vmem:[#allocation49_spill] sm:$0xff] %v9691_v62  ;;  %v6903_v33 = vpop.eup %6902  ;;  %v2855_v19 = vadd.bf16 1065369472, %v6901_v46  ;;  %v2616_v22 = vmul.bf16 1061961548, %v2488_v51  ;;  %v1611_v50 = vadd.f32 %v12964_v23, %v9402_v0  ;;  %v9706_v46 = vpop.f32.mrb[100].mxu0 }
 0x20b   :  { %12962 = vst [vmem:[#allocation50_spill] sm:$0xff] %v9693_v17  ;;  %v2981_v54 = vmul.bf16 %v2853_v34, %v12963_v4  ;;  %6908 = vtanh.bf16 %v2607_v31  ;;  %v2862_v44 = vadd.bf16 1065369472, %v6903_v33  ;;  %v6905_v20 = vpop.eup %6904  ;;  %v12965_v55 = vmul.bf16 1056980736, %v12934_v27  ;;  %12966 = vst [vmem:[#allocation15_spill] sm:$0xff] %v9706_v46 }
 0x20c   :  { %6910 = vtanh.bf16 %v2614_v39  ;;  %v9708_v31 = vpop.f32.mrb[100].mxu1  ;;  %v12968_v4 = vmul.bf16 1056980736, %v12936_v1  ;;  %v2864_v7 = vadd.bf16 1065369472, %v6905_v20  ;;  %v9712_v14 = vpack.c.bf16 %v1611_v50, %v1607_v6  ;;  %v9714_v34 = vpop.f32.mrb[101].mxu0 }
 0x20d   :  { %3399 = vmatmul.mubr.bf16.gmra.mrb[176].mxu0 %v2981_v54  ;;  %v2983_v24 = vmul.bf16 %v2855_v19, %v12965_v55  ;;  %12967 = vst [vmem:[#allocation51_spill] sm:$0xff] %v9708_v31  ;;  %6912 = vtanh.bf16 %v2616_v22  ;;  %12969 = vst [vmem:[#allocation52_spill] sm:$0xff] %v9714_v34  ;;  %v9716_v27 = vpop.f32.mrb[101].mxu1  ;;  %v12971_v19 = vld [vmem:[#allocation25_spill] sm:$0xff]  ;;  %v12973_v39 = vld [vmem:[#allocation26_spill] sm:$0xff]  ;;  %v9726_v22 = vpop.f32.mrb[102].mxu0  ;;  %v1615_v55 = vadd.f32 %v9425_v58, %v9391_v48 }
 0x20e   :  { %v2990_v51 = vmul.bf16 %v2862_v44, %v12968_v4  ;;  %12970 = vst [vmem:[#allocation53_spill] sm:$0xff] %v9716_v27  ;;  %v12972_v33 = vmul.bf16 1027030327, %v12971_v19  ;;  %v12974_v1 = vmul.bf16 1027030327, %v12973_v39  ;;  %12975 = vst [vmem:[#allocation25_spill] sm:$0xff] %v9726_v22 }
 0x20f   :  { %3560 = vmatmul.mubr.bf16.gmra.mrb[176].mxu1 %v2983_v24  ;;  %v9728_v6 = vpop.f32.mrb[102].mxu1  ;;  %v12977_v50 = vmul.bf16 1056980736, %v12938_v57  ;;  %v12978_v24 = vld [vmem:[#allocation29_spill] sm:$0xff]  ;;  %v9737_v2 = vpop.f32.mrb[103].mxu0 }
 0x210   :  { %v2229_v54 = vmul.bf16 %v12972_v33, %v12971_v19  ;;  %v2231_v44 = vmul.bf16 %v12974_v1, %v12973_v39  ;;  %12976 = vst [vmem:[#allocation26_spill] sm:$0xff] %v9728_v6  ;;  %3406 = vmatprep.mubr.bf16.mxu0 %v2990_v51  ;;  %v12979_v33 = vmul.bf16 1027030327, %v12978_v24  ;;  %12980 = vst [vmem:[#allocation29_spill] sm:$0xff] %v9737_v2  ;;  %v9739_v56 = vpop.f32.mrb[103].mxu1  ;;  %v12982_v51 = vld [vmem:[#allocation30_spill] sm:$0xff] }
 0x211   :  { %v2992_v20 = vmul.bf16 %v2864_v7, %v12977_v50  ;;  %12981 = vst [vmem:[#allocation54_spill] sm:$0xff] %v9739_v56  ;;  %v12983_v57 = vmul.bf16 1027030327, %v12982_v51  ;;  %v12985_v56 = vld [vmem:[#allocation33_spill] sm:$0xff]  ;;  %v12986_v2 = vld [vmem:[#allocation16_spill] sm:$0xff]  ;;  %v12987_v6 = vld [vmem:[#allocation35_spill] sm:$0xff] }
 0x212   :  { %v2238_v37 = vmul.bf16 %v12979_v33, %v12978_v24  ;;  %v2357_v1 = vmul.bf16 %v2229_v54, %v12971_v19  ;;  %v2359_v23 = vmul.bf16 %v2231_v44, %v12973_v39  ;;  %v1422_v33 = vadd.f32 %v9419_v52, %v9388_v40  ;;  %v9766_v22 = vpop.f32.mrb[104].mxu0 }
 0x213   :  { %v2240_v7 = vmul.bf16 %v12983_v57, %v12982_v51  ;;  %3567 = vmatprep.mubr.bf16.mxu1 %v2992_v20  ;;  %v1424_v54 = vadd.f32 %v9427_v16, %v9399_v35  ;;  %v12984_v57 = vld [vmem:[#allocation32_spill] sm:$0xff]  ;;  %v1426_v52 = vadd.f32 %v12985_v56, %v9388_v40  ;;  %v1619_v58 = vadd.f32 %v12986_v2, %v9391_v48  ;;  %v9773_v31 = vpop.f32.mrb[105].mxu0 }
 0x214   :  { %v2366_v50 = vmul.bf16 %v2238_v37, %v12978_v24  ;;  %v2485_v44 = vadd.bf16 %v2357_v1, %v12971_v19  ;;  %v2487_v47 = vadd.bf16 %v2359_v23, %v12973_v39  ;;  %v1617_v20 = vadd.f32 %v12984_v57, %v9402_v0  ;;  %12988 = vst [vmem:[#allocation30_spill] sm:$0xff] %v9766_v22  ;;  %v12989_v57 = vld [vmem:[#allocation17_spill] sm:$0xff] }
 0x215   :  { %v2368_v4 = vmul.bf16 %v2240_v7, %v12982_v51  ;;  %v1428_v16 = vadd.f32 %v12987_v6, %v9399_v35  ;;  %v6907_v1 = vpop.eup %6906  ;;  %v1621_v34 = vadd.f32 %v12989_v57, %v9402_v0  ;;  %12991 = vst [vmem:[#allocation33_spill] sm:$0xff] %v9773_v31  ;;  %v9775_v17 = vpack.c.bf16 %v1426_v52, %v1422_v33 }
 0x216   :  { %v2494_v37 = vadd.bf16 %v2366_v50, %v12978_v24  ;;  %v2613_v23 = vmul.bf16 1061961548, %v2485_v44  ;;  %v2615_v27 = vmul.bf16 1061961548, %v2487_v47  ;;  %v9771_v50 = vpop.f32.mrb[104].mxu1  ;;  %v6909_v56 = vpop.eup %6908  ;;  %v9777_v6 = vpack.c.bf16 %v1619_v58, %v1615_v55 }
 0x217   :  { %v2496_v7 = vadd.bf16 %v2368_v4, %v12982_v51  ;;  %12990 = vst [vmem:[#allocation32_spill] sm:$0xff] %v9771_v50  ;;  %v2861_v46 = vadd.bf16 1065369472, %v6907_v1  ;;  %v9779_v22 = vpop.f32.mrb[105].mxu1  ;;  %v9781_v44 = vpop.f32.mrb[106].mxu0  ;;  %v9783_v62 = vpack.c.bf16 %v1428_v16, %v1424_v54 }
 0x218   :  { %v2622_v2 = vmul.bf16 1061961548, %v2494_v37  ;;  %12992 = vst [vmem:[#allocation16_spill] sm:$0xff] %v9779_v22  ;;  %12993 = vst [vmem:[#allocation35_spill] sm:$0xff] %v9781_v44  ;;  %v2863_v47 = vadd.bf16 1065369472, %v6909_v56  ;;  %6914 = vtanh.bf16 %v2613_v23  ;;  %v6911_v31 = vpop.eup %6910 }
 0x219   :  { %v2624_v4 = vmul.bf16 1061961548, %v2496_v7  ;;  %v9785_v57 = vpop.f32.mrb[106].mxu1  ;;  %v9787_v50 = vpop.f32.mrb[107].mxu0  ;;  %v12996_v37 = vmul.bf16 1056980736, %v12945_v38  ;;  %6916 = vtanh.bf16 %v2615_v27  ;;  %v9798_v38 = vpack.c.bf16 %v1621_v34, %v1617_v20 }
 0x21a   :  { %12994 = vst [vmem:[#allocation17_spill] sm:$0xff] %v9785_v57  ;;  %12995 = vst [vmem:[#allocation55_spill] sm:$0xff] %v9787_v50  ;;  %v9793_v58 = vpop.f32.mrb[107].mxu1  ;;  %v6913_v1 = vpop.eup %6912  ;;  %v12998_v23 = vmul.bf16 1056980736, %v12948_v3  ;;  %6918 = vtanh.bf16 %v2622_v2  ;;  %v13008_v7 = vld [vmem:[#allocation37_spill] sm:$0xff] }
 0x21b   :  { %v2989_v33 = vmul.bf16 %v2861_v46, %v12996_v37  ;;  %12997 = vst [vmem:[#allocation56_spill] sm:$0xff] %v9793_v58  ;;  %v2870_v16 = vadd.bf16 1065369472, %v6911_v31  ;;  %v2872_v56 = vadd.bf16 1065369472, %v6913_v1  ;;  %6920 = vtanh.bf16 %v2624_v4  ;;  %v12999_v46 = vld [vmem:[#allocation27_spill] sm:$0xff] }
 0x21c   :  { %v2991_v54 = vmul.bf16 %v2863_v47, %v12998_v23  ;;  %v13000_v37 = vmul.bf16 1056980736, %v9243_v43  ;;  %v13001_v55 = vmul.bf16 1027030327, %v12999_v46  ;;  %v13002_v47 = vld [vmem:[#allocation28_spill] sm:$0xff] }
 0x21d   :  { %3407 = vmatmul.mubr.bf16.gmra.mrb[180].mxu0 %v2989_v33  ;;  %v13003_v2 = vmul.bf16 1027030327, %v13002_v47  ;;  %v13004_v4 = vmul.bf16 1056980736, %v9260_v32  ;;  %v13005_v1 = vld [vmem:[#allocation36_spill] sm:$0xff] }
 0x21e   :  { %3568 = vmatmul.mubr.bf16.gmra.mrb[180].mxu1 %v2991_v54  ;;  %v2998_v52 = vmul.bf16 %v2870_v16, %v13000_v37  ;;  %v2237_v3 = vmul.bf16 %v13001_v55, %v12999_v46  ;;  %v13006_v43 = vmul.bf16 1027030327, %v13005_v1  ;;  %v9817_v16 = vpop.f32.mrb[108].mxu0  ;;  %v13009_v32 = vmul.bf16 1027030327, %v13008_v7  ;;  %v13012_v23 = vld [vmem:[#allocation20_spill] sm:$0xff] }
 0x21f   :  { %v2239_v33 = vmul.bf16 %v13003_v2, %v13002_v47  ;;  %v3000_v34 = vmul.bf16 %v2872_v56, %v13004_v4  ;;  %13007 = vst [vmem:[#allocation27_spill] sm:$0xff] %v9817_v16  ;;  %v9825_v4 = vpop.f32.mrb[108].mxu1  ;;  %v9827_v20 = vpop.f32.mrb[109].mxu0 }
 0x220   :  { %v2122_v54 = vmul.bf16 %v13006_v43, %v13005_v1  ;;  %3414 = vmatprep.mubr.bf16.mxu0 %v2998_v52  ;;  %v2365_v55 = vmul.bf16 %v2237_v3, %v12999_v46  ;;  %v2124_v56 = vmul.bf16 %v13009_v32, %v13008_v7  ;;  %13010 = vst [vmem:[#allocation28_spill] sm:$0xff] %v9825_v4  ;;  %13011 = vst [vmem:[#allocation36_spill] sm:$0xff] %v9827_v20  ;;  %v13013_v3 = vld [vmem:[#allocation38_spill] sm:$0xff]  ;;  %v9836_v27 = vpop.f32.mrb[109].mxu1  ;;  %v9838_v16 = vpop.f32.mrb[110].mxu0 }
 0x221   :  { %v2367_v37 = vmul.bf16 %v2239_v33, %v13002_v47  ;;  %3575 = vmatprep.mubr.bf16.mxu1 %v3000_v34  ;;  %v1432_v52 = vadd.f32 %v13012_v23, %v9388_v40  ;;  %v1625_v31 = vadd.f32 %v13013_v3, %v9391_v48  ;;  %v13014_v33 = vld [vmem:[#allocation39_spill] sm:$0xff]  ;;  %13015 = vst [vmem:[#allocation37_spill] sm:$0xff] %v9836_v27  ;;  %13016 = vst [vmem:[#allocation20_spill] sm:$0xff] %v9838_v16  ;;  %v9845_v23 = vpop.f32.mrb[110].mxu1  ;;  %v9847_v58 = vpop.f32.mrb[111].mxu0 }
 0x222   :  { %v2250_v43 = vmul.bf16 %v2122_v54, %v13005_v1  ;;  %v1434_v2 = vadd.f32 %v13014_v33, %v9399_v35  ;;  %v2493_v32 = vadd.bf16 %v2365_v55, %v12999_v46  ;;  %v2252_v34 = vmul.bf16 %v2124_v56, %v13008_v7  ;;  %v13017_v54 = vld [vmem:[#allocation40_spill] sm:$0xff]  ;;  %13018 = vst [vmem:[#allocation38_spill] sm:$0xff] %v9845_v23  ;;  %v13020_v33 = vld [vmem:[#allocation41_spill] sm:$0xff] }
 0x223   :  { %v2495_v20 = vadd.bf16 %v2367_v37, %v13002_v47  ;;  %v1627_v4 = vadd.f32 %v13017_v54, %v9402_v0  ;;  %13019 = vst [vmem:[#allocation39_spill] sm:$0xff] %v9847_v58  ;;  %v1436_v27 = vadd.f32 %v13020_v33, %v9388_v40  ;;  %v1629_v16 = vadd.f32 %v9502_v9, %v9391_v48  ;;  %v9856_v37 = vpop.f32.mrb[111].mxu1  ;;  %v6915_v23 = vpop.eup %6914 }
 0x224   :  { %v2378_v3 = vadd.bf16 %v2250_v43, %v13005_v1  ;;  %v1438_v55 = vadd.f32 %v9504_v5, %v9399_v35  ;;  %13021 = vst [vmem:[#allocation40_spill] sm:$0xff] %v9856_v37  ;;  %v2621_v56 = vmul.bf16 1061961548, %v2493_v32  ;;  %v2380_v54 = vadd.bf16 %v2252_v34, %v13008_v7  ;;  %v6917_v9 = vpop.eup %6916 }
 0x225   :  { %v2623_v50 = vmul.bf16 1061961548, %v2495_v20  ;;  %v1631_v58 = vadd.f32 %v9510_v26, %v9402_v0  ;;  %v9861_v57 = vpack.c.bf16 %v1436_v27, %v1432_v52  ;;  %v9863_v33 = vpack.c.bf16 %v1629_v16, %v1625_v31  ;;  %v6919_v20 = vpop.eup %6918  ;;  %v9874_v52 = vpop.f32.mrb[112].mxu0 }
 0x226   :  { %v2506_v43 = vmul.bf16 1061961548, %v2378_v3  ;;  %v9865_v44 = vpack.c.bf16 %v1438_v55, %v1434_v2  ;;  %v2869_v22 = vadd.bf16 1065369472, %v6915_v23  ;;  %6922 = vtanh.bf16 %v2621_v56  ;;  %v6921_v3 = vpop.eup %6920  ;;  %v9876_v23 = vpop.f32.mrb[112].mxu1 }
 0x227   :  { %v2508_v5 = vmul.bf16 1061961548, %v2380_v54  ;;  %v9867_v37 = vpack.c.bf16 %v1631_v58, %v1627_v4  ;;  %v2871_v32 = vadd.bf16 1065369472, %v6917_v9  ;;  %6924 = vtanh.bf16 %v2623_v50  ;;  %v9881_v56 = vpop.f32.mrb[113].mxu0  ;;  %v9883_v54 = vpop.f32.mrb[113].mxu1 }
 0x228   :  { %v13022_v27 = vmul.bf16 1056980736, %v12971_v19  ;;  %v2878_v16 = vadd.bf16 1065369472, %v6919_v20  ;;  %6926 = vtanh.bf16 %v2506_v43  ;;  %v13023_v58 = vmul.bf16 1056980736, %v12973_v39 }
 0x229   :  { %v2880_v50 = vadd.bf16 1065369472, %v6921_v3  ;;  %6928 = vtanh.bf16 %v2508_v5  ;;  %v13024_v19 = vmul.bf16 1056980736, %v12978_v24  ;;  %v13025_v43 = vld [vmem:[#allocation31_spill] sm:$0xff]  ;;  %v9897_v24 = vpop.f32.mrb[114].mxu0 }
 0x22a   :  { %v2997_v31 = vmul.bf16 %v2869_v22, %v13022_v27  ;;  %v2999_v4 = vmul.bf16 %v2871_v32, %v13023_v58  ;;  %v1865_v9 = vmul.bf16 1056980736, %v13025_v43  ;;  %v2761_v20 = vadd.bf16 1065369472, %v9592_v60  ;;  %v13026_v27 = vld [vmem:[#allocation34_spill] sm:$0xff] }
 0x22b   :  { %v3006_v22 = vmul.bf16 %v2878_v16, %v13024_v19  ;;  %v1867_v26 = vmul.bf16 1056980736, %v13026_v27  ;;  %v13027_v39 = vmul.bf16 1056980736, %v12982_v51  ;;  %v2763_v32 = vadd.bf16 1065369472, %v9600_v11 }
 0x22c   :  { %3415 = vmatmul.mubr.bf16.gmra.mrb[184].mxu0 %v2997_v31  ;;  %3576 = vmatmul.mubr.bf16.gmra.mrb[184].mxu1 %v2999_v4  ;;  %v13028_v31 = vmul.bf16 1027030327, %v9543_v25  ;;  %v9899_v16 = vpop.f32.mrb[114].mxu1  ;;  %v9901_v60 = vmul.bf16 %v2761_v20, %v1865_v9  ;;  %v13029_v51 = vmul.bf16 1027030327, %v9551_v15  ;;  %v1442_v11 = vadd.f32 %v9527_v49, %v9388_v40  ;;  %v9909_v19 = vpop.f32.mrb[115].mxu0 }
 0x22d   :  { %v3008_v5 = vmul.bf16 %v2880_v50, %v13027_v39  ;;  %3422 = vmatprep.mubr.bf16.mxu0 %v3006_v22  ;;  %v9911_v43 = vpop.f32.mrb[115].mxu1  ;;  %v9913_v27 = vmul.bf16 %v2763_v32, %v1867_v26  ;;  %v1635_v9 = vadd.f32 %v9537_v8, %v9391_v48  ;;  %v1444_v20 = vadd.f32 %v9539_v63, %v9399_v35  ;;  %v13030_v63 = vld [vmem:[#allocation42_spill] sm:$0xff] }
 0x22e   :  { %v2130_v58 = vmul.bf16 %v13028_v31, %v9543_v25  ;;  %v2132_v50 = vmul.bf16 %v13029_v51, %v9551_v15  ;;  %v1637_v49 = vadd.f32 %v9546_v12, %v9402_v0  ;;  %v1446_v31 = vadd.f32 %v9548_v42, %v9388_v40  ;;  %v9933_v51 = vpop.f32.mrb[116].mxu0  ;;  %v9943_v34 = vpop.f32.mrb[116].mxu1  ;;  %v13035_v4 = vld [vmem:[#allocation18_spill] sm:$0xff] }
 0x22f   :  { %3583 = vmatprep.mubr.bf16.mxu1 %v3008_v5  ;;  %v1639_v26 = vadd.f32 %v9557_v28, %v9391_v48  ;;  %v1448_v32 = vadd.f32 %v9559_v21, %v9399_v35  ;;  %v1641_v8 = vadd.f32 %v9571_v10, %v9402_v0  ;;  %13031 = vst [vmem:[#allocation41_spill] sm:$0xff] %v9933_v51  ;;  %v13032_v28 = vmul.bf16 1027030327, %v13030_v63  ;;  %v9945_v21 = vpop.f32.mrb[117].mxu0 }
 0x230   :  { %v2258_v22 = vmul.bf16 %v2130_v58, %v9543_v25  ;;  %v2260_v39 = vmul.bf16 %v2132_v50, %v9551_v15  ;;  %v9936_v50 = vpack.c.bf16 %v1446_v31, %v1442_v11  ;;  %13033 = vst [vmem:[#allocation31_spill] sm:$0xff] %v9943_v34  ;;  %13034 = vst [vmem:[#allocation34_spill] sm:$0xff] %v9945_v21  ;;  %v9952_v11 = vpop.f32.mrb[117].mxu1 }
 0x231   :  { %v9938_v42 = vpack.c.bf16 %v1639_v26, %v1635_v9  ;;  %v6923_v55 = vpop.eup %6922  ;;  %v9947_v2 = vpack.c.bf16 %v1448_v32, %v1444_v20  ;;  %v9949_v58 = vpack.c.bf16 %v1641_v8, %v1637_v49  ;;  %v9954_v9 = vpop.f32.mrb[118].mxu0  ;;  %v13037_v32 = vmul.bf16 1056980736, %v12999_v46 }
 0x232   :  { %v2386_v5 = vadd.bf16 %v2258_v22, %v9543_v25  ;;  %v2388_v12 = vadd.bf16 %v2260_v39, %v9551_v15  ;;  %v2129_v22 = vmul.bf16 %v13032_v28, %v13030_v63  ;;  %13036 = vst [vmem:[#allocation42_spill] sm:$0xff] %v9954_v9  ;;  %v6925_v31 = vpop.eup %6924  ;;  %v2877_v26 = vadd.bf16 1065369472, %v6923_v55  ;;  %v9965_v28 = vpop.f32.mrb[119].mxu0 }
 0x233   :  { %v6927_v21 = vpop.eup %6926  ;;  %v2879_v51 = vadd.bf16 1065369472, %v6925_v31  ;;  %v13039_v49 = vmul.bf16 1027030327, %v13035_v4 }
 0x234   :  { %v2514_v10 = vmul.bf16 1061961548, %v2386_v5  ;;  %v2516_v3 = vmul.bf16 1061961548, %v2388_v12  ;;  %v2257_v34 = vmul.bf16 %v2129_v22, %v13030_v63  ;;  %v6929_v5 = vpop.eup %6928  ;;  %v3005_v8 = vmul.bf16 %v2877_v26, %v13037_v32  ;;  %v9963_v12 = vpop.f32.mrb[118].mxu1 }
 0x235   :  { %v2762_v39 = vadd.bf16 1065369472, %v6927_v21  ;;  %v13038_v22 = vmul.bf16 1056980736, %v13002_v47  ;;  %v2131_v9 = vmul.bf16 %v13039_v49, %v13035_v4  ;;  %v9973_v46 = vpop.f32.mrb[119].mxu1 }
 0x236   :  { %6930 = vtanh.bf16 %v2514_v10  ;;  %v2764_v10 = vadd.bf16 1065369472, %v6929_v5  ;;  %v2385_v20 = vadd.bf16 %v2257_v34, %v13030_v63  ;;  %3423 = vmatmul.mubr.bf16.gmra.mrb[188].mxu0 %v3005_v8  ;;  %v13041_v32 = vmul.bf16 1027030327, %v9624_v18 }
 0x237   :  { %6932 = vtanh.bf16 %v2516_v3  ;;  %v3007_v31 = vmul.bf16 %v2879_v51, %v13038_v22  ;;  %v13040_v3 = vmul.bf16 1056980736, %v13005_v1  ;;  %v13042_v34 = vmul.bf16 1056980736, %v13008_v7 }
 0x238   :  { %v2138_v47 = vmul.bf16 %v13041_v32, %v9624_v18  ;;  %v2513_v22 = vmul.bf16 1061961548, %v2385_v20  ;;  %v2259_v49 = vmul.bf16 %v2131_v9, %v13035_v4  ;;  %v13043_v8 = vmul.bf16 1027030327, %v9626_v41  ;;  %v13045_v32 = vld [vmem:[#allocation19_spill] sm:$0xff]  ;;  %v9997_v20 = vpop.f32.mrb[120].mxu1 }
 0x239   :  { %v2890_v21 = vmul.bf16 %v2762_v39, %v13040_v3  ;;  %3584 = vmatmul.mubr.bf16.gmra.mrb[188].mxu1 %v3007_v31  ;;  %v2892_v5 = vmul.bf16 %v2764_v10, %v13042_v34  ;;  %v9988_v39 = vpop.f32.mrb[120].mxu0  ;;  %v1452_v55 = vadd.f32 %v13045_v32, %v9388_v40  ;;  %v1645_v31 = vadd.f32 %v9596_v36, %v9391_v48  ;;  %v10005_v34 = vpop.f32.mrb[121].mxu1  ;;  %v13050_v32 = vld [vmem:[#allocation23_spill] sm:$0xff] }
 0x23a   :  { %v2140_v1 = vmul.bf16 %v13043_v8, %v9626_v41  ;;  %13044 = vst [vmem:[#allocation18_spill] sm:$0xff] %v9988_v39  ;;  %v2266_v3 = vmul.bf16 %v2138_v47, %v9624_v18  ;;  %v1454_v7 = vadd.f32 %v9598_v61, %v9399_v35  ;;  %13046 = vst [vmem:[#allocation19_spill] sm:$0xff] %v9997_v20  ;;  %v9999_v9 = vpop.f32.mrb[121].mxu0  ;;  %6934 = vtanh.bf16 %v2513_v22  ;;  %v13051_v22 = vld [vmem:[#allocation24_spill] sm:$0xff]  ;;  %v10016_v51 = vpop.f32.mrb[122].mxu1 }
 0x23b   :  { %3881 = vmatprep.mubr.bf16.mxu0 %v2890_v21  ;;  %13047 = vst [vmem:[#allocation57_spill] sm:$0xff] %v9999_v9  ;;  %4042 = vmatprep.mubr.bf16.mxu1 %v2892_v5  ;;  %v2387_v10 = vadd.bf16 %v2259_v49, %v13035_v4  ;;  %v1647_v47 = vadd.f32 %v9607_v30, %v9402_v0  ;;  %13048 = vst [vmem:[#allocation58_spill] sm:$0xff] %v10005_v34  ;;  %v10007_v8 = vpop.f32.mrb[122].mxu0  ;;  %v10024_v34 = vpop.f32.mrb[123].mxu1 }
 0x23c   :  { %v2268_v21 = vmul.bf16 %v2140_v1, %v9626_v41  ;;  %13049 = vst [vmem:[#allocation59_spill] sm:$0xff] %v10007_v8  ;;  %v2394_v36 = vadd.bf16 %v2266_v3, %v9624_v18  ;;  %v1456_v61 = vadd.f32 %v9609_v59, %v9388_v40  ;;  %v1649_v5 = vadd.f32 %v13050_v32, %v9391_v48  ;;  %v10018_v1 = vpop.f32.mrb[123].mxu0 }
 0x23d   :  { %v1458_v49 = vadd.f32 %v13051_v22, %v9399_v35  ;;  %13052 = vst [vmem:[#allocation23_spill] sm:$0xff] %v10016_v51  ;;  %13053 = vst [vmem:[#allocation24_spill] sm:$0xff] %v10018_v1  ;;  %v2515_v30 = vmul.bf16 1061961548, %v2387_v10  ;;  %v1651_v8 = vadd.f32 %v9629_v53, %v9402_v0  ;;  %v13055_v10 = vmul.bf16 1027030327, %v9603_v13 }
 0x23e   :  { %v2396_v26 = vadd.bf16 %v2268_v21, %v9626_v41  ;;  %13054 = vst [vmem:[#allocation60_spill] sm:$0xff] %v10024_v34  ;;  %v2522_v59 = vmul.bf16 1061961548, %v2394_v36  ;;  %v10026_v9 = vpack.c.bf16 %v1456_v61, %v1452_v55  ;;  %v10028_v32 = vpack.c.bf16 %v1649_v5, %v1645_v31  ;;  %3882 = vmatmul.mubr.bf16.vlgmr.msra.gmra.mrb[192].mxu0 %v9901_v60  ;;  %v10044_v61 = vpop.f32.mrb[124].mxu0 }
 0x23f   :  { %v10030_v22 = vpack.c.bf16 %v1458_v49, %v1454_v7  ;;  %6936 = vtanh.bf16 %v2515_v30  ;;  %v10032_v1 = vpack.c.bf16 %v1651_v8, %v1647_v47  ;;  %v2137_v21 = vmul.bf16 %v13055_v10, %v9603_v13  ;;  %13056 = vst [vmem:[#allocation61_spill] sm:$0xff] %v10044_v61  ;;  %v10060_v36 = vpop.f32.mrb[125].mxu0 }
 0x240   :  { %v2524_v51 = vmul.bf16 1061961548, %v2396_v26  ;;  %6938 = vtanh.bf16 %v2522_v59  ;;  %v13057_v49 = vmul.bf16 1027030327, %v9622_v29  ;;  %v13058_v10 = vmul.bf16 1056980736, %v9543_v25 }
 0x241   :  { %v6931_v53 = vpop.eup %6930  ;;  %4043 = vmatmul.mubr.bf16.vlgmr.msra.gmra.mrb[192].mxu1 %v9913_v27  ;;  %v2265_v8 = vmul.bf16 %v2137_v21, %v9603_v13  ;;  %13061 = vst [vmem:[#allocation63_spill] sm:$0xff] %v10060_v36  ;;  %v13062_v47 = vmul.bf16 1056980736, %v9551_v15  ;;  %v13063_v25 = vmul.bf16 1027030327, %v9712_v14  ;;  %v13067_v15 = vld [vmem:[#allocation22_spill] sm:$0xff] }
 0x242   :  { %v6933_v7 = vpop.eup %6932  ;;  %v2770_v26 = vadd.bf16 1065369472, %v6931_v53  ;;  %6940 = vtanh.bf16 %v2524_v51  ;;  %v2139_v30 = vmul.bf16 %v13057_v49, %v9622_v29  ;;  %v13059_v53 = vmul.bf16 1027030327, %v9695_v45 }
 0x243   :  { %v2772_v5 = vadd.bf16 1065369472, %v6933_v7  ;;  %v2393_v51 = vadd.bf16 %v2265_v8, %v9603_v13  ;;  %v10058_v7 = vpop.f32.mrb[124].mxu1  ;;  %v13064_v8 = vld [vmem:[#allocation21_spill] sm:$0xff]  ;;  %v13077_v34 = vmul.bf16 1056980736, %v13030_v63 }
 0x244   :  { %v2898_v27 = vmul.bf16 %v2770_v26, %v13058_v10  ;;  %v2146_v21 = vmul.bf16 %v13059_v53, %v9695_v45  ;;  %13060 = vst [vmem:[#allocation62_spill] sm:$0xff] %v10058_v7  ;;  %v2267_v31 = vmul.bf16 %v2139_v30, %v9622_v29  ;;  %v2148_v26 = vmul.bf16 %v13063_v25, %v9712_v14  ;;  %v10070_v59 = vpop.f32.mrb[125].mxu1  ;;  %v10072_v53 = vpop.f32.mrb[126].mxu0 }
 0x245   :  { %v2900_v49 = vmul.bf16 %v2772_v5, %v13062_v47  ;;  %v1462_v10 = vadd.f32 %v13064_v8, %v9388_v40  ;;  %13065 = vst [vmem:[#allocation21_spill] sm:$0xff] %v10070_v59  ;;  %13066 = vst [vmem:[#allocation64_spill] sm:$0xff] %v10072_v53  ;;  %v2521_v55 = vmul.bf16 1061961548, %v2393_v51  ;;  %v1655_v47 = vadd.f32 %v13067_v15, %v9391_v48  ;;  %v13068_v5 = vld [vmem:[#allocation43_spill] sm:$0xff]  ;;  %v10079_v3 = vpop.f32.mrb[126].mxu1  ;;  %v6935_v36 = vpop.eup %6934 }
 0x246   :  { %3889 = vmatprep.mubr.bf16.mxu0 %v2898_v27  ;;  %v2274_v60 = vmul.bf16 %v2146_v21, %v9695_v45  ;;  %v1464_v30 = vadd.f32 %v13068_v5, %v9399_v35  ;;  %13069 = vst [vmem:[#allocation22_spill] sm:$0xff] %v10079_v3  ;;  %v10081_v25 = vpop.f32.mrb[127].mxu0  ;;  %v2395_v8 = vadd.bf16 %v2267_v31, %v9622_v29  ;;  %v13071_v27 = vld [vmem:[#allocation44_spill] sm:$0xff]  ;;  %v13072_v21 = vld [vmem:[#allocation45_spill] sm:$0xff]  ;;  %v10089_v15 = vpop.f32.mrb[127].mxu1 }
 0x247   :  { %13070 = vst [vmem:[#allocation43_spill] sm:$0xff] %v10081_v25  ;;  %4050 = vmatprep.mubr.bf16.mxu1 %v2900_v49  ;;  %v2276_v53 = vmul.bf16 %v2148_v26, %v9712_v14  ;;  %v1657_v51 = vadd.f32 %v13071_v27, %v9402_v0  ;;  %v1466_v59 = vadd.f32 %v13072_v21, %v9388_v40  ;;  %13073 = vst [vmem:[#allocation44_spill] sm:$0xff] %v10089_v15  ;;  %v13074_v25 = vld [vmem:[#allocation46_spill] sm:$0xff]  ;;  %v13076_v26 = vld [vmem:[#allocation47_spill] sm:$0xff] }
 0x248   :  { %v2769_v7 = vadd.bf16 1065369472, %v6935_v36  ;;  %6942 = vtanh.bf16 %v2521_v55  ;;  %v2402_v5 = vadd.bf16 %v2274_v60, %v9695_v45  ;;  %v1659_v3 = vadd.f32 %v13074_v25, %v9391_v48  ;;  %v13079_v36 = vld [vmem:[#allocation48_spill] sm:$0xff]  ;;  %v10105_v60 = vpop.f32.mrb[128].mxu0 }
 0x249   :  { %v2523_v49 = vmul.bf16 1061961548, %v2395_v8  ;;  %v2404_v31 = vadd.bf16 %v2276_v53, %v9712_v14  ;;  %v10095_v61 = vpack.c.bf16 %v1466_v59, %v1462_v10  ;;  %v1468_v27 = vadd.f32 %v13076_v26, %v9399_v35  ;;  %13080 = vst [vmem:[#allocation47_spill] sm:$0xff] %v10105_v60  ;;  %v10110_v53 = vpop.f32.mrb[128].mxu1  ;;  %v10112_v26 = vpop.f32.mrb[129].mxu0 }
 0x24a   :  { %v2897_v21 = vmul.bf16 %v2769_v7, %v13077_v34  ;;  %v2530_v20 = vmul.bf16 1061961548, %v2402_v5  ;;  %v10101_v15 = vpack.c.bf16 %v1659_v3, %v1655_v47  ;;  %v1661_v55 = vadd.f32 %v13079_v36, %v9402_v0  ;;  %v6937_v25 = vpop.eup %6936  ;;  %13081 = vst [vmem:[#allocation48_spill] sm:$0xff] %v10110_v53  ;;  %13082 = vst [vmem:[#allocation65_spill] sm:$0xff] %v10112_v26  ;;  %v10117_v47 = vpop.f32.mrb[129].mxu1 }
 0x24b   :  { %13075 = vst [vmem:[#allocation45_spill] sm:$0xff] %v10095_v61  ;;  %6944 = vtanh.bf16 %v2523_v49  ;;  %v2532_v8 = vmul.bf16 1061961548, %v2404_v31  ;;  %v10108_v10 = vpack.c.bf16 %v1468_v27, %v1464_v30  ;;  %v6939_v63 = vpop.eup %6938  ;;  %v2771_v34 = vadd.bf16 1065369472, %v6937_v25  ;;  %13083 = vst [vmem:[#allocation66_spill] sm:$0xff] %v10117_v47 }
 0x24c   :  { %13078 = vst [vmem:[#allocation46_spill] sm:$0xff] %v10101_v15  ;;  %3890 = vmatmul.mubr.bf16.gmra.mrb[196].mxu0 %v2897_v21  ;;  %6946 = vtanh.bf16 %v2530_v20  ;;  %v10115_v7 = vpack.c.bf16 %v1661_v55, %v1657_v51  ;;  %v10119_v5 = vpop.f32.mrb[130].mxu0  ;;  %v2778_v31 = vadd.bf16 1065369472, %v6939_v63  ;;  %v13085_v27 = vld [vmem:[#allocation49_spill] sm:$0xff]  ;;  %v10129_v3 = vpop.f32.mrb[130].mxu1 }
 0x24d   :  { %13084 = vst [vmem:[#allocation67_spill] sm:$0xff] %v10119_v5  ;;  %v6941_v49 = vpop.eup %6940  ;;  %6948 = vtanh.bf16 %v2532_v8  ;;  %v13086_v59 = vmul.bf16 1056980736, %v13035_v4  ;;  %v13087_v51 = vmul.bf16 1027030327, %v13085_v27  ;;  %13088 = vst [vmem:[#allocation49_spill] sm:$0xff] %v10129_v3 }
 0x24e   :  { %v2780_v25 = vadd.bf16 1065369472, %v6941_v49  ;;  %v10131_v5 = vpop.f32.mrb[131].mxu0  ;;  %v13090_v8 = vmul.bf16 1056980736, %v9624_v18  ;;  %v13091_v30 = vld [vmem:[#allocation50_spill] sm:$0xff] }
 0x24f   :  { %v2899_v21 = vmul.bf16 %v2771_v34, %v13086_v59  ;;  %v2145_v55 = vmul.bf16 %v13087_v51, %v13085_v27  ;;  %13089 = vst [vmem:[#allocation68_spill] sm:$0xff] %v10131_v5  ;;  %v13092_v4 = vmul.bf16 1027030327, %v13091_v30  ;;  %v10140_v49 = vpop.f32.mrb[131].mxu1  ;;  %v13094_v51 = vmul.bf16 1056980736, %v9626_v41 }
 0x250   :  { %v2906_v63 = vmul.bf16 %v2778_v31, %v13090_v8  ;;  %13093 = vst [vmem:[#allocation50_spill] sm:$0xff] %v10140_v49  ;;  %v13095_v18 = vmul.bf16 1027030327, %v9783_v62  ;;  %v13098_v41 = vld [vmem:[#allocation51_spill] sm:$0xff]  ;;  %v10163_v3 = vpop.f32.mrb[132].mxu0  ;;  %v10183_v61 = vpop.f32.mrb[132].mxu1 }
 0x251   :  { %v2147_v59 = vmul.bf16 %v13092_v4, %v13091_v30  ;;  %4051 = vmatmul.mubr.bf16.gmra.mrb[196].mxu1 %v2899_v21  ;;  %v2908_v20 = vmul.bf16 %v2780_v25, %v13094_v51  ;;  %v2273_v36 = vmul.bf16 %v2145_v55, %v13085_v27  ;;  %v13096_v4 = vmul.bf16 1027030327, %v9798_v38  ;;  %v13097_v21 = vld [vmem:[#allocation15_spill] sm:$0xff] }
 0x252   :  { %v2154_v31 = vmul.bf16 %v13095_v18, %v9783_v62  ;;  %3897 = vmatprep.mubr.bf16.mxu0 %v2906_v63  ;;  %v1472_v49 = vadd.f32 %v13097_v21, %v9388_v40  ;;  %v1665_v25 = vadd.f32 %v13098_v41, %v9391_v48  ;;  %v13099_v18 = vld [vmem:[#allocation52_spill] sm:$0xff]  ;;  %13101 = vst [vmem:[#allocation15_spill] sm:$0xff] %v10163_v3  ;;  %v13102_v41 = vld [vmem:[#allocation25_spill] sm:$0xff] }
 0x253   :  { %v2275_v47 = vmul.bf16 %v2147_v59, %v13091_v30  ;;  %v2156_v34 = vmul.bf16 %v13096_v4, %v9798_v38  ;;  %4058 = vmatprep.mubr.bf16.mxu1 %v2908_v20  ;;  %v2401_v55 = vadd.bf16 %v2273_v36, %v13085_v27  ;;  %v1474_v63 = vadd.f32 %v13099_v18, %v9399_v35  ;;  %v13100_v59 = vld [vmem:[#allocation53_spill] sm:$0xff]  ;;  %v6943_v4 = vpop.eup %6942  ;;  %v13103_v36 = vld [vmem:[#allocation26_spill] sm:$0xff] }
 0x254   :  { %v2282_v51 = vmul.bf16 %v2154_v31, %v9783_v62  ;;  %v1667_v8 = vadd.f32 %v13100_v59, %v9402_v0  ;;  %v1476_v20 = vadd.f32 %v13102_v41, %v9388_v40  ;;  %v1669_v53 = vadd.f32 %v13103_v36, %v9391_v48  ;;  %v10171_v31 = vpop.f32.mrb[133].mxu0  ;;  %v13105_v59 = vld [vmem:[#allocation29_spill] sm:$0xff]  ;;  %13108 = vst [vmem:[#allocation25_spill] sm:$0xff] %v10183_v61 }
 0x255   :  { %v2403_v5 = vadd.bf16 %v2275_v47, %v13091_v30  ;;  %v2284_v21 = vmul.bf16 %v2156_v34, %v9798_v38  ;;  %13104 = vst [vmem:[#allocation51_spill] sm:$0xff] %v10171_v31  ;;  %v2777_v26 = vadd.bf16 1065369472, %v6943_v4  ;;  %v2529_v18 = vmul.bf16 1061961548, %v2401_v55  ;;  %v10176_v39 = vpop.f32.mrb[134].mxu0 }
 0x256   :  { %v2410_v60 = vadd.bf16 %v2282_v51, %v9783_v62  ;;  %v1478_v3 = vadd.f32 %v13105_v59, %v9399_v35  ;;  %13106 = vst [vmem:[#allocation52_spill] sm:$0xff] %v10176_v39  ;;  %v10179_v15 = vpack.c.bf16 %v1476_v20, %v1472_v49  ;;  %v10181_v41 = vpack.c.bf16 %v1669_v53, %v1665_v25  ;;  %v10185_v36 = vpop.f32.mrb[135].mxu0  ;;  %v6945_v4 = vpop.eup %6944 }
 0x257   :  { %v2531_v47 = vmul.bf16 1061961548, %v2403_v5  ;;  %v2412_v34 = vadd.bf16 %v2284_v21, %v9798_v38  ;;  %13109 = vst [vmem:[#allocation26_spill] sm:$0xff] %v10185_v36  ;;  %v13110_v55 = vmul.bf16 1056980736, %v9603_v13  ;;  %6950 = vtanh.bf16 %v2529_v18  ;;  %v10191_v39 = vpop.f32.mrb[133].mxu1  ;;  %v6947_v5 = vpop.eup %6946 }
 0x258   :  { %13107 = vst [vmem:[#allocation53_spill] sm:$0xff] %v10181_v41  ;;  %v2538_v31 = vmul.bf16 1061961548, %v2410_v60  ;;  %v10189_v59 = vpack.c.bf16 %v1478_v3, %v1474_v63  ;;  %13111 = vst [vmem:[#allocation29_spill] sm:$0xff] %v10191_v39  ;;  %v2779_v21 = vadd.bf16 1065369472, %v6945_v4  ;;  %v6949_v25 = vpop.eup %6948 }
 0x259   :  { %v2905_v51 = vmul.bf16 %v2777_v26, %v13110_v55  ;;  %6952 = vtanh.bf16 %v2531_v47  ;;  %v2540_v49 = vmul.bf16 1061961548, %v2412_v34  ;;  %v2786_v20 = vadd.bf16 1065369472, %v6947_v5  ;;  %v13113_v63 = vld [vmem:[#allocation54_spill] sm:$0xff]  ;;  %v10200_v47 = vpop.f32.mrb[134].mxu1 }
 0x25a   :  { %6954 = vtanh.bf16 %v2538_v31  ;;  %v13112_v60 = vmul.bf16 1056980736, %v9622_v29  ;;  %v2788_v3 = vadd.bf16 1065369472, %v6949_v25  ;;  %v1671_v18 = vadd.f32 %v13113_v63, %v9402_v0  ;;  %13114 = vst [vmem:[#allocation54_spill] sm:$0xff] %v10200_v47  ;;  %v10209_v29 = vpop.f32.mrb[135].mxu1 }
 0x25b   :  { %3898 = vmatmul.mubr.bf16.gmra.mrb[200].mxu0 %v2905_v51  ;;  %6956 = vtanh.bf16 %v2540_v49  ;;  %v13115_v34 = vmul.bf16 1056980736, %v9695_v45  ;;  %v13116_v31 = vmul.bf16 1027030327, %v9775_v17  ;;  %13117 = vst [vmem:[#allocation69_spill] sm:$0xff] %v10209_v29  ;;  %v13124_v13 = vld [vmem:[#allocation33_spill] sm:$0xff] }
 0x25c   :  { %v2907_v26 = vmul.bf16 %v2779_v21, %v13112_v60  ;;  %v13118_v21 = vmul.bf16 1056980736, %v9712_v14  ;;  %v10213_v25 = vpack.c.bf16 %v1671_v18, %v1667_v8  ;;  %v13119_v45 = vmul.bf16 1027030327, %v9777_v6  ;;  %v13127_v60 = vld [vmem:[#allocation17_spill] sm:$0xff]  ;;  %v10255_v39 = vpop.f32.mrb[136].mxu0 }
 0x25d   :  { %v2914_v4 = vmul.bf16 %v2786_v20, %v13115_v34  ;;  %v2153_v51 = vmul.bf16 %v13116_v31, %v9775_v17  ;;  %v13120_v34 = vmul.bf16 1027030327, %v9865_v44  ;;  %v13121_v14 = vmul.bf16 1027030327, %v9867_v37 }
 0x25e   :  { %4059 = vmatmul.mubr.bf16.gmra.mrb[200].mxu1 %v2907_v26  ;;  %v2916_v49 = vmul.bf16 %v2788_v3, %v13118_v21  ;;  %v2155_v20 = vmul.bf16 %v13119_v45, %v9777_v6  ;;  %v13122_v21 = vld [vmem:[#allocation30_spill] sm:$0xff]  ;;  %v13125_v3 = vld [vmem:[#allocation16_spill] sm:$0xff]  ;;  %v13126_v26 = vld [vmem:[#allocation35_spill] sm:$0xff] }
 0x25f   :  { %3905 = vmatprep.mubr.bf16.mxu0 %v2914_v4  ;;  %v2281_v63 = vmul.bf16 %v2153_v51, %v9775_v17  ;;  %v2162_v31 = vmul.bf16 %v13120_v34, %v9865_v44  ;;  %v2164_v8 = vmul.bf16 %v13121_v14, %v9867_v37  ;;  %v1482_v4 = vadd.f32 %v13122_v21, %v9388_v40  ;;  %v13123_v51 = vld [vmem:[#allocation32_spill] sm:$0xff] }
 0x260   :  { %4066 = vmatprep.mubr.bf16.mxu1 %v2916_v49  ;;  %v2283_v18 = vmul.bf16 %v2155_v20, %v9777_v6  ;;  %v1675_v45 = vadd.f32 %v13123_v51, %v9391_v48  ;;  %v1484_v14 = vadd.f32 %v13124_v13, %v9399_v35  ;;  %v1677_v20 = vadd.f32 %v13125_v3, %v9402_v0  ;;  %v13130_v3 = vld [vmem:[#allocation56_spill] sm:$0xff] }
 0x261   :  { %v2409_v36 = vadd.bf16 %v2281_v63, %v9775_v17  ;;  %v2290_v34 = vmul.bf16 %v2162_v31, %v9865_v44  ;;  %v2292_v53 = vmul.bf16 %v2164_v8, %v9867_v37  ;;  %v1486_v21 = vadd.f32 %v13126_v26, %v9388_v40  ;;  %v13128_v8 = vld [vmem:[#allocation55_spill] sm:$0xff]  ;;  %13131 = vst [vmem:[#allocation32_spill] sm:$0xff] %v10255_v39  ;;  %v10263_v39 = vpop.f32.mrb[136].mxu1 }
 0x262   :  { %v2411_v49 = vadd.bf16 %v2283_v18, %v9777_v6  ;;  %v1679_v51 = vadd.f32 %v13127_v60, %v9391_v48  ;;  %v1488_v55 = vadd.f32 %v13128_v8, %v9399_v35  ;;  %v6951_v13 = vpop.eup %6950  ;;  %v1681_v26 = vadd.f32 %v13130_v3, %v9402_v0  ;;  %13133 = vst [vmem:[#allocation33_spill] sm:$0xff] %v10263_v39 }
 0x263   :  { %v2537_v5 = vmul.bf16 1061961548, %v2409_v36  ;;  %v2418_v63 = vadd.bf16 %v2290_v34, %v9865_v44  ;;  %v2420_v31 = vadd.bf16 %v2292_v53, %v9867_v37  ;;  %v10249_v18 = vpack.c.bf16 %v1486_v21, %v1482_v4 }
 0x264   :  { %v2539_v29 = vmul.bf16 1061961548, %v2411_v49  ;;  %v10251_v47 = vpack.c.bf16 %v1679_v51, %v1675_v45  ;;  %v6953_v60 = vpop.eup %6952  ;;  %v2785_v36 = vadd.bf16 1065369472, %v6951_v13  ;;  %v13132_v45 = vmul.bf16 1056980736, %v13085_v27 }
 0x265   :  { %6958 = vtanh.bf16 %v2537_v5  ;;  %v2546_v34 = vmul.bf16 1061961548, %v2418_v63  ;;  %v2548_v61 = vmul.bf16 1061961548, %v2420_v31  ;;  %v6955_v53 = vpop.eup %6954  ;;  %v2787_v41 = vadd.bf16 1065369472, %v6953_v60 }
 0x266   :  { %13129 = vst [vmem:[#allocation30_spill] sm:$0xff] %v10251_v47  ;;  %6960 = vtanh.bf16 %v2539_v29  ;;  %v6957_v49 = vpop.eup %6956  ;;  %v2913_v21 = vmul.bf16 %v2785_v36, %v13132_v45  ;;  %v2794_v51 = vadd.bf16 1065369472, %v6955_v53  ;;  %v10261_v3 = vpack.c.bf16 %v1488_v55, %v1484_v14  ;;  %v10265_v5 = vpop.f32.mrb[137].mxu0  ;;  %v13152_v36 = vld [vmem:[#allocation38_spill] sm:$0xff] }
 0x267   :  { %6962 = vtanh.bf16 %v2546_v34  ;;  %13134 = vst [vmem:[#allocation16_spill] sm:$0xff] %v10265_v5  ;;  %v13135_v63 = vmul.bf16 1056980736, %v13091_v30  ;;  %v2796_v29 = vadd.bf16 1065369472, %v6957_v49  ;;  %v10269_v13 = vpack.c.bf16 %v1681_v26, %v1677_v20  ;;  %v10271_v60 = vpop.f32.mrb[137].mxu1 }
 0x268   :  { %6964 = vtanh.bf16 %v2548_v61  ;;  %13136 = vst [vmem:[#allocation35_spill] sm:$0xff] %v10271_v60  ;;  %v10273_v4 = vpop.f32.mrb[138].mxu0  ;;  %3906 = vmatmul.mubr.bf16.gmra.mrb[204].mxu0 %v2913_v21  ;;  %v13138_v27 = vmul.bf16 1056980736, %v9783_v62  ;;  %v13139_v30 = vmul.bf16 1027030327, %v9861_v57 }
 0x269   :  { %v2915_v31 = vmul.bf16 %v2787_v41, %v13135_v63  ;;  %13137 = vst [vmem:[#allocation17_spill] sm:$0xff] %v10273_v4  ;;  %v10282_v34 = vpop.f32.mrb[138].mxu1  ;;  %v10284_v61 = vpop.f32.mrb[139].mxu0  ;;  %v13142_v20 = vmul.bf16 1056980736, %v9798_v38  ;;  %v13151_v62 = vld [vmem:[#allocation20_spill] sm:$0xff] }
 0x26a   :  { %v2922_v55 = vmul.bf16 %v2794_v51, %v13138_v27  ;;  %v2161_v41 = vmul.bf16 %v13139_v30, %v9861_v57  ;;  %13140 = vst [vmem:[#allocation55_spill] sm:$0xff] %v10282_v34  ;;  %13141 = vst [vmem:[#allocation56_spill] sm:$0xff] %v10284_v61  ;;  %v13143_v49 = vmul.bf16 1027030327, %v9863_v33  ;;  %v10293_v21 = vpop.f32.mrb[139].mxu1 }
 0x26b   :  { %4067 = vmatmul.mubr.bf16.gmra.mrb[204].mxu1 %v2915_v31  ;;  %v2924_v26 = vmul.bf16 %v2796_v29, %v13142_v20  ;;  %13144 = vst [vmem:[#allocation70_spill] sm:$0xff] %v10293_v21  ;;  %v13145_v31 = vmul.bf16 1027030327, %v9947_v2  ;;  %v13146_v30 = vmul.bf16 1027030327, %v9949_v58 }
 0x26c   :  { %v2163_v45 = vmul.bf16 %v13143_v49, %v9863_v33  ;;  %3913 = vmatprep.mubr.bf16.mxu0 %v2922_v55  ;;  %v2289_v51 = vmul.bf16 %v2161_v41, %v9861_v57  ;;  %v13147_v49 = vld [vmem:[#allocation27_spill] sm:$0xff]  ;;  %v13148_v41 = vld [vmem:[#allocation28_spill] sm:$0xff] }
 0x26d   :  { %v2170_v38 = vmul.bf16 %v13145_v31, %v9947_v2  ;;  %4074 = vmatprep.mubr.bf16.mxu1 %v2924_v26  ;;  %v2172_v20 = vmul.bf16 %v13146_v30, %v9949_v58  ;;  %v1492_v55 = vadd.f32 %v13147_v49, %v9388_v40  ;;  %v1685_v8 = vadd.f32 %v13148_v41, %v9391_v48  ;;  %v13149_v31 = vld [vmem:[#allocation36_spill] sm:$0xff]  ;;  %v13150_v26 = vld [vmem:[#allocation37_spill] sm:$0xff] }
 0x26e   :  { %v2291_v27 = vmul.bf16 %v2163_v45, %v9863_v33  ;;  %v2417_v53 = vadd.bf16 %v2289_v51, %v9861_v57  ;;  %v1494_v29 = vadd.f32 %v13149_v31, %v9399_v35  ;;  %v1687_v45 = vadd.f32 %v13150_v26, %v9402_v0  ;;  %v13154_v31 = vld [vmem:[#allocation40_spill] sm:$0xff] }
 0x26f   :  { %v2298_v14 = vmul.bf16 %v2170_v38, %v9947_v2  ;;  %v2300_v30 = vmul.bf16 %v2172_v20, %v9949_v58  ;;  %v1496_v49 = vadd.f32 %v13151_v62, %v9388_v40  ;;  %v1689_v41 = vadd.f32 %v13152_v36, %v9391_v48  ;;  %v13153_v38 = vld [vmem:[#allocation39_spill] sm:$0xff] }
 0x270   :  { %v2419_v63 = vadd.bf16 %v2291_v27, %v9863_v33  ;;  %v2545_v21 = vmul.bf16 1061961548, %v2417_v53  ;;  %v1498_v34 = vadd.f32 %v13153_v38, %v9399_v35  ;;  %v1691_v61 = vadd.f32 %v13154_v31, %v9402_v0  ;;  %v6959_v26 = vpop.eup %6958 }
 0x271   :  { %v2426_v51 = vadd.bf16 %v2298_v14, %v9947_v2  ;;  %v2428_v27 = vadd.bf16 %v2300_v30, %v9949_v58  ;;  %v10327_v20 = vpack.c.bf16 %v1496_v49, %v1492_v55  ;;  %v10329_v60 = vpack.c.bf16 %v1689_v41, %v1685_v8  ;;  %v6961_v62 = vpop.eup %6960  ;;  %v10337_v49 = vpop.f32.mrb[140].mxu0 }
 0x272   :  { %v2547_v4 = vmul.bf16 1061961548, %v2419_v63  ;;  %v2793_v39 = vadd.bf16 1065369472, %v6959_v26  ;;  %6966 = vtanh.bf16 %v2545_v21  ;;  %v10331_v53 = vpack.c.bf16 %v1498_v34, %v1494_v29  ;;  %v6963_v14 = vpop.eup %6962  ;;  %v10342_v41 = vpop.f32.mrb[141].mxu0 }
 0x273   :  { %v2554_v36 = vmul.bf16 1061961548, %v2426_v51  ;;  %v2795_v5 = vadd.bf16 1065369472, %v6961_v62  ;;  %v2556_v38 = vmul.bf16 1061961548, %v2428_v27  ;;  %v6965_v47 = vpop.eup %6964  ;;  %v1701_v8 = vadd.f32 %v9911_v43, %v9402_v0 }
 0x274   :  { %6968 = vtanh.bf16 %v2547_v4  ;;  %v13155_v63 = vmul.bf16 1056980736, %v9775_v17  ;;  %v2802_v55 = vadd.bf16 1065369472, %v6963_v14  ;;  %v13156_v21 = vmul.bf16 1056980736, %v9777_v6 }
 0x275   :  { %6970 = vtanh.bf16 %v2554_v36  ;;  %v2804_v29 = vadd.bf16 1065369472, %v6965_v47  ;;  %v13157_v51 = vmul.bf16 1056980736, %v9865_v44  ;;  %v13158_v27 = vmul.bf16 1027030327, %v9936_v50 }
 0x276   :  { %v2921_v30 = vmul.bf16 %v2793_v39, %v13155_v63  ;;  %v2923_v34 = vmul.bf16 %v2795_v5, %v13156_v21  ;;  %6972 = vtanh.bf16 %v2556_v38  ;;  %v10346_v39 = vpack.c.bf16 %v1691_v61, %v1687_v45  ;;  %v10352_v6 = vpop.f32.mrb[142].mxu0 }
 0x277   :  { %v2930_v17 = vmul.bf16 %v2802_v55, %v13157_v51  ;;  %v2169_v62 = vmul.bf16 %v13158_v27, %v9936_v50  ;;  %v13159_v47 = vmul.bf16 1056980736, %v9867_v37  ;;  %v13160_v44 = vmul.bf16 1027030327, %v9938_v42  ;;  %v10361_v45 = vpop.f32.mrb[143].mxu0  ;;  %v10377_v27 = vpop.f32.mrb[140].mxu1 }
 0x278   :  { %3914 = vmatmul.mubr.bf16.gmra.mrb[208].mxu0 %v2921_v30  ;;  %4075 = vmatmul.mubr.bf16.gmra.mrb[208].mxu1 %v2923_v34  ;;  %v13161_v30 = vmul.bf16 1027030327, %v10030_v22  ;;  %v13162_v34 = vmul.bf16 1027030327, %v10032_v1  ;;  %v1502_v51 = vadd.f32 %v9874_v52, %v9388_v40 }
 0x279   :  { %v2932_v5 = vmul.bf16 %v2804_v29, %v13159_v47  ;;  %v2171_v14 = vmul.bf16 %v13160_v44, %v9938_v42  ;;  %3921 = vmatprep.mubr.bf16.mxu0 %v2930_v17  ;;  %v2297_v63 = vmul.bf16 %v2169_v62, %v9936_v50  ;;  %v1695_v17 = vadd.f32 %v9876_v23, %v9391_v48 }
 0x27a   :  { %v2178_v37 = vmul.bf16 %v13161_v30, %v10030_v22  ;;  %v2180_v29 = vmul.bf16 %v13162_v34, %v10032_v1  ;;  %v1697_v44 = vadd.f32 %v9883_v54, %v9402_v0  ;;  %v1506_v23 = vadd.f32 %v9897_v24, %v9388_v40 }
 0x27b   :  { %4082 = vmatprep.mubr.bf16.mxu1 %v2932_v5  ;;  %v2299_v21 = vmul.bf16 %v2171_v14, %v9938_v42  ;;  %v2425_v62 = vadd.bf16 %v2297_v63, %v9936_v50  ;;  %v1504_v5 = vadd.f32 %v9881_v56, %v9399_v35  ;;  %v10385_v14 = vpop.f32.mrb[141].mxu1  ;;  %v1699_v63 = vadd.f32 %v9899_v16, %v9391_v48 }
 0x27c   :  { %v2306_v47 = vmul.bf16 %v2178_v37, %v10030_v22  ;;  %v2308_v52 = vmul.bf16 %v2180_v29, %v10032_v1  ;;  %v10393_v34 = vpop.f32.mrb[142].mxu1  ;;  %v1508_v54 = vadd.f32 %v9909_v19, %v9399_v35  ;;  %v10403_v38 = vpack.c.bf16 %v1506_v23, %v1502_v51 }
 0x27d   :  { %v2427_v30 = vadd.bf16 %v2299_v21, %v9938_v42  ;;  %v2553_v37 = vmul.bf16 1061961548, %v2425_v62  ;;  %v10400_v21 = vpop.f32.mrb[143].mxu1  ;;  %v6967_v29 = vpop.eup %6966  ;;  %v10405_v16 = vpack.c.bf16 %v1699_v63, %v1695_v17  ;;  %v13164_v23 = vmul.bf16 1056980736, %v9863_v33 }
 0x27e   :  { %v2434_v56 = vadd.bf16 %v2306_v47, %v10030_v22  ;;  %v2436_v24 = vadd.bf16 %v2308_v52, %v10032_v1  ;;  %v2801_v62 = vadd.bf16 1065369472, %v6967_v29  ;;  %v10407_v55 = vpack.c.bf16 %v1508_v54, %v1504_v5  ;;  %v10463_v17 = vpop.f32.mrb[144].mxu1 }
 0x27f   :  { %v2555_v31 = vmul.bf16 1061961548, %v2427_v30  ;;  %v6969_v4 = vpop.eup %6968  ;;  %6974 = vtanh.bf16 %v2553_v37  ;;  %v13163_v30 = vmul.bf16 1056980736, %v9861_v57  ;;  %v13166_v54 = vmul.bf16 1027030327, %v10026_v9 }
 0x280   :  { %v2562_v47 = vmul.bf16 1061961548, %v2434_v56  ;;  %v6971_v19 = vpop.eup %6970  ;;  %v2803_v61 = vadd.bf16 1065369472, %v6969_v4  ;;  %v2564_v43 = vmul.bf16 1061961548, %v2436_v24  ;;  %v10418_v56 = vpack.c.bf16 %v1701_v8, %v1697_v44 }
 0x281   :  { %6976 = vtanh.bf16 %v2555_v31  ;;  %v6973_v26 = vpop.eup %6972  ;;  %v2929_v52 = vmul.bf16 %v2801_v62, %v13163_v30  ;;  %v2810_v51 = vadd.bf16 1065369472, %v6971_v19  ;;  %v13165_v31 = vmul.bf16 1056980736, %v9947_v2 }
 0x282   :  { %6978 = vtanh.bf16 %v2562_v47  ;;  %v2931_v63 = vmul.bf16 %v2803_v61, %v13164_v23  ;;  %v2812_v37 = vadd.bf16 1065369472, %v6973_v26  ;;  %v2177_v29 = vmul.bf16 %v13166_v54, %v10026_v9  ;;  %v13171_v23 = vld [vmem:[#allocation41_spill] sm:$0xff] }
 0x283   :  { %6980 = vtanh.bf16 %v2564_v43  ;;  %3922 = vmatmul.mubr.bf16.gmra.mrb[212].mxu0 %v2929_v52  ;;  %v2938_v4 = vmul.bf16 %v2810_v51, %v13165_v31  ;;  %v13167_v33 = vmul.bf16 1056980736, %v9949_v58  ;;  %v13168_v24 = vmul.bf16 1027030327, %v10028_v32  ;;  %v10437_v43 = vpop.f32.mrb[144].mxu0 }
 0x284   :  { %4083 = vmatmul.mubr.bf16.gmra.mrb[212].mxu1 %v2931_v63  ;;  %v2305_v44 = vmul.bf16 %v2177_v29, %v10026_v9  ;;  %v13169_v47 = vmul.bf16 1027030327, %v10108_v10  ;;  %v13170_v52 = vmul.bf16 1027030327, %v10115_v7  ;;  %v1512_v63 = vadd.f32 %v13171_v23, %v9388_v40  ;;  %v13175_v23 = vld [vmem:[#allocation42_spill] sm:$0xff] }
 0x285   :  { %v2940_v61 = vmul.bf16 %v2812_v37, %v13167_v33  ;;  %v2179_v62 = vmul.bf16 %v13168_v24, %v10028_v32  ;;  %3929 = vmatprep.mubr.bf16.mxu0 %v2938_v4  ;;  %v13172_v37 = vld [vmem:[#allocation31_spill] sm:$0xff]  ;;  %v10447_v4 = vpop.f32.mrb[145].mxu0  ;;  %v13173_v33 = vld [vmem:[#allocation34_spill] sm:$0xff]  ;;  %v1707_v24 = vadd.f32 %v9952_v11, %v9402_v0  ;;  %v1518_v11 = vadd.f32 %v9965_v28, %v9399_v35 }
 0x286   :  { %v2186_v19 = vmul.bf16 %v13169_v47, %v10108_v10  ;;  %v2188_v51 = vmul.bf16 %v13170_v52, %v10115_v7  ;;  %v1705_v31 = vadd.f32 %v13172_v37, %v9391_v48  ;;  %v2433_v54 = vadd.bf16 %v2305_v44, %v10026_v9 }
 0x287   :  { %4090 = vmatprep.mubr.bf16.mxu1 %v2940_v61  ;;  %v2307_v30 = vmul.bf16 %v2179_v62, %v10028_v32  ;;  %v1514_v61 = vadd.f32 %v13173_v33, %v9399_v35  ;;  %v10455_v62 = vpop.f32.mrb[146].mxu0  ;;  %v1516_v37 = vadd.f32 %v13175_v23, %v9388_v40  ;;  %v1709_v44 = vadd.f32 %v9963_v12, %v9391_v48 }
 0x288   :  { %v2314_v29 = vmul.bf16 %v2186_v19, %v10108_v10  ;;  %13174 = vst [vmem:[#allocation27_spill] sm:$0xff] %v10455_v62  ;;  %v2316_v52 = vmul.bf16 %v2188_v51, %v10115_v7  ;;  %v10465_v19 = vpop.f32.mrb[147].mxu0  ;;  %v2561_v33 = vmul.bf16 1061961548, %v2433_v54  ;;  %v10472_v51 = vpop.f32.mrb[145].mxu1 }
 0x289   :  { %v2435_v47 = vadd.bf16 %v2307_v30, %v10028_v32  ;;  %13176 = vst [vmem:[#allocation28_spill] sm:$0xff] %v10465_v19  ;;  %v1711_v30 = vadd.f32 %v9973_v46, %v9402_v0  ;;  %13177 = vst [vmem:[#allocation36_spill] sm:$0xff] %v10472_v51  ;;  %v10475_v12 = vpack.c.bf16 %v1516_v37, %v1512_v63  ;;  %v10479_v2 = vpop.f32.mrb[146].mxu1 }
 0x28a   :  { %v2442_v36 = vadd.bf16 %v2314_v29, %v10108_v10  ;;  %v6975_v8 = vpop.eup %6974  ;;  %v2444_v5 = vadd.bf16 %v2316_v52, %v10115_v7  ;;  %v10477_v58 = vpack.c.bf16 %v1709_v44, %v1705_v31  ;;  %13178 = vst [vmem:[#allocation37_spill] sm:$0xff] %v10479_v2  ;;  %6982 = vtanh.bf16 %v2561_v33  ;;  %v10483_v57 = vpop.f32.mrb[147].mxu1  ;;  %v13183_v52 = vld [vmem:[#allocation45_spill] sm:$0xff] }
 0x28b   :  { %v2563_v23 = vmul.bf16 1061961548, %v2435_v47  ;;  %v2809_v29 = vadd.bf16 1065369472, %v6975_v8  ;;  %v10481_v28 = vpack.c.bf16 %v1518_v11, %v1514_v61  ;;  %13179 = vst [vmem:[#allocation20_spill] sm:$0xff] %v10483_v57 }
 0x28c   :  { %v6977_v54 = vpop.eup %6976  ;;  %v2570_v26 = vmul.bf16 1061961548, %v2442_v36  ;;  %v2572_v47 = vmul.bf16 1061961548, %v2444_v5  ;;  %v13180_v31 = vmul.bf16 1056980736, %v9936_v50 }
 0x28d   :  { %v6979_v46 = vpop.eup %6978  ;;  %v2811_v19 = vadd.bf16 1065369472, %v6977_v54  ;;  %6984 = vtanh.bf16 %v2563_v23  ;;  %v13181_v36 = vmul.bf16 1056980736, %v9938_v42  ;;  %v13182_v5 = vmul.bf16 1056980736, %v10030_v22 }
 0x28e   :  { %v6981_v63 = vpop.eup %6980  ;;  %v2937_v37 = vmul.bf16 %v2809_v29, %v13180_v31  ;;  %v2818_v44 = vadd.bf16 1065369472, %v6979_v46  ;;  %6986 = vtanh.bf16 %v2570_v26  ;;  %v10494_v54 = vpack.c.bf16 %v1711_v30, %v1707_v24  ;;  %v13186_v46 = vld [vmem:[#allocation46_spill] sm:$0xff]  ;;  %v10527_v24 = vpop.f32.mrb[148].mxu0  ;;  %v13199_v50 = vld [vmem:[#allocation60_spill] sm:$0xff] }
 0x28f   :  { %v2939_v61 = vmul.bf16 %v2811_v19, %v13181_v36  ;;  %v2820_v33 = vadd.bf16 1065369472, %v6981_v63  ;;  %6988 = vtanh.bf16 %v2572_v47  ;;  %v13184_v26 = vmul.bf16 1027030327, %v13183_v52  ;;  %13194 = vst [vmem:[#allocation38_spill] sm:$0xff] %v10527_v24  ;;  %v10535_v22 = vpop.f32.mrb[149].mxu0 }
 0x290   :  { %3930 = vmatmul.mubr.bf16.gmra.mrb[216].mxu0 %v2937_v37  ;;  %v2946_v23 = vmul.bf16 %v2818_v44, %v13182_v5  ;;  %v13185_v42 = vmul.bf16 1056980736, %v10032_v1  ;;  %v13187_v63 = vmul.bf16 1027030327, %v13186_v46  ;;  %v13188_v37 = vmul.bf16 1027030327, %v10189_v59 }
 0x291   :  { %v2185_v29 = vmul.bf16 %v13184_v26, %v13183_v52  ;;  %4091 = vmatmul.mubr.bf16.gmra.mrb[216].mxu1 %v2939_v61  ;;  %v13189_v61 = vmul.bf16 1027030327, %v10213_v25  ;;  %v13190_v5 = vld [vmem:[#allocation18_spill] sm:$0xff]  ;;  %v13191_v26 = vld [vmem:[#allocation19_spill] sm:$0xff]  ;;  %13197 = vst [vmem:[#allocation39_spill] sm:$0xff] %v10535_v22  ;;  %v13198_v47 = vld [vmem:[#allocation24_spill] sm:$0xff]  ;;  %v1721_v24 = vadd.f32 %v13199_v50, %v9402_v0 }
 0x292   :  { %v2948_v19 = vmul.bf16 %v2820_v33, %v13185_v42  ;;  %v2187_v31 = vmul.bf16 %v13187_v63, %v13186_v46  ;;  %3937 = vmatprep.mubr.bf16.mxu0 %v2946_v23  ;;  %v2194_v44 = vmul.bf16 %v13188_v37, %v10189_v59  ;;  %v1522_v23 = vadd.f32 %v13190_v5, %v9388_v40  ;;  %v13192_v37 = vld [vmem:[#allocation57_spill] sm:$0xff]  ;;  %v13195_v5 = vld [vmem:[#allocation59_spill] sm:$0xff] }
 0x293   :  { %v2313_v30 = vmul.bf16 %v2185_v29, %v13183_v52  ;;  %v2196_v33 = vmul.bf16 %v13189_v61, %v10213_v25  ;;  %v1715_v42 = vadd.f32 %v13191_v26, %v9391_v48  ;;  %v1524_v8 = vadd.f32 %v13192_v37, %v9399_v35  ;;  %v13196_v26 = vld [vmem:[#allocation23_spill] sm:$0xff] }
 0x294   :  { %4098 = vmatprep.mubr.bf16.mxu1 %v2948_v19  ;;  %v2315_v36 = vmul.bf16 %v2187_v31, %v13186_v46  ;;  %v2322_v63 = vmul.bf16 %v2194_v44, %v10189_v59  ;;  %v13193_v19 = vld [vmem:[#allocation58_spill] sm:$0xff]  ;;  %v1526_v1 = vadd.f32 %v13195_v5, %v9388_v40 }
 0x295   :  { %v2441_v29 = vadd.bf16 %v2313_v30, %v13183_v52  ;;  %v1717_v31 = vadd.f32 %v13193_v19, %v9402_v0  ;;  %v2324_v11 = vmul.bf16 %v2196_v33, %v10213_v25  ;;  %v1719_v30 = vadd.f32 %v13196_v26, %v9391_v48  ;;  %v10544_v33 = vpop.f32.mrb[150].mxu0  ;;  %v6983_v57 = vpop.eup %6982 }
 0x296   :  { %v2443_v61 = vadd.bf16 %v2315_v36, %v13186_v46  ;;  %v2450_v37 = vadd.bf16 %v2322_v63, %v10189_v59  ;;  %v1528_v19 = vadd.f32 %v13198_v47, %v9399_v35  ;;  %v10542_v36 = vpop.f32.mrb[148].mxu1  ;;  %13201 = vst [vmem:[#allocation41_spill] sm:$0xff] %v10544_v33  ;;  %v10547_v26 = vpack.c.bf16 %v1526_v1, %v1522_v23  ;;  %v10553_v63 = vpop.f32.mrb[151].mxu0 }
 0x297   :  { %v2569_v44 = vmul.bf16 1061961548, %v2441_v29  ;;  %13200 = vst [vmem:[#allocation40_spill] sm:$0xff] %v10542_v36  ;;  %v2452_v2 = vadd.bf16 %v2324_v11, %v10213_v25  ;;  %v10549_v22 = vpack.c.bf16 %v1719_v30, %v1715_v42  ;;  %v10551_v29 = vpop.f32.mrb[149].mxu1  ;;  %v2817_v62 = vadd.bf16 1065369472, %v6983_v57 }
 0x298   :  { %v2571_v5 = vmul.bf16 1061961548, %v2443_v61  ;;  %13202 = vst [vmem:[#allocation31_spill] sm:$0xff] %v10551_v29  ;;  %v6985_v47 = vpop.eup %6984  ;;  %v2578_v50 = vmul.bf16 1061961548, %v2450_v37  ;;  %v10555_v51 = vpack.c.bf16 %v1528_v19, %v1524_v8  ;;  %v10557_v36 = vpop.f32.mrb[150].mxu1  ;;  %v10570_v1 = vpack.c.bf16 %v1721_v24, %v1717_v31 }
 0x299   :  { %6990 = vtanh.bf16 %v2569_v44  ;;  %v6987_v33 = vpop.eup %6986  ;;  %v2819_v61 = vadd.bf16 1065369472, %v6985_v47  ;;  %v2580_v11 = vmul.bf16 1061961548, %v2452_v2  ;;  %v13203_v42 = vmul.bf16 1056980736, %v10026_v9 }
 0x29a   :  { %6992 = vtanh.bf16 %v2571_v5  ;;  %v6989_v23 = vpop.eup %6988  ;;  %v2826_v29 = vadd.bf16 1065369472, %v6987_v33  ;;  %v10563_v44 = vpop.f32.mrb[151].mxu1  ;;  %v13205_v8 = vmul.bf16 1056980736, %v10028_v32  ;;  %v13217_v5 = vld [vmem:[#allocation64_spill] sm:$0xff] }
 0x29b   :  { %v2945_v30 = vmul.bf16 %v2817_v62, %v13203_v42  ;;  %6994 = vtanh.bf16 %v2578_v50  ;;  %13204 = vst [vmem:[#allocation34_spill] sm:$0xff] %v10563_v44  ;;  %v2828_v19 = vadd.bf16 1065369472, %v6989_v23  ;;  %v13206_v2 = vmul.bf16 1056980736, %v10108_v10  ;;  %v10609_v10 = vpop.f32.mrb[152].mxu0 }
 0x29c   :  { %v2947_v37 = vmul.bf16 %v2819_v61, %v13205_v8  ;;  %6996 = vtanh.bf16 %v2580_v11  ;;  %v13207_v62 = vmul.bf16 1027030327, %v10179_v15  ;;  %v13208_v32 = vmul.bf16 1056980736, %v10115_v7  ;;  %v13209_v61 = vld [vmem:[#allocation53_spill] sm:$0xff]  ;;  %v13218_v7 = vld [vmem:[#allocation22_spill] sm:$0xff] }
 0x29d   :  { %3938 = vmatmul.mubr.bf16.gmra.mrb[220].mxu0 %v2945_v30  ;;  %v2954_v47 = vmul.bf16 %v2826_v29, %v13206_v2  ;;  %v13210_v23 = vmul.bf16 1027030327, %v13209_v61  ;;  %v13211_v29 = vmul.bf16 1027030327, %v10261_v3  ;;  %v13213_v2 = vld [vmem:[#allocation61_spill] sm:$0xff] }
 0x29e   :  { %v2193_v33 = vmul.bf16 %v13207_v62, %v10179_v15  ;;  %4099 = vmatmul.mubr.bf16.gmra.mrb[220].mxu1 %v2947_v37  ;;  %v2956_v50 = vmul.bf16 %v2828_v19, %v13208_v32  ;;  %v13212_v37 = vmul.bf16 1027030327, %v10269_v13  ;;  %v13214_v62 = vld [vmem:[#allocation62_spill] sm:$0xff] }
 0x29f   :  { %v2195_v42 = vmul.bf16 %v13210_v23, %v13209_v61  ;;  %3945 = vmatprep.mubr.bf16.mxu0 %v2954_v47  ;;  %v2202_v30 = vmul.bf16 %v13211_v29, %v10261_v3  ;;  %v1532_v47 = vadd.f32 %v13213_v2, %v9388_v40  ;;  %v1725_v32 = vadd.f32 %v13214_v62, %v9391_v48  ;;  %v13215_v29 = vld [vmem:[#allocation63_spill] sm:$0xff] }
 0x2a0   :  { %v2321_v31 = vmul.bf16 %v2193_v33, %v10179_v15  ;;  %4106 = vmatprep.mubr.bf16.mxu1 %v2956_v50  ;;  %v2204_v19 = vmul.bf16 %v13212_v37, %v10269_v13  ;;  %v1534_v57 = vadd.f32 %v13215_v29, %v9399_v35  ;;  %v13216_v50 = vld [vmem:[#allocation21_spill] sm:$0xff]  ;;  %v1536_v2 = vadd.f32 %v13217_v5, %v9388_v40  ;;  %v13219_v29 = vld [vmem:[#allocation43_spill] sm:$0xff] }
 0x2a1   :  { %v2323_v8 = vmul.bf16 %v2195_v42, %v13209_v61  ;;  %v2330_v23 = vmul.bf16 %v2202_v30, %v10261_v3  ;;  %v1727_v42 = vadd.f32 %v13216_v50, %v9402_v0  ;;  %v1729_v62 = vadd.f32 %v13218_v7, %v9391_v48  ;;  %v13220_v50 = vld [vmem:[#allocation44_spill] sm:$0xff] }
 0x2a2   :  { %v2449_v33 = vadd.bf16 %v2321_v31, %v10179_v15  ;;  %v2332_v37 = vmul.bf16 %v2204_v19, %v10269_v13  ;;  %v1538_v11 = vadd.f32 %v13219_v29, %v9399_v35  ;;  %v1731_v9 = vadd.f32 %v13220_v50, %v9402_v0  ;;  %v10618_v19 = vpop.f32.mrb[153].mxu0 }
 0x2a3   :  { %v2451_v24 = vadd.bf16 %v2323_v8, %v13209_v61  ;;  %v2458_v30 = vadd.bf16 %v2330_v23, %v10261_v3  ;;  %v10616_v8 = vpop.f32.mrb[152].mxu1  ;;  %13222 = vst [vmem:[#allocation45_spill] sm:$0xff] %v10618_v19  ;;  %v10621_v48 = vpack.c.bf16 %v1536_v2, %v1532_v47  ;;  %v10623_v7 = vpack.c.bf16 %v1729_v62, %v1725_v32  ;;  %v10627_v23 = vpop.f32.mrb[154].mxu0 }
 0x2a4   :  { %v2577_v31 = vmul.bf16 1061961548, %v2449_v33  ;;  %13221 = vst [vmem:[#allocation42_spill] sm:$0xff] %v10616_v8  ;;  %v6991_v44 = vpop.eup %6990  ;;  %v2460_v5 = vadd.bf16 %v2332_v37, %v10269_v13  ;;  %v10625_v33 = vpop.f32.mrb[153].mxu1  ;;  %13224 = vst [vmem:[#allocation18_spill] sm:$0xff] %v10627_v23  ;;  %v10629_v50 = vpack.c.bf16 %v1538_v11, %v1534_v57  ;;  %v10646_v32 = vpack.c.bf16 %v1731_v9, %v1727_v42 }
 0x2a5   :  { %v2579_v40 = vmul.bf16 1061961548, %v2451_v24  ;;  %13223 = vst [vmem:[#allocation46_spill] sm:$0xff] %v10625_v33  ;;  %v6993_v35 = vpop.eup %6992  ;;  %v2825_v29 = vadd.bf16 1065369472, %v6991_v44  ;;  %v10631_v8 = vpop.f32.mrb[154].mxu1 }
 0x2a6   :  { %6998 = vtanh.bf16 %v2577_v31  ;;  %v2586_v0 = vmul.bf16 1061961548, %v2458_v30  ;;  %13225 = vst [vmem:[#allocation19_spill] sm:$0xff] %v10631_v8  ;;  %v10633_v19 = vpop.f32.mrb[155].mxu0  ;;  %v6995_v24 = vpop.eup %6994  ;;  %v2827_v37 = vadd.bf16 1065369472, %v6993_v35 }
 0x2a7   :  { %13226 = vst [vmem:[#allocation57_spill] sm:$0xff] %v10633_v19  ;;  %7000 = vtanh.bf16 %v2579_v40  ;;  %v2588_v47 = vmul.bf16 1061961548, %v2460_v5  ;;  %v6997_v2 = vpop.eup %6996  ;;  %v13227_v62 = vmul.bf16 1056980736, %v13183_v52  ;;  %v10639_v57 = vpop.f32.mrb[155].mxu1 }
 0x2a8   :  { %v2834_v33 = vadd.bf16 1065369472, %v6995_v24  ;;  %7002 = vtanh.bf16 %v2586_v0  ;;  %13228 = vst [vmem:[#allocation58_spill] sm:$0xff] %v10639_v57  ;;  %v13229_v11 = vmul.bf16 1056980736, %v13186_v46  ;;  %v13241_v40 = vld [vmem:[#allocation67_spill] sm:$0xff] }
 0x2a9   :  { %v2953_v23 = vmul.bf16 %v2825_v29, %v13227_v62  ;;  %v2836_v30 = vadd.bf16 1065369472, %v6997_v2  ;;  %7004 = vtanh.bf16 %v2588_v47  ;;  %v13230_v5 = vmul.bf16 1056980736, %v10189_v59  ;;  %v13244_v47 = vld [vmem:[#allocation50_spill] sm:$0xff] }
 0x2aa   :  { %v2955_v31 = vmul.bf16 %v2827_v37, %v13229_v11  ;;  %v13231_v29 = vmul.bf16 1027030327, %v10249_v18  ;;  %v13232_v46 = vmul.bf16 1056980736, %v10213_v25  ;;  %v13233_v37 = vld [vmem:[#allocation30_spill] sm:$0xff]  ;;  %v13242_v25 = vld [vmem:[#allocation68_spill] sm:$0xff] }
 0x2ab   :  { %3946 = vmatmul.mubr.bf16.gmra.mrb[224].mxu0 %v2953_v23  ;;  %v2962_v35 = vmul.bf16 %v2834_v33, %v13230_v5  ;;  %v13234_v23 = vmul.bf16 1027030327, %v13233_v37  ;;  %v13235_v33 = vmul.bf16 1027030327, %v10331_v53  ;;  %v10665_v11 = vld [vmem:[#allocation5 + $0x1] ss:$0 sm:$0xff]  ;;  %v6296_v59 = vadd.f32 %v13242_v25, %v13241_v40 }
 0x2ac   :  { %v2201_v0 = vmul.bf16 %v13231_v29, %v10249_v18  ;;  %4107 = vmatmul.mubr.bf16.gmra.mrb[224].mxu1 %v2955_v31  ;;  %v2964_v24 = vmul.bf16 %v2836_v30, %v13232_v46  ;;  %v13236_v30 = vmul.bf16 1027030327, %v10346_v39  ;;  %v13238_v29 = vld [vmem:[#allocation65_spill] sm:$0xff]  ;;  %v13246_v40 = vmul.bf16 1027030327, %v10327_v20 }
 0x2ad   :  { %v2203_v2 = vmul.bf16 %v13234_v23, %v13233_v37  ;;  %3953 = vmatprep.mubr.bf16.mxu0 %v2962_v35  ;;  %v2210_v62 = vmul.bf16 %v13235_v33, %v10331_v53  ;;  %v13237_v35 = vld [vmem:[#allocation47_spill] sm:$0xff]  ;;  %v13239_v23 = vld [vmem:[#allocation48_spill] sm:$0xff] }
 0x2ae   :  { %v2329_v42 = vmul.bf16 %v2201_v0, %v10249_v18  ;;  %4114 = vmatprep.mubr.bf16.mxu1 %v2964_v24  ;;  %v2212_v5 = vmul.bf16 %v13236_v30, %v10346_v39  ;;  %v6293_v46 = vadd.f32 %v13238_v29, %v13237_v35  ;;  %v13240_v0 = vld [vmem:[#allocation66_spill] sm:$0xff]  ;;  %v13243_v24 = vld [vmem:[#allocation49_spill] sm:$0xff]  ;;  %v10685_v29 = vpop.f32.mrb[156].mxu0  ;;  %v2209_v25 = vmul.bf16 %v13246_v40, %v10327_v20 }
 0x2af   :  { %v2331_v31 = vmul.bf16 %v2203_v2, %v13233_v37  ;;  %v6405_v44 = vadd.f32 %v13240_v0, %v13239_v23  ;;  %v2338_v33 = vmul.bf16 %v2210_v62, %v10331_v53  ;;  %v6408_v2 = vadd.f32 %v13244_v47, %v13243_v24  ;;  %13245 = vst [vmem:[#allocation59_spill] sm:$0xff] %v10685_v29  ;;  %v10692_v47 = vpop.f32.mrb[156].mxu1 }
 0x2b0   :  { %v2457_v9 = vadd.bf16 %v2329_v42, %v10249_v18  ;;  %v2340_v30 = vmul.bf16 %v2212_v5, %v10346_v39  ;;  %v3305_v57 = vadd.f32 %v6293_v46, %v10665_v11  ;;  %v3308_v62 = vadd.f32 %v6296_v59, %v10665_v11  ;;  %13247 = vst [vmem:[#allocation23_spill] sm:$0xff] %v10692_v47 }
 0x2b1   :  { %v2459_v52 = vadd.bf16 %v2331_v31, %v13233_v37  ;;  %v2466_v42 = vadd.bf16 %v2338_v33, %v10331_v53  ;;  %v10694_v31 = vpop.f32.mrb[157].mxu0  ;;  %v6999_v5 = vpop.eup %6998 }
 0x2b2   :  { %v2585_v23 = vmul.bf16 1061961548, %v2457_v9  ;;  %13248 = vst [vmem:[#allocation24_spill] sm:$0xff] %v10694_v31  ;;  %v2468_v46 = vadd.bf16 %v2340_v30, %v10346_v39  ;;  %v3466_v24 = vadd.f32 %v6405_v44, %v3305_v57  ;;  %v10698_v9 = vpop.f32.mrb[157].mxu1  ;;  %v10700_v33 = vpop.f32.mrb[158].mxu0  ;;  %v10702_v40 = vadd.f32 %v6408_v2, %v3308_v62 }
 0x2b3   :  { %v2587_v0 = vmul.bf16 1061961548, %v2459_v52  ;;  %v7001_v59 = vpop.eup %7000  ;;  %v2833_v29 = vadd.bf16 1065369472, %v6999_v5  ;;  %v2594_v8 = vmul.bf16 1061961548, %v2466_v42  ;;  %v2337_v57 = vmul.bf16 %v2209_v25, %v10327_v20 }
 0x2b4   :  { %7006 = vtanh.bf16 %v2585_v23  ;;  %v10704_v47 = vpop.f32.mrb[158].mxu1  ;;  %v10706_v31 = vpop.f32.mrb[159].mxu0  ;;  %v2835_v19 = vadd.bf16 1065369472, %v7001_v59  ;;  %v2596_v44 = vmul.bf16 1061961548, %v2468_v46 }
 0x2b5   :  { %13249 = vst [vmem:[#allocation60_spill] sm:$0xff] %v10704_v47  ;;  %13250 = vst [vmem:[#allocation53_spill] sm:$0xff] %v10706_v31  ;;  %v7003_v52 = vpop.eup %7002  ;;  %7008 = vtanh.bf16 %v2587_v0  ;;  %v10709_v30 = vpop.f32.mrb[159].mxu1  ;;  %v13252_v5 = vmul.bf16 1056980736, %v10179_v15  ;;  %v2465_v25 = vadd.bf16 %v2337_v57, %v10327_v20 }
 0x2b6   :  { %5938 = vst [vmem:[#allocation7] sm:$0xff] %v3466_v24  ;;  %13251 = vst [vmem:[#allocation61_spill] sm:$0xff] %v10709_v30  ;;  %v7005_v35 = vpop.eup %7004  ;;  %v2842_v42 = vadd.bf16 1065369472, %v7003_v52  ;;  %7010 = vtanh.bf16 %v2594_v8  ;;  %v13253_v2 = vmul.bf16 1027030327, %v10329_v60 }
 0x2b7   :  { %v2961_v23 = vmul.bf16 %v2833_v29, %v13252_v5  ;;  %5939 = vst [vmem:[#allocation7 + $0x8] sm:$0xff] %v10702_v40  ;;  %v13254_v0 = vmul.bf16 1056980736, %v13209_v61  ;;  %v2844_v59 = vadd.bf16 1065369472, %v7005_v35  ;;  %7012 = vtanh.bf16 %v2596_v44  ;;  %v13265_v44 = vld [vmem:[#allocation54_spill] sm:$0xff] }
 0x2b8   :  { %v2211_v62 = vmul.bf16 %v13253_v2, %v10329_v60  ;;  %v13255_v30 = vmul.bf16 1056980736, %v10261_v3  ;;  %v13256_v52 = vmul.bf16 1027030327, %v10407_v55  ;;  %v13257_v61 = vmul.bf16 1056980736, %v10269_v13 }
 0x2b9   :  { %v2963_v46 = vmul.bf16 %v2835_v19, %v13254_v0  ;;  %3954 = vmatmul.mubr.bf16.gmra.mrb[228].mxu0 %v2961_v23  ;;  %v2593_v35 = vmul.bf16 1061961548, %v2465_v25  ;;  %v13258_v57 = vmul.bf16 1027030327, %v10418_v56  ;;  %v13259_v2 = vld [vmem:[#allocation15_spill] sm:$0xff]  ;;  %v13262_v13 = vld [vmem:[#allocation29_spill] sm:$0xff] }
 0x2ba   :  { %v2970_v15 = vmul.bf16 %v2842_v42, %v13255_v30  ;;  %v2339_v29 = vmul.bf16 %v2211_v62, %v10329_v60  ;;  %v2218_v5 = vmul.bf16 %v13256_v52, %v10407_v55  ;;  %v2972_v19 = vmul.bf16 %v2844_v59, %v13257_v61  ;;  %v10733_v30 = vld [vmem:[#allocation5 + $0x3] ss:$0 sm:$0xff]  ;;  %v13263_v52 = vld [vmem:[#allocation52_spill] sm:$0xff]  ;;  %v13264_v61 = vld [vmem:[#allocation26_spill] sm:$0xff] }
 0x2bb   :  { %4115 = vmatmul.mubr.bf16.gmra.mrb[228].mxu1 %v2963_v46  ;;  %v2220_v3 = vmul.bf16 %v13258_v57, %v10418_v56  ;;  %v13260_v62 = vld [vmem:[#allocation51_spill] sm:$0xff]  ;;  %v13261_v46 = vld [vmem:[#allocation25_spill] sm:$0xff]  ;;  %7014 = vtanh.bf16 %v2593_v35  ;;  %v6302_v57 = vadd.f32 %v13264_v61, %v13263_v52 }
 0x2bc   :  { %3961 = vmatprep.mubr.bf16.mxu0 %v2970_v15  ;;  %v2467_v23 = vadd.bf16 %v2339_v29, %v10329_v60  ;;  %v2346_v42 = vmul.bf16 %v2218_v5, %v10407_v55  ;;  %v6299_v0 = vadd.f32 %v13260_v62, %v13259_v2  ;;  %v6411_v59 = vadd.f32 %v13262_v13, %v13261_v46  ;;  %v13266_v8 = vld [vmem:[#allocation69_spill] sm:$0xff]  ;;  %v10746_v47 = vld [vmem:[#allocation5 + $0x5] ss:$0 sm:$0xff] }
 0x2bd   :  { %4122 = vmatprep.mubr.bf16.mxu1 %v2972_v19  ;;  %v2348_v25 = vmul.bf16 %v2220_v3, %v10418_v56  ;;  %v6414_v15 = vadd.f32 %v13266_v8, %v13265_v44  ;;  %v5199_v62 = vmul.f32 %v10733_v30, %v3466_v24  ;;  %v3316_v35 = vadd.f32 %v6302_v57, %v10665_v11  ;;  %v10757_v8 = vpop.f32.mrb[160].mxu0 }
 0x2be   :  { %v2595_v29 = vmul.bf16 1061961548, %v2467_v23  ;;  %v2474_v5 = vadd.bf16 %v2346_v42, %v10407_v55  ;;  %v3313_v2 = vadd.f32 %v6299_v0, %v10665_v11  ;;  %v13267_v46 = vmul.bf16 1027030327, %v10403_v38  ;;  %13268 = vst [vmem:[#allocation62_spill] sm:$0xff] %v10757_v8  ;;  %v10760_v0 = vpop.f32.mrb[160].mxu1 }
 0x2bf   :  { %v2476_v19 = vadd.bf16 %v2348_v25, %v10418_v56  ;;  %v5232_v42 = vadd.f32 %v10746_v47, %v5199_v62  ;;  %13269 = vst [vmem:[#allocation63_spill] sm:$0xff] %v10760_v0  ;;  %v10762_v24 = vpop.f32.mrb[161].mxu0  ;;  %v7007_v25 = vpop.eup %7006  ;;  %v10764_v61 = vadd.f32 %v6414_v15, %v3316_v35  ;;  %v13278_v15 = vmul.bf16 1056980736, %v10249_v18 }
 0x2c0   :  { %v2217_v13 = vmul.bf16 %v13267_v46, %v10403_v38  ;;  %7016 = vtanh.bf16 %v2595_v29  ;;  %v2602_v44 = vmul.bf16 1061961548, %v2474_v5  ;;  %v3474_v23 = vadd.f32 %v6411_v59, %v3313_v2  ;;  %13270 = vst [vmem:[#allocation21_spill] sm:$0xff] %v10762_v24  ;;  %v10768_v46 = vpop.f32.mrb[161].mxu1  ;;  %v10770_v8 = vpop.f32.mrb[162].mxu0 }
 0x2c1   :  { %v2604_v52 = vmul.bf16 1061961548, %v2476_v19  ;;  %13271 = vst [vmem:[#allocation64_spill] sm:$0xff] %v10768_v46  ;;  %13272 = vst [vmem:[#allocation22_spill] sm:$0xff] %v10770_v8  ;;  %v7009_v29 = vpop.eup %7008  ;;  %v2841_v59 = vadd.bf16 1065369472, %v7007_v25  ;;  %5264 = vadd.xlane.f32.xlu0 %v5232_v42 }
 0x2c2   :  { %v2345_v57 = vmul.bf16 %v2217_v13, %v10403_v38  ;;  %7018 = vtanh.bf16 %v2602_v44  ;;  %5940 = vst [vmem:[#allocation7 + $0x10] sm:$0xff] %v3474_v23  ;;  %v13273_v5 = vmul.bf16 1027030327, %v10405_v16  ;;  %v10776_v62 = vpop.f32.mrb[162].mxu1  ;;  %v10778_v19 = vpop.f32.mrb[163].mxu0  ;;  %5941 = vst [vmem:[#allocation7 + $0x18] sm:$0xff] %v10764_v61 }
 0x2c3   :  { %13274 = vst [vmem:[#allocation43_spill] sm:$0xff] %v10776_v62  ;;  %13275 = vst [vmem:[#allocation44_spill] sm:$0xff] %v10778_v19  ;;  %v7011_v35 = vpop.eup %7010  ;;  %v2843_v13 = vadd.bf16 1065369472, %v7009_v29  ;;  %7020 = vtanh.bf16 %v2604_v52  ;;  %v13276_v44 = vmul.bf16 1027030327, %v10481_v28  ;;  %v2969_v8 = vmul.bf16 %v2841_v59, %v13278_v15 }
 0x2c4   :  { %v2219_v2 = vmul.bf16 %v13273_v5, %v10405_v16  ;;  %v2473_v25 = vadd.bf16 %v2345_v57, %v10403_v38  ;;  %v10785_v3 = vpop.f32.mrb[163].mxu1  ;;  %v7013_v5 = vpop.eup %7012  ;;  %v2850_v62 = vadd.bf16 1065369472, %v7011_v35  ;;  %v1972_v29 = vmul.bf16 1056980736, %v10494_v54 }
 0x2c5   :  { %v2226_v42 = vmul.bf16 %v13276_v44, %v10481_v28  ;;  %13277 = vst [vmem:[#allocation30_spill] sm:$0xff] %v10785_v3  ;;  %v13279_v52 = vmul.bf16 1056980736, %v13233_v37  ;;  %v2852_v0 = vadd.bf16 1065369472, %v7013_v5  ;;  %3962 = vmatmul.mubr.bf16.gmra.mrb[232].mxu0 %v2969_v8  ;;  %v13283_v8 = vld [vmem:[#allocation32_spill] sm:$0xff] }
 0x2c6   :  { %v2347_v19 = vmul.bf16 %v2219_v2, %v10405_v16  ;;  %v2601_v57 = vmul.bf16 1061961548, %v2473_v25  ;;  %v13280_v44 = vmul.bf16 1056980736, %v10331_v53  ;;  %v13281_v18 = vmul.bf16 1027030327, %v10494_v54 }
 0x2c7   :  { %v2971_v46 = vmul.bf16 %v2843_v13, %v13279_v52  ;;  %v2354_v24 = vmul.bf16 %v2226_v42, %v10481_v28  ;;  %v5200_v2 = vmul.f32 %v10733_v30, %v10702_v40  ;;  %v13282_v37 = vmul.bf16 1056980736, %v10346_v39  ;;  %v13284_v13 = vld [vmem:[#allocation16_spill] sm:$0xff]  ;;  %v13285_v5 = vld [vmem:[#allocation33_spill] sm:$0xff]  ;;  %v13286_v52 = vld [vmem:[#allocation35_spill] sm:$0xff] }
 0x2c8   :  { %v2978_v3 = vmul.bf16 %v2850_v62, %v13280_v44  ;;  %v2475_v31 = vadd.bf16 %v2347_v19, %v10405_v16  ;;  %v2228_v59 = vmul.bf16 %v13281_v18, %v10494_v54  ;;  %7022 = vtanh.bf16 %v2601_v57  ;;  %v7015_v62 = vpop.eup %7014  ;;  %v13287_v57 = vld [vmem:[#allocation17_spill] sm:$0xff] }
 0x2c9   :  { %4123 = vmatmul.mubr.bf16.gmra.mrb[232].mxu1 %v2971_v46  ;;  %v2980_v15 = vmul.bf16 %v2852_v0, %v13282_v37  ;;  %v2482_v35 = vadd.bf16 %v2354_v24, %v10481_v28  ;;  %v6305_v53 = vadd.f32 %v13284_v13, %v13283_v8  ;;  %v5233_v42 = vadd.f32 %v10746_v47, %v5200_v2  ;;  %v13288_v24 = vld [vmem:[#allocation56_spill] sm:$0xff] }
 0x2ca   :  { %3969 = vmatprep.mubr.bf16.mxu0 %v2978_v3  ;;  %v2603_v19 = vmul.bf16 1061961548, %v2475_v31  ;;  %v2356_v25 = vmul.bf16 %v2228_v59, %v10494_v54  ;;  %v6417_v40 = vadd.f32 %v13286_v52, %v13285_v5  ;;  %v2849_v46 = vadd.bf16 1065369472, %v7015_v62  ;;  %v13289_v31 = vld [vmem:[#allocation55_spill] sm:$0xff]  ;;  %v13290_v3 = vld [vmem:[#allocation70_spill] sm:$0xff] }
 0x2cb   :  { %4130 = vmatprep.mubr.bf16.mxu1 %v2980_v15  ;;  %v2610_v39 = vmul.bf16 1061961548, %v2482_v35  ;;  %v3321_v0 = vadd.f32 %v6305_v53, %v10665_v11  ;;  %v6308_v44 = vadd.f32 %v13288_v24, %v13287_v57  ;;  %5266 = vadd.xlane.f32.xlu1 %v5233_v42  ;;  %v6420_v59 = vadd.f32 %v13290_v3, %v13289_v31  ;;  %v7017_v37 = vpop.eup %7016  ;;  %v10821_v53 = vpop.f32.mrb[164].mxu0 }
 0x2cc   :  { %7024 = vtanh.bf16 %v2603_v19  ;;  %v2484_v18 = vadd.bf16 %v2356_v25, %v10494_v54  ;;  %v5201_v2 = vmul.f32 %v10733_v30, %v3474_v23  ;;  %v13291_v8 = vmul.bf16 1056980736, %v10327_v20  ;;  %v10836_v57 = vpop.f32.mrb[165].mxu0 }
 0x2cd   :  { %7026 = vtanh.bf16 %v2610_v39  ;;  %v3482_v35 = vadd.f32 %v6417_v40, %v3321_v0  ;;  %v3324_v13 = vadd.f32 %v6308_v44, %v10665_v11  ;;  %v2851_v62 = vadd.bf16 1065369472, %v7017_v37  ;;  %v7019_v5 = vpop.eup %7018  ;;  %v10834_v0 = vpop.f32.mrb[164].mxu1 }
 0x2ce   :  { %v2977_v15 = vmul.bf16 %v2849_v46, %v13291_v8  ;;  %v2612_v19 = vmul.bf16 1061961548, %v2484_v18  ;;  %v5234_v25 = vadd.f32 %v10746_v47, %v5201_v2  ;;  %v1969_v42 = vmul.bf16 1056980736, %v10475_v12  ;;  %v7021_v24 = vpop.eup %7020  ;;  %v10843_v2 = vpop.f32.mrb[166].mxu0 }
 0x2cf   :  { %5942 = vst [vmem:[#allocation7 + $0x20] sm:$0xff] %v3482_v35  ;;  %v10825_v52 = vadd.f32 %v6420_v59, %v3324_v13  ;;  %v13292_v20 = vmul.bf16 1027030327, %v10475_v12  ;;  %v1971_v40 = vmul.bf16 1056980736, %v10477_v58  ;;  %v10841_v59 = vpop.f32.mrb[165].mxu1 }
 0x2d0   :  { %v13293_v46 = vmul.bf16 1027030327, %v10477_v58  ;;  %3970 = vmatmul.mubr.bf16.gmra.mrb[236].mxu0 %v2977_v15  ;;  %v13294_v44 = vmul.bf16 1056980736, %v10329_v60  ;;  %v2858_v31 = vadd.bf16 1065369472, %v7019_v5  ;;  %7028 = vtanh.bf16 %v2612_v19  ;;  %5268 = vadd.xlane.f32.xlu0 %v5234_v25 }
 0x2d1   :  { %v2225_v23 = vmul.bf16 %v13292_v20, %v10475_v12  ;;  %v2860_v37 = vadd.bf16 1065369472, %v7021_v24  ;;  %5943 = vst [vmem:[#allocation7 + $0x28] sm:$0xff] %v10825_v52  ;;  %v13295_v60 = vmul.bf16 1027030327, %v10555_v51  ;;  %v10853_v19 = vpop.f32.mrb[167].mxu0  ;;  %v6423_v20 = vadd.f32 %v10385_v14, %v10377_v27 }
 0x2d2   :  { %v2227_v39 = vmul.bf16 %v13293_v46, %v10477_v58  ;;  %v2979_v18 = vmul.bf16 %v2851_v62, %v13294_v44  ;;  %v10851_v62 = vpop.f32.mrb[166].mxu1  ;;  %v13296_v25 = vmul.bf16 1056980736, %v10407_v55  ;;  %v13297_v46 = vmul.bf16 1027030327, %v10570_v1 }
 0x2d3   :  { %v2353_v8 = vmul.bf16 %v2225_v23, %v10475_v12  ;;  %v2234_v15 = vmul.bf16 %v13295_v60, %v10555_v51  ;;  %v10863_v24 = vpop.f32.mrb[167].mxu1  ;;  %v13298_v44 = vmul.bf16 1056980736, %v10418_v56  ;;  %v13299_v27 = vmul.bf16 1056980736, %v10403_v38 }
 0x2d4   :  { %v2355_v13 = vmul.bf16 %v2227_v39, %v10477_v58  ;;  %4131 = vmatmul.mubr.bf16.gmra.mrb[236].mxu1 %v2979_v18  ;;  %v2986_v5 = vmul.bf16 %v2858_v31, %v13296_v25  ;;  %v2236_v23 = vmul.bf16 %v13297_v46, %v10570_v1  ;;  %v5202_v39 = vmul.f32 %v10733_v30, %v10764_v61  ;;  %v7023_v31 = vpop.eup %7022 }
 0x2d5   :  { %v2988_v60 = vmul.bf16 %v2860_v37, %v13298_v44  ;;  %v2481_v3 = vadd.bf16 %v2353_v8, %v10475_v12  ;;  %v2362_v55 = vmul.bf16 %v2234_v15, %v10555_v51  ;;  %v6311_v61 = vadd.f32 %v10342_v41, %v10337_v49 }
 0x2d6   :  { %v2483_v18 = vadd.bf16 %v2355_v13, %v10477_v58  ;;  %3977 = vmatprep.mubr.bf16.mxu0 %v2986_v5  ;;  %v2364_v25 = vmul.bf16 %v2236_v23, %v10570_v1  ;;  %v5235_v46 = vadd.f32 %v10746_v47, %v5202_v39  ;;  %v2857_v56 = vadd.bf16 1065369472, %v7023_v31  ;;  %v13316_v58 = vld [vmem:[#allocation40_spill] sm:$0xff] }
 0x2d7   :  { %4138 = vmatprep.mubr.bf16.mxu1 %v2988_v60  ;;  %v2609_v37 = vmul.bf16 1061961548, %v2481_v3  ;;  %v2490_v13 = vadd.bf16 %v2362_v55, %v10555_v51  ;;  %v3329_v5 = vadd.f32 %v6311_v61, %v10665_v11  ;;  %v6314_v23 = vadd.f32 %v10361_v45, %v10352_v6  ;;  %v7025_v41 = vpop.eup %7024 }
 0x2d8   :  { %v2611_v8 = vmul.bf16 1061961548, %v2483_v18  ;;  %v2492_v15 = vadd.bf16 %v2364_v25, %v10570_v1  ;;  %5270 = vadd.xlane.f32.xlu1 %v5235_v46  ;;  %v6426_v49 = vadd.f32 %v10400_v21, %v10393_v34  ;;  %v2985_v14 = vmul.bf16 %v2857_v56, %v13299_v27  ;;  %v7027_v44 = vpop.eup %7026  ;;  %v10888_v34 = vpop.f32.mrb[168].mxu0 }
 0x2d9   :  { %7030 = vtanh.bf16 %v2609_v37  ;;  %v2618_v3 = vmul.bf16 1061961548, %v2490_v13  ;;  %v5203_v39 = vmul.f32 %v10733_v30, %v3482_v35  ;;  %v2859_v60 = vadd.bf16 1065369472, %v7025_v41  ;;  %v10896_v46 = vpop.f32.mrb[168].mxu1  ;;  %v10898_v61 = vpop.f32.mrb[169].mxu0 }
 0x2da   :  { %7032 = vtanh.bf16 %v2611_v8  ;;  %v2620_v18 = vmul.bf16 1061961548, %v2492_v15  ;;  %v3490_v55 = vadd.f32 %v6423_v20, %v3329_v5  ;;  %3978 = vmatmul.mubr.bf16.gmra.mrb[240].mxu0 %v2985_v14  ;;  %v2866_v31 = vadd.bf16 1065369472, %v7027_v44  ;;  %v10908_v41 = vpop.f32.mrb[170].mxu0 }
 0x2db   :  { %7034 = vtanh.bf16 %v2618_v3  ;;  %v3332_v6 = vadd.f32 %v6314_v23, %v10665_v11  ;;  %v5236_v45 = vadd.f32 %v10746_v47, %v5203_v39  ;;  %v13300_v38 = vmul.bf16 1056980736, %v10405_v16  ;;  %v7029_v56 = vpop.eup %7028  ;;  %v10906_v23 = vpop.f32.mrb[169].mxu1 }
 0x2dc   :  { %7036 = vtanh.bf16 %v2620_v18  ;;  %5944 = vst [vmem:[#allocation7 + $0x30] sm:$0xff] %v3490_v55  ;;  %v1977_v35 = vmul.bf16 1056980736, %v10547_v26  ;;  %v13301_v25 = vmul.bf16 1027030327, %v10547_v26  ;;  %v10915_v39 = vpop.f32.mrb[170].mxu1 }
 0x2dd   :  { %v2987_v21 = vmul.bf16 %v2859_v60, %v13300_v38  ;;  %v13302_v37 = vmul.bf16 1056980736, %v10481_v28  ;;  %v3493_v13 = vadd.f32 %v6426_v49, %v3332_v6  ;;  %5272 = vadd.xlane.f32.xlu0 %v5236_v45  ;;  %v1979_v16 = vmul.bf16 1056980736, %v10549_v22  ;;  %v10917_v44 = vpop.f32.mrb[171].mxu0  ;;  %v10926_v45 = vpop.f32.mrb[171].mxu1 }
 0x2de   :  { %v2233_v20 = vmul.bf16 %v13301_v25, %v10547_v26  ;;  %v13303_v15 = vmul.bf16 1027030327, %v10549_v22  ;;  %v2868_v27 = vadd.bf16 1065369472, %v7029_v56  ;;  %v1986_v3 = vmul.bf16 1056980736, %v10629_v50 }
 0x2df   :  { %v2994_v8 = vmul.bf16 %v2866_v31, %v13302_v37  ;;  %4139 = vmatmul.mubr.bf16.gmra.mrb[240].mxu1 %v2987_v21  ;;  %v13304_v28 = vmul.bf16 1027030327, %v10629_v50  ;;  %5945 = vst [vmem:[#allocation7 + $0x38] sm:$0xff] %v3493_v13  ;;  %v1988_v18 = vmul.bf16 1056980736, %v10646_v32  ;;  %v5204_v6 = vmul.f32 %v10733_v30, %v10825_v52  ;;  %v13306_v30 = vld [vmem:[#allocation36_spill] sm:$0xff] }
 0x2e0   :  { %v2235_v5 = vmul.bf16 %v13303_v15, %v10549_v22  ;;  %v2361_v14 = vmul.bf16 %v2233_v20, %v10547_v26  ;;  %v13305_v55 = vmul.bf16 1027030327, %v10646_v32  ;;  %v2996_v38 = vmul.bf16 %v2868_v27, %v1972_v29  ;;  %v13307_v15 = vld [vmem:[#allocation27_spill] sm:$0xff] }
 0x2e1   :  { %v2242_v49 = vmul.bf16 %v13304_v28, %v10629_v50  ;;  %3985 = vmatprep.mubr.bf16.mxu0 %v2994_v8  ;;  %v6317_v20 = vadd.f32 %v10447_v4, %v10437_v43  ;;  %v5237_v8 = vadd.f32 %v10746_v47, %v5204_v6  ;;  %v6429_v52 = vadd.f32 %v13306_v30, %v10463_v17  ;;  %v13309_v4 = vld [vmem:[#allocation37_spill] sm:$0xff]  ;;  %v13310_v28 = vld [vmem:[#allocation20_spill] sm:$0xff] }
 0x2e2   :  { %v2363_v60 = vmul.bf16 %v2235_v5, %v10549_v22  ;;  %v2244_v31 = vmul.bf16 %v13305_v55, %v10646_v32  ;;  %v2489_v21 = vadd.bf16 %v2361_v14, %v10547_v26  ;;  %4146 = vmatprep.mubr.bf16.mxu1 %v2996_v38  ;;  %v13308_v5 = vld [vmem:[#allocation28_spill] sm:$0xff]  ;;  %v1985_v47 = vmul.bf16 1056980736, %v10621_v48 }
 0x2e3   :  { %v2370_v25 = vmul.bf16 %v2242_v49, %v10629_v50  ;;  %v3337_v29 = vadd.f32 %v6317_v20, %v10665_v11  ;;  %v6320_v27 = vadd.f32 %v13308_v5, %v13307_v15  ;;  %5274 = vadd.xlane.f32.xlu1 %v5237_v8  ;;  %v6432_v49 = vadd.f32 %v13310_v28, %v13309_v4  ;;  %v13314_v4 = vld [vmem:[#allocation39_spill] sm:$0xff] }
 0x2e4   :  { %v2491_v56 = vadd.bf16 %v2363_v60, %v10549_v22  ;;  %v2372_v37 = vmul.bf16 %v2244_v31, %v10646_v32  ;;  %v2617_v13 = vmul.bf16 1061961548, %v2489_v21  ;;  %v7031_v60 = vpop.eup %7030  ;;  %v13315_v12 = vmul.bf16 1056980736, %v10555_v51  ;;  %v13320_v51 = vld [vmem:[#allocation34_spill] sm:$0xff] }
 0x2e5   :  { %v2498_v54 = vadd.bf16 %v2370_v25, %v10629_v50  ;;  %v10947_v55 = vadd.f32 %v6429_v52, %v3337_v29  ;;  %v3340_v31 = vadd.f32 %v6320_v27, %v10665_v11  ;;  %v7033_v6 = vpop.eup %7032  ;;  %v2865_v38 = vadd.bf16 1065369472, %v7031_v60 }
 0x2e6   :  { %v2619_v14 = vmul.bf16 1061961548, %v2491_v56  ;;  %v2500_v43 = vadd.bf16 %v2372_v37, %v10646_v32  ;;  %7038 = vtanh.bf16 %v2617_v13  ;;  %v13311_v25 = vmul.bf16 1027030327, %v10621_v48  ;;  %v7035_v56 = vpop.eup %7034 }
 0x2e7   :  { %v2626_v17 = vmul.bf16 1061961548, %v2498_v54  ;;  %v2867_v37 = vadd.bf16 1065369472, %v7033_v6  ;;  %5946 = vst [vmem:[#allocation7 + $0x40] sm:$0xff] %v10947_v55  ;;  %v10954_v8 = vadd.f32 %v6432_v49, %v3340_v31  ;;  %v7037_v52 = vpop.eup %7036  ;;  %v2993_v13 = vmul.bf16 %v2865_v38, %v1969_v42  ;;  %v10968_v49 = vpop.f32.mrb[172].mxu0 }
 0x2e8   :  { %7040 = vtanh.bf16 %v2619_v14  ;;  %v2628_v21 = vmul.bf16 1061961548, %v2500_v43  ;;  %v2241_v20 = vmul.bf16 %v13311_v25, %v10621_v48  ;;  %v2874_v54 = vadd.bf16 1065369472, %v7035_v56  ;;  %v13313_v43 = vld [vmem:[#allocation38_spill] sm:$0xff]  ;;  %v13318_v31 = vld [vmem:[#allocation41_spill] sm:$0xff] }
 0x2e9   :  { %7042 = vtanh.bf16 %v2626_v17  ;;  %v2995_v15 = vmul.bf16 %v2867_v37, %v1971_v40  ;;  %v2876_v5 = vadd.bf16 1065369472, %v7037_v52  ;;  %5947 = vst [vmem:[#allocation7 + $0x48] sm:$0xff] %v10954_v8  ;;  %v13312_v27 = vmul.bf16 1027030327, %v10623_v7  ;;  %3986 = vmatmul.mubr.bf16.gmra.mrb[244].mxu0 %v2993_v13  ;;  %v13317_v40 = vld [vmem:[#allocation31_spill] sm:$0xff] }
 0x2ea   :  { %7044 = vtanh.bf16 %v2628_v21  ;;  %v2369_v29 = vmul.bf16 %v2241_v20, %v10621_v48  ;;  %v6323_v28 = vadd.f32 %v13314_v4, %v13313_v43  ;;  %v3002_v42 = vmul.bf16 %v2874_v54, %v13315_v12  ;;  %v10977_v38 = vpop.f32.mrb[173].mxu0  ;;  %v10985_v52 = vpop.f32.mrb[172].mxu1  ;;  %v13325_v12 = vld [vmem:[#allocation57_spill] sm:$0xff] }
 0x2eb   :  { %v2243_v14 = vmul.bf16 %v13312_v27, %v10623_v7  ;;  %v6435_v17 = vadd.f32 %v13317_v40, %v13316_v58  ;;  %v6326_v6 = vadd.f32 %v10553_v63, %v13318_v31  ;;  %4147 = vmatmul.mubr.bf16.gmra.mrb[244].mxu1 %v2995_v15  ;;  %v13319_v21 = vmul.bf16 1056980736, %v10570_v1  ;;  %v10987_v13 = vpop.f32.mrb[174].mxu0  ;;  %v13322_v1 = vld [vmem:[#allocation42_spill] sm:$0xff] }
 0x2ec   :  { %v2497_v60 = vadd.bf16 %v2369_v29, %v10621_v48  ;;  %v3345_v56 = vadd.f32 %v6323_v28, %v10665_v11  ;;  %v6438_v37 = vadd.f32 %v13320_v51, %v10557_v36  ;;  %3993 = vmatprep.mubr.bf16.mxu0 %v3002_v42  ;;  %v13321_v29 = vld [vmem:[#allocation45_spill] sm:$0xff]  ;;  %v10996_v43 = vpop.f32.mrb[175].mxu0  ;;  %v13324_v28 = vld [vmem:[#allocation18_spill] sm:$0xff]  ;;  %v13329_v51 = vld [vmem:[#allocation24_spill] sm:$0xff]  ;;  %v6347_v22 = vadd.f32 %v10836_v57, %v10821_v53 }
 0x2ed   :  { %v3004_v25 = vmul.bf16 %v2876_v5, %v13319_v21  ;;  %v2371_v20 = vmul.bf16 %v2243_v14, %v10623_v7  ;;  %v3348_v63 = vadd.f32 %v6326_v6, %v10665_v11  ;;  %v6329_v15 = vadd.f32 %v13321_v29, %v10609_v10  ;;  %v13323_v5 = vld [vmem:[#allocation46_spill] sm:$0xff]  ;;  %v10994_v14 = vpop.f32.mrb[173].mxu1  ;;  %v13328_v21 = vld [vmem:[#allocation59_spill] sm:$0xff] }
 0x2ee   :  { %v2625_v54 = vmul.bf16 1061961548, %v2497_v60  ;;  %v6441_v27 = vadd.f32 %v13323_v5, %v13322_v1  ;;  %v10999_v4 = vadd.f32 %v6435_v17, %v3345_v56  ;;  %v6332_v42 = vadd.f32 %v13325_v12, %v13324_v28  ;;  %v13326_v60 = vld [vmem:[#allocation19_spill] sm:$0xff]  ;;  %v13327_v58 = vld [vmem:[#allocation58_spill] sm:$0xff]  ;;  %v11005_v31 = vpop.f32.mrb[174].mxu1  ;;  %v13331_v5 = vld [vmem:[#allocation53_spill] sm:$0xff] }
 0x2ef   :  { %4154 = vmatprep.mubr.bf16.mxu1 %v3004_v25  ;;  %v2499_v36 = vadd.bf16 %v2371_v20, %v10623_v7  ;;  %v6444_v40 = vadd.f32 %v13327_v58, %v13326_v60  ;;  %v11007_v10 = vadd.f32 %v6438_v37, %v3348_v63  ;;  %v3353_v6 = vadd.f32 %v6329_v15, %v10665_v11  ;;  %v11012_v29 = vpop.f32.mrb[175].mxu1  ;;  %v13330_v56 = vld [vmem:[#allocation23_spill] sm:$0xff]  ;;  %v13332_v28 = vld [vmem:[#allocation60_spill] sm:$0xff]  ;;  %v13333_v12 = vld [vmem:[#allocation61_spill] sm:$0xff] }
 0x2f0   :  { %7046 = vtanh.bf16 %v2625_v54  ;;  %v6335_v25 = vadd.f32 %v13329_v51, %v13328_v21  ;;  %5948 = vst [vmem:[#allocation7 + $0x50] sm:$0xff] %v10999_v4  ;;  %v3356_v20 = vadd.f32 %v6332_v42, %v10665_v11  ;;  %v6447_v1 = vadd.f32 %v10698_v9, %v13330_v56  ;;  %v13334_v60 = vld [vmem:[#allocation62_spill] sm:$0xff]  ;;  %v13335_v58 = vld [vmem:[#allocation21_spill] sm:$0xff] }
 0x2f1   :  { %v2627_v17 = vmul.bf16 1061961548, %v2499_v36  ;;  %v6338_v54 = vadd.f32 %v13331_v5, %v10700_v33  ;;  %v7039_v37 = vpop.eup %7038  ;;  %5949 = vst [vmem:[#allocation7 + $0x58] sm:$0xff] %v11007_v10  ;;  %v11021_v63 = vadd.f32 %v6441_v27, %v3353_v6  ;;  %v6450_v36 = vadd.f32 %v13333_v12, %v13332_v28  ;;  %v13337_v28 = vld [vmem:[#allocation64_spill] sm:$0xff] }
 0x2f2   :  { %v3361_v15 = vadd.f32 %v6335_v25, %v10665_v11  ;;  %v6341_v21 = vadd.f32 %v13335_v58, %v13334_v60  ;;  %v2873_v51 = vadd.bf16 1065369472, %v7039_v37  ;;  %v11028_v9 = vadd.f32 %v6444_v40, %v3356_v20  ;;  %v13336_v25 = vld [vmem:[#allocation63_spill] sm:$0xff]  ;;  %v13338_v20 = vld [vmem:[#allocation22_spill] sm:$0xff] }
 0x2f3   :  { %v7041_v42 = vpop.eup %7040  ;;  %7048 = vtanh.bf16 %v2627_v17  ;;  %v3364_v33 = vadd.f32 %v6338_v54, %v10665_v11  ;;  %5950 = vst [vmem:[#allocation7 + $0x60] sm:$0xff] %v11021_v63  ;;  %v6453_v12 = vadd.f32 %v13337_v28, %v13336_v25  ;;  %v13339_v54 = vld [vmem:[#allocation44_spill] sm:$0xff]  ;;  %v6350_v50 = vadd.f32 %v10853_v19, %v10843_v2 }
 0x2f4   :  { %v7043_v56 = vpop.eup %7042  ;;  %v2875_v5 = vadd.bf16 1065369472, %v7041_v42  ;;  %v11032_v27 = vadd.f32 %v6447_v1, %v3361_v15  ;;  %v3369_v6 = vadd.f32 %v6341_v21, %v10665_v11  ;;  %v3001_v37 = vmul.bf16 %v2873_v51, %v1977_v35  ;;  %5951 = vst [vmem:[#allocation7 + $0x68] sm:$0xff] %v11028_v9  ;;  %v13340_v21 = vld [vmem:[#allocation43_spill] sm:$0xff]  ;;  %v13341_v42 = vld [vmem:[#allocation30_spill] sm:$0xff] }
 0x2f5   :  { %v7045_v30 = vpop.eup %7044  ;;  %v2882_v17 = vadd.bf16 1065369472, %v7043_v56  ;;  %v11040_v40 = vadd.f32 %v6450_v36, %v3364_v33  ;;  %v6344_v60 = vadd.f32 %v13339_v54, %v13338_v20  ;;  %v6456_v26 = vadd.f32 %v13341_v42, %v13340_v21 }
 0x2f6   :  { %v3003_v1 = vmul.bf16 %v2875_v5, %v1979_v16  ;;  %v2884_v15 = vadd.bf16 1065369472, %v7045_v30  ;;  %5952 = vst [vmem:[#allocation7 + $0x70] sm:$0xff] %v11032_v27  ;;  %v11047_v58 = vadd.f32 %v6453_v12, %v3369_v6  ;;  %3994 = vmatmul.mubr.bf16.gmra.mrb[248].mxu0 %v3001_v37  ;;  %v6459_v16 = vadd.f32 %v10841_v59, %v10834_v0  ;;  %v6363_v59 = vpop.f32.mrb[176].mxu0 }
 0x2f7   :  { %v3010_v35 = vmul.bf16 %v2882_v17, %v1986_v3  ;;  %5953 = vst [vmem:[#allocation7 + $0x78] sm:$0xff] %v11040_v40  ;;  %v3372_v36 = vadd.f32 %v6344_v60, %v10665_v11  ;;  %v6462_v3 = vadd.f32 %v10863_v24, %v10851_v62  ;;  %v6353_v51 = vadd.f32 %v10898_v61, %v10888_v34  ;;  %v6364_v34 = vpop.f32.mrb[177].mxu0 }
 0x2f8   :  { %4155 = vmatmul.mubr.bf16.gmra.mrb[248].mxu1 %v3003_v1  ;;  %v3012_v30 = vmul.bf16 %v2884_v15, %v1988_v18  ;;  %5954 = vst [vmem:[#allocation7 + $0x80] sm:$0xff] %v11047_v58  ;;  %v3377_v0 = vadd.f32 %v6347_v22, %v10665_v11  ;;  %v6465_v32 = vadd.f32 %v10906_v23, %v10896_v46  ;;  %v6475_v18 = vpop.f32.mrb[176].mxu1  ;;  %v6366_v33 = vpop.f32.mrb[178].mxu0 }
 0x2f9   :  { %4001 = vmatprep.mubr.bf16.mxu0 %v3010_v35  ;;  %v11068_v53 = vadd.f32 %v6456_v26, %v3372_v36  ;;  %v6356_v57 = vadd.f32 %v10917_v44, %v10908_v41  ;;  %v3380_v2 = vadd.f32 %v6350_v50, %v10665_v11  ;;  %v3385_v62 = vadd.f32 %v6353_v51, %v10665_v11  ;;  %v6476_v56 = vpop.f32.mrb[177].mxu1  ;;  %v6367_v5 = vpop.f32.mrb[179].mxu0 }
 0x2fa   :  { %4162 = vmatprep.mubr.bf16.mxu1 %v3012_v30  ;;  %v6468_v19 = vadd.f32 %v10926_v45, %v10915_v39  ;;  %v6359_v24 = vadd.f32 %v10977_v38, %v10968_v49  ;;  %v11082_v46 = vadd.f32 %v6459_v16, %v3377_v0  ;;  %v6471_v41 = vadd.f32 %v10994_v14, %v10985_v52  ;;  %v6369_v42 = vpop.f32.mrb[180].mxu0 }
 0x2fb   :  { %v7047_v61 = vpop.eup %7046  ;;  %5955 = vst [vmem:[#allocation7 + $0x88] sm:$0xff] %v11068_v53  ;;  %v3388_v23 = vadd.f32 %v6356_v57, %v10665_v11  ;;  %v6362_v44 = vadd.f32 %v10996_v43, %v10987_v13  ;;  %v11089_v45 = vadd.f32 %v6462_v3, %v3380_v2  ;;  %v11091_v49 = vadd.f32 %v6465_v32, %v3385_v62  ;;  %v6478_v43 = vpop.f32.mrb[178].mxu1 }
 0x2fc   :  { %v2881_v39 = vadd.bf16 1065369472, %v7047_v61  ;;  %v3393_v38 = vadd.f32 %v6359_v24, %v10665_v11  ;;  %5956 = vst [vmem:[#allocation7 + $0x90] sm:$0xff] %v11082_v46  ;;  %v6474_v13 = vadd.f32 %v11012_v29, %v11005_v31  ;;  %v6365_v14 = vadd.f32 %v6364_v34, %v6363_v59  ;;  %v6479_v20 = vpop.f32.mrb[179].mxu1  ;;  %v6370_v35 = vpop.f32.mrb[181].mxu0 }
 0x2fd   :  { %13342 = vst [vmem:[#allocation47_spill] sm:$0xff] %v11089_v45  ;;  %13343 = vst [vmem:[#allocation65_spill] sm:$0xff] %v11091_v49  ;;  %v11095_v6 = vadd.f32 %v6468_v19, %v3388_v23  ;;  %v3396_v52 = vadd.f32 %v6362_v44, %v10665_v11  ;;  %v6477_v37 = vadd.f32 %v6476_v56, %v6475_v18  ;;  %v6481_v26 = vpop.f32.mrb[180].mxu1  ;;  %v6372_v16 = vpop.f32.mrb[182].mxu0 }
 0x2fe   :  { %v7049_v25 = vpop.eup %7048  ;;  %v3009_v28 = vmul.bf16 %v2881_v39, %v1985_v47  ;;  %5957 = vst [vmem:[#allocation7 + $0x98] sm:$0xff] %v11089_v45  ;;  %5958 = vst [vmem:[#allocation7 + $0xa0] sm:$0xff] %v11091_v49  ;;  %v11104_v12 = vadd.f32 %v6471_v41, %v3393_v38  ;;  %v6368_v17 = vadd.f32 %v6367_v5, %v6366_v33  ;;  %v13347_v47 = vmul.bf16 1056980736, %v10623_v7  ;;  %v6482_v22 = vpop.f32.mrb[181].mxu1 }
 0x2ff   :  { %13344 = vst [vmem:[#allocation48_spill] sm:$0xff] %v11095_v6  ;;  %v2883_v54 = vadd.bf16 1065369472, %v7049_v25  ;;  %5959 = vst [vmem:[#allocation7 + $0xa8] sm:$0xff] %v11095_v6  ;;  %v11107_v60 = vadd.f32 %v6474_v13, %v3396_v52  ;;  %v3401_v31 = vadd.f32 %v6365_v14, %v10665_v11  ;;  %v6480_v29 = vadd.f32 %v6479_v20, %v6478_v43  ;;  %v6484_v7 = vpop.f32.mrb[182].mxu1  ;;  %v6373_v50 = vpop.f32.mrb[183].mxu0 }
 0x300   :  { %13345 = vst [vmem:[#allocation66_spill] sm:$0xff] %v11104_v12  ;;  %4002 = vmatmul.mubr.bf16.gmra.mrb[252].mxu0 %v3009_v28  ;;  %5960 = vst [vmem:[#allocation7 + $0xb0] sm:$0xff] %v11104_v12  ;;  %v3404_v48 = vadd.f32 %v6368_v17, %v10665_v11  ;;  %v6371_v36 = vadd.f32 %v6370_v35, %v6369_v42  ;;  %v6483_v30 = vadd.f32 %v6482_v22, %v6481_v26  ;;  %v6485_v0 = vpop.f32.mrb[183].mxu1  ;;  %v6375_v62 = vpop.f32.mrb[184].mxu0  ;;  %v13351_v22 = vlaneseq }
 0x301   :  { %13346 = vst [vmem:[#allocation67_spill] sm:$0xff] %v11107_v60  ;;  %v3011_v1 = vmul.bf16 %v2883_v54, %v13347_v47  ;;  %5961 = vst [vmem:[#allocation7 + $0xb8] sm:$0xff] %v11107_v60  ;;  %v11115_v15 = vadd.f32 %v6477_v37, %v3401_v31  ;;  %v6374_v51 = vadd.f32 %v6373_v50, %v6372_v16  ;;  %v6487_v19 = vpop.f32.mrb[184].mxu1  ;;  %v6376_v24 = vpop.f32.mrb[185].mxu0 }
 0x302   :  { %v11117_v21 = vadd.f32 %v6480_v29, %v3404_v48  ;;  %v3409_v3 = vadd.f32 %v6371_v36, %v10665_v11  ;;  %v6486_v32 = vadd.f32 %v6485_v0, %v6484_v7  ;;  %v6377_v34 = vadd.f32 %v6376_v24, %v6375_v62  ;;  %v6488_v61 = vpop.f32.mrb[185].mxu1  ;;  %v6378_v23 = vpop.f32.mrb[186].mxu0  ;;  %v11133_v7 = vld [vmem:[#allocation5 + $0x2] ss:$0 sm:$0xff] }
 0x303   :  { %13348 = vst [vmem:[#allocation68_spill] sm:$0xff] %v11115_v15  ;;  %4163 = vmatmul.mubr.bf16.gmra.mrb[252].mxu1 %v3011_v1  ;;  %5962 = vst [vmem:[#allocation7 + $0xc0] sm:$0xff] %v11115_v15  ;;  %v3412_v59 = vadd.f32 %v6374_v51, %v10665_v11  ;;  %v6489_v41 = vadd.f32 %v6488_v61, %v6487_v19  ;;  %v6490_v44 = vpop.f32.mrb[186].mxu1  ;;  %v6379_v18 = vpop.f32.mrb[187].mxu0  ;;  %v11131_v16 = vand.u32 127, %v13351_v22 }
 0x304   :  { %13349 = vst [vmem:[#allocation49_spill] sm:$0xff] %v11117_v21  ;;  %5963 = vst [vmem:[#allocation7 + $0xc8] sm:$0xff] %v11117_v21  ;;  %v11122_v57 = vadd.f32 %v6483_v30, %v3409_v3  ;;  %v3417_v33 = vadd.f32 %v6377_v34, %v10665_v11  ;;  %v6380_v39 = vadd.f32 %v6379_v18, %v6378_v23  ;;  %v6491_v38 = vpop.f32.mrb[187].mxu1 }
 0x305   :  { %v3573_v2 = vadd.f32 %v6486_v32, %v3412_v59  ;;  %v6492_v56 = vadd.f32 %v6491_v38, %v6490_v44  ;;  %vm4173_vm0 = vcmp.eq.s32.totalorder %v11131_v16, 0 }
 0x306   :  { %13350 = vst [vmem:[#allocation50_spill] sm:$0xff] %v11122_v57  ;;  %5964 = vst [vmem:[#allocation7 + $0xd0] sm:$0xff] %v11122_v57  ;;  %v3578_v5 = vadd.f32 %v6489_v41, %v3417_v33  ;;  %v3420_v52 = vadd.f32 %v6380_v39, %v10665_v11 }
 0x307   :  { %5965 = vst [vmem:[#allocation7 + $0xd8] sm:$0xff] %v3573_v2 }
 0x308   :  { %5966 = vst [vmem:[#allocation7 + $0xe0] sm:$0xff] %v3578_v5  ;;  %v3581_v13 = vadd.f32 %v6492_v56, %v3420_v52 }
 0x309   :  { %v6381_v14 = vpop.f32.mrb[188].mxu0 }
 0x30a   :  { %5967 = vst [vmem:[#allocation7 + $0xe8] sm:$0xff] %v3581_v13  ;;  %v6382_v25 = vpop.f32.mrb[189].mxu0 }
 0x30b   :  { %v6383_v28 = vadd.f32 %v6382_v25, %v6381_v14  ;;  %v6384_v17 = vpop.f32.mrb[190].mxu0 }
 0x30c   :  { %v6493_v43 = vpop.f32.mrb[188].mxu1  ;;  %v6385_v31 = vpop.f32.mrb[191].mxu0 }
 0x30d   :  { %v6494_v37 = vpop.f32.mrb[189].mxu1  ;;  %v3425_v29 = vadd.f32 %v6383_v28, %v10665_v11  ;;  %v6386_v48 = vadd.f32 %v6385_v31, %v6384_v17 }
 0x30e   :  { %v6495_v20 = vadd.f32 %v6494_v37, %v6493_v43  ;;  %v6496_v54 = vpop.f32.mrb[190].mxu1 }
 0x30f   :  { %v6497_v47 = vpop.f32.mrb[191].mxu1  ;;  %v3428_v26 = vadd.f32 %v6386_v48, %v10665_v11 }
 0x310   :  { %v6498_v1 = vadd.f32 %v6497_v47, %v6496_v54  ;;  %v3586_v42 = vadd.f32 %v6495_v20, %v3425_v29 }
 0x311   :  { %v6515_v36 = vpop.f32.mrb[192].mxu0 }
 0x312   :  { %5968 = vst [vmem:[#allocation7 + $0xf0] sm:$0xff] %v3586_v42  ;;  %v3589_v35 = vadd.f32 %v6498_v1, %v3428_v26  ;;  %v6516_v50 = vpop.f32.mrb[193].mxu0 }
 0x313   :  { %v6517_v3 = vadd.f32 %v6516_v50, %v6515_v36  ;;  %v6518_v0 = vpop.f32.mrb[194].mxu0 }
 0x314   :  { %v6627_v30 = vpop.f32.mrb[192].mxu1  ;;  %5969 = vst [vmem:[#allocation7 + $0xf8] sm:$0xff] %v3589_v35  ;;  %v6519_v2 = vpop.f32.mrb[195].mxu0 }
 0x315   :  { %v6628_v51 = vpop.f32.mrb[193].mxu1  ;;  %v3884_v62 = vadd.f32 %v6517_v3, %v11133_v7  ;;  %v6520_v11 = vadd.f32 %v6519_v2, %v6518_v0 }
 0x316   :  { %v6629_v32 = vadd.f32 %v6628_v51, %v6627_v30  ;;  %v6630_v59 = vpop.f32.mrb[194].mxu1 }
 0x317   :  { %v6631_v19 = vpop.f32.mrb[195].mxu1  ;;  %v3887_v61 = vadd.f32 %v6520_v11, %v11133_v7 }
 0x318   :  { %v6632_v24 = vadd.f32 %v6631_v19, %v6630_v59  ;;  %v4045_v34 = vadd.f32 %v6629_v32, %v3884_v62 }
 0x31a   :  { %v4048_v23 = vadd.f32 %v6632_v24, %v3887_v61  ;;  %v11140_v41 = vsel %vm4173_vm0, 0.0, %v4045_v34 }
 0x31b   :  { %v4206_v44 = vmul.f32 %v11140_v41, %v11140_v41 }
 0x31c   :  { %v11146_v18 = vsel %vm4173_vm0, 0.0, %v4048_v23 }
 0x31d   :  { %4238 = vadd.xlane.f32.xlu0 %v4206_v44  ;;  %v4207_v5 = vmul.f32 %v11146_v18, %v11146_v18 }
 0x31f   :  { %v6521_v33 = vpop.f32.mrb[196].mxu0 }
 0x320   :  { %v6522_v39 = vpop.f32.mrb[197].mxu0 }
 0x321   :  { %v6523_v38 = vadd.f32 %v6522_v39, %v6521_v33  ;;  %v6524_v56 = vpop.f32.mrb[198].mxu0  ;;  %4240 = vadd.xlane.f32.xlu0 %v4207_v5 }
 0x322   :  { %v6525_v52 = vpop.f32.mrb[199].mxu0 }
 0x323   :  { %v3892_v14 = vadd.f32 %v6523_v38, %v11133_v7  ;;  %v6526_v43 = vadd.f32 %v6525_v52, %v6524_v56 }
 0x324   :  { %v6633_v13 = vpop.f32.mrb[196].mxu1 }
 0x325   :  { %v6634_v25 = vpop.f32.mrb[197].mxu1  ;;  %v3895_v17 = vadd.f32 %v6526_v43, %v11133_v7 }
 0x326   :  { %v6635_v28 = vadd.f32 %v6634_v25, %v6633_v13  ;;  %v6636_v37 = vpop.f32.mrb[198].mxu1 }
 0x327   :  { %v6637_v20 = vpop.f32.mrb[199].mxu1 }
 0x328   :  { %v4053_v54 = vadd.f32 %v6635_v28, %v3892_v14  ;;  %v6638_v31 = vadd.f32 %v6637_v20, %v6636_v37 }
 0x32a   :  { %v4056_v29 = vadd.f32 %v6638_v31, %v3895_v17  ;;  %v11154_v48 = vsel %vm4173_vm0, 0.0, %v4053_v54 }
 0x32b   :  { %v4208_v47 = vmul.f32 %v11154_v48, %v11154_v48 }
 0x32c   :  { %v11160_v42 = vsel %vm4173_vm0, 0.0, %v4056_v29 }
 0x32d   :  { %4242 = vadd.xlane.f32.xlu1 %v4208_v47  ;;  %v4209_v50 = vmul.f32 %v11160_v42, %v11160_v42 }
 0x32e   :  { %v6527_v1 = vpop.f32.mrb[200].mxu0 }
 0x32f   :  { %v6528_v26 = vpop.f32.mrb[201].mxu0 }
 0x330   :  { %v6529_v35 = vadd.f32 %v6528_v26, %v6527_v1  ;;  %v6530_v36 = vpop.f32.mrb[202].mxu0 }
 0x331   :  { %v6639_v22 = vpop.f32.mrb[200].mxu1  ;;  %v6531_v30 = vpop.f32.mrb[203].mxu0  ;;  %4244 = vadd.xlane.f32.xlu1 %v4209_v50 }
 0x332   :  { %v3900_v3 = vadd.f32 %v6529_v35, %v11133_v7  ;;  %v6640_v51 = vpop.f32.mrb[201].mxu1  ;;  %v6532_v0 = vadd.f32 %v6531_v30, %v6530_v36 }
 0x333   :  { %v6641_v32 = vadd.f32 %v6640_v51, %v6639_v22  ;;  %v6642_v59 = vpop.f32.mrb[202].mxu1 }
 0x334   :  { %v3903_v2 = vadd.f32 %v6532_v0, %v11133_v7  ;;  %v6643_v62 = vpop.f32.mrb[203].mxu1 }
 0x335   :  { %v4061_v11 = vadd.f32 %v6641_v32, %v3900_v3  ;;  %v6644_v19 = vadd.f32 %v6643_v62, %v6642_v59 }
 0x337   :  { %v4064_v24 = vadd.f32 %v6644_v19, %v3903_v2  ;;  %v11168_v34 = vsel %vm4173_vm0, 0.0, %v4061_v11 }
 0x338   :  { %v4210_v61 = vmul.f32 %v11168_v34, %v11168_v34 }
 0x339   :  { %v11174_v23 = vsel %vm4173_vm0, 0.0, %v4064_v24 }
 0x33a   :  { %4246 = vadd.xlane.f32.xlu0 %v4210_v61  ;;  %v4211_v44 = vmul.f32 %v11174_v23, %v11174_v23 }
 0x33b   :  { %v6533_v33 = vpop.f32.mrb[204].mxu0 }
 0x33c   :  { %4248 = vadd.xlane.f32.xlu1 %v4211_v44  ;;  %v6534_v38 = vpop.f32.mrb[205].mxu0 }
 0x33d   :  { %v6535_v56 = vadd.f32 %v6534_v38, %v6533_v33  ;;  %v6536_v52 = vpop.f32.mrb[206].mxu0 }
 0x33e   :  { %v6645_v39 = vpop.f32.mrb[204].mxu1  ;;  %v6537_v43 = vpop.f32.mrb[207].mxu0 }
 0x33f   :  { %v6646_v5 = vpop.f32.mrb[205].mxu1  ;;  %v3908_v25 = vadd.f32 %v6535_v56, %v11133_v7  ;;  %v6538_v28 = vadd.f32 %v6537_v43, %v6536_v52 }
 0x340   :  { %v6647_v13 = vadd.f32 %v6646_v5, %v6645_v39  ;;  %v6648_v14 = vpop.f32.mrb[206].mxu1 }
 0x341   :  { %v6649_v37 = vpop.f32.mrb[207].mxu1  ;;  %v3911_v54 = vadd.f32 %v6538_v28, %v11133_v7 }
 0x342   :  { %v6650_v17 = vadd.f32 %v6649_v37, %v6648_v14  ;;  %v4069_v20 = vadd.f32 %v6647_v13, %v3908_v25 }
 0x344   :  { %v4072_v31 = vadd.f32 %v6650_v17, %v3911_v54  ;;  %v11182_v29 = vsel %vm4173_vm0, 0.0, %v4069_v20 }
 0x345   :  { %v4212_v47 = vmul.f32 %v11182_v29, %v11182_v29 }
 0x346   :  { %v11188_v1 = vsel %vm4173_vm0, 0.0, %v4072_v31 }
 0x347   :  { %4250 = vadd.xlane.f32.xlu0 %v4212_v47  ;;  %v4213_v26 = vmul.f32 %v11188_v1, %v11188_v1 }
 0x349   :  { %4252 = vadd.xlane.f32.xlu1 %v4213_v26 }
 0x34b   :  { %v6539_v35 = vpop.f32.mrb[208].mxu0  ;;  %v6651_v36 = vpop.f32.mrb[208].mxu1 }
 0x34c   :  { %v6540_v22 = vpop.f32.mrb[209].mxu0  ;;  %v6652_v50 = vpop.f32.mrb[209].mxu1 }
 0x34d   :  { %v6541_v30 = vadd.f32 %v6540_v22, %v6539_v35  ;;  %v6542_v3 = vpop.f32.mrb[210].mxu0  ;;  %v6653_v51 = vadd.f32 %v6652_v50, %v6651_v36  ;;  %v6654_v0 = vpop.f32.mrb[210].mxu1 }
 0x34e   :  { %v6543_v32 = vpop.f32.mrb[211].mxu0  ;;  %v6655_v62 = vpop.f32.mrb[211].mxu1 }
 0x34f   :  { %v3916_v59 = vadd.f32 %v6541_v30, %v11133_v7  ;;  %v6544_v2 = vadd.f32 %v6543_v32, %v6542_v3  ;;  %v6656_v11 = vadd.f32 %v6655_v62, %v6654_v0 }
 0x351   :  { %v4077_v19 = vadd.f32 %v6653_v51, %v3916_v59  ;;  %v3919_v24 = vadd.f32 %v6544_v2, %v11133_v7 }
 0x353   :  { %v4080_v61 = vadd.f32 %v6656_v11, %v3919_v24  ;;  %v11196_v44 = vsel %vm4173_vm0, 0.0, %v4077_v19 }
 0x354   :  { %v4214_v33 = vmul.f32 %v11196_v44, %v11196_v44 }
 0x355   :  { %v11202_v39 = vsel %vm4173_vm0, 0.0, %v4080_v61 }
 0x356   :  { %13352 = vst [vmem:[#allocation15_spill] sm:$0xff] %v11202_v39  ;;  %4254 = vadd.xlane.f32.xlu0 %v4214_v33  ;;  %v4215_v38 = vmul.f32 %v11202_v39, %v11202_v39  ;;  %v6545_v56 = vpop.f32.mrb[212].mxu0 }
 0x357   :  { %v6657_v5 = vpop.f32.mrb[212].mxu1  ;;  %v6546_v52 = vpop.f32.mrb[213].mxu0 }
 0x358   :  { %4256 = vadd.xlane.f32.xlu1 %v4215_v38  ;;  %v6547_v13 = vadd.f32 %v6546_v52, %v6545_v56  ;;  %v6658_v14 = vpop.f32.mrb[213].mxu1  ;;  %v6548_v43 = vpop.f32.mrb[214].mxu0 }
 0x359   :  { %v6659_v25 = vadd.f32 %v6658_v14, %v6657_v5  ;;  %v6660_v28 = vpop.f32.mrb[214].mxu1  ;;  %v6549_v37 = vpop.f32.mrb[215].mxu0 }
 0x35a   :  { %v3924_v17 = vadd.f32 %v6547_v13, %v11133_v7  ;;  %v6550_v20 = vadd.f32 %v6549_v37, %v6548_v43  ;;  %v6661_v54 = vpop.f32.mrb[215].mxu1 }
 0x35b   :  { %v6662_v31 = vadd.f32 %v6661_v54, %v6660_v28 }
 0x35c   :  { %v4085_v47 = vadd.f32 %v6659_v25, %v3924_v17  ;;  %v3927_v26 = vadd.f32 %v6550_v20, %v11133_v7 }
 0x35e   :  { %v4088_v35 = vadd.f32 %v6662_v31, %v3927_v26  ;;  %v11210_v36 = vsel %vm4173_vm0, 0.0, %v4085_v47 }
 0x35f   :  { %13353 = vst [vmem:[#allocation51_spill] sm:$0xff] %v11210_v36  ;;  %v4216_v22 = vmul.f32 %v11210_v36, %v11210_v36 }
 0x360   :  { %v11216_v30 = vsel %vm4173_vm0, 0.0, %v4088_v35 }
 0x361   :  { %13354 = vst [vmem:[#allocation25_spill] sm:$0xff] %v11216_v30  ;;  %4258 = vadd.xlane.f32.xlu0 %v4216_v22  ;;  %v4217_v50 = vmul.f32 %v11216_v30, %v11216_v30 }
 0x363   :  { %v6551_v3 = vpop.f32.mrb[216].mxu0  ;;  %4260 = vadd.xlane.f32.xlu1 %v4217_v50 }
 0x364   :  { %v6663_v51 = vpop.f32.mrb[216].mxu1  ;;  %v6552_v0 = vpop.f32.mrb[217].mxu0 }
 0x365   :  { %v6553_v32 = vadd.f32 %v6552_v0, %v6551_v3  ;;  %v6664_v59 = vpop.f32.mrb[217].mxu1  ;;  %v6554_v2 = vpop.f32.mrb[218].mxu0 }
 0x366   :  { %v6665_v62 = vadd.f32 %v6664_v59, %v6663_v51  ;;  %v6666_v11 = vpop.f32.mrb[218].mxu1  ;;  %v6555_v24 = vpop.f32.mrb[219].mxu0 }
 0x367   :  { %v3932_v19 = vadd.f32 %v6553_v32, %v11133_v7  ;;  %v6667_v61 = vpop.f32.mrb[219].mxu1  ;;  %v6556_v33 = vadd.f32 %v6555_v24, %v6554_v2 }
 0x368   :  { %v6668_v38 = vadd.f32 %v6667_v61, %v6666_v11 }
 0x369   :  { %v4093_v56 = vadd.f32 %v6665_v62, %v3932_v19  ;;  %v3935_v5 = vadd.f32 %v6556_v33, %v11133_v7 }
 0x36b   :  { %v11224_v52 = vsel %vm4173_vm0, 0.0, %v4093_v56  ;;  %v4096_v13 = vadd.f32 %v6668_v38, %v3935_v5 }
 0x36c   :  { %13355 = vst [vmem:[#allocation29_spill] sm:$0xff] %v11224_v52  ;;  %v4218_v14 = vmul.f32 %v11224_v52, %v11224_v52 }
 0x36d   :  { %v11230_v43 = vsel %vm4173_vm0, 0.0, %v4096_v13 }
 0x36e   :  { %4262 = vadd.xlane.f32.xlu0 %v4218_v14  ;;  %13356 = vst [vmem:[#allocation52_spill] sm:$0xff] %v11230_v43  ;;  %v4219_v28 = vmul.f32 %v11230_v43, %v11230_v43 }
 0x370   :  { %v6557_v25 = vpop.f32.mrb[220].mxu0  ;;  %4264 = vadd.xlane.f32.xlu1 %v4219_v28 }
 0x371   :  { %v6669_v37 = vpop.f32.mrb[220].mxu1  ;;  %v6558_v17 = vpop.f32.mrb[221].mxu0 }
 0x372   :  { %v6559_v20 = vadd.f32 %v6558_v17, %v6557_v25  ;;  %v6670_v54 = vpop.f32.mrb[221].mxu1  ;;  %v6560_v31 = vpop.f32.mrb[222].mxu0 }
 0x373   :  { %v6671_v47 = vadd.f32 %v6670_v54, %v6669_v37  ;;  %v6672_v26 = vpop.f32.mrb[222].mxu1  ;;  %v6561_v35 = vpop.f32.mrb[223].mxu0 }
 0x374   :  { %v3940_v22 = vadd.f32 %v6559_v20, %v11133_v7  ;;  %v6562_v50 = vadd.f32 %v6561_v35, %v6560_v31  ;;  %v6673_v3 = vpop.f32.mrb[223].mxu1 }
 0x375   :  { %v6674_v51 = vadd.f32 %v6673_v3, %v6672_v26 }
 0x376   :  { %v4101_v0 = vadd.f32 %v6671_v47, %v3940_v22  ;;  %v3943_v32 = vadd.f32 %v6562_v50, %v11133_v7 }
 0x378   :  { %v4104_v59 = vadd.f32 %v6674_v51, %v3943_v32  ;;  %v11238_v2 = vsel %vm4173_vm0, 0.0, %v4101_v0 }
 0x379   :  { %13357 = vst [vmem:[#allocation26_spill] sm:$0xff] %v11238_v2  ;;  %v4220_v62 = vmul.f32 %v11238_v2, %v11238_v2 }
 0x37a   :  { %v11244_v11 = vsel %vm4173_vm0, 0.0, %v4104_v59 }
 0x37b   :  { %13358 = vst [vmem:[#allocation54_spill] sm:$0xff] %v11244_v11  ;;  %4266 = vadd.xlane.f32.xlu0 %v4220_v62  ;;  %v4221_v19 = vmul.f32 %v11244_v11, %v11244_v11 }
 0x37d   :  { %4268 = vadd.xlane.f32.xlu1 %v4221_v19 }
 0x37e   :  { %v6563_v24 = vpop.f32.mrb[224].mxu0 }
 0x37f   :  { %v6675_v61 = vpop.f32.mrb[224].mxu1  ;;  %v6564_v33 = vpop.f32.mrb[225].mxu0 }
 0x380   :  { %v6565_v38 = vadd.f32 %v6564_v33, %v6563_v24  ;;  %v6676_v56 = vpop.f32.mrb[225].mxu1  ;;  %v6566_v5 = vpop.f32.mrb[226].mxu0 }
 0x381   :  { %v6677_v13 = vadd.f32 %v6676_v56, %v6675_v61  ;;  %v6678_v14 = vpop.f32.mrb[226].mxu1  ;;  %v6567_v25 = vpop.f32.mrb[227].mxu0 }
 0x382   :  { %v3948_v28 = vadd.f32 %v6565_v38, %v11133_v7  ;;  %v6568_v37 = vadd.f32 %v6567_v25, %v6566_v5  ;;  %v6679_v17 = vpop.f32.mrb[227].mxu1 }
 0x383   :  { %v6680_v20 = vadd.f32 %v6679_v17, %v6678_v14 }
 0x384   :  { %v4109_v54 = vadd.f32 %v6677_v13, %v3948_v28  ;;  %v3951_v31 = vadd.f32 %v6568_v37, %v11133_v7 }
 0x386   :  { %v4112_v47 = vadd.f32 %v6680_v20, %v3951_v31  ;;  %v11252_v26 = vsel %vm4173_vm0, 0.0, %v4109_v54 }
 0x387   :  { %13359 = vst [vmem:[#allocation69_spill] sm:$0xff] %v11252_v26  ;;  %v4222_v35 = vmul.f32 %v11252_v26, %v11252_v26 }
 0x388   :  { %v11258_v22 = vsel %vm4173_vm0, 0.0, %v4112_v47 }
 0x389   :  { %13360 = vst [vmem:[#allocation32_spill] sm:$0xff] %v11258_v22  ;;  %4270 = vadd.xlane.f32.xlu0 %v4222_v35  ;;  %v4223_v50 = vmul.f32 %v11258_v22, %v11258_v22 }
 0x38b   :  { %4272 = vadd.xlane.f32.xlu1 %v4223_v50 }
 0x38c   :  { %v6569_v3 = vpop.f32.mrb[228].mxu0 }
 0x38d   :  { %v6570_v0 = vpop.f32.mrb[229].mxu0 }
 0x38e   :  { %v6681_v51 = vpop.f32.mrb[228].mxu1  ;;  %v6571_v32 = vadd.f32 %v6570_v0, %v6569_v3  ;;  %v6572_v62 = vpop.f32.mrb[230].mxu0 }
 0x38f   :  { %v6682_v59 = vpop.f32.mrb[229].mxu1  ;;  %v6573_v61 = vpop.f32.mrb[231].mxu0 }
 0x390   :  { %v6683_v19 = vadd.f32 %v6682_v59, %v6681_v51  ;;  %v6684_v24 = vpop.f32.mrb[230].mxu1  ;;  %v3956_v33 = vadd.f32 %v6571_v32, %v11133_v7  ;;  %v6574_v38 = vadd.f32 %v6573_v61, %v6572_v62 }
 0x391   :  { %v6685_v56 = vpop.f32.mrb[231].mxu1 }
 0x392   :  { %v6686_v5 = vadd.f32 %v6685_v56, %v6684_v24  ;;  %v4117_v13 = vadd.f32 %v6683_v19, %v3956_v33  ;;  %v3959_v14 = vadd.f32 %v6574_v38, %v11133_v7 }
 0x394   :  { %v4120_v25 = vadd.f32 %v6686_v5, %v3959_v14  ;;  %v11266_v28 = vsel %vm4173_vm0, 0.0, %v4117_v13 }
 0x395   :  { %13361 = vst [vmem:[#allocation16_spill] sm:$0xff] %v11266_v28  ;;  %v4224_v37 = vmul.f32 %v11266_v28, %v11266_v28 }
 0x396   :  { %v11272_v17 = vsel %vm4173_vm0, 0.0, %v4120_v25 }
 0x397   :  { %13362 = vst [vmem:[#allocation33_spill] sm:$0xff] %v11272_v17  ;;  %4274 = vadd.xlane.f32.xlu0 %v4224_v37  ;;  %v4225_v20 = vmul.f32 %v11272_v17, %v11272_v17 }
 0x398   :  { %v6575_v54 = vpop.f32.mrb[232].mxu0 }
 0x399   :  { %v6576_v47 = vpop.f32.mrb[233].mxu0  ;;  %4276 = vadd.xlane.f32.xlu1 %v4225_v20 }
 0x39a   :  { %v6577_v35 = vadd.f32 %v6576_v47, %v6575_v54  ;;  %v6578_v3 = vpop.f32.mrb[234].mxu0 }
 0x39b   :  { %v6579_v32 = vpop.f32.mrb[235].mxu0 }
 0x39c   :  { %v6687_v31 = vpop.f32.mrb[232].mxu1  ;;  %v3964_v59 = vadd.f32 %v6577_v35, %v11133_v7  ;;  %v6580_v62 = vadd.f32 %v6579_v32, %v6578_v3 }
 0x39d   :  { %v6688_v50 = vpop.f32.mrb[233].mxu1 }
 0x39e   :  { %v6689_v51 = vadd.f32 %v6688_v50, %v6687_v31  ;;  %v6690_v0 = vpop.f32.mrb[234].mxu1  ;;  %v3967_v33 = vadd.f32 %v6580_v62, %v11133_v7 }
 0x39f   :  { %v6691_v19 = vpop.f32.mrb[235].mxu1 }
 0x3a0   :  { %v6692_v24 = vadd.f32 %v6691_v19, %v6690_v0  ;;  %v4125_v61 = vadd.f32 %v6689_v51, %v3964_v59 }
 0x3a2   :  { %v4128_v38 = vadd.f32 %v6692_v24, %v3967_v33  ;;  %v11280_v5 = vsel %vm4173_vm0, 0.0, %v4125_v61 }
 0x3a3   :  { %v6581_v56 = vpop.f32.mrb[236].mxu0  ;;  %13363 = vst [vmem:[#allocation35_spill] sm:$0xff] %v11280_v5  ;;  %v4226_v14 = vmul.f32 %v11280_v5, %v11280_v5 }
 0x3a4   :  { %v6582_v13 = vpop.f32.mrb[237].mxu0  ;;  %v11286_v54 = vsel %vm4173_vm0, 0.0, %v4128_v38 }
 0x3a5   :  { %v6583_v37 = vadd.f32 %v6582_v13, %v6581_v56  ;;  %v6584_v20 = vpop.f32.mrb[238].mxu0  ;;  %13364 = vst [vmem:[#allocation17_spill] sm:$0xff] %v11286_v54  ;;  %4278 = vadd.xlane.f32.xlu0 %v4226_v14  ;;  %v4227_v35 = vmul.f32 %v11286_v54, %v11286_v54  ;;  %v11302_v14 = vpop.xlane.xlu0 %5264 }
 0x3a6   :  { %v6585_v47 = vpop.f32.mrb[239].mxu0  ;;  %13367 = vst [vmem:[#allocation70_spill] sm:$0xff] %v11302_v14 }
 0x3a7   :  { %v6693_v25 = vpop.f32.mrb[236].mxu1  ;;  %v3972_v50 = vadd.f32 %v6583_v37, %v11133_v7  ;;  %v6586_v0 = vadd.f32 %v6585_v47, %v6584_v20  ;;  %4280 = vadd.xlane.f32.xlu1 %v4227_v35 }
 0x3a8   :  { %v6694_v31 = vpop.f32.mrb[237].mxu1 }
 0x3a9   :  { %v6695_v3 = vadd.f32 %v6694_v31, %v6693_v25  ;;  %v6696_v51 = vpop.f32.mrb[238].mxu1  ;;  %v3975_v62 = vadd.f32 %v6586_v0, %v11133_v7 }
 0x3aa   :  { %v6697_v32 = vpop.f32.mrb[239].mxu1 }
 0x3ab   :  { %v4133_v59 = vadd.f32 %v6695_v3, %v3972_v50  ;;  %v6698_v19 = vadd.f32 %v6697_v32, %v6696_v51  ;;  %v11307_v32 = vpop.xlane.xlu0 %5268 }
 0x3ac   :  { %13368 = vst [vmem:[#allocation36_spill] sm:$0xff] %v11307_v32 }
 0x3ad   :  { %v4136_v24 = vadd.f32 %v6698_v19, %v3975_v62  ;;  %v11294_v61 = vsel %vm4173_vm0, 0.0, %v4133_v59  ;;  %v6587_v33 = vpop.f32.mrb[240].mxu0 }
 0x3ae   :  { %13365 = vst [vmem:[#allocation56_spill] sm:$0xff] %v11294_v61  ;;  %v4228_v38 = vmul.f32 %v11294_v61, %v11294_v61  ;;  %v6588_v56 = vpop.f32.mrb[241].mxu0 }
 0x3af   :  { %v11300_v13 = vsel %vm4173_vm0, 0.0, %v4136_v24  ;;  %v6589_v25 = vadd.f32 %v6588_v56, %v6587_v33  ;;  %v6590_v37 = vpop.f32.mrb[242].mxu0  ;;  %v11314_v56 = vpop.xlane.xlu0 %5272 }
 0x3b0   :  { %13366 = vst [vmem:[#allocation55_spill] sm:$0xff] %v11300_v13  ;;  %4282 = vadd.xlane.f32.xlu0 %v4228_v38  ;;  %v4229_v20 = vmul.f32 %v11300_v13, %v11300_v13  ;;  %v6591_v47 = vpop.f32.mrb[243].mxu0  ;;  %13370 = vst [vmem:[#allocation28_spill] sm:$0xff] %v11314_v56 }
 0x3b1   :  { %v3980_v35 = vadd.f32 %v6589_v25, %v11133_v7  ;;  %v6592_v3 = vadd.f32 %v6591_v47, %v6590_v37  ;;  %v7563_v47 = vld [vmem:[#allocation7 + $0x30] sm:$0xff] }
 0x3b2   :  { %v6699_v31 = vpop.f32.mrb[240].mxu1  ;;  %4284 = vadd.xlane.f32.xlu1 %v4229_v20 }
 0x3b3   :  { %v6700_v50 = vpop.f32.mrb[241].mxu1  ;;  %v3983_v59 = vadd.f32 %v6592_v3, %v11133_v7 }
 0x3b4   :  { %v6701_v51 = vadd.f32 %v6700_v50, %v6699_v31  ;;  %v6702_v0 = vpop.f32.mrb[242].mxu1  ;;  %v11324_v31 = vld [vmem:[#allocation5 + $0x3] ss:$0 sm:$0xff]  ;;  %v7564_v50 = vld [vmem:[#allocation7 + $0x38] sm:$0xff] }
 0x3b5   :  { %v6703_v62 = vpop.f32.mrb[243].mxu1  ;;  %v5206_v3 = vmul.f32 %v7564_v50, %v11324_v31 }
 0x3b6   :  { %v4141_v19 = vadd.f32 %v6701_v51, %v3980_v35  ;;  %v6704_v24 = vadd.f32 %v6703_v62, %v6702_v0  ;;  %v5205_v35 = vmul.f32 %v7563_v47, %v11324_v31  ;;  %v5207_v51 = vmul.f32 %v11324_v31, %v10947_v55  ;;  %v11330_v0 = vpop.xlane.xlu1 %5266  ;;  %v11339_v55 = vld [vmem:[#allocation5 + $0x5] ss:$0 sm:$0xff] }
 0x3b7   :  { %13372 = vst [vmem:[#allocation20_spill] sm:$0xff] %v11330_v0 }
 0x3b8   :  { %v4144_v33 = vadd.f32 %v6704_v24, %v3983_v59  ;;  %v11312_v38 = vsel %vm4173_vm0, 0.0, %v4141_v19  ;;  %v5208_v59 = vmul.f32 %v11324_v31, %v10954_v8  ;;  %v5209_v19 = vmul.f32 %v11324_v31, %v10999_v4  ;;  %v11336_v24 = vpop.xlane.xlu0 %4238 }
 0x3b9   :  { %13369 = vst [vmem:[#allocation27_spill] sm:$0xff] %v11312_v38  ;;  %v4230_v25 = vmul.f32 %v11312_v38, %v11312_v38  ;;  %7050 = vrsqrt.f32 %v11336_v24  ;;  %v11342_v38 = vadd.f32 %v11339_v55, %v5205_v35  ;;  %v11345_v8 = vadd.f32 %v11339_v55, %v5206_v3 }
 0x3ba   :  { %v11320_v37 = vsel %vm4173_vm0, 0.0, %v4144_v33  ;;  %v11351_v54 = vadd.f32 %v11339_v55, %v5208_v59  ;;  %v11359_v56 = vadd.f32 %v11339_v55, %v5209_v19  ;;  %v11375_v19 = vpop.xlane.xlu1 %5270  ;;  %vm4304_vm1 = vcmp.eq.f32.partialorder %v11336_v24, inf }
 0x3bb   :  { %13371 = vst [vmem:[#allocation37_spill] sm:$0xff] %v11320_v37  ;;  %4286 = vadd.xlane.f32.xlu0 %v4230_v25  ;;  %v4231_v20 = vmul.f32 %v11320_v37, %v11320_v37  ;;  %13373 = vst [vmem:[#allocation38_spill] sm:$0xff] %v11375_v19  ;;  %vm4306_vm2 = vcmp.eq.f32.partialorder %v11336_v24, 0.0 }
 0x3bc   :  { %v6593_v62 = vpop.f32.mrb[244].mxu0 }
 0x3bd   :  { %4288 = vadd.xlane.f32.xlu1 %v4231_v20  ;;  %v6594_v25 = vpop.f32.mrb[245].mxu0  ;;  %v11348_v20 = vadd.f32 %v11339_v55, %v5207_v51  ;;  %v5212_v51 = vmul.f32 %v11324_v31, %v11028_v9  ;;  %v5216_v9 = vmul.f32 %v11324_v31, %v11068_v53  ;;  %v5219_v53 = vmul.f32 %v11324_v31, %v11091_v49 }
 0x3be   :  { %v6705_v33 = vpop.f32.mrb[244].mxu1  ;;  %v6595_v47 = vadd.f32 %v6594_v25, %v6593_v62  ;;  %v6596_v37 = vpop.f32.mrb[246].mxu0  ;;  %v5210_v62 = vmul.f32 %v11324_v31, %v11007_v10  ;;  %v5211_v25 = vmul.f32 %v11324_v31, %v11021_v63  ;;  %v5214_v10 = vmul.f32 %v11324_v31, %v11040_v40 }
 0x3bf   :  { %v6706_v50 = vpop.f32.mrb[245].mxu1  ;;  %v6597_v61 = vpop.f32.mrb[247].mxu0  ;;  %v5217_v40 = vmul.f32 %v11324_v31, %v11082_v46 }
 0x3c0   :  { %v6707_v4 = vadd.f32 %v6706_v50, %v6705_v33  ;;  %v6708_v13 = vpop.f32.mrb[246].mxu1  ;;  %v3988_v35 = vadd.f32 %v6595_v47, %v11133_v7  ;;  %v6598_v5 = vadd.f32 %v6597_v61, %v6596_v37  ;;  %v11363_v33 = vpop.xlane.xlu0 %4240  ;;  %v5213_v50 = vmul.f32 %v11324_v31, %v11032_v27 }
 0x3c1   :  { %v6709_v3 = vpop.f32.mrb[247].mxu1  ;;  %7052 = vrsqrt.f32 %v11363_v33  ;;  %v5215_v37 = vmul.f32 %v11324_v31, %v11047_v58  ;;  %v11381_v27 = vadd.f32 %v11339_v55, %v5211_v25  ;;  %v11398_v25 = vadd.f32 %v11339_v55, %v5212_v51 }
 0x3c2   :  { %v6710_v59 = vadd.f32 %v6709_v3, %v6708_v13  ;;  %v4149_v63 = vadd.f32 %v6707_v4, %v3988_v35  ;;  %v3991_v61 = vadd.f32 %v6598_v5, %v11133_v7  ;;  %v11378_v13 = vadd.f32 %v11339_v55, %v5210_v62 }
 0x3c3   :  { %v5218_v5 = vmul.f32 %v11324_v31, %v11089_v45  ;;  %v5220_v4 = vmul.f32 %v11324_v31, %v11095_v6  ;;  %v11401_v46 = vadd.f32 %v11339_v55, %v5213_v50  ;;  %v5221_v35 = vmul.f32 %v11324_v31, %v11104_v12  ;;  %v7051_v51 = vpop.eup %7050  ;;  %v11418_v6 = vpop.xlane.xlu1 %5274 }
 0x3c4   :  { %v4152_v47 = vadd.f32 %v6710_v59, %v3991_v61  ;;  %v11389_v58 = vsel %vm4173_vm0, 0.0, %v4149_v63  ;;  %v11410_v59 = vadd.f32 %v11339_v55, %v5214_v10  ;;  %v11413_v63 = vadd.f32 %v11339_v55, %v5215_v37  ;;  %13376 = vst [vmem:[#allocation31_spill] sm:$0xff] %v11418_v6 }
 0x3c5   :  { %13374 = vst [vmem:[#allocation39_spill] sm:$0xff] %v11389_v58  ;;  %v4232_v62 = vmul.f32 %v11389_v58, %v11389_v58  ;;  %v11416_v61 = vadd.f32 %v11339_v55, %v5216_v9  ;;  %v11426_v10 = vadd.f32 %v11339_v55, %v5218_v5  ;;  %v5222_v37 = vmul.f32 %v11324_v31, %v11107_v60 }
 0x3c6   :  { %v11407_v3 = vsel %vm4173_vm0, 0.0, %v4152_v47  ;;  %v11423_v47 = vadd.f32 %v11339_v55, %v5217_v40  ;;  %v4303_v45 = vmul.f32 %v7051_v51, %v11336_v24  ;;  %v11432_v58 = vadd.f32 %v11339_v55, %v5219_v53 }
 0x3c7   :  { %13375 = vst [vmem:[#allocation40_spill] sm:$0xff] %v11407_v3  ;;  %4290 = vadd.xlane.f32.xlu0 %v4232_v62  ;;  %v4233_v12 = vmul.f32 %v11407_v3, %v11407_v3  ;;  %v11435_v62 = vadd.f32 %v11339_v55, %v5220_v4  ;;  %v5223_v40 = vmul.f32 %v11324_v31, %v11115_v15  ;;  %v4307_v60 = vand.u32 2147483648, %v11336_v24  ;;  %v11449_v32 = vpop.xlane.xlu1 %4242 }
 0x3c8   :  { %v11442_v17 = vadd.f32 %v11339_v55, %v5221_v35  ;;  %v5224_v4 = vmul.f32 %v11324_v31, %v11117_v21  ;;  %v4305_v28 = vsel %vm4304_vm1, %v11336_v24, %v4303_v45  ;;  %v11452_v35 = vadd.f32 %v11339_v55, %v5222_v37 }
 0x3c9   :  { %v6599_v50 = vpop.f32.mrb[248].mxu0  ;;  %4292 = vadd.xlane.f32.xlu1 %v4233_v12  ;;  %7054 = vrsqrt.f32 %v11449_v32  ;;  %v11459_v45 = vadd.f32 %v11339_v55, %v5223_v40  ;;  %vm4311_vm3 = vcmp.eq.f32.partialorder %v11363_v33, inf  ;;  %vm4313_vm5 = vcmp.eq.f32.partialorder %v11363_v33, 0.0 }
 0x3ca   :  { %v6600_v9 = vpop.f32.mrb[249].mxu0  ;;  %v11465_v37 = vadd.f32 %v11339_v55, %v5224_v4  ;;  %vm4318_vm7 = vcmp.eq.f32.partialorder %v11449_v32, inf  ;;  %vm4320_vm8 = vcmp.eq.f32.partialorder %v11449_v32, 0.0 }
 0x3cb   :  { %v6711_v49 = vpop.f32.mrb[248].mxu1  ;;  %v6601_v3 = vadd.f32 %v6600_v9, %v6599_v50  ;;  %v6602_v5 = vpop.f32.mrb[250].mxu0 }
 0x3cc   :  { %v6712_v6 = vpop.f32.mrb[249].mxu1  ;;  %v6603_v19 = vpop.f32.mrb[251].mxu0 }
 0x3cd   :  { %v6713_v51 = vadd.f32 %v6712_v6, %v6711_v49  ;;  %v6714_v53 = vpop.f32.mrb[250].mxu1  ;;  %v7053_v50 = vpop.eup %7052  ;;  %v3996_v12 = vadd.f32 %v6601_v3, %v11133_v7  ;;  %v6604_v9 = vadd.f32 %v6603_v19, %v6602_v5  ;;  %v11454_v49 = vsel %vm4306_vm2, %v4307_v60, %v4305_v28 }
 0x3ce   :  { %v6715_v15 = vpop.f32.mrb[251].mxu1  ;;  %v4310_v0 = vmul.f32 %v7053_v50, %v11363_v33  ;;  %v4526_v19 = vmul.f32 1.442695, %v11454_v49  ;;  %v4590_v60 = vsub.f32 0.0, %v11454_v49  ;;  %v4942_v50 = vmul.f32 %v11336_v24, %v11336_v24 }
 0x3cf   :  { %v6716_v6 = vadd.f32 %v6715_v15, %v6714_v53  ;;  %v4157_v21 = vadd.f32 %v6713_v51, %v3996_v12  ;;  %v3999_v3 = vadd.f32 %v6604_v9, %v11133_v7  ;;  %v4878_v15 = vmul.f32 0.16666667, %v11336_v24  ;;  %v11475_v53 = vpop.xlane.xlu1 %4244 }
 0x3d0   :  { %v4312_v28 = vsel %vm4311_vm3, %v11363_v33, %v4310_v0  ;;  %v4314_v51 = vand.u32 2147483648, %v11363_v33  ;;  %7056 = vrsqrt.f32 %v11475_v53  ;;  %vm4814_vm4 = vcmp.lt.f32.partialorder %v11454_v49, 0.1 }
 0x3d1   :  { %v4160_v5 = vadd.f32 %v6716_v6, %v3999_v3  ;;  %v11472_v40 = vsel %vm4173_vm0, 0.0, %v4157_v21  ;;  %7058 = vpow2.f32 %v4526_v19  ;;  %v4622_v9 = vmul.f32 1.442695, %v4590_v60 }
 0x3d2   :  { %13377 = vst [vmem:[#allocation41_spill] sm:$0xff] %v11472_v40  ;;  %v4234_v12 = vmul.f32 %v11472_v40, %v11472_v40  ;;  %v11488_v6 = vsel %vm4313_vm5, %v4314_v51, %v4312_v28  ;;  %v11496_v19 = vadd.f32 1.0, %v4878_v15  ;;  %v4846_v15 = vsel %vm4814_vm4, 1.0, %v11454_v49 }
 0x3d3   :  { %v6605_v4 = vpop.f32.mrb[252].mxu0  ;;  %v11486_v21 = vsel %vm4173_vm0, 0.0, %v4160_v5  ;;  %v4528_v22 = vmul.f32 1.442695, %v11488_v6  ;;  %v4591_v26 = vsub.f32 0.0, %v11488_v6  ;;  %v5225_v5 = vmul.f32 %v11324_v31, %v11122_v57  ;;  %v7055_v57 = vpop.eup %7054 }
 0x3d4   :  { %v6606_v0 = vpop.f32.mrb[253].mxu0  ;;  %13378 = vst [vmem:[#allocation34_spill] sm:$0xff] %v11486_v21  ;;  %4294 = vadd.xlane.f32.xlu0 %v4234_v12  ;;  %v4235_v40 = vmul.f32 %v11486_v21, %v11486_v21  ;;  %7060 = vpow2.f32 %v4622_v9  ;;  %vm4815_vm6 = vcmp.lt.f32.partialorder %v11488_v6, 0.1  ;;  %v4974_v9 = vmul.f32 0.008333334, %v4942_v50  ;;  %v11507_v43 = vpop.xlane.xlu1 %4248 }
 0x3d5   :  { %v6607_v24 = vadd.f32 %v6606_v0, %v6605_v4  ;;  %v6608_v3 = vpop.f32.mrb[254].mxu0  ;;  %v11500_v4 = vpop.xlane.xlu0 %4246  ;;  %7062 = vpow2.f32 %v4528_v22  ;;  %v4624_v12 = vmul.f32 1.442695, %v4591_v26  ;;  %v4847_v50 = vsel %vm4815_vm6, 1.0, %v11488_v6 }
 0x3d6   :  { %v6717_v11 = vpop.f32.mrb[252].mxu1  ;;  %v6609_v2 = vpop.f32.mrb[255].mxu0  ;;  %4296 = vadd.xlane.f32.xlu1 %v4235_v40  ;;  %7064 = vrsqrt.f32 %v11500_v4  ;;  %v4317_v40 = vmul.f32 %v7055_v57, %v11449_v32  ;;  %vm4325_vm9 = vcmp.eq.f32.partialorder %v11475_v53, inf  ;;  %vm4327_vm11 = vcmp.eq.f32.partialorder %v11475_v53, 0.0 }
 0x3d7   :  { %v4004_v60 = vadd.f32 %v6607_v24, %v11133_v7  ;;  %v6718_v28 = vpop.f32.mrb[253].mxu1  ;;  %v6610_v51 = vadd.f32 %v6609_v2, %v6608_v3  ;;  %7066 = vpow2.f32 %v4624_v12  ;;  %v4879_v2 = vmul.f32 0.16666667, %v11363_v33 }
 0x3d8   :  { %v6719_v0 = vadd.f32 %v6718_v28, %v6717_v11  ;;  %v6720_v21 = vpop.f32.mrb[254].mxu1  ;;  %v4943_v11 = vmul.f32 %v11363_v33, %v11363_v33  ;;  %7068 = vrcp.f32 %v4846_v15  ;;  %v4319_v57 = vsel %vm4318_vm7, %v11449_v32, %v4317_v40 }
 0x3d9   :  { %v4007_v14 = vadd.f32 %v6610_v51, %v11133_v7  ;;  %v6721_v24 = vpop.f32.mrb[255].mxu1  ;;  %v4321_v7 = vand.u32 2147483648, %v11449_v32  ;;  %7070 = vrsqrt.f32 %v11507_v43  ;;  %vm4332_vm13 = vcmp.eq.f32.partialorder %v11500_v4, inf }
 0x3da   :  { %v4165_v26 = vadd.f32 %v6719_v0, %v4004_v60  ;;  %v6722_v22 = vadd.f32 %v6721_v24, %v6720_v21  ;;  %v7057_v33 = vpop.eup %7056  ;;  %v4911_v60 = vadd.f32 1.0, %v4879_v2  ;;  %7072 = vrcp.f32 %v4847_v50 }
 0x3db   :  { %v11527_v51 = vsel %vm4320_vm8, %v4321_v7, %v4319_v57  ;;  %v7059_v12 = vpop.eup %7058  ;;  %v4324_v0 = vmul.f32 %v7057_v33, %v11475_v53  ;;  %v4328_v2 = vand.u32 2147483648, %v11475_v53  ;;  %v4975_v33 = vmul.f32 0.008333334, %v4943_v11 }
 0x3dc   :  { %v4168_v3 = vadd.f32 %v6722_v22, %v4007_v14  ;;  %v11521_v28 = vsel %vm4173_vm0, 0.0, %v4165_v26  ;;  %v4530_v15 = vmul.f32 1.442695, %v11527_v51  ;;  %v4592_v24 = vsub.f32 0.0, %v11527_v51 }
 0x3dd   :  { %13379 = vst [vmem:[#allocation45_spill] sm:$0xff] %v11521_v28  ;;  %v4236_v21 = vmul.f32 %v11521_v28, %v11521_v28  ;;  %vm4816_vm10 = vcmp.lt.f32.partialorder %v11527_v51, 0.1  ;;  %v4326_v7 = vsel %vm4325_vm9, %v11475_v53, %v4324_v0  ;;  %v11549_v28 = vadd.f32 %v11339_v55, %v5225_v5 }
 0x3de   :  { %v11531_v14 = vsel %vm4173_vm0, 0.0, %v4168_v3  ;;  %v7061_v22 = vpop.eup %7060  ;;  %v4626_v40 = vmul.f32 1.442695, %v4592_v24  ;;  %v4848_v50 = vsel %vm4816_vm10, 1.0, %v11527_v51  ;;  %7074 = vpow2.f32 %v4530_v15  ;;  %v11551_v24 = vld [vmem:[#allocation7 + $0xd8] sm:$0xff] }
 0x3df   :  { %13380 = vst [vmem:[#allocation42_spill] sm:$0xff] %v11531_v14  ;;  %4298 = vadd.xlane.f32.xlu0 %v4236_v21  ;;  %v4237_v26 = vmul.f32 %v11531_v14, %v11531_v14  ;;  %v7063_v3 = vpop.eup %7062  ;;  %v4750_v57 = vsub.f32 %v7059_v12, %v7061_v22  ;;  %v11546_v21 = vsel %vm4327_vm11, %v4328_v2, %v4326_v7  ;;  %13381 = vst [vmem:[#allocation46_spill] sm:$0xff] %v11551_v24  ;;  %v11560_v2 = vpop.xlane.xlu0 %4250 }
 0x3e0   :  { %v7065_v14 = vpop.eup %7064  ;;  %v5226_v52 = vmul.f32 %v11551_v24, %v11324_v31  ;;  %7076 = vpow2.f32 %v4626_v40  ;;  %v4593_v0 = vsub.f32 0.0, %v11546_v21  ;;  %v5006_v11 = vadd.f32 %v4974_v9, %v11496_v19 }
 0x3e1   :  { %4300 = vadd.xlane.f32.xlu1 %v4237_v26  ;;  %v7067_v30 = vpop.eup %7066  ;;  %v4782_v26 = vmul.f32 0.5, %v4750_v57  ;;  %7078 = vrcp.f32 %v4848_v50  ;;  %v4532_v15 = vmul.f32 1.442695, %v11546_v21  ;;  %v4331_v5 = vmul.f32 %v7065_v14, %v11500_v4 }
 0x3e2   :  { %v4751_v7 = vsub.f32 %v7063_v3, %v7067_v30  ;;  %v4628_v36 = vmul.f32 1.442695, %v4593_v0  ;;  %vm4817_vm12 = vcmp.lt.f32.partialorder %v11546_v21, 0.1  ;;  %v7069_v40 = vpop.eup %7068  ;;  %7080 = vrsqrt.f32 %v11560_v2 }
 0x3e3   :  { %5276 = vadd.xlane.f32.xlu0 %v11342_v38  ;;  %v4686_v38 = vadd.f32 %v7061_v22, %v7059_v12  ;;  %v5007_v57 = vadd.f32 %v4975_v33, %v4911_v60  ;;  %v4880_v19 = vmul.f32 0.16666667, %v11449_v32  ;;  %v7071_v9 = vpop.eup %7070  ;;  %v5039_v50 = vmul.f32 %v7069_v40, %v4782_v26 }
 0x3e4   :  { %v4687_v24 = vadd.f32 %v7067_v30, %v7063_v3  ;;  %v4783_v39 = vmul.f32 0.5, %v4751_v7  ;;  %7082 = vpow2.f32 %v4628_v36  ;;  %v7073_v14 = vpop.eup %7072  ;;  %v4944_v0 = vmul.f32 %v11449_v32, %v11449_v32 }
 0x3e5   :  { %5278 = vadd.xlane.f32.xlu1 %v11345_v8  ;;  %7084 = vpow2.f32 %v4532_v15  ;;  %v4849_v8 = vsel %vm4817_vm12, 1.0, %v11546_v21  ;;  %v4335_v60 = vand.u32 2147483648, %v11500_v4  ;;  %v5102_v30 = vsel %vm4814_vm4, %v5006_v11, %v5039_v50 }
 0x3e6   :  { %v5041_v12 = vmul.f32 %v7073_v14, %v4783_v39  ;;  %v4333_v36 = vsel %vm4332_vm13, %v11500_v4, %v4331_v5  ;;  %v4718_v22 = vmul.f32 0.5, %v4686_v38  ;;  %v5134_v32 = vmul.f32 %v5102_v30, %v11140_v41  ;;  %v11586_v39 = vpop.xlane.xlu1 %4252  ;;  %v11599_v5 = vld [vmem:[#allocation7 + $0xe0] sm:$0xff] }
 0x3e7   :  { %5280 = vadd.xlane.f32.xlu0 %v11348_v20  ;;  %v4338_v20 = vmul.f32 %v7071_v9, %v11507_v43  ;;  %vm4334_vm14 = vcmp.eq.f32.partialorder %v11500_v4, 0.0  ;;  %v4719_v3 = vmul.f32 0.5, %v4687_v24  ;;  %7086 = vrcp.f32 %v4849_v8  ;;  %13382 = vst [vmem:[#allocation18_spill] sm:$0xff] %v11599_v5 }
 0x3e8   :  { %v5103_v33 = vsel %vm4815_vm6, %v5007_v57, %v5041_v12  ;;  %v11583_v26 = vsel %vm4334_vm14, %v4335_v60, %v4333_v36  ;;  %v7075_v49 = vpop.eup %7074  ;;  %vm4339_vm15 = vcmp.eq.f32.partialorder %v11507_v43, inf  ;;  %v11597_v15 = vadd.f32 %v11339_v55, %v5226_v52 }
 0x3e9   :  { %5282 = vadd.xlane.f32.xlu1 %v11351_v54  ;;  %v11590_v54 = vsel %vm4173_vm0, %v4718_v22, %v5134_v32  ;;  %v5135_v41 = vmul.f32 %v5103_v33, %v11146_v18  ;;  %v4534_v11 = vmul.f32 1.442695, %v11583_v26  ;;  %v4594_v24 = vsub.f32 0.0, %v11583_v26 }
 0x3ea   :  { %v7077_v6 = vpop.eup %7076  ;;  %5970 = vst [vmem:[#allocation8] sm:$0xff] %v11590_v54  ;;  %v4912_v7 = vadd.f32 1.0, %v4880_v19  ;;  %v4976_v57 = vmul.f32 0.008333334, %v4944_v0  ;;  %v4881_v52 = vmul.f32 0.16666667, %v11475_v53  ;;  %7088 = vrsqrt.f32 %v11586_v39 }
 0x3eb   :  { %5284 = vadd.xlane.f32.xlu0 %v11359_v56  ;;  %v5227_v56 = vmul.f32 %v11599_v5, %v11324_v31  ;;  %v7079_v40 = vpop.eup %7078  ;;  %v11607_v18 = vsel %vm4173_vm0, %v4719_v3, %v5135_v41  ;;  %v4752_v38 = vsub.f32 %v7075_v49, %v7077_v6  ;;  %v4945_v9 = vmul.f32 %v11475_v53, %v11475_v53  ;;  %v11623_v53 = vld [vmem:[#allocation7 + $0xe8] sm:$0xff] }
 0x3ec   :  { %5971 = vst [vmem:[#allocation8 + $0x8] sm:$0xff] %v11607_v18  ;;  %v4630_v50 = vmul.f32 1.442695, %v4594_v24  ;;  %v7081_v19 = vpop.eup %7080  ;;  %v4688_v14 = vadd.f32 %v7077_v6, %v7075_v49  ;;  %7090 = vpow2.f32 %v4534_v11  ;;  %vm4818_vm1 = vcmp.lt.f32.partialorder %v11583_v26, 0.1  ;;  %13383 = vst [vmem:[#allocation57_spill] sm:$0xff] %v11623_v53 }
 0x3ed   :  { %5286 = vadd.xlane.f32.xlu1 %v11378_v13  ;;  %v4340_v13 = vsel %vm4339_vm15, %v11507_v43, %v4338_v20  ;;  %v4784_v8 = vmul.f32 0.5, %v4752_v38  ;;  %v4342_v60 = vand.u32 2147483648, %v11507_v43  ;;  %v11621_v30 = vadd.f32 %v11339_v55, %v5227_v56 }
 0x3ee   :  { %v7083_v0 = vpop.eup %7082  ;;  %v5228_v12 = vmul.f32 %v11623_v53, %v11324_v31  ;;  %7092 = vpow2.f32 %v4630_v50  ;;  %v5008_v20 = vadd.f32 %v4976_v57, %v4912_v7  ;;  %v4913_v32 = vadd.f32 1.0, %v4881_v52 }
 0x3ef   :  { %5288 = vadd.xlane.f32.xlu0 %v11381_v27  ;;  %v7085_v36 = vpop.eup %7084  ;;  %v11628_v27 = vpop.xlane.xlu0 %4254  ;;  %v5043_v22 = vmul.f32 %v7079_v40, %v4784_v8  ;;  %vm4341_vm2 = vcmp.eq.f32.partialorder %v11507_v43, 0.0  ;;  %v4977_v33 = vmul.f32 0.008333334, %v4945_v9  ;;  %v4850_v49 = vsel %vm4818_vm1, 1.0, %v11583_v26 }
 0x3f0   :  { %v4753_v3 = vsub.f32 %v7085_v36, %v7083_v0  ;;  %v11634_v41 = vsel %vm4341_vm2, %v4342_v60, %v4340_v13  ;;  %v4345_v11 = vmul.f32 %v7081_v19, %v11560_v2  ;;  %v4720_v6 = vmul.f32 0.5, %v4688_v14 }
 0x3f1   :  { %5290 = vadd.xlane.f32.xlu1 %v11398_v25  ;;  %v11638_v25 = vld [vmem:[#allocation7 + $0xf0] sm:$0xff]  ;;  %v5104_v56 = vsel %vm4816_vm10, %v5008_v20, %v5043_v22  ;;  %v7087_v7 = vpop.eup %7086  ;;  %7094 = vrsqrt.f32 %v11628_v27  ;;  %v4536_v57 = vmul.f32 1.442695, %v11634_v41  ;;  %vm4346_vm3 = vcmp.eq.f32.partialorder %v11560_v2, inf }
 0x3f2   :  { %13384 = vst [vmem:[#allocation19_spill] sm:$0xff] %v11638_v25  ;;  %v5229_v24 = vmul.f32 %v11638_v25, %v11324_v31  ;;  %v5136_v40 = vmul.f32 %v5104_v56, %v11154_v48  ;;  %v4785_v38 = vmul.f32 0.5, %v4753_v3  ;;  %7096 = vrcp.f32 %v4850_v49  ;;  %v11656_v48 = vld [vmem:[#allocation7 + $0xf8] sm:$0xff] }
 0x3f3   :  { %5292 = vadd.xlane.f32.xlu0 %v11401_v46  ;;  %v4689_v46 = vadd.f32 %v7085_v36, %v7083_v0  ;;  %v4595_v52 = vsub.f32 0.0, %v11634_v41  ;;  %v4349_v9 = vand.u32 2147483648, %v11560_v2  ;;  %v5009_v50 = vadd.f32 %v4977_v33, %v4913_v32  ;;  %13385 = vst [vmem:[#allocation58_spill] sm:$0xff] %v11656_v48  ;;  %v11689_v33 = vpop.xlane.xlu1 %4256 }
 0x3f4   :  { %v11653_v51 = vsel %vm4173_vm0, %v4720_v6, %v5136_v40  ;;  %v5045_v13 = vmul.f32 %v7087_v7, %v4785_v38  ;;  %v4882_v19 = vmul.f32 0.16666667, %v11500_v4  ;;  %vm4819_vm4 = vcmp.lt.f32.partialorder %v11634_v41, 0.1  ;;  %v7089_v8 = vpop.eup %7088 }
 0x3f5   :  { %5294 = vadd.xlane.f32.xlu1 %v11410_v59  ;;  %v5230_v59 = vmul.f32 %v11656_v48, %v11324_v31  ;;  %5972 = vst [vmem:[#allocation8 + $0x10] sm:$0xff] %v11653_v51  ;;  %v4632_v14 = vmul.f32 1.442695, %v4595_v52  ;;  %v4946_v60 = vmul.f32 %v11500_v4, %v11500_v4  ;;  %7098 = vpow2.f32 %v4536_v57 }
 0x3f6   :  { %v5105_v0 = vsel %vm4817_vm12, %v5009_v50, %v5045_v13  ;;  %v7091_v31 = vpop.eup %7090  ;;  %v4721_v36 = vmul.f32 0.5, %v4689_v46  ;;  %vm4348_vm5 = vcmp.eq.f32.partialorder %v11560_v2, 0.0  ;;  %v11674_v21 = vadd.f32 %v11339_v55, %v5228_v12  ;;  %v11691_v12 = vld [vmem:[#allocation5 + $0x4] ss:$0 sm:$0xff] }
 0x3f7   :  { %5296 = vadd.xlane.f32.xlu0 %v11413_v63  ;;  %v4347_v63 = vsel %vm4346_vm3, %v11560_v2, %v4345_v11  ;;  %v5137_v20 = vmul.f32 %v5105_v0, %v11160_v42  ;;  %7100 = vpow2.f32 %v4632_v14  ;;  %v11677_v4 = vadd.f32 %v11339_v55, %v5229_v24  ;;  %v11716_v14 = vpop.xlane.xlu0 %4258 }
 0x3f8   :  { %v7093_v22 = vpop.eup %7092  ;;  %v4851_v32 = vsel %vm4819_vm4, 1.0, %v11634_v41  ;;  %v11682_v3 = vsel %vm4348_vm5, %v4349_v9, %v4347_v63  ;;  %v4352_v42 = vmul.f32 %v7089_v8, %v11586_v39  ;;  %v4914_v24 = vadd.f32 1.0, %v4882_v19 }
 0x3f9   :  { %5298 = vadd.xlane.f32.xlu1 %v11416_v61  ;;  %v11687_v61 = vadd.f32 %v11339_v55, %v5230_v59  ;;  %v11695_v49 = vsel %vm4173_vm0, %v4721_v36, %v5137_v20  ;;  %v4754_v11 = vsub.f32 %v7091_v31, %v7093_v22  ;;  %v4978_v6 = vmul.f32 0.008333334, %v4946_v60 }
 0x3fa   :  { %5973 = vst [vmem:[#allocation8 + $0x18] sm:$0xff] %v11695_v49  ;;  %v4596_v56 = vsub.f32 0.0, %v11682_v3  ;;  %vm4353_vm6 = vcmp.eq.f32.partialorder %v11586_v39, inf  ;;  %v4356_v55 = vand.u32 2147483648, %v11586_v39  ;;  %v4947_v7 = vmul.f32 %v11507_v43, %v11507_v43 }
 0x3fb   :  { %5300 = vadd.xlane.f32.xlu0 %v11423_v47  ;;  %v4883_v47 = vmul.f32 0.16666667, %v11507_v43  ;;  %7102 = vrcp.f32 %v4851_v32  ;;  %v7095_v40 = vpop.eup %7094  ;;  %v5329_v38 = vmul.f32 %v11691_v12, %v11590_v54  ;;  %v4786_v57 = vmul.f32 0.5, %v4754_v11 }
 0x3fc   :  { %7104 = vrsqrt.f32 %v11689_v33  ;;  %v4538_v46 = vmul.f32 1.442695, %v11682_v3  ;;  %v7097_v52 = vpop.eup %7096  ;;  %v4634_v9 = vmul.f32 1.442695, %v4596_v56  ;;  %vm4820_vm7 = vcmp.lt.f32.partialorder %v11682_v3, 0.1 }
 0x3fd   :  { %5302 = vadd.xlane.f32.xlu1 %v11426_v10  ;;  %v4690_v10 = vadd.f32 %v7093_v22, %v7091_v31  ;;  %v4354_v50 = vsel %vm4353_vm6, %v11586_v39, %v4352_v42  ;;  %v5330_v43 = vmul.f32 %v11691_v12, %v11607_v18  ;;  %v5010_v13 = vadd.f32 %v4978_v6, %v4914_v24 }
 0x3fe   :  { %v5047_v59 = vmul.f32 %v7097_v52, %v4786_v57  ;;  %v4915_v19 = vadd.f32 1.0, %v4883_v47  ;;  %v4359_v54 = vmul.f32 %v7095_v40, %v11628_v27  ;;  %v4979_v8 = vmul.f32 0.008333334, %v4947_v7 }
 0x3ff   :  { %5304 = vadd.xlane.f32.xlu0 %v11432_v58  ;;  %7106 = vpow2.f32 %v4634_v9  ;;  %vm4355_vm8 = vcmp.eq.f32.partialorder %v11586_v39, 0.0  ;;  %v7099_v58 = vpop.eup %7098  ;;  %v4852_v18 = vsel %vm4820_vm7, 1.0, %v11682_v3  ;;  %v4722_v63 = vmul.f32 0.5, %v4690_v10 }
 0x400   :  { %v5106_v0 = vsel %vm4818_vm1, %v5010_v13, %v5047_v59  ;;  %7108 = vpow2.f32 %v4538_v46  ;;  %v11724_v60 = vsel %vm4355_vm8, %v4356_v55, %v4354_v50  ;;  %vm4360_vm9 = vcmp.eq.f32.partialorder %v11628_v27, inf }
 0x401   :  { %5306 = vadd.xlane.f32.xlu1 %v11435_v62  ;;  %v7101_v62 = vpop.eup %7100  ;;  %v5138_v31 = vmul.f32 %v5106_v0, %v11168_v34  ;;  %v4540_v36 = vmul.f32 1.442695, %v11724_v60  ;;  %v4597_v20 = vsub.f32 0.0, %v11724_v60  ;;  %v4363_v26 = vand.u32 2147483648, %v11628_v27  ;;  %v11739_v34 = vld [vmem:[#allocation5 + $0x6] ss:$0 sm:$0xff] }
 0x402   :  { %7110 = vrsqrt.f32 %v11716_v14  ;;  %v4755_v22 = vsub.f32 %v7099_v58, %v7101_v62  ;;  %vm4821_vm10 = vcmp.lt.f32.partialorder %v11724_v60, 0.1  ;;  %v5011_v11 = vadd.f32 %v4979_v8, %v4915_v19 }
 0x403   :  { %5308 = vadd.xlane.f32.xlu0 %v11442_v17  ;;  %v11736_v32 = vsel %vm4173_vm0, %v4722_v63, %v5138_v31  ;;  %7112 = vrcp.f32 %v4852_v18  ;;  %v4636_v17 = vmul.f32 1.442695, %v4597_v20  ;;  %v4884_v24 = vmul.f32 0.16666667, %v11560_v2 }
 0x404   :  { %5974 = vst [vmem:[#allocation8 + $0x20] sm:$0xff] %v11736_v32  ;;  %v4787_v42 = vmul.f32 0.5, %v4755_v22  ;;  %7114 = vpow2.f32 %v4540_v36  ;;  %v4361_v47 = vsel %vm4360_vm9, %v11628_v27, %v4359_v54  ;;  %vm4362_vm11 = vcmp.eq.f32.partialorder %v11628_v27, 0.0 }
 0x405   :  { %5310 = vadd.xlane.f32.xlu1 %v11452_v35  ;;  %v7103_v6 = vpop.eup %7102  ;;  %v4691_v35 = vadd.f32 %v7101_v62, %v7099_v58  ;;  %7116 = vpow2.f32 %v4636_v17  ;;  %v4948_v7 = vmul.f32 %v11560_v2, %v11560_v2  ;;  %v4853_v40 = vsel %vm4821_vm10, 1.0, %v11724_v60 }
 0x406   :  { %v7105_v56 = vpop.eup %7104  ;;  %v5049_v55 = vmul.f32 %v7103_v6, %v4787_v42  ;;  %v11753_v57 = vsel %vm4362_vm11, %v4363_v26, %v4361_v47  ;;  %vm4367_vm12 = vcmp.eq.f32.partialorder %v11689_v33, inf  ;;  %v11760_v46 = vadd.f32 %v11739_v34, %v5329_v38  ;;  %v11802_v6 = vpop.xlane.xlu0 %4262 }
 0x407   :  { %5312 = vadd.xlane.f32.xlu0 %v11459_v45  ;;  %v11757_v45 = vpop.xlane.xlu1 %4260  ;;  %v11763_v52 = vadd.f32 %v11739_v34, %v5330_v43  ;;  %v4885_v2 = vmul.f32 0.16666667, %v11586_v39  ;;  %v4949_v9 = vmul.f32 %v11586_v39, %v11586_v39  ;;  %v4598_v50 = vsub.f32 0.0, %v11753_v57 }
 0x408   :  { %v5107_v10 = vsel %vm4819_vm4, %v5011_v11, %v5049_v55  ;;  %v4366_v38 = vmul.f32 %v7105_v56, %v11689_v33  ;;  %v4723_v59 = vmul.f32 0.5, %v4691_v35  ;;  %7118 = vrcp.f32 %v4853_v40 }
 0x409   :  { %5314 = vadd.xlane.f32.xlu1 %v11465_v37  ;;  %v4542_v37 = vmul.f32 1.442695, %v11753_v57  ;;  %v7107_v13 = vpop.eup %7106  ;;  %v5139_v43 = vmul.f32 %v5107_v10, %v11174_v23  ;;  %7120 = vrsqrt.f32 %v11757_v45  ;;  %v5331_v41 = vmul.f32 %v11691_v12, %v11653_v51 }
 0x40a   :  { %v7109_v19 = vpop.eup %7108  ;;  %v4916_v39 = vadd.f32 1.0, %v4884_v24  ;;  %v4980_v54 = vmul.f32 0.008333334, %v4948_v7  ;;  %v4638_v58 = vmul.f32 1.442695, %v4598_v50  ;;  %v4370_v0 = vand.u32 2147483648, %v11689_v33 }
 0x40b   :  { %5316 = vadd.xlane.f32.xlu0 %v11549_v28  ;;  %v11781_v8 = vsel %vm4173_vm0, %v4723_v59, %v5139_v43  ;;  %v4756_v28 = vsub.f32 %v7109_v19, %v7107_v13  ;;  %vm4822_vm13 = vcmp.lt.f32.partialorder %v11753_v57, 0.1  ;;  %v4917_v18 = vadd.f32 1.0, %v4885_v2 }
 0x40c   :  { %v7111_v23 = vpop.eup %7110  ;;  %5975 = vst [vmem:[#allocation8 + $0x28] sm:$0xff] %v11781_v8  ;;  %v4981_v62 = vmul.f32 0.008333334, %v4949_v9  ;;  %7122 = vpow2.f32 %v4542_v37  ;;  %v4368_v63 = vsel %vm4367_vm12, %v11689_v33, %v4366_v38  ;;  %vm4369_vm14 = vcmp.eq.f32.partialorder %v11689_v33, 0.0 }
 0x40d   :  { %5318 = vadd.xlane.f32.xlu1 %v11597_v15  ;;  %v7113_v51 = vpop.eup %7112  ;;  %v4788_v15 = vmul.f32 0.5, %v4756_v28  ;;  %7124 = vpow2.f32 %v4638_v58  ;;  %v5364_v36 = vadd.f32 %v11739_v34, %v5331_v41  ;;  %v4692_v20 = vadd.f32 %v7109_v19, %v7107_v13 }
 0x40e   :  { %v7115_v31 = vpop.eup %7114  ;;  %v4854_v26 = vsel %vm4822_vm13, 1.0, %v11753_v57  ;;  %v11795_v22 = vsel %vm4369_vm14, %v4370_v0, %v4368_v63  ;;  %v5012_v42 = vadd.f32 %v4980_v54, %v4916_v39  ;;  %vm4374_vm15 = vcmp.eq.f32.partialorder %v11716_v14, inf }
 0x40f   :  { %5320 = vadd.xlane.f32.xlu0 %v11621_v30  ;;  %v7117_v17 = vpop.eup %7116  ;;  %v5332_v30 = vmul.f32 %v11691_v12, %v11695_v49  ;;  %v5051_v11 = vmul.f32 %v7113_v51, %v4788_v15  ;;  %v4599_v24 = vsub.f32 0.0, %v11795_v22  ;;  %v5333_v35 = vmul.f32 %v11691_v12, %v11736_v32  ;;  %v11814_v32 = vpop.xlane.xlu1 %4264 }
 0x410   :  { %v4757_v47 = vsub.f32 %v7115_v31, %v7117_v17  ;;  %v5013_v56 = vadd.f32 %v4981_v62, %v4917_v18  ;;  %7126 = vrcp.f32 %v4854_v26  ;;  %v4544_v49 = vmul.f32 1.442695, %v11795_v22  ;;  %v11847_v15 = vpop.xlane.xlu0 %4266 }
 0x411   :  { %5322 = vadd.xlane.f32.xlu1 %v11674_v21  ;;  %v5108_v21 = vsel %vm4820_vm7, %v5012_v42, %v5051_v11  ;;  %v4640_v55 = vmul.f32 1.442695, %v4599_v24  ;;  %v4373_v7 = vmul.f32 %v7111_v23, %v11716_v14  ;;  %v4724_v40 = vmul.f32 0.5, %v4692_v20 }
 0x412   :  { %v5140_v2 = vmul.f32 %v5108_v21, %v11182_v29  ;;  %v4789_v10 = vmul.f32 0.5, %v4757_v47  ;;  %v7119_v9 = vpop.eup %7118  ;;  %7128 = vrsqrt.f32 %v11802_v6  ;;  %v4886_v3 = vmul.f32 0.16666667, %v11628_v27 }
 0x413   :  { %5324 = vadd.xlane.f32.xlu0 %v11677_v4  ;;  %v4693_v4 = vadd.f32 %v7117_v17, %v7115_v31  ;;  %vm4823_vm1 = vcmp.lt.f32.partialorder %v11795_v22, 0.1  ;;  %v7121_v37 = vpop.eup %7120  ;;  %v4950_v29 = vmul.f32 %v11628_v27, %v11628_v27  ;;  %7130 = vpow2.f32 %v4640_v55 }
 0x414   :  { %v5172_v50 = vsel %vm4173_vm0, %v4724_v40, %v5140_v2  ;;  %v5053_v13 = vmul.f32 %v7119_v9, %v4789_v10  ;;  %v5365_v38 = vadd.f32 %v11739_v34, %v5332_v30  ;;  %v5366_v59 = vadd.f32 %v11739_v34, %v5333_v35 }
 0x415   :  { %5326 = vadd.xlane.f32.xlu1 %v11687_v61  ;;  %v4377_v61 = vand.u32 2147483648, %v11716_v14  ;;  %5976 = vst [vmem:[#allocation8 + $0x30] sm:$0xff] %v5172_v50  ;;  %7132 = vpow2.f32 %v4544_v49  ;;  %v4855_v27 = vsel %vm4823_vm1, 1.0, %v11795_v22  ;;  %v4380_v39 = vmul.f32 %v7121_v37, %v11757_v45 }
 0x416   :  { %v7123_v43 = vpop.eup %7122  ;;  %7134 = vrsqrt.f32 %v11814_v32  ;;  %v5109_v19 = vsel %vm4821_vm10, %v5013_v56, %v5053_v13  ;;  %v5334_v54 = vmul.f32 %v11691_v12, %v11781_v8  ;;  %v4725_v28 = vmul.f32 0.5, %v4693_v4 }
 0x417   :  { %5394 = vadd.xlane.f32.xlu0 %v11760_v46  ;;  %v4375_v46 = vsel %vm4374_vm15, %v11716_v14, %v4373_v7  ;;  %v7125_v41 = vpop.eup %7124  ;;  %v5141_v60 = vmul.f32 %v5109_v19, %v11188_v1  ;;  %v4918_v23 = vadd.f32 1.0, %v4886_v3  ;;  %v4982_v0 = vmul.f32 0.008333334, %v4950_v29 }
 0x418   :  { %v4758_v58 = vsub.f32 %v7123_v43, %v7125_v41  ;;  %vm4376_vm2 = vcmp.eq.f32.partialorder %v11716_v14, 0.0  ;;  %v5335_v18 = vmul.f32 %v11691_v12, %v5172_v50  ;;  %7136 = vrcp.f32 %v4855_v27 }
 0x419   :  { %5396 = vadd.xlane.f32.xlu1 %v11763_v52  ;;  %v5173_v62 = vsel %vm4173_vm0, %v4725_v28, %v5141_v60  ;;  %v11844_v51 = vsel %vm4376_vm2, %v4377_v61, %v4375_v46  ;;  %vm4381_vm3 = vcmp.eq.f32.partialorder %v11757_v45, inf  ;;  %v4694_v52 = vadd.f32 %v7125_v41, %v7123_v43  ;;  %v11886_v60 = vpop.xlane.xlu1 %4268 }
 0x41a   :  { %5977 = vst [vmem:[#allocation8 + $0x38] sm:$0xff] %v5173_v62  ;;  %v4790_v8 = vmul.f32 0.5, %v4758_v58  ;;  %v7127_v1 = vpop.eup %7126  ;;  %v5367_v63 = vadd.f32 %v11739_v34, %v5334_v54  ;;  %v5336_v31 = vmul.f32 %v11691_v12, %v5173_v62  ;;  %v4600_v20 = vsub.f32 0.0, %v11844_v51 }
 0x41b   :  { %5398 = vadd.xlane.f32.xlu0 %v5364_v36  ;;  %v4887_v36 = vmul.f32 0.16666667, %v11689_v33  ;;  %v5014_v26 = vadd.f32 %v4982_v0, %v4918_v23  ;;  %v4951_v30 = vmul.f32 %v11689_v33, %v11689_v33  ;;  %v4382_v42 = vsel %vm4381_vm3, %v11757_v45, %v4380_v39 }
 0x41c   :  { %v5055_v17 = vmul.f32 %v7127_v1, %v4790_v8  ;;  %v7129_v11 = vpop.eup %7128  ;;  %v4384_v24 = vand.u32 2147483648, %v11757_v45  ;;  %v5368_v35 = vadd.f32 %v11739_v34, %v5335_v18  ;;  %v4546_v47 = vmul.f32 1.442695, %v11844_v51  ;;  %v13386_v18 = vld [vmem:[#allocation15_spill] sm:$0xff] }
 0x41d   :  { %5400 = vadd.xlane.f32.xlu1 %v5365_v38  ;;  %v4642_v56 = vmul.f32 1.442695, %v4600_v20  ;;  %v7131_v21 = vpop.eup %7130  ;;  %7138 = vrsqrt.f32 %v11847_v15  ;;  %v4726_v49 = vmul.f32 0.5, %v4694_v52  ;;  %vm4383_vm4 = vcmp.eq.f32.partialorder %v11757_v45, 0.0 }
 0x41e   :  { %v5110_v55 = vsel %vm4822_vm13, %v5014_v26, %v5055_v17  ;;  %v5369_v7 = vadd.f32 %v11739_v34, %v5336_v31  ;;  %vm4824_vm5 = vcmp.lt.f32.partialorder %v11844_v51, 0.1  ;;  %v11866_v2 = vsel %vm4383_vm4, %v4384_v24, %v4382_v42 }
 0x41f   :  { %5402 = vadd.xlane.f32.xlu0 %v5366_v59  ;;  %v7133_v33 = vpop.eup %7132  ;;  %v5142_v40 = vmul.f32 %v5110_v55, %v11196_v44  ;;  %v4919_v4 = vadd.f32 1.0, %v4887_v36  ;;  %v4983_v3 = vmul.f32 0.008333334, %v4951_v30  ;;  %7140 = vpow2.f32 %v4642_v56 }
 0x420   :  { %v7135_v10 = vpop.eup %7134  ;;  %v4759_v9 = vsub.f32 %v7133_v33, %v7131_v21  ;;  %v4387_v57 = vmul.f32 %v7129_v11, %v11802_v6  ;;  %vm4388_vm6 = vcmp.eq.f32.partialorder %v11802_v6, inf  ;;  %7142 = vpow2.f32 %v4546_v47  ;;  %v11913_v47 = vpop.xlane.xlu0 %4270 }
 0x421   :  { %5404 = vadd.xlane.f32.xlu1 %v5367_v63  ;;  %v5174_v37 = vsel %vm4173_vm0, %v4726_v49, %v5142_v40  ;;  %v4856_v13 = vsel %vm4824_vm5, 1.0, %v11844_v51  ;;  %v4548_v29 = vmul.f32 1.442695, %v11866_v2  ;;  %v4391_v38 = vand.u32 2147483648, %v11802_v6 }
 0x422   :  { %v5337_v44 = vmul.f32 %v11691_v12, %v5174_v37  ;;  %5978 = vst [vmem:[#allocation8 + $0x40] sm:$0xff] %v5174_v37  ;;  %v4791_v50 = vmul.f32 0.5, %v4759_v9  ;;  %v7137_v61 = vpop.eup %7136  ;;  %v4394_v59 = vmul.f32 %v7135_v10, %v11814_v32  ;;  %v4695_v43 = vadd.f32 %v7133_v33, %v7131_v21 }
 0x423   :  { %5406 = vadd.xlane.f32.xlu0 %v5368_v35  ;;  %v4601_v19 = vsub.f32 0.0, %v11866_v2  ;;  %v5015_v46 = vadd.f32 %v4983_v3, %v4919_v4  ;;  %v4888_v39 = vmul.f32 0.16666667, %v11716_v14  ;;  %7144 = vrcp.f32 %v4856_v13 }
 0x424   :  { %v5370_v27 = vadd.f32 %v11739_v34, %v5337_v44  ;;  %v5057_v41 = vmul.f32 %v7137_v61, %v4791_v50  ;;  %vm4825_vm7 = vcmp.lt.f32.partialorder %v11866_v2, 0.1  ;;  %v4389_v28 = vsel %vm4388_vm6, %v11802_v6, %v4387_v57 }
 0x425   :  { %5408 = vadd.xlane.f32.xlu1 %v5369_v7  ;;  %v4644_v54 = vmul.f32 1.442695, %v4601_v19  ;;  %v4952_v23 = vmul.f32 %v11716_v14, %v11716_v14  ;;  %7146 = vpow2.f32 %v4548_v29  ;;  %vm4390_vm8 = vcmp.eq.f32.partialorder %v11802_v6, 0.0 }
 0x426   :  { %v5111_v58 = vsel %vm4823_vm1, %v5015_v46, %v5057_v41  ;;  %v4727_v0 = vmul.f32 0.5, %v4695_v43  ;;  %v11894_v52 = vsel %vm4390_vm8, %v4391_v38, %v4389_v28  ;;  %vm4395_vm9 = vcmp.eq.f32.partialorder %v11814_v32, inf  ;;  %v13387_v46 = vld [vmem:[#allocation51_spill] sm:$0xff] }
 0x427   :  { %5410 = vadd.xlane.f32.xlu0 %v5370_v27  ;;  %v5143_v62 = vmul.f32 %v5111_v58, %v13386_v18  ;;  %7148 = vpow2.f32 %v4644_v54  ;;  %v7139_v8 = vpop.eup %7138  ;;  %v4398_v1 = vand.u32 2147483648, %v11814_v32  ;;  %v4857_v22 = vsel %vm4825_vm7, 1.0, %v11866_v2 }
 0x428   :  { %v4602_v14 = vsub.f32 0.0, %v11894_v52  ;;  %7150 = vrsqrt.f32 %v11886_v60  ;;  %v4920_v31 = vadd.f32 1.0, %v4888_v39  ;;  %v4550_v36 = vmul.f32 1.442695, %v11894_v52 }
 0x429   :  { %v5175_v63 = vsel %vm4173_vm0, %v4727_v0, %v5143_v62  ;;  %v7141_v20 = vpop.eup %7140  ;;  %v4984_v17 = vmul.f32 0.008333334, %v4952_v23  ;;  %v4889_v30 = vmul.f32 0.16666667, %v11757_v45  ;;  %v4401_v24 = vmul.f32 %v7139_v8, %v11847_v15 }
 0x42a   :  { %v5338_v26 = vmul.f32 %v11691_v12, %v5175_v63  ;;  %5979 = vst [vmem:[#allocation8 + $0x48] sm:$0xff] %v5175_v63  ;;  %v4646_v42 = vmul.f32 1.442695, %v4602_v14  ;;  %v7143_v11 = vpop.eup %7142  ;;  %7152 = vrcp.f32 %v4857_v22  ;;  %vm4826_vm10 = vcmp.lt.f32.partialorder %v11894_v52, 0.1  ;;  %v11950_v63 = vpop.xlane.xlu1 %4272 }
 0x42b   :  { %v4396_v35 = vsel %vm4395_vm9, %v11814_v32, %v4394_v59  ;;  %v4760_v21 = vsub.f32 %v7143_v11, %v7141_v20  ;;  %v4953_v49 = vmul.f32 %v11757_v45, %v11757_v45  ;;  %vm4402_vm11 = vcmp.eq.f32.partialorder %v11847_v15, inf }
 0x42c   :  { %v5371_v56 = vadd.f32 %v11739_v34, %v5338_v26  ;;  %7154 = vpow2.f32 %v4646_v42  ;;  %v4405_v55 = vand.u32 2147483648, %v11847_v15  ;;  %vm4397_vm12 = vcmp.eq.f32.partialorder %v11814_v32, 0.0 }
 0x42d   :  { %7156 = vpow2.f32 %v4550_v36  ;;  %v4792_v33 = vmul.f32 0.5, %v4760_v21  ;;  %v5016_v7 = vadd.f32 %v4984_v17, %v4920_v31  ;;  %v4858_v40 = vsel %vm4826_vm10, 1.0, %v11894_v52  ;;  %v7145_v9 = vpop.eup %7144 }
 0x42e   :  { %5412 = vadd.xlane.f32.xlu1 %v5371_v56  ;;  %v11924_v10 = vsel %vm4397_vm12, %v4398_v1, %v4396_v35  ;;  %7158 = vrsqrt.f32 %v11913_v47  ;;  %v4696_v45 = vadd.f32 %v7143_v11, %v7141_v20  ;;  %v4921_v44 = vadd.f32 1.0, %v4889_v30 }
 0x42f   :  { %v4552_v4 = vmul.f32 1.442695, %v11924_v10  ;;  %v4603_v3 = vsub.f32 0.0, %v11924_v10  ;;  %v7147_v57 = vpop.eup %7146  ;;  %v5059_v37 = vmul.f32 %v7145_v9, %v4792_v33  ;;  %v4985_v50 = vmul.f32 0.008333334, %v4953_v49 }
 0x430   :  { %v4403_v13 = vsel %vm4402_vm11, %v11847_v15, %v4401_v24  ;;  %v4890_v61 = vmul.f32 0.16666667, %v11802_v6  ;;  %7160 = vrcp.f32 %v4858_v40  ;;  %vm4827_vm13 = vcmp.lt.f32.partialorder %v11924_v10, 0.1  ;;  %v13388_v24 = vld [vmem:[#allocation25_spill] sm:$0xff] }
 0x431   :  { %v7149_v29 = vpop.eup %7148  ;;  %v4648_v38 = vmul.f32 1.442695, %v4603_v3  ;;  %v5112_v59 = vsel %vm4824_vm5, %v5016_v7, %v5059_v37  ;;  %7162 = vpow2.f32 %v4552_v4  ;;  %vm4404_vm14 = vcmp.eq.f32.partialorder %v11847_v15, 0.0 }
 0x432   :  { %v4761_v43 = vsub.f32 %v7147_v57, %v7149_v29  ;;  %v7151_v19 = vpop.eup %7150  ;;  %v4728_v27 = vmul.f32 0.5, %v4696_v45  ;;  %v5144_v41 = vmul.f32 %v5112_v59, %v13387_v46  ;;  %v11938_v39 = vsel %vm4404_vm14, %v4405_v55, %v4403_v13 }
 0x433   :  { %7164 = vpow2.f32 %v4648_v38  ;;  %v4954_v28 = vmul.f32 %v11802_v6, %v11802_v6  ;;  %v4859_v51 = vsel %vm4827_vm13, 1.0, %v11924_v10  ;;  %v4697_v0 = vadd.f32 %v7149_v29, %v7147_v57  ;;  %v11967_v57 = vpop.xlane.xlu0 %4274  ;;  %v12000_v10 = vpop.xlane.xlu1 %4276 }
 0x434   :  { %v4793_v54 = vmul.f32 0.5, %v4761_v43  ;;  %v7153_v58 = vpop.eup %7152  ;;  %v5176_v23 = vsel %vm4173_vm0, %v4728_v27, %v5144_v41  ;;  %v5017_v8 = vadd.f32 %v4985_v50, %v4921_v44  ;;  %v4604_v22 = vsub.f32 0.0, %v11938_v39  ;;  %v13389_v43 = vld [vmem:[#allocation29_spill] sm:$0xff] }
 0x435   :  { %v5339_v62 = vmul.f32 %v11691_v12, %v5176_v23  ;;  %5980 = vst [vmem:[#allocation8 + $0x50] sm:$0xff] %v5176_v23  ;;  %v4408_v6 = vmul.f32 %v7151_v19, %v11886_v60  ;;  %v4922_v31 = vadd.f32 1.0, %v4890_v61  ;;  %7166 = vrcp.f32 %v4859_v51 }
 0x436   :  { %v7155_v18 = vpop.eup %7154  ;;  %v5061_v1 = vmul.f32 %v7153_v58, %v4793_v54  ;;  %v4554_v36 = vmul.f32 1.442695, %v11938_v39  ;;  %v4986_v30 = vmul.f32 0.008333334, %v4954_v28  ;;  %v4729_v11 = vmul.f32 0.5, %v4697_v0 }
 0x437   :  { %v7157_v14 = vpop.eup %7156  ;;  %v5372_v20 = vadd.f32 %v11739_v34, %v5339_v62  ;;  %v4891_v56 = vmul.f32 0.16666667, %v11814_v32  ;;  %v4955_v21 = vmul.f32 %v11814_v32, %v11814_v32  ;;  %vm4409_vm15 = vcmp.eq.f32.partialorder %v11886_v60, inf }
 0x438   :  { %v5113_v26 = vsel %vm4825_vm7, %v5017_v8, %v5061_v1  ;;  %v4762_v17 = vsub.f32 %v7157_v14, %v7155_v18  ;;  %v7159_v42 = vpop.eup %7158  ;;  %7168 = vrsqrt.f32 %v11950_v63  ;;  %v4650_v55 = vmul.f32 1.442695, %v4604_v22 }
 0x439   :  { %v5145_v35 = vmul.f32 %v5113_v26, %v13388_v24  ;;  %5414 = vadd.xlane.f32.xlu0 %v5372_v20  ;;  %v4698_v7 = vadd.f32 %v7157_v14, %v7155_v18  ;;  %7170 = vpow2.f32 %v4554_v36  ;;  %vm4828_vm1 = vcmp.lt.f32.partialorder %v11938_v39, 0.1  ;;  %v13390_v36 = vld [vmem:[#allocation52_spill] sm:$0xff] }
 0x43a   :  { %v4794_v49 = vmul.f32 0.5, %v4762_v17  ;;  %v7161_v2 = vpop.eup %7160  ;;  %v5018_v32 = vadd.f32 %v4986_v30, %v4922_v31  ;;  %7172 = vpow2.f32 %v4650_v55  ;;  %v4412_v3 = vand.u32 2147483648, %v11886_v60  ;;  %v13391_v55 = vld [vmem:[#allocation70_spill] sm:$0xff] }
 0x43b   :  { %v5177_v33 = vsel %vm4173_vm0, %v4729_v11, %v5145_v35  ;;  %v7163_v40 = vpop.eup %7162  ;;  %v4923_v37 = vadd.f32 1.0, %v4891_v56  ;;  %v4987_v44 = vmul.f32 0.008333334, %v4955_v21  ;;  %v4410_v50 = vsel %vm4409_vm15, %v11886_v60, %v4408_v6 }
 0x43c   :  { %v5340_v9 = vmul.f32 %v11691_v12, %v5177_v33  ;;  %5981 = vst [vmem:[#allocation8 + $0x58] sm:$0xff] %v5177_v33  ;;  %v5063_v45 = vmul.f32 %v7161_v2, %v4794_v49  ;;  %v4860_v38 = vsel %vm4828_vm1, 1.0, %v11938_v39  ;;  %v4730_v59 = vmul.f32 0.5, %v4698_v7 }
 0x43d   :  { %v7165_v4 = vpop.eup %7164  ;;  %vm4411_vm2 = vcmp.eq.f32.partialorder %v11886_v60, 0.0  ;;  %v4415_v27 = vmul.f32 %v7159_v42, %v11913_v47  ;;  %7174 = vrsqrt.f32 %v11967_v57  ;;  %v4892_v51 = vmul.f32 0.16666667, %v11847_v15 }
 0x43e   :  { %v5373_v13 = vadd.f32 %v11739_v34, %v5340_v9  ;;  %v5114_v29 = vsel %vm4826_vm10, %v5018_v32, %v5063_v45  ;;  %v4763_v61 = vsub.f32 %v7163_v40, %v7165_v4  ;;  %v11982_v41 = vsel %vm4411_vm2, %v4412_v3, %v4410_v50 }
 0x43f   :  { %v5146_v19 = vmul.f32 %v5114_v29, %v13389_v43  ;;  %v7167_v52 = vpop.eup %7166  ;;  %v4699_v28 = vadd.f32 %v7165_v4, %v7163_v40  ;;  %7176 = vrcp.f32 %v4860_v38  ;;  %v5019_v23 = vadd.f32 %v4987_v44, %v4923_v37  ;;  %v12025_v43 = vpop.xlane.xlu0 %4278 }
 0x440   :  { %5416 = vadd.xlane.f32.xlu1 %v5373_v13  ;;  %v4795_v46 = vmul.f32 0.5, %v4763_v61  ;;  %v4556_v18 = vmul.f32 1.442695, %v11982_v41  ;;  %v4605_v62 = vsub.f32 0.0, %v11982_v41  ;;  %vm4416_vm3 = vcmp.eq.f32.partialorder %v11913_v47, inf }
 0x441   :  { %v5178_v54 = vsel %vm4173_vm0, %v4730_v59, %v5146_v19  ;;  %v4956_v14 = vmul.f32 %v11847_v15, %v11847_v15  ;;  %v4731_v31 = vmul.f32 0.5, %v4699_v28  ;;  %vm4829_vm4 = vcmp.lt.f32.partialorder %v11982_v41, 0.1 }
 0x442   :  { %v5341_v58 = vmul.f32 %v11691_v12, %v5178_v54  ;;  %5982 = vst [vmem:[#allocation8 + $0x60] sm:$0xff] %v5178_v54  ;;  %v5065_v0 = vmul.f32 %v7167_v52, %v4795_v46  ;;  %v7169_v8 = vpop.eup %7168  ;;  %v4652_v26 = vmul.f32 1.442695, %v4605_v62  ;;  %v4419_v30 = vand.u32 2147483648, %v11913_v47  ;;  %v13392_v46 = vld [vmem:[#allocation26_spill] sm:$0xff] }
 0x443   :  { %v7171_v6 = vpop.eup %7170  ;;  %v4924_v42 = vadd.f32 1.0, %v4892_v51  ;;  %7178 = vpow2.f32 %v4556_v18  ;;  %v4417_v11 = vsel %vm4416_vm3, %v11913_v47, %v4415_v27  ;;  %vm4418_vm5 = vcmp.eq.f32.partialorder %v11913_v47, 0.0 }
 0x444   :  { %v5374_v1 = vadd.f32 %v11739_v34, %v5341_v58  ;;  %v5115_v22 = vsel %vm4827_vm13, %v5019_v23, %v5065_v0  ;;  %v7173_v17 = vpop.eup %7172  ;;  %7180 = vpow2.f32 %v4652_v26  ;;  %v4988_v56 = vmul.f32 0.008333334, %v4956_v14 }
 0x445   :  { %v5147_v20 = vmul.f32 %v5115_v22, %v13390_v36  ;;  %v4764_v24 = vsub.f32 %v7171_v6, %v7173_v17  ;;  %v4861_v21 = vsel %vm4829_vm4, 1.0, %v11982_v41  ;;  %v12009_v49 = vsel %vm4418_vm5, %v4419_v30, %v4417_v11 }
 0x446   :  { %5418 = vadd.xlane.f32.xlu0 %v5374_v1  ;;  %v5458_v2 = vsub.f32 0.0, %v13391_v55  ;;  %v4422_v33 = vmul.f32 %v7169_v8, %v11950_v63  ;;  %7182 = vrsqrt.f32 %v12000_v10  ;;  %v4558_v32 = vmul.f32 1.442695, %v12009_v49 }
 0x447   :  { %v5179_v15 = vsel %vm4173_vm0, %v4731_v31, %v5147_v20  ;;  %v7175_v7 = vpop.eup %7174  ;;  %v4796_v9 = vmul.f32 0.5, %v4764_v24  ;;  %vm4423_vm6 = vcmp.eq.f32.partialorder %v11950_v63, inf  ;;  %v4700_v4 = vadd.f32 %v7173_v17, %v7171_v6 }
 0x448   :  { %v5342_v35 = vmul.f32 %v11691_v12, %v5179_v15  ;;  %5983 = vst [vmem:[#allocation8 + $0x68] sm:$0xff] %v5179_v15  ;;  %7184 = vrcp.f32 %v4861_v21  ;;  %v4606_v3 = vsub.f32 0.0, %v12009_v49  ;;  %v4426_v37 = vand.u32 2147483648, %v11950_v63 }
 0x449   :  { %v7177_v45 = vpop.eup %7176  ;;  %v5020_v44 = vadd.f32 %v4988_v56, %v4924_v42  ;;  %v4893_v13 = vmul.f32 0.16666667, %v11886_v60  ;;  %v4957_v29 = vmul.f32 %v11886_v60, %v11886_v60  ;;  %vm4830_vm7 = vcmp.lt.f32.partialorder %v12009_v49, 0.1 }
 0x44a   :  { %v5375_v40 = vadd.f32 %v11739_v34, %v5342_v35  ;;  %v5067_v50 = vmul.f32 %v7177_v45, %v4796_v9  ;;  %v4654_v61 = vmul.f32 1.442695, %v4606_v3  ;;  %v4424_v38 = vsel %vm4423_vm6, %v11950_v63, %v4422_v33  ;;  %v13393_v45 = vld [vmem:[#allocation54_spill] sm:$0xff] }
 0x44b   :  { %v4429_v59 = vmul.f32 %v7175_v7, %v11967_v57  ;;  %7186 = vpow2.f32 %v4558_v32  ;;  %vm4425_vm8 = vcmp.eq.f32.partialorder %v11950_v63, 0.0  ;;  %v4732_v27 = vmul.f32 0.5, %v4700_v4 }
 0x44c   :  { %5420 = vadd.xlane.f32.xlu1 %v5375_v40  ;;  %v5116_v19 = vsel %vm4828_vm1, %v5020_v44, %v5067_v50  ;;  %7188 = vpow2.f32 %v4654_v61  ;;  %v12031_v60 = vsel %vm4425_vm8, %v4426_v37, %v4424_v38  ;;  %vm4430_vm9 = vcmp.eq.f32.partialorder %v11967_v57, inf }
 0x44d   :  { %v5148_v52 = vmul.f32 %v5116_v19, %v13392_v46  ;;  %v7179_v54 = vpop.eup %7178  ;;  %v4862_v28 = vsel %vm4830_vm7, 1.0, %v12009_v49  ;;  %v4560_v51 = vmul.f32 1.442695, %v12031_v60  ;;  %v4607_v39 = vsub.f32 0.0, %v12031_v60 }
 0x44e   :  { %v7181_v58 = vpop.eup %7180  ;;  %7190 = vrsqrt.f32 %v12025_v43  ;;  %v4925_v0 = vadd.f32 1.0, %v4893_v13  ;;  %v4989_v18 = vmul.f32 0.008333334, %v4957_v29  ;;  %vm4831_vm10 = vcmp.lt.f32.partialorder %v12031_v60, 0.1  ;;  %v12066_v13 = vpop.xlane.xlu1 %4280 }
 0x44f   :  { %v5180_v23 = vsel %vm4173_vm0, %v4732_v27, %v5148_v52  ;;  %v4765_v8 = vsub.f32 %v7179_v54, %v7181_v58  ;;  %v4431_v1 = vsel %vm4430_vm9, %v11967_v57, %v4429_v59  ;;  %v4433_v22 = vand.u32 2147483648, %v11967_v57 }
 0x450   :  { %v5343_v62 = vmul.f32 %v11691_v12, %v5180_v23  ;;  %5984 = vst [vmem:[#allocation8 + $0x70] sm:$0xff] %v5180_v23  ;;  %v4894_v14 = vmul.f32 0.16666667, %v11913_v47  ;;  %7192 = vrcp.f32 %v4862_v28  ;;  %v4656_v6 = vmul.f32 1.442695, %v4607_v39  ;;  %v7183_v31 = vpop.eup %7182 }
 0x451   :  { %v4797_v20 = vmul.f32 0.5, %v4765_v8  ;;  %7194 = vpow2.f32 %v4560_v51  ;;  %vm4432_vm11 = vcmp.eq.f32.partialorder %v11967_v57, 0.0  ;;  %v4701_v17 = vadd.f32 %v7181_v58, %v7179_v54  ;;  %v12086_v58 = vpop.xlane.xlu0 %4282 }
 0x452   :  { %v5376_v36 = vadd.f32 %v11739_v34, %v5343_v62  ;;  %v7185_v26 = vpop.eup %7184  ;;  %7196 = vpow2.f32 %v4656_v6  ;;  %v4863_v30 = vsel %vm4831_vm10, 1.0, %v12031_v60  ;;  %v12052_v42 = vsel %vm4432_vm11, %v4433_v22, %v4431_v1 }
 0x453   :  { %v5490_v11 = vmul.f32 1.442695, %v5458_v2  ;;  %v5021_v15 = vadd.f32 %v4989_v18, %v4925_v0  ;;  %v5069_v24 = vmul.f32 %v7185_v26, %v4797_v20  ;;  %v4958_v35 = vmul.f32 %v11913_v47, %v11913_v47 }
 0x454   :  { %5422 = vadd.xlane.f32.xlu0 %v5376_v36  ;;  %v4436_v56 = vmul.f32 %v7183_v31, %v12000_v10  ;;  %vm4437_vm12 = vcmp.eq.f32.partialorder %v12000_v10, inf  ;;  %v4562_v21 = vmul.f32 1.442695, %v12052_v42  ;;  %v4608_v55 = vsub.f32 0.0, %v12052_v42 }
 0x455   :  { %v7187_v33 = vpop.eup %7186  ;;  %v4440_v7 = vand.u32 2147483648, %v12000_v10  ;;  %v5117_v2 = vsel %vm4829_vm4, %v5021_v15, %v5069_v24  ;;  %v4926_v40 = vadd.f32 1.0, %v4894_v14  ;;  %7198 = vrcp.f32 %v4863_v30  ;;  %v13394_v14 = vld [vmem:[#allocation69_spill] sm:$0xff]  ;;  %v12101_v24 = vld [vmem:[#allocation5 + $0x4] ss:$0 sm:$0xff] }
 0x456   :  { %v7189_v9 = vpop.eup %7188  ;;  %v4733_v32 = vmul.f32 0.5, %v4701_v17  ;;  %v5149_v47 = vmul.f32 %v5117_v2, %v13393_v45  ;;  %v4658_v4 = vmul.f32 1.442695, %v4608_v55  ;;  %vm4832_vm13 = vcmp.lt.f32.partialorder %v12052_v42, 0.1 }
 0x457   :  { %v4766_v3 = vsub.f32 %v7187_v33, %v7189_v9  ;;  %v4990_v37 = vmul.f32 0.008333334, %v4958_v35  ;;  %v4895_v44 = vmul.f32 0.16666667, %v11950_v63  ;;  %7200 = vpow2.f32 %v4562_v21 }
 0x458   :  { %v7191_v50 = vpop.eup %7190  ;;  %v5181_v41 = vsel %vm4173_vm0, %v4733_v32, %v5149_v47  ;;  %v4959_v29 = vmul.f32 %v11950_v63, %v11950_v63  ;;  %7202 = vpow2.f32 %v4658_v4  ;;  %v4438_v61 = vsel %vm4437_vm12, %v12000_v10, %v4436_v56  ;;  %v13395_v4 = vld [vmem:[#allocation32_spill] sm:$0xff] }
 0x459   :  { %v5344_v38 = vmul.f32 %v11691_v12, %v5181_v41  ;;  %5985 = vst [vmem:[#allocation8 + $0x78] sm:$0xff] %v5181_v41  ;;  %v4798_v59 = vmul.f32 0.5, %v4766_v3  ;;  %v4864_v19 = vsel %vm4832_vm13, 1.0, %v12052_v42  ;;  %vm4439_vm14 = vcmp.eq.f32.partialorder %v12000_v10, 0.0 }
 0x45a   :  { %v7193_v27 = vpop.eup %7192  ;;  %7204 = vpow2.f32 %v5490_v11  ;;  %vm4444_vm15 = vcmp.eq.f32.partialorder %v12025_v43, inf  ;;  %v4702_v63 = vadd.f32 %v7189_v9, %v7187_v33  ;;  %v12081_v46 = vsel %vm4439_vm14, %v4440_v7, %v4438_v61 }
 0x45b   :  { %v7195_v52 = vpop.eup %7194  ;;  %7206 = vrsqrt.f32 %v12066_v13  ;;  %v5377_v12 = vadd.f32 %v11739_v34, %v5344_v38  ;;  %v5022_v54 = vadd.f32 %v4990_v37, %v4926_v40  ;;  %v5071_v28 = vmul.f32 %v7193_v27, %v4798_v59 }
 0x45c   :  { %v7197_v51 = vpop.eup %7196  ;;  %v4443_v39 = vmul.f32 %v7191_v50, %v12025_v43  ;;  %7208 = vrcp.f32 %v4864_v19  ;;  %v4564_v23 = vmul.f32 1.442695, %v12081_v46  ;;  %v4609_v0 = vsub.f32 0.0, %v12081_v46 }
 0x45d   :  { %5424 = vadd.xlane.f32.xlu1 %v5377_v12  ;;  %v5118_v18 = vsel %vm4830_vm7, %v5022_v54, %v5071_v28  ;;  %v4767_v62 = vsub.f32 %v7195_v52, %v7197_v51  ;;  %v4927_v8 = vadd.f32 1.0, %v4895_v44  ;;  %v4991_v1 = vmul.f32 0.008333334, %v4959_v29  ;;  %v13396_v28 = vld [vmem:[#allocation20_spill] sm:$0xff] }
 0x45e   :  { %v4734_v22 = vmul.f32 0.5, %v4702_v63  ;;  %v5150_v6 = vmul.f32 %v5118_v18, %v13394_v14  ;;  %v4896_v31 = vmul.f32 0.16666667, %v11967_v57  ;;  %v4960_v36 = vmul.f32 %v11967_v57, %v11967_v57 }
 0x45f   :  { %v7199_v20 = vpop.eup %7198  ;;  %7210 = vrsqrt.f32 %v12086_v58  ;;  %v4799_v26 = vmul.f32 0.5, %v4767_v62  ;;  %v4660_v17 = vmul.f32 1.442695, %v4609_v0  ;;  %vm4833_vm1 = vcmp.lt.f32.partialorder %v12081_v46, 0.1  ;;  %v13397_v62 = vld [vmem:[#allocation36_spill] sm:$0xff] }
 0x460   :  { %v4447_v49 = vand.u32 2147483648, %v12025_v43  ;;  %v5182_v30 = vsel %vm4173_vm0, %v4734_v22, %v5150_v6  ;;  %v4703_v11 = vadd.f32 %v7197_v51, %v7195_v52  ;;  %7212 = vpow2.f32 %v4564_v23  ;;  %v12130_v23 = vld [vmem:[#allocation5 + $0x6] ss:$0 sm:$0xff]  ;;  %v13398_v22 = vld [vmem:[#allocation16_spill] sm:$0xff] }
 0x461   :  { %v7201_v15 = vpop.eup %7200  ;;  %v5345_v35 = vmul.f32 %v12101_v24, %v5182_v30  ;;  %5986 = vst [vmem:[#allocation8 + $0x80] sm:$0xff] %v5182_v30  ;;  %v5023_v57 = vadd.f32 %v4991_v1, %v4927_v8  ;;  %v5073_v56 = vmul.f32 %v7199_v20, %v4799_v26  ;;  %7214 = vpow2.f32 %v4660_v17 }
 0x462   :  { %v7203_v21 = vpop.eup %7202  ;;  %v4928_v55 = vadd.f32 1.0, %v4896_v31  ;;  %v4992_v33 = vmul.f32 0.008333334, %v4960_v36  ;;  %v4865_v7 = vsel %vm4833_vm1, 1.0, %v12081_v46  ;;  %v4445_v2 = vsel %vm4444_vm15, %v12025_v43, %v4443_v39  ;;  %v12128_v39 = vpop.xlane.xlu1 %4284 }
 0x463   :  { %v5378_v40 = vadd.f32 %v11739_v34, %v5345_v35  ;;  %v5119_v9 = vsel %vm4831_vm10, %v5023_v57, %v5073_v56  ;;  %v4768_v32 = vsub.f32 %v7201_v15, %v7203_v21  ;;  %vm4446_vm2 = vcmp.eq.f32.partialorder %v12025_v43, 0.0  ;;  %v13399_v35 = vld [vmem:[#allocation38_spill] sm:$0xff] }
 0x464   :  { %v7205_v45 = vpop.eup %7204  ;;  %v4735_v47 = vmul.f32 0.5, %v4703_v11  ;;  %v5151_v3 = vmul.f32 %v5119_v9, %v13395_v4  ;;  %v4897_v37 = vmul.f32 0.16666667, %v12000_v10  ;;  %v12116_v44 = vsel %vm4446_vm2, %v4447_v49, %v4445_v2 }
 0x465   :  { %v7207_v50 = vpop.eup %7206  ;;  %5426 = vadd.xlane.f32.xlu0 %v5378_v40  ;;  %v4800_v41 = vmul.f32 0.5, %v4768_v32  ;;  %7216 = vrcp.f32 %v4865_v7  ;;  %v4566_v34 = vmul.f32 1.442695, %v12116_v44  ;;  %v4610_v60 = vsub.f32 0.0, %v12116_v44  ;;  %v12156_v40 = vpop.xlane.xlu0 %4286 }
 0x466   :  { %v7209_v29 = vpop.eup %7208  ;;  %v5183_v61 = vsel %vm4173_vm0, %v4735_v47, %v5151_v3  ;;  %v4704_v38 = vadd.f32 %v7203_v21, %v7201_v15  ;;  %v5024_v59 = vadd.f32 %v4992_v33, %v4928_v55  ;;  %v4961_v19 = vmul.f32 %v12000_v10, %v12000_v10 }
 0x467   :  { %v5346_v27 = vmul.f32 %v12101_v24, %v5183_v61  ;;  %5987 = vst [vmem:[#allocation8 + $0x88] sm:$0xff] %v5183_v61  ;;  %v5075_v63 = vmul.f32 %v7209_v29, %v4800_v41  ;;  %v4662_v52 = vmul.f32 1.442695, %v4610_v60  ;;  %vm4834_vm3 = vcmp.lt.f32.partialorder %v12116_v44, 0.1  ;;  %v12164_v60 = vpop.xlane.xlu1 %4288 }
 0x468   :  { %v4450_v12 = vmul.f32 %v7207_v50, %v12066_v13  ;;  %7218 = vpow2.f32 %v4566_v34  ;;  %v5459_v51 = vsub.f32 0.0, %v13396_v28  ;;  %v5460_v8 = vsub.f32 0.0, %v13397_v62 }
 0x469   :  { %v7211_v54 = vpop.eup %7210  ;;  %v5379_v0 = vadd.f32 %v12130_v23, %v5346_v27  ;;  %v5120_v10 = vsel %vm4832_vm13, %v5024_v59, %v5075_v63  ;;  %7220 = vpow2.f32 %v4662_v52  ;;  %v4736_v1 = vmul.f32 0.5, %v4704_v38 }
 0x46a   :  { %v7213_v18 = vpop.eup %7212  ;;  %v5152_v14 = vmul.f32 %v5120_v10, %v13398_v22  ;;  %v4866_v6 = vsel %vm4834_vm3, 1.0, %v12116_v44  ;;  %vm4451_vm4 = vcmp.eq.f32.partialorder %v12066_v13, inf  ;;  %v4929_v36 = vadd.f32 1.0, %v4897_v37 }
 0x46b   :  { %v7215_v31 = vpop.eup %7214  ;;  %5428 = vadd.xlane.f32.xlu1 %v5379_v0  ;;  %v4993_v20 = vmul.f32 0.008333334, %v4961_v19  ;;  %7222 = vrsqrt.f32 %v12128_v39  ;;  %v4452_v17 = vsel %vm4451_vm4, %v12066_v13, %v4450_v12  ;;  %v5492_v49 = vmul.f32 1.442695, %v5459_v51  ;;  %v13401_v12 = vld [vmem:[#allocation28_spill] sm:$0xff]  ;;  %v12179_v0 = vpop.xlane.xlu1 %4292 }
 0x46c   :  { %v12144_v42 = vsel %vm4173_vm0, %v4736_v1, %v5152_v14  ;;  %v4769_v26 = vsub.f32 %v7213_v18, %v7215_v31  ;;  %v4454_v30 = vand.u32 2147483648, %v12066_v13  ;;  %7224 = vrcp.f32 %v4866_v6 }
 0x46d   :  { %v5347_v11 = vmul.f32 %v12101_v24, %v12144_v42  ;;  %5988 = vst [vmem:[#allocation8 + $0x90] sm:$0xff] %v12144_v42  ;;  %v5494_v15 = vmul.f32 1.442695, %v5460_v8  ;;  %v5461_v57 = vsub.f32 0.0, %v13399_v35  ;;  %vm4453_vm5 = vcmp.eq.f32.partialorder %v12066_v13, 0.0 }
 0x46e   :  { %v4801_v56 = vmul.f32 0.5, %v4769_v26  ;;  %v4705_v33 = vadd.f32 %v7215_v31, %v7213_v18  ;;  %v5025_v7 = vadd.f32 %v4993_v20, %v4929_v36  ;;  %v12154_v2 = vsel %vm4453_vm5, %v4454_v30, %v4452_v17 }
 0x46f   :  { %v7217_v21 = vpop.eup %7216  ;;  %v5380_v55 = vadd.f32 %v12130_v23, %v5347_v11  ;;  %v4898_v32 = vmul.f32 0.16666667, %v12025_v43  ;;  %v4962_v47 = vmul.f32 %v12025_v43, %v12025_v43  ;;  %v4568_v4 = vmul.f32 1.442695, %v12154_v2  ;;  %v13400_v43 = vld [vmem:[#allocation33_spill] sm:$0xff]  ;;  %v12198_v30 = vpop.xlane.xlu1 %4296 }
 0x470   :  { %v5077_v9 = vmul.f32 %v7217_v21, %v4801_v56  ;;  %v5554_v3 = vadd.f32 1.0, %v7205_v45  ;;  %7226 = vpow2.f32 %v5492_v49  ;;  %v4611_v37 = vsub.f32 0.0, %v12154_v2  ;;  %v12170_v45 = vpop.xlane.xlu0 %4290 }
 0x471   :  { %5430 = vadd.xlane.f32.xlu0 %v5380_v55  ;;  %7228 = vpow2.f32 %v5494_v15  ;;  %v5496_v41 = vmul.f32 1.442695, %v5461_v57  ;;  %v4457_v34 = vmul.f32 %v7211_v54, %v12086_v58  ;;  %v4737_v38 = vmul.f32 0.5, %v4705_v33  ;;  %v13402_v57 = vld [vmem:[#allocation35_spill] sm:$0xff] }
 0x472   :  { %v7219_v50 = vpop.eup %7218  ;;  %v5121_v29 = vsel %vm4833_vm1, %v5025_v7, %v5077_v9  ;;  %v4664_v19 = vmul.f32 1.442695, %v4611_v37  ;;  %vm4835_vm6 = vcmp.lt.f32.partialorder %v12154_v2, 0.1  ;;  %v4930_v63 = vadd.f32 1.0, %v4898_v32 }
 0x473   :  { %v7221_v61 = vpop.eup %7220  ;;  %v5153_v59 = vmul.f32 %v5121_v29, %v13400_v43  ;;  %v4994_v52 = vmul.f32 0.008333334, %v4962_v47  ;;  %7230 = vpow2.f32 %v4568_v4  ;;  %v5462_v54 = vsub.f32 0.0, %v13401_v12  ;;  %v13403_v47 = vld [vmem:[#allocation31_spill] sm:$0xff] }
 0x474   :  { %v4770_v27 = vsub.f32 %v7219_v50, %v7221_v61  ;;  %vm4458_vm7 = vcmp.eq.f32.partialorder %v12086_v58, inf  ;;  %7232 = vpow2.f32 %v4664_v19  ;;  %v4461_v51 = vand.u32 2147483648, %v12086_v58  ;;  %v12190_v14 = vpop.xlane.xlu0 %4294 }
 0x475   :  { %v12176_v46 = vsel %vm4173_vm0, %v4737_v38, %v5153_v59  ;;  %v7223_v28 = vpop.eup %7222  ;;  %v4867_v62 = vsel %vm4835_vm6, 1.0, %v12154_v2  ;;  %7234 = vrsqrt.f32 %v12156_v40  ;;  %v4706_v1 = vadd.f32 %v7221_v61, %v7219_v50  ;;  %v12215_v50 = vpop.xlane.xlu1 %4300 }
 0x476   :  { %v5348_v10 = vmul.f32 %v12101_v24, %v12176_v46  ;;  %5989 = vst [vmem:[#allocation8 + $0x98] sm:$0xff] %v12176_v46  ;;  %v4802_v18 = vmul.f32 0.5, %v4770_v27  ;;  %v7225_v8 = vpop.eup %7224  ;;  %v4459_v22 = vsel %vm4458_vm7, %v12086_v58, %v4457_v34  ;;  %vm4460_vm8 = vcmp.eq.f32.partialorder %v12086_v58, 0.0 }
 0x477   :  { %v5026_v31 = vadd.f32 %v4994_v52, %v4930_v63  ;;  %v12193_v20 = vsel %vm4460_vm8, %v4461_v51, %v4459_v22  ;;  %7236 = vrcp.f32 %v4867_v62  ;;  %v4464_v49 = vmul.f32 %v7223_v28, %v12128_v39 }
 0x478   :  { %v5381_v6 = vadd.f32 %v12130_v23, %v5348_v10  ;;  %v5079_v36 = vmul.f32 %v7225_v8, %v4802_v18  ;;  %v4570_v26 = vmul.f32 1.442695, %v12193_v20  ;;  %v4612_v17 = vsub.f32 0.0, %v12193_v20  ;;  %v12204_v9 = vpop.xlane.xlu0 %4298 }
 0x479   :  { %7238 = vrcp.f32 %v5554_v3  ;;  %v4738_v35 = vmul.f32 0.5, %v4706_v1  ;;  %v4899_v21 = vmul.f32 0.16666667, %v12066_v13  ;;  %v5498_v7 = vmul.f32 1.442695, %v5462_v54  ;;  %v12237_v1 = vpop.xlane.xlu1 %5278 }
 0x47a   :  { %5432 = vadd.xlane.f32.xlu1 %v5381_v6  ;;  %v5122_v11 = vsel %vm4834_vm3, %v5026_v31, %v5079_v36  ;;  %v7227_v15 = vpop.eup %7226  ;;  %v4666_v55 = vmul.f32 1.442695, %v4612_v17  ;;  %7240 = vpow2.f32 %v5496_v41  ;;  %v4963_v32 = vmul.f32 %v12066_v13, %v12066_v13 }
 0x47b   :  { %v5154_v56 = vmul.f32 %v5122_v11, %v13402_v57  ;;  %v7229_v33 = vpop.eup %7228  ;;  %vm4836_vm9 = vcmp.lt.f32.partialorder %v12193_v20, 0.1  ;;  %v5463_v44 = vsub.f32 0.0, %v13403_v47  ;;  %vm4465_vm10 = vcmp.eq.f32.partialorder %v12128_v39, inf  ;;  %v13404_v57 = vld [vmem:[#allocation17_spill] sm:$0xff] }
 0x47c   :  { %7242 = vpow2.f32 %v4570_v26  ;;  %v5555_v37 = vadd.f32 1.0, %v7227_v15  ;;  %v4466_v13 = vsel %vm4465_vm10, %v12128_v39, %v4464_v49  ;;  %v4468_v29 = vand.u32 2147483648, %v12128_v39  ;;  %v12230_v12 = vpop.xlane.xlu0 %5276 }
 0x47d   :  { %v12213_v4 = vsel %vm4173_vm0, %v4738_v35, %v5154_v56  ;;  %v7231_v3 = vpop.eup %7230  ;;  %7244 = vpow2.f32 %v4666_v55  ;;  %v4931_v61 = vadd.f32 1.0, %v4899_v21  ;;  %v4868_v38 = vsel %vm4836_vm9, 1.0, %v12193_v20 }
 0x47e   :  { %v5349_v41 = vmul.f32 %v12101_v24, %v12213_v4  ;;  %5990 = vst [vmem:[#allocation8 + $0xa0] sm:$0xff] %v12213_v4  ;;  %v7233_v34 = vpop.eup %7232  ;;  %7246 = vrsqrt.f32 %v12164_v60  ;;  %v4995_v19 = vmul.f32 0.008333334, %v4963_v32  ;;  %vm4467_vm11 = vcmp.eq.f32.partialorder %v12128_v39, 0.0 }
 0x47f   :  { %v4771_v59 = vsub.f32 %v7231_v3, %v7233_v34  ;;  %v7235_v27 = vpop.eup %7234  ;;  %7248 = vpow2.f32 %v5498_v7  ;;  %v5500_v63 = vmul.f32 1.442695, %v5463_v44  ;;  %v12228_v52 = vsel %vm4467_vm11, %v4468_v29, %v4466_v13  ;;  %v12263_v13 = vpop.xlane.xlu1 %5282 }
 0x480   :  { %v5382_v43 = vadd.f32 %v12130_v23, %v5349_v41  ;;  %7250 = vrcp.f32 %v4868_v38  ;;  %v4572_v28 = vmul.f32 1.442695, %v12228_v52  ;;  %v4707_v10 = vadd.f32 %v7233_v34, %v7231_v3 }
 0x481   :  { %v4803_v54 = vmul.f32 0.5, %v4771_v59  ;;  %v7237_v51 = vpop.eup %7236  ;;  %7252 = vrcp.f32 %v5555_v37  ;;  %v4613_v18 = vsub.f32 0.0, %v12228_v52  ;;  %v4471_v8 = vmul.f32 %v7235_v27, %v12156_v40 }
 0x482   :  { %5434 = vadd.xlane.f32.xlu0 %v5382_v43  ;;  %v5027_v22 = vadd.f32 %v4995_v19, %v4931_v61  ;;  %v4900_v31 = vmul.f32 0.16666667, %v12086_v58  ;;  %7254 = vpow2.f32 %v5500_v63  ;;  %v4964_v36 = vmul.f32 %v12086_v58, %v12086_v58  ;;  %v12248_v58 = vpop.xlane.xlu0 %5280 }
 0x483   :  { %v12234_v62 = vpop.eup %7238  ;;  %v5081_v6 = vmul.f32 %v7237_v51, %v4803_v54  ;;  %v4668_v26 = vmul.f32 1.442695, %v4613_v18  ;;  %vm4837_vm12 = vcmp.lt.f32.partialorder %v12228_v52, 0.1  ;;  %v5556_v49 = vadd.f32 1.0, %v7229_v33 }
 0x484   :  { %v7241_v17 = vpop.eup %7240  ;;  %7256 = vpow2.f32 %v4572_v28  ;;  %vm4472_vm13 = vcmp.eq.f32.partialorder %v12156_v40, inf  ;;  %v4739_v35 = vmul.f32 0.5, %v4707_v10  ;;  %v4475_v55 = vand.u32 2147483648, %v12156_v40 }
 0x485   :  { %v5123_v11 = vsel %vm4835_vm6, %v5027_v22, %v5081_v6  ;;  %7258 = vpow2.f32 %v4668_v26  ;;  %v4932_v7 = vadd.f32 1.0, %v4900_v31  ;;  %v4869_v33 = vsel %vm4837_vm12, 1.0, %v12228_v52 }
 0x486   :  { %v7243_v15 = vpop.eup %7242  ;;  %v5155_v56 = vmul.f32 %v5123_v11, %v13404_v57  ;;  %v4473_v2 = vsel %vm4472_vm13, %v12156_v40, %v4471_v8  ;;  %v4996_v3 = vmul.f32 0.008333334, %v4964_v36  ;;  %vm4474_vm14 = vcmp.eq.f32.partialorder %v12156_v40, 0.0  ;;  %v12274_v18 = vpop.xlane.xlu0 %5284 }
 0x487   :  { %v7245_v21 = vpop.eup %7244  ;;  %v5557_v37 = vadd.f32 1.0, %v7241_v17  ;;  %7260 = vrsqrt.f32 %v12170_v45  ;;  %v12265_v34 = vsel %vm4474_vm14, %v4475_v55, %v4473_v2  ;;  %v4901_v10 = vmul.f32 0.16666667, %v12128_v39 }
 0x488   :  { %v7247_v32 = vpop.eup %7246  ;;  %v12256_v47 = vsel %vm4173_vm0, %v4739_v35, %v5155_v56  ;;  %v4772_v44 = vsub.f32 %v7243_v15, %v7245_v21  ;;  %7262 = vrcp.f32 %v4869_v33  ;;  %v4574_v38 = vmul.f32 1.442695, %v12265_v34 }
 0x489   :  { %v5350_v41 = vmul.f32 %v12101_v24, %v12256_v47  ;;  %5991 = vst [vmem:[#allocation8 + $0xa8] sm:$0xff] %v12256_v47  ;;  %v7249_v29 = vpop.eup %7248  ;;  %7264 = vrcp.f32 %v5556_v49  ;;  %v4708_v19 = vadd.f32 %v7245_v21, %v7243_v15  ;;  %v4614_v27 = vsub.f32 0.0, %v12265_v34  ;;  %v13405_v49 = vld [vmem:[#allocation56_spill] sm:$0xff]  ;;  %v12283_v15 = vpop.xlane.xlu1 %5286 }
 0x48a   :  { %v4804_v61 = vmul.f32 0.5, %v4772_v44  ;;  %v7251_v43 = vpop.eup %7250  ;;  %v4478_v54 = vmul.f32 %v7247_v32, %v12164_v60  ;;  %v5028_v28 = vadd.f32 %v4996_v3, %v4932_v7  ;;  %7266 = vrcp.f32 %v5557_v37  ;;  %v12301_v37 = vpop.xlane.xlu0 %5288 }
 0x48b   :  { %v5383_v59 = vadd.f32 %v12130_v23, %v5350_v41  ;;  %v12270_v63 = vpop.eup %7252  ;;  %v4965_v8 = vmul.f32 %v12128_v39, %v12128_v39  ;;  %v4670_v22 = vmul.f32 1.442695, %v4614_v27  ;;  %vm4838_vm15 = vcmp.lt.f32.partialorder %v12265_v34, 0.1 }
 0x48c   :  { %v5083_v51 = vmul.f32 %v7251_v43, %v4804_v61  ;;  %v7255_v6 = vpop.eup %7254  ;;  %v5558_v31 = vadd.f32 1.0, %v7249_v29  ;;  %7268 = vpow2.f32 %v4574_v38  ;;  %vm4479_vm1 = vcmp.eq.f32.partialorder %v12164_v60, inf }
 0x48d   :  { %5436 = vadd.xlane.f32.xlu1 %v5383_v59  ;;  %v4740_v17 = vmul.f32 0.5, %v4708_v19  ;;  %7270 = vpow2.f32 %v4670_v22  ;;  %v4482_v39 = vand.u32 2147483648, %v12164_v60  ;;  %v4933_v57 = vadd.f32 1.0, %v4901_v10 }
 0x48e   :  { %v5124_v36 = vsel %vm4836_vm9, %v5028_v28, %v5083_v51  ;;  %v7257_v26 = vpop.eup %7256  ;;  %v4870_v56 = vsel %vm4838_vm15, 1.0, %v12265_v34  ;;  %v4480_v20 = vsel %vm4479_vm1, %v12164_v60, %v4478_v54  ;;  %v4997_v7 = vmul.f32 0.008333334, %v4965_v8  ;;  %v12308_v54 = vpop.xlane.xlu1 %5290 }
 0x48f   :  { %v5156_v11 = vmul.f32 %v5124_v36, %v13405_v49  ;;  %v7259_v35 = vpop.eup %7258  ;;  %vm4481_vm2 = vcmp.eq.f32.partialorder %v12164_v60, 0.0  ;;  %v5559_v33 = vadd.f32 1.0, %v7255_v6  ;;  %7272 = vrsqrt.f32 %v12179_v0 }
 0x490   :  { %v4773_v55 = vsub.f32 %v7257_v26, %v7259_v35  ;;  %v12299_v32 = vsel %vm4481_vm2, %v4482_v39, %v4480_v20  ;;  %7274 = vrcp.f32 %v4870_v56  ;;  %v4709_v38 = vadd.f32 %v7259_v35, %v7257_v26 }
 0x491   :  { %v12292_v21 = vsel %vm4173_vm0, %v4740_v17, %v5156_v11  ;;  %v7261_v44 = vpop.eup %7260  ;;  %v4615_v41 = vsub.f32 0.0, %v12299_v32  ;;  %7276 = vrcp.f32 %v5558_v31  ;;  %v4576_v43 = vmul.f32 1.442695, %v12299_v32  ;;  %v13406_v17 = vld [vmem:[#allocation55_spill] sm:$0xff] }
 0x492   :  { %v5351_v2 = vmul.f32 %v12101_v24, %v12292_v21  ;;  %5992 = vst [vmem:[#allocation8 + $0xb0] sm:$0xff] %v12292_v21  ;;  %v4805_v3 = vmul.f32 0.5, %v4773_v55  ;;  %v7263_v29 = vpop.eup %7262  ;;  %v5029_v19 = vadd.f32 %v4997_v7, %v4933_v57  ;;  %v4902_v28 = vmul.f32 0.16666667, %v12156_v40  ;;  %v12337_v55 = vpop.xlane.xlu1 %5294 }
 0x493   :  { %v12306_v59 = vpop.eup %7264  ;;  %v4672_v51 = vmul.f32 1.442695, %v4615_v41  ;;  %7278 = vrcp.f32 %v5559_v33  ;;  %v4966_v10 = vmul.f32 %v12156_v40, %v12156_v40  ;;  %v4485_v22 = vmul.f32 %v7261_v44, %v12170_v45  ;;  %v12322_v40 = vpop.xlane.xlu0 %5292 }
 0x494   :  { %v5384_v61 = vadd.f32 %v12130_v23, %v5351_v2  ;;  %v5085_v27 = vmul.f32 %v7263_v29, %v4805_v3  ;;  %v12313_v8 = vpop.eup %7266  ;;  %7280 = vrsqrt.f32 %v12190_v14  ;;  %vm4839_vm3 = vcmp.lt.f32.partialorder %v12299_v32, 0.1 }
 0x495   :  { %v5464_v36 = vsub.f32 0.0, %v12230_v12  ;;  %v4741_v26 = vmul.f32 0.5, %v4709_v38  ;;  %7282 = vpow2.f32 %v4576_v43  ;;  %v4934_v35 = vadd.f32 1.0, %v4902_v28 }
 0x496   :  { %5438 = vadd.xlane.f32.xlu0 %v5384_v61  ;;  %v5125_v6 = vsel %vm4837_vm12, %v5029_v19, %v5085_v27  ;;  %v7269_v31 = vpop.eup %7268  ;;  %7284 = vpow2.f32 %v4672_v51  ;;  %v4998_v57 = vmul.f32 0.008333334, %v4966_v10  ;;  %v4871_v56 = vsel %vm4839_vm3, 1.0, %v12299_v32 }
 0x497   :  { %v5157_v49 = vmul.f32 %v5125_v6, %v13406_v17  ;;  %v7271_v11 = vpop.eup %7270  ;;  %vm4486_vm4 = vcmp.eq.f32.partialorder %v12170_v45, inf  ;;  %v4489_v12 = vand.u32 2147483648, %v12170_v45  ;;  %7286 = vrsqrt.f32 %v12198_v30  ;;  %v12351_v51 = vpop.xlane.xlu0 %5296 }
 0x498   :  { %v4774_v52 = vsub.f32 %v7269_v31, %v7271_v11  ;;  %v5502_v33 = vmul.f32 1.442695, %v5464_v36  ;;  %v5465_v2 = vsub.f32 0.0, %v12237_v1  ;;  %v4487_v3 = vsel %vm4486_vm4, %v12170_v45, %v4485_v22 }
 0x499   :  { %v12326_v39 = vsel %vm4173_vm0, %v4741_v26, %v5157_v49  ;;  %v7273_v7 = vpop.eup %7272  ;;  %v4710_v61 = vadd.f32 %v7271_v11, %v7269_v31  ;;  %7288 = vrcp.f32 %v4871_v56  ;;  %vm4488_vm5 = vcmp.eq.f32.partialorder %v12170_v45, 0.0  ;;  %v13407_v11 = vld [vmem:[#allocation27_spill] sm:$0xff] }
 0x49a   :  { %v5352_v20 = vmul.f32 %v12101_v24, %v12326_v39  ;;  %5993 = vst [vmem:[#allocation8 + $0xb8] sm:$0xff] %v12326_v39  ;;  %v4806_v44 = vmul.f32 0.5, %v4774_v52  ;;  %v7275_v41 = vpop.eup %7274  ;;  %7290 = vrsqrt.f32 %v12204_v9  ;;  %v5030_v43 = vadd.f32 %v4998_v57, %v4934_v35 }
 0x49b   :  { %v12343_v38 = vpop.eup %7276  ;;  %v12346_v27 = vsel %vm4488_vm5, %v4489_v12, %v4487_v3  ;;  %v4903_v1 = vmul.f32 0.16666667, %v12164_v60  ;;  %v4967_v28 = vmul.f32 %v12164_v60, %v12164_v60  ;;  %v4492_v31 = vmul.f32 %v7273_v7, %v12179_v0  ;;  %v12361_v60 = vpop.xlane.xlu1 %5298 }
 0x49c   :  { %v5385_v29 = vadd.f32 %v12130_v23, %v5352_v20  ;;  %v5087_v19 = vmul.f32 %v7275_v41, %v4806_v44  ;;  %v4578_v10 = vmul.f32 1.442695, %v12346_v27  ;;  %v4616_v22 = vsub.f32 0.0, %v12346_v27 }
 0x49d   :  { %v12355_v6 = vpop.eup %7278  ;;  %7292 = vpow2.f32 %v5502_v33  ;;  %v5504_v36 = vmul.f32 1.442695, %v5465_v2  ;;  %v4742_v49 = vmul.f32 0.5, %v4710_v61  ;;  %vm4840_vm6 = vcmp.lt.f32.partialorder %v12346_v27, 0.1  ;;  %v12379_v61 = vpop.xlane.xlu0 %5300 }
 0x49e   :  { %5440 = vadd.xlane.f32.xlu1 %v5385_v29  ;;  %v5126_v26 = vsel %vm4838_vm15, %v5030_v43, %v5087_v19  ;;  %v7281_v17 = vpop.eup %7280  ;;  %v4674_v52 = vmul.f32 1.442695, %v4616_v22  ;;  %vm4493_vm7 = vcmp.eq.f32.partialorder %v12179_v0, inf  ;;  %v5466_v56 = vsub.f32 0.0, %v12248_v58 }
 0x49f   :  { %v5158_v35 = vmul.f32 %v5126_v26, %v13407_v11  ;;  %v7283_v57 = vpop.eup %7282  ;;  %7294 = vpow2.f32 %v4578_v10  ;;  %v4935_v20 = vadd.f32 1.0, %v4903_v1  ;;  %v4999_v7 = vmul.f32 0.008333334, %v4967_v28  ;;  %v12383_v22 = vpop.xlane.xlu1 %5302 }
 0x4a0   :  { %v7285_v12 = vpop.eup %7284  ;;  %7296 = vpow2.f32 %v4674_v52  ;;  %v4872_v44 = vsel %vm4840_vm6, 1.0, %v12346_v27  ;;  %v4494_v58 = vsel %vm4493_vm7, %v12179_v0, %v4492_v31  ;;  %v4496_v41 = vand.u32 2147483648, %v12179_v0 }
 0x4a1   :  { %v12368_v34 = vsel %vm4173_vm0, %v4742_v49, %v5158_v35  ;;  %v4775_v2 = vsub.f32 %v7283_v57, %v7285_v12  ;;  %v7287_v3 = vpop.eup %7286  ;;  %7298 = vpow2.f32 %v5504_v36  ;;  %v5467_v29 = vsub.f32 0.0, %v12263_v13 }
 0x4a2   :  { %13408 = vst [vmem:[#allocation59_spill] sm:$0xff] %v12368_v34  ;;  %v5353_v33 = vmul.f32 %v12101_v24, %v12368_v34  ;;  %5994 = vst [vmem:[#allocation8 + $0xc0] sm:$0xff] %v12368_v34  ;;  %v5506_v43 = vmul.f32 1.442695, %v5466_v56  ;;  %vm4495_vm8 = vcmp.eq.f32.partialorder %v12179_v0, 0.0  ;;  %v4711_v10 = vadd.f32 %v7285_v12, %v7283_v57 }
 0x4a3   :  { %v4807_v1 = vmul.f32 0.5, %v4775_v2  ;;  %v7289_v28 = vpop.eup %7288  ;;  %7300 = vrcp.f32 %v4872_v44  ;;  %v12385_v31 = vsel %vm4495_vm8, %v4496_v41, %v4494_v58  ;;  %v5468_v36 = vsub.f32 0.0, %v12274_v18  ;;  %v12401_v58 = vpop.xlane.xlu0 %5304 }
 0x4a4   :  { %v5386_v19 = vadd.f32 %v12130_v23, %v5353_v33  ;;  %v12387_v26 = vpop.eup %7290  ;;  %v5031_v13 = vadd.f32 %v4999_v7, %v4935_v20  ;;  %v4580_v11 = vmul.f32 1.442695, %v12385_v31  ;;  %7302 = vrsqrt.f32 %v12215_v50  ;;  %v13409_v7 = vld [vmem:[#allocation37_spill] sm:$0xff] }
 0x4a5   :  { %v5089_v49 = vmul.f32 %v7289_v28, %v4807_v1  ;;  %v4904_v35 = vmul.f32 0.16666667, %v12170_v45  ;;  %v4968_v52 = vmul.f32 %v12170_v45, %v12170_v45  ;;  %v4617_v57 = vsub.f32 0.0, %v12385_v31 }
 0x4a6   :  { %5442 = vadd.xlane.f32.xlu0 %v5386_v19  ;;  %v4499_v12 = vmul.f32 %v7281_v17, %v12190_v14  ;;  %7304 = vpow2.f32 %v5506_v43  ;;  %v5508_v33 = vmul.f32 1.442695, %v5467_v29  ;;  %v4743_v20 = vmul.f32 0.5, %v4711_v10  ;;  %v12408_v43 = vpop.xlane.xlu1 %5306 }
 0x4a7   :  { %v7293_v56 = vpop.eup %7292  ;;  %v5127_v18 = vsel %vm4839_vm3, %v5031_v13, %v5089_v49  ;;  %v4676_v44 = vmul.f32 1.442695, %v4617_v57  ;;  %vm4841_vm9 = vcmp.lt.f32.partialorder %v12385_v31, 0.1  ;;  %vm4500_vm10 = vcmp.eq.f32.partialorder %v12190_v14, inf }
 0x4a8   :  { %v5159_v2 = vmul.f32 %v5127_v18, %v13409_v7  ;;  %v5510_v45 = vmul.f32 1.442695, %v5468_v36  ;;  %7306 = vpow2.f32 %v4580_v11  ;;  %v4936_v32 = vadd.f32 1.0, %v4904_v35 }
 0x4a9   :  { %v7295_v41 = vpop.eup %7294  ;;  %v5000_v29 = vmul.f32 0.008333334, %v4968_v52  ;;  %7308 = vpow2.f32 %v4676_v44  ;;  %v4873_v10 = vsel %vm4841_vm9, 1.0, %v12385_v31  ;;  %v4501_v36 = vsel %vm4500_vm10, %v12190_v14, %v4499_v12 }
 0x4aa   :  { %v7297_v19 = vpop.eup %7296  ;;  %v12406_v17 = vsel %vm4173_vm0, %v4743_v20, %v5159_v2  ;;  %v4503_v49 = vand.u32 2147483648, %v12190_v14  ;;  %v4506_v11 = vmul.f32 %v7287_v3, %v12198_v30  ;;  %v5560_v35 = vadd.f32 1.0, %v7293_v56  ;;  %v12422_v2 = vpop.xlane.xlu0 %5308 }
 0x4ab   :  { %13410 = vst [vmem:[#allocation24_spill] sm:$0xff] %v12406_v17  ;;  %v5354_v1 = vmul.f32 %v12101_v24, %v12406_v17  ;;  %5995 = vst [vmem:[#allocation8 + $0xc8] sm:$0xff] %v12406_v17  ;;  %v4776_v28 = vsub.f32 %v7295_v41, %v7297_v19  ;;  %v7299_v13 = vpop.eup %7298  ;;  %7310 = vpow2.f32 %v5508_v33  ;;  %vm4502_vm11 = vcmp.eq.f32.partialorder %v12190_v14, 0.0 }
 0x4ac   :  { %7312 = vpow2.f32 %v5510_v45  ;;  %v5469_v20 = vsub.f32 0.0, %v12283_v15  ;;  %v4712_v7 = vadd.f32 %v7297_v19, %v7295_v41  ;;  %v12424_v12 = vsel %vm4502_vm11, %v4503_v49, %v4501_v36  ;;  %v12432_v41 = vpop.xlane.xlu1 %5310  ;;  %v13411_v49 = vld [vmem:[#allocation39_spill] sm:$0xff] }
 0x4ad   :  { %v5387_v52 = vadd.f32 %v12130_v23, %v5354_v1  ;;  %v4808_v57 = vmul.f32 0.5, %v4776_v28  ;;  %v7301_v18 = vpop.eup %7300  ;;  %7314 = vrcp.f32 %v4873_v10  ;;  %v5032_v44 = vadd.f32 %v5000_v29, %v4936_v32 }
 0x4ae   :  { %v4582_v56 = vmul.f32 1.442695, %v12424_v12  ;;  %v4618_v33 = vsub.f32 0.0, %v12424_v12  ;;  %v12428_v45 = vpop.eup %7302  ;;  %vm4507_vm12 = vcmp.eq.f32.partialorder %v12198_v30, inf  ;;  %7316 = vrcp.f32 %v5560_v35 }
 0x4af   :  { %5444 = vadd.xlane.f32.xlu1 %v5387_v52  ;;  %v5091_v3 = vmul.f32 %v7301_v18, %v4808_v57  ;;  %v5561_v1 = vadd.f32 1.0, %v7299_v13  ;;  %v4905_v15 = vmul.f32 0.16666667, %v12179_v0  ;;  %v4969_v32 = vmul.f32 %v12179_v0, %v12179_v0 }
 0x4b0   :  { %v7305_v19 = vpop.eup %7304  ;;  %v4678_v29 = vmul.f32 1.442695, %v4618_v33  ;;  %vm4842_vm13 = vcmp.lt.f32.partialorder %v12424_v12, 0.1  ;;  %v5512_v10 = vmul.f32 1.442695, %v5469_v20  ;;  %7318 = vpow2.f32 %v4582_v56 }
 0x4b1   :  { %v5128_v28 = vsel %vm4840_vm6, %v5032_v44, %v5091_v3  ;;  %v4744_v36 = vmul.f32 0.5, %v4712_v7  ;;  %v4510_v35 = vand.u32 2147483648, %v12198_v30  ;;  %v4508_v27 = vsel %vm4507_vm12, %v12198_v30, %v4506_v11  ;;  %v12451_v7 = vpop.xlane.xlu0 %5312 }
 0x4b2   :  { %v5160_v52 = vmul.f32 %v5128_v28, %v13411_v49  ;;  %v7307_v13 = vpop.eup %7306  ;;  %7320 = vpow2.f32 %v4678_v29  ;;  %v4937_v18 = vadd.f32 1.0, %v4905_v15  ;;  %v4874_v20 = vsel %vm4842_vm13, 1.0, %v12424_v12  ;;  %v12461_v15 = vpop.xlane.xlu1 %5314 }
 0x4b3   :  { %v7309_v57 = vpop.eup %7308  ;;  %7322 = vrcp.f32 %v5561_v1  ;;  %v5001_v11 = vmul.f32 0.008333334, %v4969_v32  ;;  %vm4509_vm14 = vcmp.eq.f32.partialorder %v12198_v30, 0.0  ;;  %v5562_v33 = vadd.f32 1.0, %v7305_v19 }
 0x4b4   :  { %v12446_v0 = vsel %vm4173_vm0, %v4744_v36, %v5160_v52  ;;  %v4777_v3 = vsub.f32 %v7307_v13, %v7309_v57  ;;  %7324 = vpow2.f32 %v5512_v10  ;;  %v12459_v1 = vsel %vm4509_vm14, %v4510_v35, %v4508_v27 }
 0x4b5   :  { %13412 = vst [vmem:[#allocation23_spill] sm:$0xff] %v12446_v0  ;;  %v5355_v44 = vmul.f32 %v12101_v24, %v12446_v0  ;;  %5996 = vst [vmem:[#allocation8 + $0xd0] sm:$0xff] %v12446_v0  ;;  %v12457_v56 = vpop.eup %7310  ;;  %v5470_v29 = vsub.f32 0.0, %v12301_v37  ;;  %7326 = vrcp.f32 %v4874_v20  ;;  %v5471_v32 = vsub.f32 0.0, %v12308_v54 }
 0x4b6   :  { %v12463_v28 = vpop.eup %7312  ;;  %v4809_v49 = vmul.f32 0.5, %v4777_v3  ;;  %v4713_v48 = vadd.f32 %v7309_v57, %v7307_v13  ;;  %v4584_v25 = vmul.f32 1.442695, %v12459_v1  ;;  %v4619_v19 = vsub.f32 0.0, %v12459_v1  ;;  %v12477_v13 = vpop.xlane.xlu0 %5316 }
 0x4b7   :  { %v5388_v36 = vadd.f32 %v12130_v23, %v5355_v44  ;;  %v7315_v52 = vpop.eup %7314  ;;  %v5033_v10 = vadd.f32 %v5001_v11, %v4937_v18  ;;  %v4906_v27 = vmul.f32 0.16666667, %v12190_v14  ;;  %v4970_v37 = vmul.f32 %v12190_v14, %v12190_v14 }
 0x4b8   :  { %v5093_v35 = vmul.f32 %v7315_v52, %v4809_v49  ;;  %v12473_v53 = vpop.eup %7316  ;;  %v4513_v20 = vmul.f32 %v12387_v26, %v12204_v9  ;;  %7328 = vrcp.f32 %v5562_v33  ;;  %v4680_v54 = vmul.f32 1.442695, %v4619_v19  ;;  %v12484_v52 = vpop.xlane.xlu1 %5318 }
 0x4b9   :  { %5446 = vadd.xlane.f32.xlu0 %v5388_v36  ;;  %v5514_v57 = vmul.f32 1.442695, %v5470_v29  ;;  %v5472_v44 = vsub.f32 0.0, %v12322_v40  ;;  %vm4843_vm15 = vcmp.lt.f32.partialorder %v12459_v1, 0.1  ;;  %v4745_v14 = vmul.f32 0.5, %v4713_v48 }
 0x4ba   :  { %v5129_v18 = vsel %vm4841_vm9, %v5033_v10, %v5093_v35  ;;  %v7319_v3 = vpop.eup %7318  ;;  %v5516_v11 = vmul.f32 1.442695, %v5471_v32  ;;  %v13413_v36 = vld [vmem:[#allocation40_spill] sm:$0xff]  ;;  %7330 = vpow2.f32 %v4584_v25  ;;  %vm4514_vm1 = vcmp.eq.f32.partialorder %v12204_v9, inf }
 0x4bb   :  { %v5161_v49 = vmul.f32 %v5129_v18, %v13413_v36  ;;  %v4938_v33 = vadd.f32 1.0, %v4906_v27  ;;  %v5002_v29 = vmul.f32 0.008333334, %v4970_v37  ;;  %7332 = vpow2.f32 %v4680_v54  ;;  %v12504_v18 = vpop.xlane.xlu0 %5320 }
 0x4bc   :  { %v7321_v26 = vpop.eup %7320  ;;  %v4875_v48 = vsel %vm4843_vm15, 1.0, %v12459_v1  ;;  %v4515_v25 = vsel %vm4514_vm1, %v12204_v9, %v4513_v20  ;;  %v4517_v32 = vand.u32 2147483648, %v12204_v9  ;;  %7334 = vpow2.f32 %v5514_v57 }
 0x4bd   :  { %v12487_v40 = vpop.eup %7322  ;;  %v12491_v31 = vsel %vm4173_vm0, %v4745_v14, %v5161_v49  ;;  %v4778_v19 = vsub.f32 %v7319_v3, %v7321_v26  ;;  %v5518_v10 = vmul.f32 1.442695, %v5472_v44  ;;  %v4520_v37 = vmul.f32 %v12428_v45, %v12215_v50  ;;  %v12511_v45 = vpop.xlane.xlu1 %5322 }
 0x4be   :  { %13414 = vst [vmem:[#allocation53_spill] sm:$0xff] %v12491_v31  ;;  %v5356_v35 = vmul.f32 %v12101_v24, %v12491_v31  ;;  %5997 = vst [vmem:[#allocation8 + $0xd8] sm:$0xff] %v12491_v31  ;;  %v7325_v27 = vpop.eup %7324  ;;  %7336 = vpow2.f32 %v5516_v11  ;;  %vm4516_vm2 = vcmp.eq.f32.partialorder %v12204_v9, 0.0  ;;  %v4714_v57 = vadd.f32 %v7321_v26, %v7319_v3 }
 0x4bf   :  { %v4810_v54 = vmul.f32 0.5, %v4778_v19  ;;  %v7327_v20 = vpop.eup %7326  ;;  %7338 = vrcp.f32 %v4875_v48  ;;  %v12507_v44 = vsel %vm4516_vm2, %v4517_v32, %v4515_v25  ;;  %v5034_v24 = vadd.f32 %v5002_v29, %v4938_v33  ;;  %13415 = vst [vmem:[#allocation60_spill] sm:$0xff] %v12511_v45  ;;  %v13416_v32 = vld [vmem:[#allocation41_spill] sm:$0xff]  ;;  %v12528_v12 = vpop.xlane.xlu0 %5324 }
 0x4c0   :  { %v5389_v14 = vadd.f32 %v12130_v23, %v5356_v35  ;;  %v4586_v49 = vmul.f32 1.442695, %v12507_v44  ;;  %v4620_v5 = vsub.f32 0.0, %v12507_v44  ;;  %vm4521_vm3 = vcmp.eq.f32.partialorder %v12215_v50, inf  ;;  %13417 = vst [vmem:[#allocation61_spill] sm:$0xff] %v12528_v12 }
 0x4c1   :  { %v5095_v36 = vmul.f32 %v7327_v20, %v4810_v54  ;;  %7340 = vpow2.f32 %v5518_v10  ;;  %v4907_v11 = vmul.f32 0.16666667, %v12198_v30  ;;  %v4971_v3 = vmul.f32 %v12198_v30, %v12198_v30 }
 0x4c2   :  { %5448 = vadd.xlane.f32.xlu1 %v5389_v14  ;;  %v12517_v26 = vpop.eup %7328  ;;  %v4682_v29 = vmul.f32 1.442695, %v4620_v5  ;;  %vm4844_vm4 = vcmp.lt.f32.partialorder %v12507_v44, 0.1  ;;  %v4522_v19 = vsel %vm4521_vm3, %v12215_v50, %v4520_v37  ;;  %v4524_v48 = vand.u32 2147483648, %v12215_v50 }
 0x4c3   :  { %v5130_v33 = vsel %vm4842_vm13, %v5034_v24, %v5095_v36  ;;  %v4746_v25 = vmul.f32 0.5, %v4714_v57  ;;  %7342 = vpow2.f32 %v4586_v49  ;;  %v5563_v54 = vadd.f32 1.0, %v12457_v56  ;;  %v12540_v56 = vld [vmem:[#allocation5 + $0x4] ss:$0 sm:$0xff]  ;;  %v12545_v49 = vpop.xlane.xlu1 %5326 }
 0x4c4   :  { %v5162_v10 = vmul.f32 %v5130_v33, %v13416_v32  ;;  %v7331_v35 = vpop.eup %7330  ;;  %v5564_v30 = vadd.f32 1.0, %v12463_v28  ;;  %7344 = vpow2.f32 %v4682_v29  ;;  %vm4523_vm5 = vcmp.eq.f32.partialorder %v12215_v50, 0.0  ;;  %13419 = vst [vmem:[#allocation21_spill] sm:$0xff] %v12545_v49 }
 0x4c5   :  { %v7333_v5 = vpop.eup %7332  ;;  %v5473_v20 = vsub.f32 0.0, %v12337_v55  ;;  %v4876_v14 = vsel %vm4844_vm4, 1.0, %v12507_v44  ;;  %v12538_v57 = vsel %vm4523_vm5, %v4524_v48, %v4522_v19  ;;  %v4939_v36 = vadd.f32 1.0, %v4907_v11  ;;  %v5395_v11 = vpop.xlane.xlu0 %5394 }
 0x4c6   :  { %v12533_v37 = vsel %vm4173_vm0, %v4746_v25, %v5162_v10  ;;  %v4779_v24 = vsub.f32 %v7331_v35, %v7333_v5  ;;  %v5003_v55 = vmul.f32 0.008333334, %v4971_v3  ;;  %v7335_v33 = vpop.eup %7334  ;;  %v5565_v29 = vadd.f32 1.0, %v7325_v27 }
 0x4c7   :  { %13418 = vst [vmem:[#allocation62_spill] sm:$0xff] %v12533_v37  ;;  %v5357_v28 = vmul.f32 %v12540_v56, %v12533_v37  ;;  %5998 = vst [vmem:[#allocation8 + $0xe0] sm:$0xff] %v12533_v37  ;;  %v4908_v25 = vmul.f32 0.16666667, %v12204_v9  ;;  %v4972_v19 = vmul.f32 %v12204_v9, %v12204_v9  ;;  %v4621_v48 = vsub.f32 0.0, %v12538_v57  ;;  %v5397_v9 = vpop.xlane.xlu1 %5396 }
 0x4c8   :  { %v7337_v32 = vpop.eup %7336  ;;  %v4811_v31 = vmul.f32 0.5, %v4779_v24  ;;  %7346 = vrcp.f32 %v4876_v14  ;;  %v4588_v37 = vmul.f32 1.442695, %v12538_v57  ;;  %v4715_v49 = vadd.f32 %v7333_v5, %v7331_v35 }
 0x4c9   :  { %v5390_v10 = vadd.f32 %v12130_v23, %v5357_v28  ;;  %v7339_v3 = vpop.eup %7338  ;;  %7348 = vrcp.f32 %v5563_v54  ;;  %v4684_v0 = vmul.f32 1.442695, %v4621_v48  ;;  %v5520_v27 = vmul.f32 1.442695, %v5473_v20  ;;  %v5399_v54 = vpop.xlane.xlu0 %5398  ;;  %v12572_v48 = vld [vmem:[#allocation5 + $0x6] ss:$0 sm:$0xff] }
 0x4ca   :  { %7350 = vrcp.f32 %v5564_v30  ;;  %v5035_v12 = vadd.f32 %v5003_v55, %v4939_v36  ;;  %v5097_v17 = vmul.f32 %v7339_v3, %v4811_v31  ;;  %v5566_v34 = vadd.f32 1.0, %v7335_v33  ;;  %v13420_v30 = vld [vmem:[#allocation34_spill] sm:$0xff] }
 0x4cb   :  { %5450 = vadd.xlane.f32.xlu0 %v5390_v10  ;;  %v7341_v45 = vpop.eup %7340  ;;  %7352 = vrcp.f32 %v5565_v29  ;;  %vm4845_vm6 = vcmp.lt.f32.partialorder %v12538_v57, 0.1  ;;  %v4940_v14 = vadd.f32 1.0, %v4908_v25  ;;  %v5004_v28 = vmul.f32 0.008333334, %v4972_v19  ;;  %v5401_v36 = vpop.xlane.xlu1 %5400 }
 0x4cc   :  { %v5131_v23 = vsel %vm4843_vm15, %v5035_v12, %v5097_v17  ;;  %7354 = vpow2.f32 %v4588_v37  ;;  %v4747_v5 = vmul.f32 0.5, %v4715_v49  ;;  %v4877_v31 = vsel %vm4845_vm6, 1.0, %v12538_v57 }
 0x4cd   :  { %v7343_v35 = vpop.eup %7342  ;;  %v5163_v20 = vmul.f32 %v5131_v23, %v13420_v30  ;;  %7356 = vpow2.f32 %v4684_v0  ;;  %v5567_v55 = vadd.f32 1.0, %v7337_v32  ;;  %v12564_v12 = vadd.f32 1.0, %v7341_v45  ;;  %v5403_v33 = vpop.xlane.xlu0 %5402 }
 0x4ce   :  { %v7345_v24 = vpop.eup %7344  ;;  %7358 = vpow2.f32 %v5520_v27  ;;  %v5474_v37 = vsub.f32 0.0, %v12351_v51  ;;  %v5036_v49 = vadd.f32 %v5004_v28, %v4940_v14  ;;  %v5650_v25 = vsub.f32 0.0, %v5395_v11 }
 0x4cf   :  { %7360 = vrcp.f32 %v5566_v34  ;;  %v12562_v17 = vsel %vm4173_vm0, %v4747_v5, %v5163_v20  ;;  %v4780_v1 = vsub.f32 %v7343_v35, %v7345_v24  ;;  %v4973_v34 = vmul.f32 %v12215_v50, %v12215_v50  ;;  %v5405_v3 = vpop.xlane.xlu1 %5404 }
 0x4d0   :  { %13421 = vst [vmem:[#allocation63_spill] sm:$0xff] %v12562_v17  ;;  %v5358_v0 = vmul.f32 %v12540_v56, %v12562_v17  ;;  %5999 = vst [vmem:[#allocation8 + $0xe8] sm:$0xff] %v12562_v17  ;;  %7362 = vrcp.f32 %v4877_v31  ;;  %v4716_v32 = vadd.f32 %v7345_v24, %v7343_v35  ;;  %v5651_v51 = vsub.f32 0.0, %v5397_v9 }
 0x4d1   :  { %v4812_v29 = vmul.f32 0.5, %v4780_v1  ;;  %v5652_v10 = vsub.f32 0.0, %v5399_v54  ;;  %v4909_v14 = vmul.f32 0.16666667, %v12215_v50  ;;  %v5682_v28 = vmul.f32 1.442695, %v5650_v25 }
 0x4d2   :  { %v7347_v19 = vpop.eup %7346  ;;  %v5391_v45 = vadd.f32 %v12572_v48, %v5358_v0  ;;  %v5653_v5 = vsub.f32 0.0, %v5401_v36  ;;  %v5475_v11 = vsub.f32 0.0, %v12361_v60  ;;  %v5684_v20 = vmul.f32 1.442695, %v5651_v51  ;;  %v5407_v0 = vpop.xlane.xlu0 %5406  ;;  %v13422_v36 = vld [vmem:[#allocation45_spill] sm:$0xff] }
 0x4d3   :  { %v12575_v27 = vpop.eup %7348  ;;  %v5099_v23 = vmul.f32 %v7347_v19, %v4812_v29  ;;  %v5686_v31 = vmul.f32 1.442695, %v5652_v10  ;;  %v5654_v1 = vsub.f32 0.0, %v5403_v33  ;;  %v5522_v9 = vmul.f32 1.442695, %v5474_v37  ;;  %v5409_v60 = vpop.xlane.xlu1 %5408 }
 0x4d4   :  { %v12578_v30 = vpop.eup %7350  ;;  %5452 = vadd.xlane.f32.xlu1 %v5391_v45  ;;  %7364 = vpow2.f32 %v5682_v28  ;;  %v5688_v24 = vmul.f32 1.442695, %v5653_v5  ;;  %v4748_v29 = vmul.f32 0.5, %v4716_v32  ;;  %v5005_v51 = vmul.f32 0.008333334, %v4973_v34 }
 0x4d5   :  { %v12581_v35 = vpop.eup %7352  ;;  %v5132_v54 = vsel %vm4844_vm4, %v5036_v49, %v5099_v23  ;;  %7366 = vpow2.f32 %v5684_v20  ;;  %v5690_v19 = vmul.f32 1.442695, %v5654_v1  ;;  %v5655_v33 = vsub.f32 0.0, %v5405_v3 }
 0x4d6   :  { %v7355_v50 = vpop.eup %7354  ;;  %v5164_v25 = vmul.f32 %v5132_v54, %v13422_v36  ;;  %7368 = vpow2.f32 %v5686_v31  ;;  %v5656_v10 = vsub.f32 0.0, %v5407_v0  ;;  %v4941_v49 = vadd.f32 1.0, %v4909_v14  ;;  %v5411_v3 = vpop.xlane.xlu0 %5410 }
 0x4d7   :  { %v7357_v45 = vpop.eup %7356  ;;  %7370 = vpow2.f32 %v5688_v24  ;;  %v5476_v23 = vsub.f32 0.0, %v12379_v61  ;;  %v5692_v34 = vmul.f32 1.442695, %v5655_v33  ;;  %v5657_v31 = vsub.f32 0.0, %v5409_v60  ;;  %v5413_v1 = vpop.xlane.xlu1 %5412 }
 0x4d8   :  { %v12586_v17 = vpop.eup %7358  ;;  %v12590_v44 = vsel %vm4173_vm0, %v4748_v29, %v5164_v25  ;;  %v4781_v37 = vsub.f32 %v7355_v50, %v7357_v45  ;;  %7372 = vpow2.f32 %v5690_v19  ;;  %v5694_v20 = vmul.f32 1.442695, %v5656_v10  ;;  %v13423_v10 = vld [vmem:[#allocation42_spill] sm:$0xff] }
 0x4d9   :  { %v12592_v32 = vpop.eup %7360  ;;  %v5359_v28 = vmul.f32 %v12540_v56, %v12590_v44  ;;  %6000 = vst [vmem:[#allocation8 + $0xf0] sm:$0xff] %v12590_v44  ;;  %7374 = vrcp.f32 %v5567_v55  ;;  %v5524_v14 = vmul.f32 1.442695, %v5475_v11  ;;  %v4717_v24 = vadd.f32 %v7357_v45, %v7355_v50 }
 0x4da   :  { %v4813_v5 = vmul.f32 0.5, %v4781_v37  ;;  %v7363_v0 = vpop.eup %7362  ;;  %7376 = vpow2.f32 %v5692_v34  ;;  %v5037_v61 = vadd.f32 %v5005_v51, %v4941_v49  ;;  %v5696_v36 = vmul.f32 1.442695, %v5657_v31  ;;  %v5415_v19 = vpop.xlane.xlu0 %5414 }
 0x4db   :  { %v5392_v54 = vadd.f32 %v12572_v48, %v5359_v28  ;;  %7378 = vrcp.f32 %v12564_v12  ;;  %v5526_v25 = vmul.f32 1.442695, %v5476_v23  ;;  %v5417_v60 = vpop.xlane.xlu1 %5416  ;;  %v4749_v11 = vmul.f32 0.5, %v4717_v24 }
 0x4dc   :  { %v5101_v29 = vmul.f32 %v7363_v0, %v4813_v5  ;;  %7380 = vpow2.f32 %v5522_v9  ;;  %v5658_v45 = vsub.f32 0.0, %v5411_v3  ;;  %v5659_v57 = vsub.f32 0.0, %v5413_v1 }
 0x4dd   :  { %5454 = vadd.xlane.f32.xlu0 %v5392_v54  ;;  %7382 = vpow2.f32 %v5694_v20  ;;  %v5660_v5 = vsub.f32 0.0, %v5415_v19  ;;  %v5661_v24 = vsub.f32 0.0, %v5417_v60 }
 0x4de   :  { %v5133_v55 = vsel %vm4845_vm6, %v5037_v61, %v5101_v29  ;;  %v7365_v33 = vpop.eup %7364  ;;  %7384 = vpow2.f32 %v5524_v14  ;;  %v5419_v23 = vpop.xlane.xlu0 %5418  ;;  %v5698_v14 = vmul.f32 1.442695, %v5658_v45 }
 0x4df   :  { %v5165_v50 = vmul.f32 %v5133_v55, %v13423_v10  ;;  %v7367_v37 = vpop.eup %7366  ;;  %v5746_v12 = vadd.f32 1.0, %v7365_v33  ;;  %7386 = vpow2.f32 %v5696_v36  ;;  %v5421_v20 = vpop.xlane.xlu1 %5420  ;;  %v5702_v19 = vmul.f32 1.442695, %v5660_v5 }
 0x4e0   :  { %v7369_v51 = vpop.eup %7368  ;;  %7388 = vpow2.f32 %v5526_v25  ;;  %v5747_v49 = vadd.f32 1.0, %v7367_v37  ;;  %v5662_v55 = vsub.f32 0.0, %v5419_v23  ;;  %v5663_v10 = vsub.f32 0.0, %v5421_v20 }
 0x4e1   :  { %v12605_v9 = vsel %vm4173_vm0, %v4749_v11, %v5165_v50  ;;  %v7371_v28 = vpop.eup %7370  ;;  %7390 = vrcp.f32 %v5746_v12  ;;  %v5748_v3 = vadd.f32 1.0, %v7369_v51  ;;  %v5704_v50 = vmul.f32 1.442695, %v5661_v24 }
 0x4e2   :  { %v5360_v34 = vmul.f32 %v12540_v56, %v12605_v9  ;;  %6001 = vst [vmem:[#allocation8 + $0xf8] sm:$0xff] %v12605_v9  ;;  %v7373_v31 = vpop.eup %7372  ;;  %7392 = vrcp.f32 %v5747_v49  ;;  %v5749_v0 = vadd.f32 1.0, %v7371_v28  ;;  %v5700_v56 = vmul.f32 1.442695, %v5659_v57  ;;  %v5423_v29 = vpop.xlane.xlu0 %5422  ;;  %v7575_v49 = vld [vmem:[#allocation7] sm:$0xff] }
 0x4e3   :  { %v12610_v16 = vpop.eup %7374  ;;  %7394 = vrcp.f32 %v5748_v3  ;;  %v5750_v1 = vadd.f32 1.0, %v7373_v31  ;;  %v5664_v60 = vsub.f32 0.0, %v5423_v29  ;;  %v5842_v57 = vmul.f32 %v7575_v49, %v12234_v62  ;;  %v7582_v49 = vld [vmem:[#allocation7 + $0x20] sm:$0xff] }
 0x4e4   :  { %v5393_v54 = vadd.f32 %v12572_v48, %v5360_v34  ;;  %v7377_v61 = vpop.eup %7376  ;;  %7396 = vrcp.f32 %v5749_v0  ;;  %v5706_v23 = vmul.f32 1.442695, %v5662_v55  ;;  %v7576_v34 = vld [vmem:[#allocation7 + $0x8] sm:$0xff]  ;;  %v5708_v20 = vmul.f32 1.442695, %v5663_v10  ;;  %v7577_v0 = vld [vmem:[#allocation7 + $0x10] sm:$0xff] }
 0x4e5   :  { %v12613_v36 = vpop.eup %7378  ;;  %7398 = vrcp.f32 %v5750_v1  ;;  %v5751_v25 = vadd.f32 1.0, %v7377_v61  ;;  %v5843_v3 = vmul.f32 %v7576_v34, %v12270_v63  ;;  %v5710_v1 = vmul.f32 1.442695, %v5664_v60  ;;  %v7578_v61 = vld [vmem:[#allocation8] sm:$0xff]  ;;  %v7579_v63 = vld [vmem:[#allocation7 + $0x18] sm:$0xff]  ;;  %v7580_v10 = vld [vmem:[#allocation8 + $0x8] sm:$0xff] }
 0x4e6   :  { %5456 = vadd.xlane.f32.xlu1 %v5393_v54  ;;  %v12615_v11 = vpop.eup %7380  ;;  %7400 = vpow2.f32 %v5698_v14  ;;  %v5844_v14 = vmul.f32 %v7577_v0, %v12306_v59  ;;  %v5477_v54 = vsub.f32 0.0, %v12383_v22  ;;  %v5845_v55 = vmul.f32 %v7579_v63, %v12313_v8 }
 0x4e7   :  { %v7383_v48 = vpop.eup %7382  ;;  %7402 = vrcp.f32 %v5751_v25 }
 0x4e8   :  { %v12617_v45 = vpop.eup %7384  ;;  %v5752_v37 = vadd.f32 1.0, %v7383_v48  ;;  %7404 = vpow2.f32 %v5700_v56  ;;  %v5528_v0 = vmul.f32 1.442695, %v5477_v54 }
 0x4e9   :  { %v7387_v51 = vpop.eup %7386  ;;  %7406 = vpow2.f32 %v5702_v19 }
 0x4ea   :  { %v5425_v33 = vpop.xlane.xlu1 %5424  ;;  %v12620_v28 = vpop.eup %7388  ;;  %7408 = vrcp.f32 %v5752_v37  ;;  %v5753_v5 = vadd.f32 1.0, %v7387_v51 }
 0x4eb   :  { %v5665_v12 = vsub.f32 0.0, %v5425_v33  ;;  %v7391_v31 = vpop.eup %7390  ;;  %7410 = vpow2.f32 %v5704_v50  ;;  %v5569_v33 = vadd.f32 1.0, %v12586_v17  ;;  %v7581_v50 = vld [vmem:[#allocation8 + $0x10] sm:$0xff] }
 0x4ec   :  { %v7393_v62 = vpop.eup %7392  ;;  %v5874_v56 = vmul.f32 %v7578_v61, %v7391_v31  ;;  %7412 = vrcp.f32 %v5753_v5  ;;  %v7583_v5 = vld [vmem:[#allocation8 + $0x18] sm:$0xff] }
 0x4ed   :  { %v5712_v29 = vmul.f32 1.442695, %v5665_v12  ;;  %v7395_v19 = vpop.eup %7394  ;;  %v5875_v48 = vmul.f32 %v7580_v10, %v7393_v62  ;;  %7414 = vpow2.f32 %v5706_v23  ;;  %v5846_v12 = vmul.f32 %v7582_v49, %v12343_v38  ;;  %v7585_v62 = vld [vmem:[#allocation7 + $0x28] sm:$0xff] }
 0x4ee   :  { %v7397_v59 = vpop.eup %7396  ;;  %v5906_v22 = vadd.f32 %v5874_v56, %v5842_v57  ;;  %v5876_v60 = vmul.f32 %v7581_v50, %v7395_v19  ;;  %7416 = vpow2.f32 %v5708_v20  ;;  %v5847_v20 = vmul.f32 %v7585_v62, %v12355_v6  ;;  %v7588_v50 = vld [vmem:[#allocation8 + $0x30] sm:$0xff] }
 0x4ef   :  { %v7399_v51 = vpop.eup %7398  ;;  %v5907_v34 = vadd.f32 %v5875_v48, %v5843_v3  ;;  %v5877_v31 = vmul.f32 %v7583_v5, %v7397_v59  ;;  %7418 = vpow2.f32 %v5710_v1  ;;  %v7587_v59 = vld [vmem:[#allocation7 + $0x30] sm:$0xff] }
 0x4f0   :  { %v7401_v8 = vpop.eup %7400  ;;  %6002 = vst [vmem:[#allocation10] sm:$0xff] %v5906_v22  ;;  %v5908_v17 = vadd.f32 %v5876_v60, %v5844_v14  ;;  %7420 = vpow2.f32 %v5712_v29  ;;  %v5848_v22 = vmul.f32 %v7587_v59, %v12473_v53 }
 0x4f1   :  { %v7403_v57 = vpop.eup %7402  ;;  %6003 = vst [vmem:[#allocation10 + $0x8] sm:$0xff] %v5907_v34  ;;  %v5909_v61 = vadd.f32 %v5877_v31, %v5845_v55  ;;  %v5754_v56 = vadd.f32 1.0, %v7401_v8  ;;  %v7590_v31 = vld [vmem:[#allocation8 + $0x38] sm:$0xff] }
 0x4f2   :  { %v5427_v24 = vpop.xlane.xlu0 %5426  ;;  %v7405_v3 = vpop.eup %7404  ;;  %6004 = vst [vmem:[#allocation10 + $0x10] sm:$0xff] %v5908_v17 }
 0x4f3   :  { %v5666_v25 = vsub.f32 0.0, %v5427_v24  ;;  %v7584_v24 = vld [vmem:[#allocation8 + $0x20] sm:$0xff]  ;;  %v7407_v14 = vpop.eup %7406  ;;  %6005 = vst [vmem:[#allocation10 + $0x18] sm:$0xff] %v5909_v61  ;;  %v5755_v29 = vadd.f32 1.0, %v7405_v3 }
 0x4f4   :  { %v5878_v23 = vmul.f32 %v7584_v24, %v7399_v51  ;;  %v7409_v63 = vpop.eup %7408  ;;  %v5756_v10 = vadd.f32 1.0, %v7407_v14  ;;  %v5571_v14 = vadd.f32 1.0, %v12617_v45  ;;  %v7596_v45 = vld [vmem:[#allocation8 + $0x50] sm:$0xff] }
 0x4f5   :  { %v5714_v37 = vmul.f32 1.442695, %v5666_v25  ;;  %v7586_v25 = vld [vmem:[#allocation8 + $0x28] sm:$0xff]  ;;  %v7411_v48 = vpop.eup %7410  ;;  %v5880_v60 = vmul.f32 %v7588_v50, %v7409_v63 }
 0x4f6   :  { %v5910_v1 = vadd.f32 %v5878_v23, %v5846_v12  ;;  %v5879_v54 = vmul.f32 %v7586_v25, %v7403_v57  ;;  %v5757_v51 = vadd.f32 1.0, %v7411_v48  ;;  %v7589_v12 = vld [vmem:[#allocation7 + $0x38] sm:$0xff]  ;;  %v7593_v48 = vld [vmem:[#allocation7 + $0x48] sm:$0xff] }
 0x4f7   :  { %7422 = vpow2.f32 %v5714_v37  ;;  %v7413_v37 = vpop.eup %7412  ;;  %v5849_v34 = vmul.f32 %v7589_v12, %v12487_v40  ;;  %v5912_v5 = vadd.f32 %v5880_v60, %v5848_v22  ;;  %v5851_v59 = vmul.f32 %v7593_v48, %v12575_v27  ;;  %v7605_v48 = vld [vmem:[#allocation7 + $0x78] sm:$0xff] }
 0x4f8   :  { %v5429_v38 = vpop.xlane.xlu1 %5428  ;;  %7424 = vrcp.f32 %v5569_v33  ;;  %6006 = vst [vmem:[#allocation10 + $0x20] sm:$0xff] %v5910_v1  ;;  %v5911_v6 = vadd.f32 %v5879_v54, %v5847_v20  ;;  %v5570_v33 = vadd.f32 1.0, %v12615_v11  ;;  %v7415_v49 = vpop.eup %7414  ;;  %v5881_v8 = vmul.f32 %v7590_v31, %v7413_v37  ;;  %v7591_v54 = vld [vmem:[#allocation7 + $0x40] sm:$0xff] }
 0x4f9   :  { %v5667_v19 = vsub.f32 0.0, %v5429_v38  ;;  %7426 = vrcp.f32 %v5754_v56  ;;  %v7417_v17 = vpop.eup %7416  ;;  %v5758_v53 = vadd.f32 1.0, %v7415_v49  ;;  %6008 = vst [vmem:[#allocation10 + $0x30] sm:$0xff] %v5912_v5  ;;  %v7597_v5 = vld [vmem:[#allocation7 + $0x58] sm:$0xff] }
 0x4fa   :  { %7428 = vpow2.f32 %v5528_v0  ;;  %6007 = vst [vmem:[#allocation10 + $0x28] sm:$0xff] %v5911_v6  ;;  %v7419_v24 = vpop.eup %7418  ;;  %v5913_v23 = vadd.f32 %v5881_v8, %v5849_v34  ;;  %v5759_v57 = vadd.f32 1.0, %v7417_v17 }
 0x4fb   :  { %v5716_v55 = vmul.f32 1.442695, %v5667_v19  ;;  %7430 = vrcp.f32 %v5755_v29  ;;  %v7421_v62 = vpop.eup %7420  ;;  %v5760_v20 = vadd.f32 1.0, %v7419_v24  ;;  %v5850_v19 = vmul.f32 %v7591_v54, %v12517_v26  ;;  %v7592_v29 = vld [vmem:[#allocation8 + $0x40] sm:$0xff]  ;;  %v7602_v54 = vld [vmem:[#allocation8 + $0x68] sm:$0xff] }
 0x4fc   :  { %7432 = vrcp.f32 %v5756_v10  ;;  %6009 = vst [vmem:[#allocation10 + $0x38] sm:$0xff] %v5913_v23  ;;  %v5761_v40 = vadd.f32 1.0, %v7421_v62  ;;  %v5478_v10 = vsub.f32 0.0, %v12401_v58  ;;  %v5853_v58 = vmul.f32 %v7597_v5, %v12581_v35  ;;  %v7600_v35 = vld [vmem:[#allocation8 + $0x60] sm:$0xff] }
 0x4fd   :  { %7434 = vpow2.f32 %v5716_v55 }
 0x4fe   :  { %v5431_v0 = vpop.xlane.xlu0 %5430  ;;  %7436 = vrcp.f32 %v5757_v51  ;;  %v7595_v51 = vld [vmem:[#allocation7 + $0x50] sm:$0xff] }
 0x4ff   :  { %v5668_v11 = vsub.f32 0.0, %v5431_v0  ;;  %7438 = vrcp.f32 %v5570_v33  ;;  %v7594_v33 = vld [vmem:[#allocation8 + $0x48] sm:$0xff]  ;;  %v5852_v26 = vmul.f32 %v7595_v51, %v12578_v30  ;;  %v5530_v0 = vmul.f32 1.442695, %v5478_v10 }
 0x500   :  { %7440 = vrcp.f32 %v5758_v53  ;;  %v7598_v53 = vld [vmem:[#allocation8 + $0x58] sm:$0xff] }
 0x501   :  { %v7423_v61 = vpop.eup %7422  ;;  %7442 = vrcp.f32 %v5759_v57  ;;  %v5718_v56 = vmul.f32 1.442695, %v5668_v11  ;;  %v7599_v57 = vld [vmem:[#allocation7 + $0x60] sm:$0xff] }
 0x502   :  { %v12632_v38 = vpop.eup %7424  ;;  %7444 = vrcp.f32 %v5760_v20  ;;  %v5762_v3 = vadd.f32 1.0, %v7423_v61  ;;  %v5854_v62 = vmul.f32 %v7599_v57, %v12592_v32 }
 0x503   :  { %v7427_v1 = vpop.eup %7426  ;;  %7446 = vrcp.f32 %v5761_v40 }
 0x504   :  { %v12634_v25 = vpop.eup %7428  ;;  %v5882_v63 = vmul.f32 %v7592_v29, %v7427_v1  ;;  %7448 = vrcp.f32 %v5762_v3  ;;  %v5572_v1 = vadd.f32 1.0, %v12620_v28  ;;  %v7603_v29 = vld [vmem:[#allocation7 + $0x70] sm:$0xff] }
 0x505   :  { %v7431_v6 = vpop.eup %7430  ;;  %7450 = vpow2.f32 %v5718_v56  ;;  %v7601_v56 = vld [vmem:[#allocation7 + $0x68] sm:$0xff] }
 0x506   :  { %v7433_v55 = vpop.eup %7432  ;;  %v5914_v22 = vadd.f32 %v5882_v63, %v5850_v19  ;;  %v5883_v50 = vmul.f32 %v7594_v33, %v7431_v6  ;;  %7452 = vrcp.f32 %v5571_v14  ;;  %v5855_v3 = vmul.f32 %v7601_v56, %v12610_v16  ;;  %v7604_v6 = vld [vmem:[#allocation8 + $0x70] sm:$0xff]  ;;  %v7606_v33 = vld [vmem:[#allocation8 + $0x78] sm:$0xff] }
 0x507   :  { %v5433_v60 = vpop.xlane.xlu1 %5432  ;;  %v7435_v37 = vpop.eup %7434  ;;  %v5884_v49 = vmul.f32 %v7596_v45, %v7433_v55  ;;  %v5856_v63 = vmul.f32 %v7603_v29, %v12613_v36 }
 0x508   :  { %v5669_v12 = vsub.f32 0.0, %v5433_v60  ;;  %v7437_v34 = vpop.eup %7436  ;;  %6010 = vst [vmem:[#allocation10 + $0x40] sm:$0xff] %v5914_v22  ;;  %v5915_v31 = vadd.f32 %v5883_v50, %v5851_v59  ;;  %v5763_v8 = vadd.f32 1.0, %v7435_v37  ;;  %v5857_v59 = vmul.f32 %v7605_v48, %v12632_v38  ;;  %v7607_v60 = vld [vmem:[#allocation7 + $0x80] sm:$0xff] }
 0x509   :  { %v7439_v27 = vpop.eup %7438  ;;  %v5916_v17 = vadd.f32 %v5884_v49, %v5852_v26  ;;  %v5885_v11 = vmul.f32 %v7598_v53, %v7437_v34  ;;  %v7608_v26 = vld [vmem:[#allocation8 + $0x80] sm:$0xff]  ;;  %v5479_v34 = vsub.f32 0.0, %v12408_v43 }
 0x50a   :  { %v5720_v24 = vmul.f32 1.442695, %v5669_v12  ;;  %v7441_v23 = vpop.eup %7440  ;;  %6011 = vst [vmem:[#allocation10 + $0x48] sm:$0xff] %v5915_v31  ;;  %7454 = vrcp.f32 %v5763_v8  ;;  %v5858_v37 = vmul.f32 %v7607_v60, %v7439_v27  ;;  %v5573_v31 = vadd.f32 1.0, %v12634_v25 }
 0x50b   :  { %v7443_v30 = vpop.eup %7442  ;;  %6012 = vst [vmem:[#allocation10 + $0x50] sm:$0xff] %v5916_v17  ;;  %v5917_v20 = vadd.f32 %v5885_v11, %v5853_v58  ;;  %v5886_v61 = vmul.f32 %v7600_v35, %v7441_v23  ;;  %v5532_v53 = vmul.f32 1.442695, %v5479_v34  ;;  %v7610_v11 = vld [vmem:[#allocation8 + $0x88] sm:$0xff] }
 0x50c   :  { %7456 = vpow2.f32 %v5720_v24  ;;  %v7445_v40 = vpop.eup %7444  ;;  %v5887_v19 = vmul.f32 %v7602_v54, %v7443_v30 }
 0x50d   :  { %v7447_v14 = vpop.eup %7446  ;;  %7458 = vpow2.f32 %v5530_v0  ;;  %6013 = vst [vmem:[#allocation10 + $0x58] sm:$0xff] %v5917_v20  ;;  %v5918_v32 = vadd.f32 %v5886_v61, %v5854_v62  ;;  %v5888_v10 = vmul.f32 %v7604_v6, %v7445_v40  ;;  %v7609_v0 = vld [vmem:[#allocation7 + $0x88] sm:$0xff]  ;;  %v5480_v62 = vsub.f32 0.0, %v12422_v2 }
 0x50e   :  { %v7449_v55 = vpop.eup %7448  ;;  %v5919_v22 = vadd.f32 %v5887_v19, %v5855_v3  ;;  %v5889_v16 = vmul.f32 %v7606_v33, %v7447_v14  ;;  %7460 = vrcp.f32 %v5572_v1 }
 0x50f   :  { %v5435_v50 = vpop.xlane.xlu0 %5434  ;;  %v7451_v28 = vpop.eup %7450  ;;  %6014 = vst [vmem:[#allocation10 + $0x60] sm:$0xff] %v5918_v32  ;;  %v5920_v51 = vadd.f32 %v5888_v10, %v5856_v63  ;;  %v5890_v36 = vmul.f32 %v7608_v26, %v7449_v55 }
 0x510   :  { %v5670_v45 = vsub.f32 0.0, %v5435_v50  ;;  %6015 = vst [vmem:[#allocation10 + $0x68] sm:$0xff] %v5919_v22  ;;  %v5921_v49 = vadd.f32 %v5889_v16, %v5857_v59  ;;  %v5764_v12 = vadd.f32 1.0, %v7451_v28  ;;  %v7453_v58 = vpop.eup %7452 }
 0x511   :  { %6016 = vst [vmem:[#allocation10 + $0x70] sm:$0xff] %v5920_v51  ;;  %v5922_v38 = vadd.f32 %v5890_v36, %v5858_v37  ;;  %v5859_v17 = vmul.f32 %v7609_v0, %v7453_v58 }
 0x512   :  { %v5722_v5 = vmul.f32 1.442695, %v5670_v45  ;;  %6017 = vst [vmem:[#allocation10 + $0x78] sm:$0xff] %v5921_v49  ;;  %7462 = vrcp.f32 %v5764_v12 }
 0x513   :  { %6018 = vst [vmem:[#allocation10 + $0x80] sm:$0xff] %v5922_v38 }
 0x514   :  { %7464 = vpow2.f32 %v5722_v5  ;;  %v7455_v8 = vpop.eup %7454 }
 0x515   :  { %v5891_v24 = vmul.f32 %v7610_v11, %v7455_v8  ;;  %7466 = vrcp.f32 %v5573_v31 }
 0x516   :  { %v7457_v27 = vpop.eup %7456 }
 0x517   :  { %v5765_v23 = vadd.f32 1.0, %v7457_v27  ;;  %v7459_v43 = vpop.eup %7458  ;;  %v5923_v30 = vadd.f32 %v5891_v24, %v5859_v17 }
 0x518   :  { %v7461_v57 = vpop.eup %7460  ;;  %v5574_v25 = vadd.f32 1.0, %v7459_v43 }
 0x519   :  { %7468 = vrcp.f32 %v5765_v23  ;;  %6019 = vst [vmem:[#allocation10 + $0x88] sm:$0xff] %v5923_v30 }
 0x51a   :  { %7470 = vpow2.f32 %v5532_v53  ;;  %v5437_v20 = vpop.xlane.xlu1 %5436 }
 0x51b   :  { %v5671_v35 = vsub.f32 0.0, %v5437_v20 }
 0x51c   :  { %v7463_v61 = vpop.eup %7462 }
 0x51d   :  { %7667 = shalt.err (!%p7664_p6)
}
 0x51e   :  { %s7668_s25 = scalar_lea.hbm %s12743_s5, 4096 }
 0x51f   :  { %p7669_p7 = scmp.ne.s32.totalorder %s12743_s5, %s7668_s25  ;;  %p7672_p8 = scmp.lt.u32.totalorder %s7668_s25, %s12743_s5 }
 0x521   :  { %p7674_p9 = pnand %p7672_p8, %p7669_p7 }
 0x523   :  { %7677 = shalt.err (!%p7674_p9)
}
 0x524   :  { %6057 = dma.vmem_to_hbm [thread:$0]  %s6052_s20, 4096, %s12743_s5, [#allocation9], %s7731_s7, %s7731_s7, %s7732_s8   ;;  %v7465_v2 = vpop.eup %7464  ;;  %v7611_v40 = vld [vmem:[#allocation7 + $0x90] sm:$0xff]  ;;  %v5892_v3 = vmul.f32 %v7463_v61, %v12144_v42  ;;  %v5724_v1 = vmul.f32 1.442695, %v5671_v35 }
 0x525   :  { %v5860_v56 = vmul.f32 %v7611_v40, %v7461_v57  ;;  %s7678_s9 = scalar_lea.vmem %s12650_s21, 4096  ;;  %p7683_p11 = scmp.lt.s32.totalorder %s12650_s21, %s12650_s21 }
 0x526   :  { %p7679_p10 = scmp.ne.s32.totalorder %s12650_s21, %s7678_s9  ;;  %p7684_p12 = scmp.lt.s32.totalorder %s7678_s9, %s7678_s9 }
 0x528   :  { %p7685_p13 = por %p7684_p12, %p7683_p11 }
 0x52a   :  { %p7686_p0 = pnand %p7685_p13, %p7679_p10 }
 0x52c   :  { %7689 = shalt.err (!%p7686_p0)
}
 0x52d   :  { %s7690_s12 = scalar_lea.hbm %s12742_s4, 4096 }
 0x52e   :  { %p7691_p1 = scmp.ne.s32.totalorder %s12742_s4, %s7690_s12  ;;  %p7694_p2 = scmp.lt.u32.totalorder %s7690_s12, %s12742_s4 }
 0x530   :  { %p7696_p3 = pnand %p7694_p2, %p7691_p1 }
 0x532   :  { %7699 = shalt.err (!%p7696_p3)
}
 0x533   :  { %6045 = dma.vmem_to_hbm [thread:$0]  %s12650_s21, 4096, %s12742_s4, [#allocation4], %s7731_s7, %s7731_s7, %s7732_s8   ;;  %7472 = vrcp.f32 %v5574_v25  ;;  %v5534_v42 = vmul.f32 1.442695, %v5480_v62  ;;  %v5766_v54 = vadd.f32 1.0, %v7465_v2  ;;  %v5924_v19 = vadd.f32 %v5892_v3, %v5860_v56  ;;  %v7467_v14 = vpop.eup %7466  ;;  %v13424_v32 = vld [vmem:[#allocation47_spill] sm:$0xff]  ;;  %v5439_v48 = vpop.xlane.xlu0 %5438 }
 0x534   :  { %7474 = vpow2.f32 %v5724_v1  ;;  %v7469_v29 = vpop.eup %7468  ;;  %v5861_v6 = vmul.f32 %v7467_v14, %v13424_v32  ;;  %v5481_v10 = vsub.f32 0.0, %v12432_v41  ;;  %v5672_v59 = vsub.f32 0.0, %v5439_v48  ;;  %v13425_v26 = vld [vmem:[#allocation65_spill] sm:$0xff]  ;;  %v5441_v49 = vpop.xlane.xlu1 %5440  ;;  %v13426_v11 = vld [vmem:[#allocation48_spill] sm:$0xff]  ;;  %v13427_v40 = vld [vmem:[#allocation66_spill] sm:$0xff]  ;;  %s7736_s4 = smov [#allocation10]  }
 0x535   :  { %7476 = vrcp.f32 %v5766_v54  ;;  %6020 = vst [vmem:[#allocation10 + $0x90] sm:$0xff] %v5924_v19  ;;  %v7471_v63 = vpop.eup %7470  ;;  %v5893_v55 = vmul.f32 %v7469_v29, %v12176_v46  ;;  %v5482_v46 = vsub.f32 0.0, %v12451_v7  ;;  %v5673_v34 = vsub.f32 0.0, %v5441_v49  ;;  %s6063_s17 = sshll.u32 %s7736_s4, 4  ;;  %s6064_s17 = int_to_ptr.vmem [resolvable:$true] %s6063_s17 }
 0x536   :  { %7478 = vpow2.f32 %v5534_v42  ;;  %v5575_v33 = vadd.f32 1.0, %v7471_v63  ;;  %v5726_v16 = vmul.f32 1.442695, %v5672_v59  ;;  %v5536_v50 = vmul.f32 1.442695, %v5481_v10  ;;  %s7700_s18 = scalar_lea.vmem %s6064_s17, 4096  ;;  %p7705_p5 = scmp.lt.s32.totalorder %s6064_s17, %s6064_s17 }
 0x537   :  { %v5925_v22 = vadd.f32 %v5893_v55, %v5861_v6  ;;  %v5728_v5 = vmul.f32 1.442695, %v5673_v34  ;;  %v5538_v58 = vmul.f32 1.442695, %v5482_v46  ;;  %v5443_v17 = vpop.xlane.xlu0 %5442  ;;  %v5484_v3 = vsub.f32 0.0, %v12477_v13  ;;  %v13428_v55 = vld [vmem:[#allocation67_spill] sm:$0xff]  ;;  %p7701_p4 = scmp.ne.s32.totalorder %s6064_s17, %s7700_s18  ;;  %p7706_p6 = scmp.lt.s32.totalorder %s7700_s18, %s7700_s18 }
 0x538   :  { %7480 = vpow2.f32 %v5726_v16  ;;  %v5674_v53 = vsub.f32 0.0, %v5443_v17  ;;  %v5485_v59 = vsub.f32 0.0, %v12484_v52  ;;  %v13430_v52 = vld [vmem:[#allocation59_spill] sm:$0xff]  ;;  %v13431_v17 = vld [vmem:[#allocation49_spill] sm:$0xff] }
 0x539   :  { %6021 = vst [vmem:[#allocation10 + $0x98] sm:$0xff] %v5925_v22  ;;  %7482 = vrcp.f32 %v5575_v33  ;;  %v5542_v29 = vmul.f32 1.442695, %v5484_v3  ;;  %v13435_v3 = vld [vmem:[#allocation50_spill] sm:$0xff]  ;;  %p7707_p7 = por %p7706_p6, %p7705_p5 }
 0x53a   :  { %7484 = vpow2.f32 %v5536_v50  ;;  %v5730_v30 = vmul.f32 1.442695, %v5674_v53 }
 0x53b   :  { %p7708_p8 = pnand %p7707_p7, %p7701_p4 }
 0x53c   :  { %v5445_v2 = vpop.xlane.xlu1 %5444 }
 0x53d   :  { %v7473_v28 = vpop.eup %7472  ;;  %v5675_v1 = vsub.f32 0.0, %v5445_v2 }
 0x53e   :  { %v7475_v60 = vpop.eup %7474  ;;  %v5862_v36 = vmul.f32 %v7473_v28, %v13425_v26 }
 0x53f   :  { %v7477_v37 = vpop.eup %7476  ;;  %v5767_v51 = vadd.f32 1.0, %v7475_v60  ;;  %v5732_v19 = vmul.f32 1.442695, %v5675_v1  ;;  %v5544_v60 = vmul.f32 1.442695, %v5485_v59  ;;  %v13436_v1 = vld [vmem:[#allocation23_spill] sm:$0xff] }
 0x540   :  { %v5894_v41 = vmul.f32 %v7477_v37, %v12213_v4  ;;  %v7479_v45 = vpop.eup %7478  ;;  %v5483_v4 = vsub.f32 0.0, %v12461_v15 }
 0x541   :  { %7486 = vrcp.f32 %v5767_v51  ;;  %v5576_v38 = vadd.f32 1.0, %v7479_v45 }
 0x542   :  { %v5926_v12 = vadd.f32 %v5894_v41, %v5862_v36  ;;  %7488 = vpow2.f32 %v5728_v5  ;;  %v7481_v31 = vpop.eup %7480  ;;  %v5540_v57 = vmul.f32 1.442695, %v5483_v4  ;;  %v13429_v41 = vld [vmem:[#allocation68_spill] sm:$0xff] }
 0x543   :  { %7490 = vrcp.f32 %v5576_v38  ;;  %v5768_v8 = vadd.f32 1.0, %v7481_v31  ;;  %v7483_v27 = vpop.eup %7482 }
 0x544   :  { %6022 = vst [vmem:[#allocation10 + $0xa0] sm:$0xff] %v5926_v12  ;;  %7492 = vpow2.f32 %v5538_v58  ;;  %v7485_v0 = vpop.eup %7484  ;;  %v5863_v24 = vmul.f32 %v7483_v27, %v13426_v11  ;;  %v13433_v11 = vld [vmem:[#allocation24_spill] sm:$0xff] }
 0x545   :  { %7494 = vrcp.f32 %v5768_v8  ;;  %v5577_v43 = vadd.f32 1.0, %v7485_v0 }
 0x546   :  { %7496 = vpow2.f32 %v5730_v30 }
 0x547   :  { %7498 = vrcp.f32 %v5577_v43 }
 0x548   :  { %7500 = vpow2.f32 %v5540_v57 }
 0x54b   :  { %v7487_v7 = vpop.eup %7486 }
 0x54c   :  { %v5895_v23 = vmul.f32 %v7487_v7, %v12256_v47  ;;  %v7489_v62 = vpop.eup %7488  ;;  %v13432_v7 = vld [vmem:[#allocation60_spill] sm:$0xff] }
 0x54d   :  { %v5769_v20 = vadd.f32 1.0, %v7489_v62  ;;  %v7491_v35 = vpop.eup %7490  ;;  %v5487_v53 = vsub.f32 0.0, %v13432_v7 }
 0x54e   :  { %v5927_v25 = vadd.f32 %v5895_v23, %v5863_v24  ;;  %v7493_v15 = vpop.eup %7492  ;;  %v5864_v56 = vmul.f32 %v7491_v35, %v13427_v40  ;;  %v13434_v40 = vld [vmem:[#allocation61_spill] sm:$0xff] }
 0x54f   :  { %7502 = vrcp.f32 %v5769_v20  ;;  %v7495_v61 = vpop.eup %7494  ;;  %v5578_v42 = vadd.f32 1.0, %v7493_v15  ;;  %v5449_v49 = vpop.xlane.xlu1 %5448  ;;  %v5548_v62 = vmul.f32 1.442695, %v5487_v53  ;;  %v13442_v53 = vld [vmem:[#allocation57_spill] sm:$0xff] }
 0x550   :  { %6023 = vst [vmem:[#allocation10 + $0xa8] sm:$0xff] %v5927_v25  ;;  %v5896_v47 = vmul.f32 %v7495_v61, %v12292_v21  ;;  %v7497_v14 = vpop.eup %7496  ;;  %7504 = vpow2.f32 %v5732_v19  ;;  %v5447_v21 = vpop.xlane.xlu0 %5446  ;;  %v5677_v34 = vsub.f32 0.0, %v5449_v49 }
 0x551   :  { %7506 = vrcp.f32 %v5578_v42  ;;  %v5770_v63 = vadd.f32 1.0, %v7497_v14  ;;  %v7499_v32 = vpop.eup %7498  ;;  %v5676_v22 = vsub.f32 0.0, %v5447_v21  ;;  %v13437_v21 = vld [vmem:[#allocation21_spill] sm:$0xff] }
 0x552   :  { %v5928_v54 = vadd.f32 %v5896_v47, %v5864_v56  ;;  %v7501_v6 = vpop.eup %7500  ;;  %v5865_v48 = vmul.f32 %v7499_v32, %v13428_v55  ;;  %v5736_v58 = vmul.f32 1.442695, %v5677_v34  ;;  %v5488_v56 = vsub.f32 0.0, %v13434_v40 }
 0x553   :  { %7508 = vrcp.f32 %v5770_v63  ;;  %v5579_v33 = vadd.f32 1.0, %v7501_v6  ;;  %v5734_v50 = vmul.f32 1.442695, %v5676_v22  ;;  %v5489_v59 = vsub.f32 0.0, %v13437_v21 }
 0x554   :  { %6024 = vst [vmem:[#allocation10 + $0xb0] sm:$0xff] %v5928_v54  ;;  %7510 = vpow2.f32 %v5542_v29  ;;  %v5550_v63 = vmul.f32 1.442695, %v5488_v56 }
 0x555   :  { %7512 = vpow2.f32 %v5734_v50  ;;  %v13439_v50 = vld [vmem:[#allocation53_spill] sm:$0xff] }
 0x556   :  { %7514 = vrcp.f32 %v5579_v33  ;;  %v13438_v33 = vld [vmem:[#allocation46_spill] sm:$0xff] }
 0x558   :  { %v5451_v23 = vpop.xlane.xlu0 %5450 }
 0x559   :  { %v7503_v10 = vpop.eup %7502  ;;  %v5678_v43 = vsub.f32 0.0, %v5451_v23 }
 0x55a   :  { %v5897_v13 = vmul.f32 %v7503_v10, %v12326_v39  ;;  %v7505_v28 = vpop.eup %7504  ;;  %v5486_v39 = vsub.f32 0.0, %v12504_v18 }
 0x55b   :  { %v7507_v37 = vpop.eup %7506  ;;  %v5771_v51 = vadd.f32 1.0, %v7505_v28  ;;  %v5738_v25 = vmul.f32 1.442695, %v5678_v43 }
 0x55c   :  { %v5929_v16 = vadd.f32 %v5897_v13, %v5865_v48  ;;  %v5866_v45 = vmul.f32 %v7507_v37, %v13429_v41  ;;  %v5546_v5 = vmul.f32 1.442695, %v5486_v39 }
 0x55d   :  { %v7509_v26 = vpop.eup %7508  ;;  %7516 = vrcp.f32 %v5771_v51 }
 0x55e   :  { %6025 = vst [vmem:[#allocation10 + $0xb8] sm:$0xff] %v5929_v16  ;;  %v7511_v36 = vpop.eup %7510  ;;  %7518 = vpow2.f32 %v5544_v60  ;;  %v5898_v46 = vmul.f32 %v7509_v26, %v13430_v52 }
 0x55f   :  { %v5580_v38 = vadd.f32 1.0, %v7511_v36  ;;  %v7513_v31 = vpop.eup %7512  ;;  %7520 = vpow2.f32 %v5736_v58  ;;  %v5552_v36 = vmul.f32 1.442695, %v5489_v59 }
 0x560   :  { %v5930_v12 = vadd.f32 %v5898_v46, %v5866_v45  ;;  %v7515_v8 = vpop.eup %7514  ;;  %v5772_v27 = vadd.f32 1.0, %v7513_v31 }
 0x561   :  { %7522 = vrcp.f32 %v5580_v38  ;;  %v5867_v18 = vmul.f32 %v7515_v8, %v13431_v17  ;;  %v5453_v54 = vpop.xlane.xlu1 %5452  ;;  %v13441_v38 = vld [vmem:[#allocation62_spill] sm:$0xff] }
 0x562   :  { %6026 = vst [vmem:[#allocation10 + $0xc0] sm:$0xff] %v5930_v12  ;;  %7524 = vpow2.f32 %v5546_v5  ;;  %v5679_v19 = vsub.f32 0.0, %v5453_v54  ;;  %v13440_v12 = vld [vmem:[#allocation18_spill] sm:$0xff] }
 0x563   :  { %7526 = vrcp.f32 %v5772_v27 }
 0x564   :  { %7528 = vpow2.f32 %v5738_v25  ;;  %v5740_v32 = vmul.f32 1.442695, %v5679_v19 }
 0x567   :  { %v7517_v0 = vpop.eup %7516 }
 0x568   :  { %v7519_v4 = vpop.eup %7518  ;;  %v5899_v24 = vmul.f32 %v7517_v0, %v13433_v11 }
 0x569   :  { %v5581_v57 = vadd.f32 1.0, %v7519_v4  ;;  %v7521_v20 = vpop.eup %7520 }
 0x56a   :  { %v5931_v30 = vadd.f32 %v5899_v24, %v5867_v18  ;;  %v5773_v15 = vadd.f32 1.0, %v7521_v20  ;;  %v5455_v22 = vpop.xlane.xlu0 %5454  ;;  %v13443_v24 = vld [vmem:[#allocation63_spill] sm:$0xff] }
 0x56b   :  { %v7523_v35 = vpop.eup %7522  ;;  %7530 = vrcp.f32 %v5581_v57  ;;  %v5680_v60 = vsub.f32 0.0, %v5455_v22 }
 0x56c   :  { %6027 = vst [vmem:[#allocation10 + $0xc8] sm:$0xff] %v5931_v30  ;;  %v7525_v61 = vpop.eup %7524  ;;  %7532 = vpow2.f32 %v5548_v62  ;;  %v5868_v47 = vmul.f32 %v7523_v35, %v13435_v3  ;;  %v13444_v35 = vld [vmem:[#allocation19_spill] sm:$0xff]  ;;  %v13445_v3 = vld [vmem:[#allocation58_spill] sm:$0xff] }
 0x56d   :  { %v7527_v2 = vpop.eup %7526  ;;  %7534 = vrcp.f32 %v5773_v15  ;;  %v5582_v14 = vadd.f32 1.0, %v7525_v61  ;;  %v5742_v26 = vmul.f32 1.442695, %v5680_v60 }
 0x56e   :  { %v5900_v42 = vmul.f32 %v7527_v2, %v13436_v1  ;;  %v7529_v6 = vpop.eup %7528  ;;  %7536 = vpow2.f32 %v5740_v32 }
 0x56f   :  { %7538 = vrcp.f32 %v5582_v14  ;;  %v5774_v10 = vadd.f32 1.0, %v7529_v6 }
 0x570   :  { %v5932_v29 = vadd.f32 %v5900_v42, %v5868_v47  ;;  %7540 = vpow2.f32 %v5550_v63 }
 0x571   :  { %7542 = vrcp.f32 %v5774_v10 }
 0x572   :  { %6028 = vst [vmem:[#allocation10 + $0xd0] sm:$0xff] %v5932_v29  ;;  %7544 = vpow2.f32 %v5742_v26 }
 0x573   :  { %v5457_v49 = vpop.xlane.xlu1 %5456 }
 0x574   :  { %v5681_v58 = vsub.f32 0.0, %v5457_v49 }
 0x575   :  { %v7531_v55 = vpop.eup %7530 }
 0x576   :  { %v7533_v48 = vpop.eup %7532  ;;  %v5869_v16 = vmul.f32 %v13438_v33, %v7531_v55  ;;  %v5744_v27 = vmul.f32 1.442695, %v5681_v58 }
 0x577   :  { %v7535_v13 = vpop.eup %7534  ;;  %v5583_v37 = vadd.f32 1.0, %v7533_v48 }
 0x578   :  { %v5901_v28 = vmul.f32 %v7535_v13, %v13439_v50  ;;  %v7537_v41 = vpop.eup %7536 }
 0x579   :  { %v7539_v45 = vpop.eup %7538  ;;  %7546 = vrcp.f32 %v5583_v37  ;;  %v5775_v39 = vadd.f32 1.0, %v7537_v41 }
 0x57a   :  { %v5933_v51 = vadd.f32 %v5901_v28, %v5869_v16  ;;  %v7541_v52 = vpop.eup %7540  ;;  %7548 = vpow2.f32 %v5552_v36  ;;  %v5870_v34 = vmul.f32 %v13440_v12, %v7539_v45 }
 0x57b   :  { %v7543_v46 = vpop.eup %7542  ;;  %7550 = vrcp.f32 %v5775_v39  ;;  %v5584_v31 = vadd.f32 1.0, %v7541_v52 }
 0x57c   :  { %6029 = vst [vmem:[#allocation10 + $0xd8] sm:$0xff] %v5933_v51  ;;  %v5902_v5 = vmul.f32 %v7543_v46, %v13441_v38  ;;  %7552 = vpow2.f32 %v5744_v27  ;;  %v7545_v0 = vpop.eup %7544 }
 0x57d   :  { %7554 = vrcp.f32 %v5584_v31  ;;  %v5776_v4 = vadd.f32 1.0, %v7545_v0 }
 0x57e   :  { %v5934_v8 = vadd.f32 %v5902_v5, %v5870_v34 }
 0x57f   :  { %7556 = vrcp.f32 %v5776_v4 }
 0x580   :  { %6030 = vst [vmem:[#allocation10 + $0xe0] sm:$0xff] %v5934_v8 }
 0x583   :  { %v7547_v17 = vpop.eup %7546 }
 0x584   :  { %v7549_v18 = vpop.eup %7548  ;;  %v5871_v11 = vmul.f32 %v13442_v53, %v7547_v17 }
 0x585   :  { %v7551_v7 = vpop.eup %7550  ;;  %v5585_v43 = vadd.f32 1.0, %v7549_v18 }
 0x586   :  { %v5903_v23 = vmul.f32 %v7551_v7, %v13443_v24  ;;  %v7553_v57 = vpop.eup %7552 }
 0x587   :  { %7558 = vrcp.f32 %v5585_v43  ;;  %v5777_v25 = vadd.f32 1.0, %v7553_v57  ;;  %v7555_v62 = vpop.eup %7554 }
 0x588   :  { %v5935_v30 = vadd.f32 %v5903_v23, %v5871_v11  ;;  %v5872_v15 = vmul.f32 %v13444_v35, %v7555_v62 }
 0x589   :  { %7560 = vrcp.f32 %v5777_v25  ;;  %v7557_v20 = vpop.eup %7556 }
 0x58a   :  { %6031 = vst [vmem:[#allocation10 + $0xe8] sm:$0xff] %v5935_v30  ;;  %v5904_v61 = vmul.f32 %v7557_v20, %v12590_v44 }
 0x58c   :  { %v5936_v2 = vadd.f32 %v5904_v61, %v5872_v15 }
 0x58e   :  { %6032 = vst [vmem:[#allocation10 + $0xf0] sm:$0xff] %v5936_v2 }
 0x591   :  { %v7559_v40 = vpop.eup %7558 }
 0x592   :  { %v5873_v47 = vmul.f32 %v13445_v3, %v7559_v40 }
 0x593   :  { %v7561_v56 = vpop.eup %7560 }
 0x594   :  { %v5905_v1 = vmul.f32 %v7561_v56, %v12605_v9 }
 0x596   :  { %v5937_v42 = vadd.f32 %v5905_v1, %v5873_v47 }
 0x598   :  { %6033 = vst [vmem:[#allocation10 + $0xf8] sm:$0xff] %v5937_v42 }
 0x599   :  { %7711 = shalt.err (!%p7708_p8)
}
 0x59a   :  { %s7712_s20 = scalar_lea.hbm %s12744_s6, 4096 }
 0x59b   :  { %p7713_p9 = scmp.ne.s32.totalorder %s12744_s6, %s7712_s20  ;;  %p7716_p10 = scmp.lt.u32.totalorder %s7712_s20, %s12744_s6 }
 0x59d   :  { %p7718_p11 = pnand %p7716_p10, %p7713_p9 }
 0x59f   :  { %7721 = shalt.err (!%p7718_p11)
}
 0x5a0   :  { %6069 = dma.vmem_to_hbm [thread:$0]  %s6064_s17, 4096, %s12744_s6, [#allocation9], %s7731_s7, %s7731_s7, %s7732_s8  }
 0x5a1   :  { %7726 = dma.done.wait [#allocation4], 4096  }
 0x5a2   :  { %7727 = vsyncadd [#allocation4], 4294963200 }
 0x5a3   :  { %7728 = dma.done.wait [#allocation9], 8192  }
 0x5a4   :  { %7729 = vsyncadd [#allocation9], 4294959104 }
 0x5a5   :  { %6079 = vsyncpa [#allocation3], 1 }
 0x5a6   :  { %6080 = vsyncpa [#allocation6], 1 }
 0x5a7   :  { %6081 = vsyncpa [#allocation4], 1 }
 0x5a8   :  { %6082 = vsyncpa [#allocation9], 1 }

</bundles_post_ra>
